<compile_context>
chip_gen: v7x
topology: tpu7x:2x2x1
jax: 0.10.0
libtpu: 0.0.40
codegen_flags: <defaults>
</compile_context>

<pallas_src>
import functools

import jax
import jax.numpy as jnp
from jax.experimental import pallas as pl
from jax.experimental.pallas import tpu as pltpu

# order in which packed weights are passed to the kernel (after the 5 activations)
WEIGHT_ORDER = (
    'wqk_s', 'bqk_s', 'wv_s', 'bv_s', 'wo_s', 'bo_s',
    'wq_c', 'bq_c', 'wk_c', 'bk_c', 'wv_c', 'bv_c', 'wo_c', 'bo_c',
    'w1', 'b1', 'w2', 'b2', 'ln_g', 'ln_b',
)


# ----------------------------- fused Pallas kernel ---------------------------

def decoder_stack_kernel(
        tgt_ref, qpos_ref, mem_ref, pos_ref, mask_ref,
        wqk_s_ref, bqk_s_ref, wv_s_ref, bv_s_ref, wo_s_ref, bo_s_ref,
        wq_c_ref, bq_c_ref, wk_c_ref, bk_c_ref, wv_c_ref, bv_c_ref,
        wo_c_ref, bo_c_ref,
        w1_ref, b1_ref, w2_ref, b2_ref, ln_g_ref, ln_b_ref,
        out_ref, *, num_layers, nhead):
    f32, bf16 = jnp.float32, jnp.bfloat16
    H = nhead
    C = tgt_ref.shape[-1]
    Dh = C // H

    # ---- hoist all weight / bias / mask loads out of the layer loop ----
    wqk_s, bqk_s = wqk_s_ref[...], bqk_s_ref[...]
    wv_s, bv_s = wv_s_ref[...], bv_s_ref[...]
    wo_s, bo_s = wo_s_ref[...], bo_s_ref[...]
    wq_c, bq_c = wq_c_ref[...], bq_c_ref[...]
    wk_c, bk_c = wk_c_ref[...], bk_c_ref[...]
    wv_c, bv_c = wv_c_ref[...], bv_c_ref[...]
    wo_c, bo_c = wo_c_ref[...], bo_c_ref[...]
    w1, b1 = w1_ref[...], b1_ref[...]
    w2, b2 = w2_ref[...], b2_ref[...]
    ln_g, ln_b = ln_g_ref[...], ln_b_ref[...]
    mask_row = mask_ref[0]                       # (1, Tm) additive f32

    x = tgt_ref[0]                               # (Tq, C) f32
    qpos = qpos_ref[0]                           # (Tq, C) f32

    def add_ln(xv, rv, i):
        # residual add fused with LayerNorm (eps=1e-5); two-pass variance (stable)
        y = xv + rv
        mu = jnp.mean(y, axis=-1, keepdims=True)
        d = y - mu
        var = jnp.mean(d * d, axis=-1, keepdims=True)
        return d * jax.lax.rsqrt(var + 1e-5) * ln_g[i] + ln_b[i]

    def mha(q_all, k_all, v_all, mask):
        # q_all/k_all: (Tq/Tk, C) bf16 lane-dense, heads contiguous along lanes.
        # Per-head scores/context use static lane slices (no per-head projections);
        # the single wide (C, C) out-projection happens in the caller.
        ctx_heads = []
        for h in range(H):
            sl = slice(h * Dh, (h + 1) * Dh)
            s = jax.lax.dot_general(q_all[:, sl], k_all[:, sl],
                                    (((1,), (1,)), ((), ())),
                                    preferred_element_type=f32)      # (Tq, Tk)
            if mask is not None:
                s = s + mask
            p = jnp.exp(s - jnp.max(s, axis=-1, keepdims=True))
            inv = pl.reciprocal(jnp.sum(p, axis=-1, keepdims=True), approx=True)
            ctx_heads.append(jnp.dot(p.astype(bf16), v_all[:, sl],
                                     preferred_element_type=f32) * inv)
        return jnp.concatenate(ctx_heads, axis=-1).astype(bf16)      # (Tq, C)

    # ---- cross-attention K/V are layer-invariant (shared deepcopy'd weights, fixed
    #      memory): project once with full-width matmuls; memory+pos added in-kernel ----
    mem = mem_ref[0]                             # (Tm, C) f32
    memk_bf = (mem + pos_ref[0]).astype(bf16)    # (Tm, C)  k input = memory + pos
    memv_bf = mem.astype(bf16)                   # (Tm, C)  v input = memory
    kc = (jnp.dot(memk_bf, wk_c, preferred_element_type=f32) + bk_c).astype(bf16)
    vc = (jnp.dot(memv_bf, wv_c, preferred_element_type=f32) + bv_c).astype(bf16)

    def layer_body(_, x):
        # --- self-attention: q = k = x + query_pos, v = x, no mask ---
        xq_bf = (x + qpos).astype(bf16)
        qk = (jnp.dot(xq_bf, wqk_s, preferred_element_type=f32)
              + bqk_s).astype(bf16)                                  # (Tq, 2C) fused Q|K
        vs = (jnp.dot(x.astype(bf16), wv_s, preferred_element_type=f32)
              + bv_s).astype(bf16)                                   # (Tq, C)
        ctx = mha(qk[:, :C], qk[:, C:], vs, None)
        sa = jnp.dot(ctx, wo_s, preferred_element_type=f32) + bo_s   # single wide out-proj
        x = add_ln(x, sa, 0)

        # --- cross-attention: q = x + query_pos, k/v hoisted, key-padding mask ---
        q_c = (jnp.dot((x + qpos).astype(bf16), wq_c,
                       preferred_element_type=f32) + bq_c).astype(bf16)
        ctx = mha(q_c, kc, vc, mask_row)
        ca = jnp.dot(ctx, wo_c, preferred_element_type=f32) + bo_c
        x = add_ln(x, ca, 1)

        # --- feed-forward: linear1 -> relu -> linear2 ---
        h1 = jnp.maximum(jnp.dot(x.astype(bf16), w1,
                                 preferred_element_type=f32) + b1, 0.0)
        ff = jnp.dot(h1.astype(bf16), w2, preferred_element_type=f32) + b2
        return add_ln(x, ff, 2)

    # fori_loop (not an unrolled Python for) bounds live ranges / vreg pressure across
    # layers; kc/vc/weights/mask stay hoisted as loop invariants.
    x = jax.lax.fori_loop(0, num_layers, layer_body, x)

    out_ref[0] = x.astype(out_ref.dtype)


# ----------------------------- host-side weight packing ----------------------

def prepare_weights(p, d_model, nhead):
    """Pack PyTorch-layout f32 params into full-width bf16 matrices for the kernel."""
    Dh = d_model // nhead
    scale = 1.0 / float(Dh) ** 0.5
    bf16, f32 = jnp.bfloat16, jnp.float32
    sa, ca = p['self_attn'], p['cross_attn']
    return {
        # self-attn: fused (C, 2C) Q|K projection (q and k share the x+query_pos input);
        # the 1/sqrt(Dh) softmax scale is folded into the Q half.
        'wqk_s': jnp.concatenate([sa['wq'] * scale, sa['wk']], axis=1).astype(bf16),
        'bqk_s': jnp.concatenate([sa['bq'] * scale, sa['bk']], axis=1).astype(f32),
        'wv_s': sa['wv'].astype(bf16), 'bv_s': sa['bv'].astype(f32),
        'wo_s': sa['wo'].astype(bf16), 'bo_s': sa['bo'].astype(f32),
        # cross-attn: full-width (C, C) projections; scale folded into Q.
        'wq_c': (ca['wq'] * scale).astype(bf16), 'bq_c': (ca['bq'] * scale).astype(f32),
        'wk_c': ca['wk'].astype(bf16), 'bk_c': ca['bk'].astype(f32),
        'wv_c': ca['wv'].astype(bf16), 'bv_c': ca['bv'].astype(f32),
        'wo_c': ca['wo'].astype(bf16), 'bo_c': ca['bo'].astype(f32),
        'w1': p['w1'].astype(bf16), 'b1': p['b1'].astype(f32),
        'w2': p['w2'].astype(bf16), 'b2': p['b2'].astype(f32),
        'ln_g': jnp.stack([p['ln1_g'], p['ln2_g'], p['ln3_g']], axis=0),  # (3,1,C)
        'ln_b': jnp.stack([p['ln1_b'], p['ln2_b'], p['ln3_b']], axis=0),
    }


# ----------------------------- wrapper ----------------------------------------

def _batch_spec(shape):
    nd = len(shape)
    blk = (1,) + tuple(shape[1:])
    return pl.BlockSpec(blk, lambda b, _nd=nd: (b,) + (0,) * (_nd - 1))


def _weight_spec(arr, single_buffer):
    nd = arr.ndim
    idx = lambda b, _nd=nd: (0,) * _nd
    if single_buffer:
        # constant index map -> single-buffer the weight window (halves its VMEM cost)
        return pl.BlockSpec(arr.shape, idx, pipeline_mode=pl.Buffered(1))
    return pl.BlockSpec(arr.shape, idx)


def transformer_decoder(tgt, memory, pad_mask, pos, query_pos, params,
                        num_layers, nhead):
    Tq, B, C = tgt.shape
    Tm = memory.shape[0]

    prep = prepare_weights(params, C, nhead)

    # batch-major, feature-on-lanes layouts for the kernel (memory+pos added in-kernel)
    tgt_b = jnp.transpose(tgt, (1, 0, 2))                  # (B, Tq, C)
    qpos_b = jnp.transpose(query_pos, (1, 0, 2))           # (B, Tq, C)
    mem_b = jnp.transpose(memory, (1, 0, 2))               # (B, Tm, C)
    pos_b = jnp.transpose(pos, (1, 0, 2))                  # (B, Tm, C)
    # PyTorch converts bool key_padding_mask to additive -inf; a large negative value is
    # numerically identical post-softmax and NaN-safe since no row is fully masked.
    mask_b = jnp.where(pad_mask, -1e30, 0.0).astype(jnp.float32).reshape(B, 1, Tm)

    acts = [tgt_b, qpos_b, mem_b, pos_b, mask_b]
    weights = [prep[k] for k in WEIGHT_ORDER]
    kernel = functools.partial(decoder_stack_kernel,
                               num_layers=num_layers, nhead=nhead)

    def build(single_buffer_weights):
        in_specs = ([_batch_spec(a.shape) for a in acts]
                    + [_weight_spec(w, single_buffer_weights) for w in weights])
        return pl.pallas_call(
            kernel,
            out_shape=jax.ShapeDtypeStruct((B, Tq, C), jnp.float32),
            grid=(B,),
            in_specs=in_specs,
            out_specs=pl.BlockSpec((1, Tq, C), lambda b: (b, 0, 0)),
            compiler_params=pltpu.CompilerParams(
                dimension_semantics=("parallel",),
                # explicit scoped-VMEM ceiling (defaults are 16/32 MiB on v5e/v6e);
                # 64 MiB is within every generation's physical VMEM incl. v7x.
                vmem_limit_bytes=64 * 1024 * 1024),
        )

    try:
        out_b = jax.block_until_ready(build(True)(*acts, *weights))
    except Exception:
        # pl.Buffered(1) pipeline_mode unsupported on this jax/libtpu build: fall back
        # to default double-buffered weight windows (identical numerics).
        out_b = build(False)(*acts, *weights)

    return jnp.transpose(out_b, (1, 0, 2))                 # back to (Tq, B, C)


# ----------------------------- parameters -------------------------------------

def init_layer_params(key, d_model, nhead, dim_ff):
    keys = iter(jax.random.split(key, 20))

    def lin(fan_in, fan_out):
        w = jax.random.normal(next(keys), (fan_in, fan_out),
                              jnp.float32) / jnp.sqrt(float(fan_in))
        b = jax.random.normal(next(keys), (1, fan_out), jnp.float32) * 0.01
        return w, b

    p = {}
    for name in ('self_attn', 'cross_attn'):
        wq, bq = lin(d_model, d_model)
        wk, bk = lin(d_model, d_model)
        wv, bv = lin(d_model, d_model)
        wo, bo = lin(d_model, d_model)
        p[name] = dict(wq=wq, bq=bq, wk=wk, bk=bk, wv=wv, bv=bv, wo=wo, bo=bo)
    p['w1'], p['b1'] = lin(d_model, dim_ff)
    p['w2'], p['b2'] = lin(dim_ff, d_model)
    for i in (1, 2, 3):
        p[f'ln{i}_g'] = jnp.ones((1, d_model), jnp.float32)
        p[f'ln{i}_b'] = jnp.zeros((1, d_model), jnp.float32)
    return p


# ----------------------------- main --------------------------------------------

if __name__ == "__main__":
    d_model, nhead, dim_ff, num_layers = 32, 4, 64, 2
    Tq, Tm, B = 8, 16, 2   # 8 object queries, 4x4 spatial memory, batch 2

    key = jax.random.PRNGKey(0)
    k1, k2, k3, k4, kp = jax.random.split(key, 5)
    tgt = jax.random.normal(k1, (Tq, B, d_model), jnp.float32)
    memory = jax.random.normal(k2, (Tm, B, d_model), jnp.float32)
    pos = jax.random.normal(k3, (Tm, B, d_model), jnp.float32)
    query_pos = jax.random.normal(k4, (Tq, B, d_model), jnp.float32)
    # deterministic padding: pad last keys of each batch element
    pad_mask = jnp.zeros((B, Tm), jnp.bool_)
    pad_mask = pad_mask.at[0, 13:].set(True).at[1, 11:].set(True)

    params = init_layer_params(kp, d_model, nhead, dim_ff)

    out = transformer_decoder(tgt, memory, pad_mask, pos, query_pos,
                              params, num_layers, nhead)
    out = jax.block_until_ready(out)
    assert out.shape == (Tq, B, d_model) and out.dtype == jnp.float32
    assert bool(jnp.all(jnp.isfinite(out)))
    print("KERNEL_OK")
</pallas_src>

<mosaic_0001>
module attributes {stable_mosaic.version = 11 : i64} {
  func.func @decoder_stack_kernel(%arg0: i32, %arg1: memref<1x8x32xf32, #tpu.memory_space<vmem>>, %arg2: memref<1x8x32xf32, #tpu.memory_space<vmem>>, %arg3: memref<1x16x32xf32, #tpu.memory_space<vmem>>, %arg4: memref<1x16x32xf32, #tpu.memory_space<vmem>>, %arg5: memref<1x1x16xf32, #tpu.memory_space<vmem>>, %arg6: memref<32x64xbf16, #tpu.memory_space<vmem>>, %arg7: memref<1x64xf32, #tpu.memory_space<vmem>>, %arg8: memref<32x32xbf16, #tpu.memory_space<vmem>>, %arg9: memref<1x32xf32, #tpu.memory_space<vmem>>, %arg10: memref<32x32xbf16, #tpu.memory_space<vmem>>, %arg11: memref<1x32xf32, #tpu.memory_space<vmem>>, %arg12: memref<32x32xbf16, #tpu.memory_space<vmem>>, %arg13: memref<1x32xf32, #tpu.memory_space<vmem>>, %arg14: memref<32x32xbf16, #tpu.memory_space<vmem>>, %arg15: memref<1x32xf32, #tpu.memory_space<vmem>>, %arg16: memref<32x32xbf16, #tpu.memory_space<vmem>>, %arg17: memref<1x32xf32, #tpu.memory_space<vmem>>, %arg18: memref<32x32xbf16, #tpu.memory_space<vmem>>, %arg19: memref<1x32xf32, #tpu.memory_space<vmem>>, %arg20: memref<32x64xbf16, #tpu.memory_space<vmem>>, %arg21: memref<1x64xf32, #tpu.memory_space<vmem>>, %arg22: memref<64x32xbf16, #tpu.memory_space<vmem>>, %arg23: memref<1x32xf32, #tpu.memory_space<vmem>>, %arg24: memref<3x1x32xf32, #tpu.memory_space<vmem>>, %arg25: memref<3x1x32xf32, #tpu.memory_space<vmem>>, %arg26: memref<1x8x32xf32, #tpu.memory_space<vmem>>) attributes {dimension_semantics = [#tpu.dimension_semantics<parallel>], iteration_bounds = array<i64: 2>, scalar_prefetch = 0 : i64, scratch_operands = 0 : i64, tpu.core_type = #tpu.core_type<tc>, window_params = [{transform_indices = @transform_0, window_bounds = array<i64: 1, 8, 32>}, {transform_indices = @transform_1, window_bounds = array<i64: 1, 8, 32>}, {transform_indices = @transform_2, window_bounds = array<i64: 1, 16, 32>}, {transform_indices = @transform_3, window_bounds = array<i64: 1, 16, 32>}, {transform_indices = @transform_4, window_bounds = array<i64: 1, 1, 16>}, {pipeline_mode = #tpu.pipeline_mode<synchronous>, transform_indices = @transform_5, window_bounds = array<i64: 32, 64>}, {pipeline_mode = #tpu.pipeline_mode<synchronous>, transform_indices = @transform_6, window_bounds = array<i64: 1, 64>}, {pipeline_mode = #tpu.pipeline_mode<synchronous>, transform_indices = @transform_7, window_bounds = array<i64: 32, 32>}, {pipeline_mode = #tpu.pipeline_mode<synchronous>, transform_indices = @transform_8, window_bounds = array<i64: 1, 32>}, {pipeline_mode = #tpu.pipeline_mode<synchronous>, transform_indices = @transform_9, window_bounds = array<i64: 32, 32>}, {pipeline_mode = #tpu.pipeline_mode<synchronous>, transform_indices = @transform_10, window_bounds = array<i64: 1, 32>}, {pipeline_mode = #tpu.pipeline_mode<synchronous>, transform_indices = @transform_11, window_bounds = array<i64: 32, 32>}, {pipeline_mode = #tpu.pipeline_mode<synchronous>, transform_indices = @transform_12, window_bounds = array<i64: 1, 32>}, {pipeline_mode = #tpu.pipeline_mode<synchronous>, transform_indices = @transform_13, window_bounds = array<i64: 32, 32>}, {pipeline_mode = #tpu.pipeline_mode<synchronous>, transform_indices = @transform_14, window_bounds = array<i64: 1, 32>}, {pipeline_mode = #tpu.pipeline_mode<synchronous>, transform_indices = @transform_15, window_bounds = array<i64: 32, 32>}, {pipeline_mode = #tpu.pipeline_mode<synchronous>, transform_indices = @transform_16, window_bounds = array<i64: 1, 32>}, {pipeline_mode = #tpu.pipeline_mode<synchronous>, transform_indices = @transform_17, window_bounds = array<i64: 32, 32>}, {pipeline_mode = #tpu.pipeline_mode<synchronous>, transform_indices = @transform_18, window_bounds = array<i64: 1, 32>}, {pipeline_mode = #tpu.pipeline_mode<synchronous>, transform_indices = @transform_19, window_bounds = array<i64: 32, 64>}, {pipeline_mode = #tpu.pipeline_mode<synchronous>, transform_indices = @transform_20, window_bounds = array<i64: 1, 64>}, {pipeline_mode = #tpu.pipeline_mode<synchronous>, transform_indices = @transform_21, window_bounds = array<i64: 64, 32>}, {pipeline_mode = #tpu.pipeline_mode<synchronous>, transform_indices = @transform_22, window_bounds = array<i64: 1, 32>}, {pipeline_mode = #tpu.pipeline_mode<synchronous>, transform_indices = @transform_23, window_bounds = array<i64: 3, 1, 32>}, {pipeline_mode = #tpu.pipeline_mode<synchronous>, transform_indices = @transform_24, window_bounds = array<i64: 3, 1, 32>}, {transform_indices = @transform_25, window_bounds = array<i64: 1, 8, 32>}]} {
    %c0 = arith.constant 0 : index
    %c0_0 = arith.constant 0 : index
    %0 = vector.load %arg6[%c0, %c0_0] : memref<32x64xbf16, #tpu.memory_space<vmem>>, vector<32x64xbf16>
    %c0_1 = arith.constant 0 : index
    %c0_2 = arith.constant 0 : index
    %1 = vector.load %arg7[%c0_1, %c0_2] : memref<1x64xf32, #tpu.memory_space<vmem>>, vector<1x64xf32>
    %c0_3 = arith.constant 0 : index
    %c0_4 = arith.constant 0 : index
    %2 = vector.load %arg8[%c0_3, %c0_4] : memref<32x32xbf16, #tpu.memory_space<vmem>>, vector<32x32xbf16>
    %c0_5 = arith.constant 0 : index
    %c0_6 = arith.constant 0 : index
    %3 = vector.load %arg9[%c0_5, %c0_6] : memref<1x32xf32, #tpu.memory_space<vmem>>, vector<1x32xf32>
    %c0_7 = arith.constant 0 : index
    %c0_8 = arith.constant 0 : index
    %4 = vector.load %arg10[%c0_7, %c0_8] : memref<32x32xbf16, #tpu.memory_space<vmem>>, vector<32x32xbf16>
    %c0_9 = arith.constant 0 : index
    %c0_10 = arith.constant 0 : index
    %5 = vector.load %arg11[%c0_9, %c0_10] : memref<1x32xf32, #tpu.memory_space<vmem>>, vector<1x32xf32>
    %c0_11 = arith.constant 0 : index
    %c0_12 = arith.constant 0 : index
    %6 = vector.load %arg12[%c0_11, %c0_12] : memref<32x32xbf16, #tpu.memory_space<vmem>>, vector<32x32xbf16>
    %c0_13 = arith.constant 0 : index
    %c0_14 = arith.constant 0 : index
    %7 = vector.load %arg13[%c0_13, %c0_14] : memref<1x32xf32, #tpu.memory_space<vmem>>, vector<1x32xf32>
    %c0_15 = arith.constant 0 : index
    %c0_16 = arith.constant 0 : index
    %8 = vector.load %arg14[%c0_15, %c0_16] : memref<32x32xbf16, #tpu.memory_space<vmem>>, vector<32x32xbf16>
    %c0_17 = arith.constant 0 : index
    %c0_18 = arith.constant 0 : index
    %9 = vector.load %arg15[%c0_17, %c0_18] : memref<1x32xf32, #tpu.memory_space<vmem>>, vector<1x32xf32>
    %c0_19 = arith.constant 0 : index
    %c0_20 = arith.constant 0 : index
    %10 = vector.load %arg16[%c0_19, %c0_20] : memref<32x32xbf16, #tpu.memory_space<vmem>>, vector<32x32xbf16>
    %c0_21 = arith.constant 0 : index
    %c0_22 = arith.constant 0 : index
    %11 = vector.load %arg17[%c0_21, %c0_22] : memref<1x32xf32, #tpu.memory_space<vmem>>, vector<1x32xf32>
    %c0_23 = arith.constant 0 : index
    %c0_24 = arith.constant 0 : index
    %12 = vector.load %arg18[%c0_23, %c0_24] : memref<32x32xbf16, #tpu.memory_space<vmem>>, vector<32x32xbf16>
    %c0_25 = arith.constant 0 : index
    %c0_26 = arith.constant 0 : index
    %13 = vector.load %arg19[%c0_25, %c0_26] : memref<1x32xf32, #tpu.memory_space<vmem>>, vector<1x32xf32>
    %c0_27 = arith.constant 0 : index
    %c0_28 = arith.constant 0 : index
    %14 = vector.load %arg20[%c0_27, %c0_28] : memref<32x64xbf16, #tpu.memory_space<vmem>>, vector<32x64xbf16>
    %c0_29 = arith.constant 0 : index
    %c0_30 = arith.constant 0 : index
    %15 = vector.load %arg21[%c0_29, %c0_30] : memref<1x64xf32, #tpu.memory_space<vmem>>, vector<1x64xf32>
    %c0_31 = arith.constant 0 : index
    %c0_32 = arith.constant 0 : index
    %16 = vector.load %arg22[%c0_31, %c0_32] : memref<64x32xbf16, #tpu.memory_space<vmem>>, vector<64x32xbf16>
    %c0_33 = arith.constant 0 : index
    %c0_34 = arith.constant 0 : index
    %17 = vector.load %arg23[%c0_33, %c0_34] : memref<1x32xf32, #tpu.memory_space<vmem>>, vector<1x32xf32>
    %c0_35 = arith.constant 0 : index
    %c0_36 = arith.constant 0 : index
    %c0_37 = arith.constant 0 : index
    %18 = vector.load %arg24[%c0_35, %c0_36, %c0_37] : memref<3x1x32xf32, #tpu.memory_space<vmem>>, vector<3x1x32xf32>
    %c0_38 = arith.constant 0 : index
    %c0_39 = arith.constant 0 : index
    %c0_40 = arith.constant 0 : index
    %19 = vector.load %arg25[%c0_38, %c0_39, %c0_40] : memref<3x1x32xf32, #tpu.memory_space<vmem>>, vector<3x1x32xf32>
    %c0_41 = arith.constant 0 : index
    %c0_42 = arith.constant 0 : index
    %c0_43 = arith.constant 0 : index
    %20 = vector.load %arg5[%c0_41, %c0_42, %c0_43] : memref<1x1x16xf32, #tpu.memory_space<vmem>>, vector<1x1x16xf32>
    %21 = vector.shape_cast %20 : vector<1x1x16xf32> to vector<1x16xf32>
    %c0_44 = arith.constant 0 : index
    %c0_45 = arith.constant 0 : index
    %c0_46 = arith.constant 0 : index
    %22 = vector.load %arg1[%c0_44, %c0_45, %c0_46] : memref<1x8x32xf32, #tpu.memory_space<vmem>>, vector<1x8x32xf32>
    %23 = vector.shape_cast %22 : vector<1x8x32xf32> to vector<8x32xf32>
    %c0_47 = arith.constant 0 : index
    %c0_48 = arith.constant 0 : index
    %c0_49 = arith.constant 0 : index
    %24 = vector.load %arg2[%c0_47, %c0_48, %c0_49] : memref<1x8x32xf32, #tpu.memory_space<vmem>>, vector<1x8x32xf32>
    %25 = vector.shape_cast %24 : vector<1x8x32xf32> to vector<8x32xf32>
    %c0_50 = arith.constant 0 : index
    %c0_51 = arith.constant 0 : index
    %c0_52 = arith.constant 0 : index
    %26 = vector.load %arg3[%c0_50, %c0_51, %c0_52] : memref<1x16x32xf32, #tpu.memory_space<vmem>>, vector<1x16x32xf32>
    %27 = vector.shape_cast %26 : vector<1x16x32xf32> to vector<16x32xf32>
    %c0_53 = arith.constant 0 : index
    %c0_54 = arith.constant 0 : index
    %c0_55 = arith.constant 0 : index
    %28 = vector.load %arg4[%c0_53, %c0_54, %c0_55] : memref<1x16x32xf32, #tpu.memory_space<vmem>>, vector<1x16x32xf32>
    %29 = vector.shape_cast %28 : vector<1x16x32xf32> to vector<16x32xf32>
    %30 = arith.addf %27, %29 : vector<16x32xf32>
    %31 = arith.truncf %30 : vector<16x32xf32> to vector<16x32xbf16>
    %32 = arith.truncf %27 : vector<16x32xf32> to vector<16x32xbf16>
    %cst = arith.constant dense<0.000000e+00> : vector<16x32xf32>
    %33 = tpu.matmul %31, %8, %cst {dimension_numbers = #tpu.dot_dimension_numbers<[1], [0], [0], [1], [0, 0, 1, 1], [], []>} : vector<16x32xbf16>, vector<32x32xbf16>, vector<16x32xf32> -> vector<16x32xf32>
    %34 = vector.broadcast %9 : vector<1x32xf32> to vector<16x32xf32>
    %35 = arith.addf %33, %34 : vector<16x32xf32>
    %36 = arith.truncf %35 : vector<16x32xf32> to vector<16x32xbf16>
    %cst_56 = arith.constant dense<0.000000e+00> : vector<16x32xf32>
    %37 = tpu.matmul %32, %10, %cst_56 {dimension_numbers = #tpu.dot_dimension_numbers<[1], [0], [0], [1], [0, 0, 1, 1], [], []>} : vector<16x32xbf16>, vector<32x32xbf16>, vector<16x32xf32> -> vector<16x32xf32>
    %38 = vector.broadcast %11 : vector<1x32xf32> to vector<16x32xf32>
    %39 = arith.addf %37, %38 : vector<16x32xf32>
    %40 = arith.truncf %39 : vector<16x32xf32> to vector<16x32xbf16>
    %c0_i32 = arith.constant 0 : i32
    %c2_i32 = arith.constant 2 : i32
    %41 = arith.addi %c0_i32, %c2_i32 : i32
    %c1_i32 = arith.constant 1 : i32
    %42 = scf.for %arg27 = %c0_i32 to %41 step %c1_i32 iter_args(%arg28 = %23) -> (vector<8x32xf32>)  : i32 {
      %46 = arith.addf %arg28, %25 : vector<8x32xf32>
      %47 = arith.truncf %46 : vector<8x32xf32> to vector<8x32xbf16>
      %cst_60 = arith.constant dense<0.000000e+00> : vector<8x64xf32>
      %48 = tpu.matmul %47, %0, %cst_60 {dimension_numbers = #tpu.dot_dimension_numbers<[1], [0], [0], [1], [0, 0, 1, 1], [], []>} : vector<8x32xbf16>, vector<32x64xbf16>, vector<8x64xf32> -> vector<8x64xf32>
      %49 = vector.broadcast %1 : vector<1x64xf32> to vector<8x64xf32>
      %50 = arith.addf %48, %49 : vector<8x64xf32>
      %51 = arith.truncf %50 : vector<8x64xf32> to vector<8x64xbf16>
      %52 = arith.truncf %arg28 : vector<8x32xf32> to vector<8x32xbf16>
      %cst_61 = arith.constant dense<0.000000e+00> : vector<8x32xf32>
      %53 = tpu.matmul %52, %2, %cst_61 {dimension_numbers = #tpu.dot_dimension_numbers<[1], [0], [0], [1], [0, 0, 1, 1], [], []>} : vector<8x32xbf16>, vector<32x32xbf16>, vector<8x32xf32> -> vector<8x32xf32>
      %54 = vector.broadcast %3 : vector<1x32xf32> to vector<8x32xf32>
      %55 = arith.addf %53, %54 : vector<8x32xf32>
      %56 = arith.truncf %55 : vector<8x32xf32> to vector<8x32xbf16>
      %57 = vector.extract_strided_slice %51 {offsets = [0, 0], sizes = [8, 32], strides = [1, 1]} : vector<8x64xbf16> to vector<8x32xbf16>
      %58 = vector.extract_strided_slice %51 {offsets = [0, 32], sizes = [8, 32], strides = [1, 1]} : vector<8x64xbf16> to vector<8x32xbf16>
      %59 = vector.extract_strided_slice %57 {offsets = [0, 0], sizes = [8, 8], strides = [1, 1]} : vector<8x32xbf16> to vector<8x8xbf16>
      %60 = vector.extract_strided_slice %58 {offsets = [0, 0], sizes = [8, 8], strides = [1, 1]} : vector<8x32xbf16> to vector<8x8xbf16>
      %cst_62 = arith.constant dense<0.000000e+00> : vector<8x8xf32>
      %61 = tpu.matmul %59, %60, %cst_62 {dimension_numbers = #tpu.dot_dimension_numbers<[1], [1], [0], [0], [0, 0, 1, 0], [], []>} : vector<8x8xbf16>, vector<8x8xbf16>, vector<8x8xf32> -> vector<8x8xf32>
      %cst_63 = arith.constant dense<0xFF800000> : vector<8xf32>
      %62 = vector.multi_reduction <maximumf>, %61, %cst_63 [1] : vector<8x8xf32> to vector<8xf32>
      %63 = vector.shape_cast %62 : vector<8xf32> to vector<8x1xf32>
      %64 = vector.broadcast %63 : vector<8x1xf32> to vector<8x8xf32>
      %65 = arith.subf %61, %64 : vector<8x8xf32>
      %66 = math.exp %65 : vector<8x8xf32>
      %cst_64 = arith.constant dense<0.000000e+00> : vector<8xf32>
      %67 = vector.multi_reduction <add>, %66, %cst_64 [1] : vector<8x8xf32> to vector<8xf32>
      %68 = vector.shape_cast %67 : vector<8xf32> to vector<8x1xf32>
      %69 = tpu.reciprocal %68 {approx = true} : vector<8x1xf32> -> vector<8x1xf32>
      %70 = arith.truncf %66 : vector<8x8xf32> to vector<8x8xbf16>
      %71 = vector.extract_strided_slice %56 {offsets = [0, 0], sizes = [8, 8], strides = [1, 1]} : vector<8x32xbf16> to vector<8x8xbf16>
      %cst_65 = arith.constant dense<0.000000e+00> : vector<8x8xf32>
      %72 = tpu.matmul %70, %71, %cst_65 {dimension_numbers = #tpu.dot_dimension_numbers<[1], [0], [0], [1], [0, 0, 1, 1], [], []>} : vector<8x8xbf16>, vector<8x8xbf16>, vector<8x8xf32> -> vector<8x8xf32>
      %73 = vector.broadcast %69 : vector<8x1xf32> to vector<8x8xf32>
      %74 = arith.mulf %72, %73 : vector<8x8xf32>
      %75 = vector.extract_strided_slice %57 {offsets = [0, 8], sizes = [8, 8], strides = [1, 1]} : vector<8x32xbf16> to vector<8x8xbf16>
      %76 = vector.extract_strided_slice %58 {offsets = [0, 8], sizes = [8, 8], strides = [1, 1]} : vector<8x32xbf16> to vector<8x8xbf16>
      %cst_66 = arith.constant dense<0.000000e+00> : vector<8x8xf32>
      %77 = tpu.matmul %75, %76, %cst_66 {dimension_numbers = #tpu.dot_dimension_numbers<[1], [1], [0], [0], [0, 0, 1, 0], [], []>} : vector<8x8xbf16>, vector<8x8xbf16>, vector<8x8xf32> -> vector<8x8xf32>
      %cst_67 = arith.constant dense<0xFF800000> : vector<8xf32>
      %78 = vector.multi_reduction <maximumf>, %77, %cst_67 [1] : vector<8x8xf32> to vector<8xf32>
      %79 = vector.shape_cast %78 : vector<8xf32> to vector<8x1xf32>
      %80 = vector.broadcast %79 : vector<8x1xf32> to vector<8x8xf32>
      %81 = arith.subf %77, %80 : vector<8x8xf32>
      %82 = math.exp %81 : vector<8x8xf32>
      %cst_68 = arith.constant dense<0.000000e+00> : vector<8xf32>
      %83 = vector.multi_reduction <add>, %82, %cst_68 [1] : vector<8x8xf32> to vector<8xf32>
      %84 = vector.shape_cast %83 : vector<8xf32> to vector<8x1xf32>
      %85 = tpu.reciprocal %84 {approx = true} : vector<8x1xf32> -> vector<8x1xf32>
      %86 = arith.truncf %82 : vector<8x8xf32> to vector<8x8xbf16>
      %87 = vector.extract_strided_slice %56 {offsets = [0, 8], sizes = [8, 8], strides = [1, 1]} : vector<8x32xbf16> to vector<8x8xbf16>
      %cst_69 = arith.constant dense<0.000000e+00> : vector<8x8xf32>
      %88 = tpu.matmul %86, %87, %cst_69 {dimension_numbers = #tpu.dot_dimension_numbers<[1], [0], [0], [1], [0, 0, 1, 1], [], []>} : vector<8x8xbf16>, vector<8x8xbf16>, vector<8x8xf32> -> vector<8x8xf32>
      %89 = vector.broadcast %85 : vector<8x1xf32> to vector<8x8xf32>
      %90 = arith.mulf %88, %89 : vector<8x8xf32>
      %91 = vector.extract_strided_slice %57 {offsets = [0, 16], sizes = [8, 8], strides = [1, 1]} : vector<8x32xbf16> to vector<8x8xbf16>
      %92 = vector.extract_strided_slice %58 {offsets = [0, 16], sizes = [8, 8], strides = [1, 1]} : vector<8x32xbf16> to vector<8x8xbf16>
      %cst_70 = arith.constant dense<0.000000e+00> : vector<8x8xf32>
      %93 = tpu.matmul %91, %92, %cst_70 {dimension_numbers = #tpu.dot_dimension_numbers<[1], [1], [0], [0], [0, 0, 1, 0], [], []>} : vector<8x8xbf16>, vector<8x8xbf16>, vector<8x8xf32> -> vector<8x8xf32>
      %cst_71 = arith.constant dense<0xFF800000> : vector<8xf32>
      %94 = vector.multi_reduction <maximumf>, %93, %cst_71 [1] : vector<8x8xf32> to vector<8xf32>
      %95 = vector.shape_cast %94 : vector<8xf32> to vector<8x1xf32>
      %96 = vector.broadcast %95 : vector<8x1xf32> to vector<8x8xf32>
      %97 = arith.subf %93, %96 : vector<8x8xf32>
      %98 = math.exp %97 : vector<8x8xf32>
      %cst_72 = arith.constant dense<0.000000e+00> : vector<8xf32>
      %99 = vector.multi_reduction <add>, %98, %cst_72 [1] : vector<8x8xf32> to vector<8xf32>
      %100 = vector.shape_cast %99 : vector<8xf32> to vector<8x1xf32>
      %101 = tpu.reciprocal %100 {approx = true} : vector<8x1xf32> -> vector<8x1xf32>
      %102 = arith.truncf %98 : vector<8x8xf32> to vector<8x8xbf16>
      %103 = vector.extract_strided_slice %56 {offsets = [0, 16], sizes = [8, 8], strides = [1, 1]} : vector<8x32xbf16> to vector<8x8xbf16>
      %cst_73 = arith.constant dense<0.000000e+00> : vector<8x8xf32>
      %104 = tpu.matmul %102, %103, %cst_73 {dimension_numbers = #tpu.dot_dimension_numbers<[1], [0], [0], [1], [0, 0, 1, 1], [], []>} : vector<8x8xbf16>, vector<8x8xbf16>, vector<8x8xf32> -> vector<8x8xf32>
      %105 = vector.broadcast %101 : vector<8x1xf32> to vector<8x8xf32>
      %106 = arith.mulf %104, %105 : vector<8x8xf32>
      %107 = vector.extract_strided_slice %57 {offsets = [0, 24], sizes = [8, 8], strides = [1, 1]} : vector<8x32xbf16> to vector<8x8xbf16>
      %108 = vector.extract_strided_slice %58 {offsets = [0, 24], sizes = [8, 8], strides = [1, 1]} : vector<8x32xbf16> to vector<8x8xbf16>
      %cst_74 = arith.constant dense<0.000000e+00> : vector<8x8xf32>
      %109 = tpu.matmul %107, %108, %cst_74 {dimension_numbers = #tpu.dot_dimension_numbers<[1], [1], [0], [0], [0, 0, 1, 0], [], []>} : vector<8x8xbf16>, vector<8x8xbf16>, vector<8x8xf32> -> vector<8x8xf32>
      %cst_75 = arith.constant dense<0xFF800000> : vector<8xf32>
      %110 = vector.multi_reduction <maximumf>, %109, %cst_75 [1] : vector<8x8xf32> to vector<8xf32>
      %111 = vector.shape_cast %110 : vector<8xf32> to vector<8x1xf32>
      %112 = vector.broadcast %111 : vector<8x1xf32> to vector<8x8xf32>
      %113 = arith.subf %109, %112 : vector<8x8xf32>
      %114 = math.exp %113 : vector<8x8xf32>
      %cst_76 = arith.constant dense<0.000000e+00> : vector<8xf32>
      %115 = vector.multi_reduction <add>, %114, %cst_76 [1] : vector<8x8xf32> to vector<8xf32>
      %116 = vector.shape_cast %115 : vector<8xf32> to vector<8x1xf32>
      %117 = tpu.reciprocal %116 {approx = true} : vector<8x1xf32> -> vector<8x1xf32>
      %118 = arith.truncf %114 : vector<8x8xf32> to vector<8x8xbf16>
      %119 = vector.extract_strided_slice %56 {offsets = [0, 24], sizes = [8, 8], strides = [1, 1]} : vector<8x32xbf16> to vector<8x8xbf16>
      %cst_77 = arith.constant dense<0.000000e+00> : vector<8x8xf32>
      %120 = tpu.matmul %118, %119, %cst_77 {dimension_numbers = #tpu.dot_dimension_numbers<[1], [0], [0], [1], [0, 0, 1, 1], [], []>} : vector<8x8xbf16>, vector<8x8xbf16>, vector<8x8xf32> -> vector<8x8xf32>
      %121 = vector.broadcast %117 : vector<8x1xf32> to vector<8x8xf32>
      %122 = arith.mulf %120, %121 : vector<8x8xf32>
      %123 = tpu.concatenate %74, %90, %106, %122 in 1 : vector<8x8xf32>, vector<8x8xf32>, vector<8x8xf32>, vector<8x8xf32> -> vector<8x32xf32>
      %124 = arith.truncf %123 : vector<8x32xf32> to vector<8x32xbf16>
      %cst_78 = arith.constant dense<0.000000e+00> : vector<8x32xf32>
      %125 = tpu.matmul %124, %4, %cst_78 {dimension_numbers = #tpu.dot_dimension_numbers<[1], [0], [0], [1], [0, 0, 1, 1], [], []>} : vector<8x32xbf16>, vector<32x32xbf16>, vector<8x32xf32> -> vector<8x32xf32>
      %126 = vector.broadcast %5 : vector<1x32xf32> to vector<8x32xf32>
      %127 = arith.addf %125, %126 : vector<8x32xf32>
      %128 = arith.addf %arg28, %127 : vector<8x32xf32>
      %cst_79 = arith.constant dense<0.000000e+00> : vector<8xf32>
      %129 = vector.multi_reduction <add>, %128, %cst_79 [1] : vector<8x32xf32> to vector<8xf32>
      %130 = vector.shape_cast %129 : vector<8xf32> to vector<8x1xf32>
      %cst_80 = arith.constant 3.200000e+01 : f32
      %131 = vector.broadcast %cst_80 : f32 to vector<8x1xf32>
      %132 = arith.divf %130, %131 : vector<8x1xf32>
      %133 = vector.broadcast %132 : vector<8x1xf32> to vector<8x32xf32>
      %134 = arith.subf %128, %133 : vector<8x32xf32>
      %135 = arith.mulf %134, %134 : vector<8x32xf32>
      %cst_81 = arith.constant dense<0.000000e+00> : vector<8xf32>
      %136 = vector.multi_reduction <add>, %135, %cst_81 [1] : vector<8x32xf32> to vector<8xf32>
      %137 = vector.shape_cast %136 : vector<8xf32> to vector<8x1xf32>
      %cst_82 = arith.constant 3.200000e+01 : f32
      %138 = vector.broadcast %cst_82 : f32 to vector<8x1xf32>
      %139 = arith.divf %137, %138 : vector<8x1xf32>
      %cst_83 = arith.constant 9.99999974E-6 : f32
      %140 = vector.broadcast %cst_83 : f32 to vector<8x1xf32>
      %141 = arith.addf %139, %140 : vector<8x1xf32>
      %142 = math.rsqrt %141 : vector<8x1xf32>
      %143 = vector.broadcast %142 : vector<8x1xf32> to vector<8x32xf32>
      %144 = arith.mulf %134, %143 : vector<8x32xf32>
      %145 = vector.extract_strided_slice %18 {offsets = [0, 0, 0], sizes = [1, 1, 32], strides = [1, 1, 1]} : vector<3x1x32xf32> to vector<1x1x32xf32>
      %146 = vector.shape_cast %145 : vector<1x1x32xf32> to vector<1x32xf32>
      %147 = vector.broadcast %146 : vector<1x32xf32> to vector<8x32xf32>
      %148 = arith.mulf %144, %147 : vector<8x32xf32>
      %149 = vector.extract_strided_slice %19 {offsets = [0, 0, 0], sizes = [1, 1, 32], strides = [1, 1, 1]} : vector<3x1x32xf32> to vector<1x1x32xf32>
      %150 = vector.shape_cast %149 : vector<1x1x32xf32> to vector<1x32xf32>
      %151 = vector.broadcast %150 : vector<1x32xf32> to vector<8x32xf32>
      %152 = arith.addf %148, %151 : vector<8x32xf32>
      %153 = arith.addf %152, %25 : vector<8x32xf32>
      %154 = arith.truncf %153 : vector<8x32xf32> to vector<8x32xbf16>
      %cst_84 = arith.constant dense<0.000000e+00> : vector<8x32xf32>
      %155 = tpu.matmul %154, %6, %cst_84 {dimension_numbers = #tpu.dot_dimension_numbers<[1], [0], [0], [1], [0, 0, 1, 1], [], []>} : vector<8x32xbf16>, vector<32x32xbf16>, vector<8x32xf32> -> vector<8x32xf32>
      %156 = vector.broadcast %7 : vector<1x32xf32> to vector<8x32xf32>
      %157 = arith.addf %155, %156 : vector<8x32xf32>
      %158 = arith.truncf %157 : vector<8x32xf32> to vector<8x32xbf16>
      %159 = vector.extract_strided_slice %158 {offsets = [0, 0], sizes = [8, 8], strides = [1, 1]} : vector<8x32xbf16> to vector<8x8xbf16>
      %160 = vector.extract_strided_slice %36 {offsets = [0, 0], sizes = [16, 8], strides = [1, 1]} : vector<16x32xbf16> to vector<16x8xbf16>
      %cst_85 = arith.constant dense<0.000000e+00> : vector<8x16xf32>
      %161 = tpu.matmul %159, %160, %cst_85 {dimension_numbers = #tpu.dot_dimension_numbers<[1], [1], [0], [0], [0, 0, 1, 0], [], []>} : vector<8x8xbf16>, vector<16x8xbf16>, vector<8x16xf32> -> vector<8x16xf32>
      %162 = vector.broadcast %21 : vector<1x16xf32> to vector<8x16xf32>
      %163 = arith.addf %161, %162 : vector<8x16xf32>
      %cst_86 = arith.constant dense<0xFF800000> : vector<8xf32>
      %164 = vector.multi_reduction <maximumf>, %163, %cst_86 [1] : vector<8x16xf32> to vector<8xf32>
      %165 = vector.shape_cast %164 : vector<8xf32> to vector<8x1xf32>
      %166 = vector.broadcast %165 : vector<8x1xf32> to vector<8x16xf32>
      %167 = arith.subf %163, %166 : vector<8x16xf32>
      %168 = math.exp %167 : vector<8x16xf32>
      %cst_87 = arith.constant dense<0.000000e+00> : vector<8xf32>
      %169 = vector.multi_reduction <add>, %168, %cst_87 [1] : vector<8x16xf32> to vector<8xf32>
      %170 = vector.shape_cast %169 : vector<8xf32> to vector<8x1xf32>
      %171 = tpu.reciprocal %170 {approx = true} : vector<8x1xf32> -> vector<8x1xf32>
      %172 = arith.truncf %168 : vector<8x16xf32> to vector<8x16xbf16>
      %173 = vector.extract_strided_slice %40 {offsets = [0, 0], sizes = [16, 8], strides = [1, 1]} : vector<16x32xbf16> to vector<16x8xbf16>
      %cst_88 = arith.constant dense<0.000000e+00> : vector<8x8xf32>
      %174 = tpu.matmul %172, %173, %cst_88 {dimension_numbers = #tpu.dot_dimension_numbers<[1], [0], [0], [1], [0, 0, 1, 1], [], []>} : vector<8x16xbf16>, vector<16x8xbf16>, vector<8x8xf32> -> vector<8x8xf32>
      %175 = vector.broadcast %171 : vector<8x1xf32> to vector<8x8xf32>
      %176 = arith.mulf %174, %175 : vector<8x8xf32>
      %177 = vector.extract_strided_slice %158 {offsets = [0, 8], sizes = [8, 8], strides = [1, 1]} : vector<8x32xbf16> to vector<8x8xbf16>
      %178 = vector.extract_strided_slice %36 {offsets = [0, 8], sizes = [16, 8], strides = [1, 1]} : vector<16x32xbf16> to vector<16x8xbf16>
      %cst_89 = arith.constant dense<0.000000e+00> : vector<8x16xf32>
      %179 = tpu.matmul %177, %178, %cst_89 {dimension_numbers = #tpu.dot_dimension_numbers<[1], [1], [0], [0], [0, 0, 1, 0], [], []>} : vector<8x8xbf16>, vector<16x8xbf16>, vector<8x16xf32> -> vector<8x16xf32>
      %180 = vector.broadcast %21 : vector<1x16xf32> to vector<8x16xf32>
      %181 = arith.addf %179, %180 : vector<8x16xf32>
      %cst_90 = arith.constant dense<0xFF800000> : vector<8xf32>
      %182 = vector.multi_reduction <maximumf>, %181, %cst_90 [1] : vector<8x16xf32> to vector<8xf32>
      %183 = vector.shape_cast %182 : vector<8xf32> to vector<8x1xf32>
      %184 = vector.broadcast %183 : vector<8x1xf32> to vector<8x16xf32>
      %185 = arith.subf %181, %184 : vector<8x16xf32>
      %186 = math.exp %185 : vector<8x16xf32>
      %cst_91 = arith.constant dense<0.000000e+00> : vector<8xf32>
      %187 = vector.multi_reduction <add>, %186, %cst_91 [1] : vector<8x16xf32> to vector<8xf32>
      %188 = vector.shape_cast %187 : vector<8xf32> to vector<8x1xf32>
      %189 = tpu.reciprocal %188 {approx = true} : vector<8x1xf32> -> vector<8x1xf32>
      %190 = arith.truncf %186 : vector<8x16xf32> to vector<8x16xbf16>
      %191 = vector.extract_strided_slice %40 {offsets = [0, 8], sizes = [16, 8], strides = [1, 1]} : vector<16x32xbf16> to vector<16x8xbf16>
      %cst_92 = arith.constant dense<0.000000e+00> : vector<8x8xf32>
      %192 = tpu.matmul %190, %191, %cst_92 {dimension_numbers = #tpu.dot_dimension_numbers<[1], [0], [0], [1], [0, 0, 1, 1], [], []>} : vector<8x16xbf16>, vector<16x8xbf16>, vector<8x8xf32> -> vector<8x8xf32>
      %193 = vector.broadcast %189 : vector<8x1xf32> to vector<8x8xf32>
      %194 = arith.mulf %192, %193 : vector<8x8xf32>
      %195 = vector.extract_strided_slice %158 {offsets = [0, 16], sizes = [8, 8], strides = [1, 1]} : vector<8x32xbf16> to vector<8x8xbf16>
      %196 = vector.extract_strided_slice %36 {offsets = [0, 16], sizes = [16, 8], strides = [1, 1]} : vector<16x32xbf16> to vector<16x8xbf16>
      %cst_93 = arith.constant dense<0.000000e+00> : vector<8x16xf32>
      %197 = tpu.matmul %195, %196, %cst_93 {dimension_numbers = #tpu.dot_dimension_numbers<[1], [1], [0], [0], [0, 0, 1, 0], [], []>} : vector<8x8xbf16>, vector<16x8xbf16>, vector<8x16xf32> -> vector<8x16xf32>
      %198 = vector.broadcast %21 : vector<1x16xf32> to vector<8x16xf32>
      %199 = arith.addf %197, %198 : vector<8x16xf32>
      %cst_94 = arith.constant dense<0xFF800000> : vector<8xf32>
      %200 = vector.multi_reduction <maximumf>, %199, %cst_94 [1] : vector<8x16xf32> to vector<8xf32>
      %201 = vector.shape_cast %200 : vector<8xf32> to vector<8x1xf32>
      %202 = vector.broadcast %201 : vector<8x1xf32> to vector<8x16xf32>
      %203 = arith.subf %199, %202 : vector<8x16xf32>
      %204 = math.exp %203 : vector<8x16xf32>
      %cst_95 = arith.constant dense<0.000000e+00> : vector<8xf32>
      %205 = vector.multi_reduction <add>, %204, %cst_95 [1] : vector<8x16xf32> to vector<8xf32>
      %206 = vector.shape_cast %205 : vector<8xf32> to vector<8x1xf32>
      %207 = tpu.reciprocal %206 {approx = true} : vector<8x1xf32> -> vector<8x1xf32>
      %208 = arith.truncf %204 : vector<8x16xf32> to vector<8x16xbf16>
      %209 = vector.extract_strided_slice %40 {offsets = [0, 16], sizes = [16, 8], strides = [1, 1]} : vector<16x32xbf16> to vector<16x8xbf16>
      %cst_96 = arith.constant dense<0.000000e+00> : vector<8x8xf32>
      %210 = tpu.matmul %208, %209, %cst_96 {dimension_numbers = #tpu.dot_dimension_numbers<[1], [0], [0], [1], [0, 0, 1, 1], [], []>} : vector<8x16xbf16>, vector<16x8xbf16>, vector<8x8xf32> -> vector<8x8xf32>
      %211 = vector.broadcast %207 : vector<8x1xf32> to vector<8x8xf32>
      %212 = arith.mulf %210, %211 : vector<8x8xf32>
      %213 = vector.extract_strided_slice %158 {offsets = [0, 24], sizes = [8, 8], strides = [1, 1]} : vector<8x32xbf16> to vector<8x8xbf16>
      %214 = vector.extract_strided_slice %36 {offsets = [0, 24], sizes = [16, 8], strides = [1, 1]} : vector<16x32xbf16> to vector<16x8xbf16>
      %cst_97 = arith.constant dense<0.000000e+00> : vector<8x16xf32>
      %215 = tpu.matmul %213, %214, %cst_97 {dimension_numbers = #tpu.dot_dimension_numbers<[1], [1], [0], [0], [0, 0, 1, 0], [], []>} : vector<8x8xbf16>, vector<16x8xbf16>, vector<8x16xf32> -> vector<8x16xf32>
      %216 = vector.broadcast %21 : vector<1x16xf32> to vector<8x16xf32>
      %217 = arith.addf %215, %216 : vector<8x16xf32>
      %cst_98 = arith.constant dense<0xFF800000> : vector<8xf32>
      %218 = vector.multi_reduction <maximumf>, %217, %cst_98 [1] : vector<8x16xf32> to vector<8xf32>
      %219 = vector.shape_cast %218 : vector<8xf32> to vector<8x1xf32>
      %220 = vector.broadcast %219 : vector<8x1xf32> to vector<8x16xf32>
      %221 = arith.subf %217, %220 : vector<8x16xf32>
      %222 = math.exp %221 : vector<8x16xf32>
      %cst_99 = arith.constant dense<0.000000e+00> : vector<8xf32>
      %223 = vector.multi_reduction <add>, %222, %cst_99 [1] : vector<8x16xf32> to vector<8xf32>
      %224 = vector.shape_cast %223 : vector<8xf32> to vector<8x1xf32>
      %225 = tpu.reciprocal %224 {approx = true} : vector<8x1xf32> -> vector<8x1xf32>
      %226 = arith.truncf %222 : vector<8x16xf32> to vector<8x16xbf16>
      %227 = vector.extract_strided_slice %40 {offsets = [0, 24], sizes = [16, 8], strides = [1, 1]} : vector<16x32xbf16> to vector<16x8xbf16>
      %cst_100 = arith.constant dense<0.000000e+00> : vector<8x8xf32>
      %228 = tpu.matmul %226, %227, %cst_100 {dimension_numbers = #tpu.dot_dimension_numbers<[1], [0], [0], [1], [0, 0, 1, 1], [], []>} : vector<8x16xbf16>, vector<16x8xbf16>, vector<8x8xf32> -> vector<8x8xf32>
      %229 = vector.broadcast %225 : vector<8x1xf32> to vector<8x8xf32>
      %230 = arith.mulf %228, %229 : vector<8x8xf32>
      %231 = tpu.concatenate %176, %194, %212, %230 in 1 : vector<8x8xf32>, vector<8x8xf32>, vector<8x8xf32>, vector<8x8xf32> -> vector<8x32xf32>
      %232 = arith.truncf %231 : vector<8x32xf32> to vector<8x32xbf16>
      %cst_101 = arith.constant dense<0.000000e+00> : vector<8x32xf32>
      %233 = tpu.matmul %232, %12, %cst_101 {dimension_numbers = #tpu.dot_dimension_numbers<[1], [0], [0], [1], [0, 0, 1, 1], [], []>} : vector<8x32xbf16>, vector<32x32xbf16>, vector<8x32xf32> -> vector<8x32xf32>
      %234 = vector.broadcast %13 : vector<1x32xf32> to vector<8x32xf32>
      %235 = arith.addf %233, %234 : vector<8x32xf32>
      %236 = arith.addf %152, %235 : vector<8x32xf32>
      %cst_102 = arith.constant dense<0.000000e+00> : vector<8xf32>
      %237 = vector.multi_reduction <add>, %236, %cst_102 [1] : vector<8x32xf32> to vector<8xf32>
      %238 = vector.shape_cast %237 : vector<8xf32> to vector<8x1xf32>
      %cst_103 = arith.constant 3.200000e+01 : f32
      %239 = vector.broadcast %cst_103 : f32 to vector<8x1xf32>
      %240 = arith.divf %238, %239 : vector<8x1xf32>
      %241 = vector.broadcast %240 : vector<8x1xf32> to vector<8x32xf32>
      %242 = arith.subf %236, %241 : vector<8x32xf32>
      %243 = arith.mulf %242, %242 : vector<8x32xf32>
      %cst_104 = arith.constant dense<0.000000e+00> : vector<8xf32>
      %244 = vector.multi_reduction <add>, %243, %cst_104 [1] : vector<8x32xf32> to vector<8xf32>
      %245 = vector.shape_cast %244 : vector<8xf32> to vector<8x1xf32>
      %cst_105 = arith.constant 3.200000e+01 : f32
      %246 = vector.broadcast %cst_105 : f32 to vector<8x1xf32>
      %247 = arith.divf %245, %246 : vector<8x1xf32>
      %cst_106 = arith.constant 9.99999974E-6 : f32
      %248 = vector.broadcast %cst_106 : f32 to vector<8x1xf32>
      %249 = arith.addf %247, %248 : vector<8x1xf32>
      %250 = math.rsqrt %249 : vector<8x1xf32>
      %251 = vector.broadcast %250 : vector<8x1xf32> to vector<8x32xf32>
      %252 = arith.mulf %242, %251 : vector<8x32xf32>
      %253 = vector.extract_strided_slice %18 {offsets = [1, 0, 0], sizes = [1, 1, 32], strides = [1, 1, 1]} : vector<3x1x32xf32> to vector<1x1x32xf32>
      %254 = vector.shape_cast %253 : vector<1x1x32xf32> to vector<1x32xf32>
      %255 = vector.broadcast %254 : vector<1x32xf32> to vector<8x32xf32>
      %256 = arith.mulf %252, %255 : vector<8x32xf32>
      %257 = vector.extract_strided_slice %19 {offsets = [1, 0, 0], sizes = [1, 1, 32], strides = [1, 1, 1]} : vector<3x1x32xf32> to vector<1x1x32xf32>
      %258 = vector.shape_cast %257 : vector<1x1x32xf32> to vector<1x32xf32>
      %259 = vector.broadcast %258 : vector<1x32xf32> to vector<8x32xf32>
      %260 = arith.addf %256, %259 : vector<8x32xf32>
      %261 = arith.truncf %260 : vector<8x32xf32> to vector<8x32xbf16>
      %cst_107 = arith.constant dense<0.000000e+00> : vector<8x64xf32>
      %262 = tpu.matmul %261, %14, %cst_107 {dimension_numbers = #tpu.dot_dimension_numbers<[1], [0], [0], [1], [0, 0, 1, 1], [], []>} : vector<8x32xbf16>, vector<32x64xbf16>, vector<8x64xf32> -> vector<8x64xf32>
      %263 = vector.broadcast %15 : vector<1x64xf32> to vector<8x64xf32>
      %264 = arith.addf %262, %263 : vector<8x64xf32>
      %cst_108 = arith.constant 0.000000e+00 : f32
      %265 = vector.broadcast %cst_108 : f32 to vector<8x64xf32>
      %266 = arith.maximumf %264, %265 : vector<8x64xf32>
      %267 = arith.truncf %266 : vector<8x64xf32> to vector<8x64xbf16>
      %cst_109 = arith.constant dense<0.000000e+00> : vector<8x32xf32>
      %268 = tpu.matmul %267, %16, %cst_109 {dimension_numbers = #tpu.dot_dimension_numbers<[1], [0], [0], [1], [0, 0, 1, 1], [], []>} : vector<8x64xbf16>, vector<64x32xbf16>, vector<8x32xf32> -> vector<8x32xf32>
      %269 = vector.broadcast %17 : vector<1x32xf32> to vector<8x32xf32>
      %270 = arith.addf %268, %269 : vector<8x32xf32>
      %271 = arith.addf %260, %270 : vector<8x32xf32>
      %cst_110 = arith.constant dense<0.000000e+00> : vector<8xf32>
      %272 = vector.multi_reduction <add>, %271, %cst_110 [1] : vector<8x32xf32> to vector<8xf32>
      %273 = vector.shape_cast %272 : vector<8xf32> to vector<8x1xf32>
      %cst_111 = arith.constant 3.200000e+01 : f32
      %274 = vector.broadcast %cst_111 : f32 to vector<8x1xf32>
      %275 = arith.divf %273, %274 : vector<8x1xf32>
      %276 = vector.broadcast %275 : vector<8x1xf32> to vector<8x32xf32>
      %277 = arith.subf %271, %276 : vector<8x32xf32>
      %278 = arith.mulf %277, %277 : vector<8x32xf32>
      %cst_112 = arith.constant dense<0.000000e+00> : vector<8xf32>
      %279 = vector.multi_reduction <add>, %278, %cst_112 [1] : vector<8x32xf32> to vector<8xf32>
      %280 = vector.shape_cast %279 : vector<8xf32> to vector<8x1xf32>
      %cst_113 = arith.constant 3.200000e+01 : f32
      %281 = vector.broadcast %cst_113 : f32 to vector<8x1xf32>
      %282 = arith.divf %280, %281 : vector<8x1xf32>
      %cst_114 = arith.constant 9.99999974E-6 : f32
      %283 = vector.broadcast %cst_114 : f32 to vector<8x1xf32>
      %284 = arith.addf %282, %283 : vector<8x1xf32>
      %285 = math.rsqrt %284 : vector<8x1xf32>
      %286 = vector.broadcast %285 : vector<8x1xf32> to vector<8x32xf32>
      %287 = arith.mulf %277, %286 : vector<8x32xf32>
      %288 = vector.extract_strided_slice %18 {offsets = [2, 0, 0], sizes = [1, 1, 32], strides = [1, 1, 1]} : vector<3x1x32xf32> to vector<1x1x32xf32>
      %289 = vector.shape_cast %288 : vector<1x1x32xf32> to vector<1x32xf32>
      %290 = vector.broadcast %289 : vector<1x32xf32> to vector<8x32xf32>
      %291 = arith.mulf %287, %290 : vector<8x32xf32>
      %292 = vector.extract_strided_slice %19 {offsets = [2, 0, 0], sizes = [1, 1, 32], strides = [1, 1, 1]} : vector<3x1x32xf32> to vector<1x1x32xf32>
      %293 = vector.shape_cast %292 : vector<1x1x32xf32> to vector<1x32xf32>
      %294 = vector.broadcast %293 : vector<1x32xf32> to vector<8x32xf32>
      %295 = arith.addf %291, %294 : vector<8x32xf32>
      scf.yield %295 : vector<8x32xf32>
    }
    %c0_57 = arith.constant 0 : index
    %c0_58 = arith.constant 0 : index
    %c0_59 = arith.constant 0 : index
    %43 = vector.load %arg26[%c0_57, %c0_58, %c0_59] : memref<1x8x32xf32, #tpu.memory_space<vmem>>, vector<1x8x32xf32>
    %44 = vector.shape_cast %43 : vector<1x8x32xf32> to vector<8x32xf32>
    %45 = vector.shape_cast %42 : vector<8x32xf32> to vector<1x8x32xf32>
    tpu.vector_store %arg26[%c0_57, %c0_58, %c0_59], %45 {strides = array<i32>} : memref<1x8x32xf32, #tpu.memory_space<vmem>>, vector<1x8x32xf32>,
    return
  }
  func.func @transform_0(%arg0: i32) -> (i32, i32, i32) {
    %c0_i32 = arith.constant 0 : i32
    %c0_i32_0 = arith.constant 0 : i32
    %c0_i32_1 = arith.constant 0 : i32
    return %arg0, %c0_i32, %c0_i32_0 : i32, i32, i32
  }
  func.func @transform_1(%arg0: i32) -> (i32, i32, i32) {
    %c0_i32 = arith.constant 0 : i32
    %c0_i32_0 = arith.constant 0 : i32
    %c0_i32_1 = arith.constant 0 : i32
    return %arg0, %c0_i32, %c0_i32_0 : i32, i32, i32
  }
  func.func @transform_2(%arg0: i32) -> (i32, i32, i32) {
    %c0_i32 = arith.constant 0 : i32
    %c0_i32_0 = arith.constant 0 : i32
    %c0_i32_1 = arith.constant 0 : i32
    return %arg0, %c0_i32, %c0_i32_0 : i32, i32, i32
  }
  func.func @transform_3(%arg0: i32) -> (i32, i32, i32) {
    %c0_i32 = arith.constant 0 : i32
    %c0_i32_0 = arith.constant 0 : i32
    %c0_i32_1 = arith.constant 0 : i32
    return %arg0, %c0_i32, %c0_i32_0 : i32, i32, i32
  }
  func.func @transform_4(%arg0: i32) -> (i32, i32, i32) {
    %c0_i32 = arith.constant 0 : i32
    %c0_i32_0 = arith.constant 0 : i32
    %c0_i32_1 = arith.constant 0 : i32
    return %arg0, %c0_i32, %c0_i32_0 : i32, i32, i32
  }
  func.func @transform_5(%arg0: i32) -> (i32, i32) {
    %c0_i32 = arith.constant 0 : i32
    %c0_i32_0 = arith.constant 0 : i32
    %c0_i32_1 = arith.constant 0 : i32
    return %c0_i32, %c0_i32_0 : i32, i32
  }
  func.func @transform_6(%arg0: i32) -> (i32, i32) {
    %c0_i32 = arith.constant 0 : i32
    %c0_i32_0 = arith.constant 0 : i32
    %c0_i32_1 = arith.constant 0 : i32
    return %c0_i32, %c0_i32_0 : i32, i32
  }
  func.func @transform_7(%arg0: i32) -> (i32, i32) {
    %c0_i32 = arith.constant 0 : i32
    %c0_i32_0 = arith.constant 0 : i32
    %c0_i32_1 = arith.constant 0 : i32
    return %c0_i32, %c0_i32_0 : i32, i32
  }
  func.func @transform_8(%arg0: i32) -> (i32, i32) {
    %c0_i32 = arith.constant 0 : i32
    %c0_i32_0 = arith.constant 0 : i32
    %c0_i32_1 = arith.constant 0 : i32
    return %c0_i32, %c0_i32_0 : i32, i32
  }
  func.func @transform_9(%arg0: i32) -> (i32, i32) {
    %c0_i32 = arith.constant 0 : i32
    %c0_i32_0 = arith.constant 0 : i32
    %c0_i32_1 = arith.constant 0 : i32
    return %c0_i32, %c0_i32_0 : i32, i32
  }
  func.func @transform_10(%arg0: i32) -> (i32, i32) {
    %c0_i32 = arith.constant 0 : i32
    %c0_i32_0 = arith.constant 0 : i32
    %c0_i32_1 = arith.constant 0 : i32
    return %c0_i32, %c0_i32_0 : i32, i32
  }
  func.func @transform_11(%arg0: i32) -> (i32, i32) {
    %c0_i32 = arith.constant 0 : i32
    %c0_i32_0 = arith.constant 0 : i32
    %c0_i32_1 = arith.constant 0 : i32
    return %c0_i32, %c0_i32_0 : i32, i32
  }
  func.func @transform_12(%arg0: i32) -> (i32, i32) {
    %c0_i32 = arith.constant 0 : i32
    %c0_i32_0 = arith.constant 0 : i32
    %c0_i32_1 = arith.constant 0 : i32
    return %c0_i32, %c0_i32_0 : i32, i32
  }
  func.func @transform_13(%arg0: i32) -> (i32, i32) {
    %c0_i32 = arith.constant 0 : i32
    %c0_i32_0 = arith.constant 0 : i32
    %c0_i32_1 = arith.constant 0 : i32
    return %c0_i32, %c0_i32_0 : i32, i32
  }
  func.func @transform_14(%arg0: i32) -> (i32, i32) {
    %c0_i32 = arith.constant 0 : i32
    %c0_i32_0 = arith.constant 0 : i32
    %c0_i32_1 = arith.constant 0 : i32
    return %c0_i32, %c0_i32_0 : i32, i32
  }
  func.func @transform_15(%arg0: i32) -> (i32, i32) {
    %c0_i32 = arith.constant 0 : i32
    %c0_i32_0 = arith.constant 0 : i32
    %c0_i32_1 = arith.constant 0 : i32
    return %c0_i32, %c0_i32_0 : i32, i32
  }
  func.func @transform_16(%arg0: i32) -> (i32, i32) {
    %c0_i32 = arith.constant 0 : i32
    %c0_i32_0 = arith.constant 0 : i32
    %c0_i32_1 = arith.constant 0 : i32
    return %c0_i32, %c0_i32_0 : i32, i32
  }
  func.func @transform_17(%arg0: i32) -> (i32, i32) {
    %c0_i32 = arith.constant 0 : i32
    %c0_i32_0 = arith.constant 0 : i32
    %c0_i32_1 = arith.constant 0 : i32
    return %c0_i32, %c0_i32_0 : i32, i32
  }
  func.func @transform_18(%arg0: i32) -> (i32, i32) {
    %c0_i32 = arith.constant 0 : i32
    %c0_i32_0 = arith.constant 0 : i32
    %c0_i32_1 = arith.constant 0 : i32
    return %c0_i32, %c0_i32_0 : i32, i32
  }
  func.func @transform_19(%arg0: i32) -> (i32, i32) {
    %c0_i32 = arith.constant 0 : i32
    %c0_i32_0 = arith.constant 0 : i32
    %c0_i32_1 = arith.constant 0 : i32
    return %c0_i32, %c0_i32_0 : i32, i32
  }
  func.func @transform_20(%arg0: i32) -> (i32, i32) {
    %c0_i32 = arith.constant 0 : i32
    %c0_i32_0 = arith.constant 0 : i32
    %c0_i32_1 = arith.constant 0 : i32
    return %c0_i32, %c0_i32_0 : i32, i32
  }
  func.func @transform_21(%arg0: i32) -> (i32, i32) {
    %c0_i32 = arith.constant 0 : i32
    %c0_i32_0 = arith.constant 0 : i32
    %c0_i32_1 = arith.constant 0 : i32
    return %c0_i32, %c0_i32_0 : i32, i32
  }
  func.func @transform_22(%arg0: i32) -> (i32, i32) {
    %c0_i32 = arith.constant 0 : i32
    %c0_i32_0 = arith.constant 0 : i32
    %c0_i32_1 = arith.constant 0 : i32
    return %c0_i32, %c0_i32_0 : i32, i32
  }
  func.func @transform_23(%arg0: i32) -> (i32, i32, i32) {
    %c0_i32 = arith.constant 0 : i32
    %c0_i32_0 = arith.constant 0 : i32
    %c0_i32_1 = arith.constant 0 : i32
    %c0_i32_2 = arith.constant 0 : i32
    return %c0_i32, %c0_i32_0, %c0_i32_1 : i32, i32, i32
  }
  func.func @transform_24(%arg0: i32) -> (i32, i32, i32) {
    %c0_i32 = arith.constant 0 : i32
    %c0_i32_0 = arith.constant 0 : i32
    %c0_i32_1 = arith.constant 0 : i32
    %c0_i32_2 = arith.constant 0 : i32
    return %c0_i32, %c0_i32_0, %c0_i32_1 : i32, i32, i32
  }
  func.func @transform_25(%arg0: i32) -> (i32, i32, i32) {
    %c0_i32 = arith.constant 0 : i32
    %c0_i32_0 = arith.constant 0 : i32
    %c0_i32_1 = arith.constant 0 : i32
    return %arg0, %c0_i32, %c0_i32_0 : i32, i32, i32
  }
}

module attributes {stable_mosaic.version = 11 : i64} {
  func.func @decoder_stack_kernel(%arg0: i32, %arg1: memref<1x8x32xf32, #tpu.memory_space<vmem>>, %arg2: memref<1x8x32xf32, #tpu.memory_space<vmem>>, %arg3: memref<1x16x32xf32, #tpu.memory_space<vmem>>, %arg4: memref<1x16x32xf32, #tpu.memory_space<vmem>>, %arg5: memref<1x1x16xf32, #tpu.memory_space<vmem>>, %arg6: memref<32x64xbf16, #tpu.memory_space<vmem>>, %arg7: memref<1x64xf32, #tpu.memory_space<vmem>>, %arg8: memref<32x32xbf16, #tpu.memory_space<vmem>>, %arg9: memref<1x32xf32, #tpu.memory_space<vmem>>, %arg10: memref<32x32xbf16, #tpu.memory_space<vmem>>, %arg11: memref<1x32xf32, #tpu.memory_space<vmem>>, %arg12: memref<32x32xbf16, #tpu.memory_space<vmem>>, %arg13: memref<1x32xf32, #tpu.memory_space<vmem>>, %arg14: memref<32x32xbf16, #tpu.memory_space<vmem>>, %arg15: memref<1x32xf32, #tpu.memory_space<vmem>>, %arg16: memref<32x32xbf16, #tpu.memory_space<vmem>>, %arg17: memref<1x32xf32, #tpu.memory_space<vmem>>, %arg18: memref<32x32xbf16, #tpu.memory_space<vmem>>, %arg19: memref<1x32xf32, #tpu.memory_space<vmem>>, %arg20: memref<32x64xbf16, #tpu.memory_space<vmem>>, %arg21: memref<1x64xf32, #tpu.memory_space<vmem>>, %arg22: memref<64x32xbf16, #tpu.memory_space<vmem>>, %arg23: memref<1x32xf32, #tpu.memory_space<vmem>>, %arg24: memref<3x1x32xf32, #tpu.memory_space<vmem>>, %arg25: memref<3x1x32xf32, #tpu.memory_space<vmem>>, %arg26: memref<1x8x32xf32, #tpu.memory_space<vmem>>) attributes {dimension_semantics = [#tpu.dimension_semantics<parallel>], iteration_bounds = array<i64: 2>, scalar_prefetch = 0 : i64, scratch_operands = 0 : i64, tpu.core_type = #tpu.core_type<tc>, window_params = [{transform_indices = @transform_0, window_bounds = array<i64: 1, 8, 32>}, {transform_indices = @transform_1, window_bounds = array<i64: 1, 8, 32>}, {transform_indices = @transform_2, window_bounds = array<i64: 1, 16, 32>}, {transform_indices = @transform_3, window_bounds = array<i64: 1, 16, 32>}, {transform_indices = @transform_4, window_bounds = array<i64: 1, 1, 16>}, {pipeline_mode = #tpu.pipeline_mode<synchronous>, transform_indices = @transform_5, window_bounds = array<i64: 32, 64>}, {pipeline_mode = #tpu.pipeline_mode<synchronous>, transform_indices = @transform_6, window_bounds = array<i64: 1, 64>}, {pipeline_mode = #tpu.pipeline_mode<synchronous>, transform_indices = @transform_7, window_bounds = array<i64: 32, 32>}, {pipeline_mode = #tpu.pipeline_mode<synchronous>, transform_indices = @transform_8, window_bounds = array<i64: 1, 32>}, {pipeline_mode = #tpu.pipeline_mode<synchronous>, transform_indices = @transform_9, window_bounds = array<i64: 32, 32>}, {pipeline_mode = #tpu.pipeline_mode<synchronous>, transform_indices = @transform_10, window_bounds = array<i64: 1, 32>}, {pipeline_mode = #tpu.pipeline_mode<synchronous>, transform_indices = @transform_11, window_bounds = array<i64: 32, 32>}, {pipeline_mode = #tpu.pipeline_mode<synchronous>, transform_indices = @transform_12, window_bounds = array<i64: 1, 32>}, {pipeline_mode = #tpu.pipeline_mode<synchronous>, transform_indices = @transform_13, window_bounds = array<i64: 32, 32>}, {pipeline_mode = #tpu.pipeline_mode<synchronous>, transform_indices = @transform_14, window_bounds = array<i64: 1, 32>}, {pipeline_mode = #tpu.pipeline_mode<synchronous>, transform_indices = @transform_15, window_bounds = array<i64: 32, 32>}, {pipeline_mode = #tpu.pipeline_mode<synchronous>, transform_indices = @transform_16, window_bounds = array<i64: 1, 32>}, {pipeline_mode = #tpu.pipeline_mode<synchronous>, transform_indices = @transform_17, window_bounds = array<i64: 32, 32>}, {pipeline_mode = #tpu.pipeline_mode<synchronous>, transform_indices = @transform_18, window_bounds = array<i64: 1, 32>}, {pipeline_mode = #tpu.pipeline_mode<synchronous>, transform_indices = @transform_19, window_bounds = array<i64: 32, 64>}, {pipeline_mode = #tpu.pipeline_mode<synchronous>, transform_indices = @transform_20, window_bounds = array<i64: 1, 64>}, {pipeline_mode = #tpu.pipeline_mode<synchronous>, transform_indices = @transform_21, window_bounds = array<i64: 64, 32>}, {pipeline_mode = #tpu.pipeline_mode<synchronous>, transform_indices = @transform_22, window_bounds = array<i64: 1, 32>}, {pipeline_mode = #tpu.pipeline_mode<synchronous>, transform_indices = @transform_23, window_bounds = array<i64: 3, 1, 32>}, {pipeline_mode = #tpu.pipeline_mode<synchronous>, transform_indices = @transform_24, window_bounds = array<i64: 3, 1, 32>}, {transform_indices = @transform_25, window_bounds = array<i64: 1, 8, 32>}]} {
    %c0 = arith.constant 0 : index
    %c0_0 = arith.constant 0 : index
    %0 = vector.load %arg6[%c0, %c0_0] : memref<32x64xbf16, #tpu.memory_space<vmem>>, vector<32x64xbf16>
    %c0_1 = arith.constant 0 : index
    %c0_2 = arith.constant 0 : index
    %1 = vector.load %arg7[%c0_1, %c0_2] : memref<1x64xf32, #tpu.memory_space<vmem>>, vector<1x64xf32>
    %c0_3 = arith.constant 0 : index
    %c0_4 = arith.constant 0 : index
    %2 = vector.load %arg8[%c0_3, %c0_4] : memref<32x32xbf16, #tpu.memory_space<vmem>>, vector<32x32xbf16>
    %c0_5 = arith.constant 0 : index
    %c0_6 = arith.constant 0 : index
    %3 = vector.load %arg9[%c0_5, %c0_6] : memref<1x32xf32, #tpu.memory_space<vmem>>, vector<1x32xf32>
    %c0_7 = arith.constant 0 : index
    %c0_8 = arith.constant 0 : index
    %4 = vector.load %arg10[%c0_7, %c0_8] : memref<32x32xbf16, #tpu.memory_space<vmem>>, vector<32x32xbf16>
    %c0_9 = arith.constant 0 : index
    %c0_10 = arith.constant 0 : index
    %5 = vector.load %arg11[%c0_9, %c0_10] : memref<1x32xf32, #tpu.memory_space<vmem>>, vector<1x32xf32>
    %c0_11 = arith.constant 0 : index
    %c0_12 = arith.constant 0 : index
    %6 = vector.load %arg12[%c0_11, %c0_12] : memref<32x32xbf16, #tpu.memory_space<vmem>>, vector<32x32xbf16>
    %c0_13 = arith.constant 0 : index
    %c0_14 = arith.constant 0 : index
    %7 = vector.load %arg13[%c0_13, %c0_14] : memref<1x32xf32, #tpu.memory_space<vmem>>, vector<1x32xf32>
    %c0_15 = arith.constant 0 : index
    %c0_16 = arith.constant 0 : index
    %8 = vector.load %arg14[%c0_15, %c0_16] : memref<32x32xbf16, #tpu.memory_space<vmem>>, vector<32x32xbf16>
    %c0_17 = arith.constant 0 : index
    %c0_18 = arith.constant 0 : index
    %9 = vector.load %arg15[%c0_17, %c0_18] : memref<1x32xf32, #tpu.memory_space<vmem>>, vector<1x32xf32>
    %c0_19 = arith.constant 0 : index
    %c0_20 = arith.constant 0 : index
    %10 = vector.load %arg16[%c0_19, %c0_20] : memref<32x32xbf16, #tpu.memory_space<vmem>>, vector<32x32xbf16>
    %c0_21 = arith.constant 0 : index
    %c0_22 = arith.constant 0 : index
    %11 = vector.load %arg17[%c0_21, %c0_22] : memref<1x32xf32, #tpu.memory_space<vmem>>, vector<1x32xf32>
    %c0_23 = arith.constant 0 : index
    %c0_24 = arith.constant 0 : index
    %12 = vector.load %arg18[%c0_23, %c0_24] : memref<32x32xbf16, #tpu.memory_space<vmem>>, vector<32x32xbf16>
    %c0_25 = arith.constant 0 : index
    %c0_26 = arith.constant 0 : index
    %13 = vector.load %arg19[%c0_25, %c0_26] : memref<1x32xf32, #tpu.memory_space<vmem>>, vector<1x32xf32>
    %c0_27 = arith.constant 0 : index
    %c0_28 = arith.constant 0 : index
    %14 = vector.load %arg20[%c0_27, %c0_28] : memref<32x64xbf16, #tpu.memory_space<vmem>>, vector<32x64xbf16>
    %c0_29 = arith.constant 0 : index
    %c0_30 = arith.constant 0 : index
    %15 = vector.load %arg21[%c0_29, %c0_30] : memref<1x64xf32, #tpu.memory_space<vmem>>, vector<1x64xf32>
    %c0_31 = arith.constant 0 : index
    %c0_32 = arith.constant 0 : index
    %16 = vector.load %arg22[%c0_31, %c0_32] : memref<64x32xbf16, #tpu.memory_space<vmem>>, vector<64x32xbf16>
    %c0_33 = arith.constant 0 : index
    %c0_34 = arith.constant 0 : index
    %17 = vector.load %arg23[%c0_33, %c0_34] : memref<1x32xf32, #tpu.memory_space<vmem>>, vector<1x32xf32>
    %c0_35 = arith.constant 0 : index
    %c0_36 = arith.constant 0 : index
    %c0_37 = arith.constant 0 : index
    %18 = vector.load %arg24[%c0_35, %c0_36, %c0_37] : memref<3x1x32xf32, #tpu.memory_space<vmem>>, vector<3x1x32xf32>
    %c0_38 = arith.constant 0 : index
    %c0_39 = arith.constant 0 : index
    %c0_40 = arith.constant 0 : index
    %19 = vector.load %arg25[%c0_38, %c0_39, %c0_40] : memref<3x1x32xf32, #tpu.memory_space<vmem>>, vector<3x1x32xf32>
    %c0_41 = arith.constant 0 : index
    %c0_42 = arith.constant 0 : index
    %c0_43 = arith.constant 0 : index
    %20 = vector.load %arg5[%c0_41, %c0_42, %c0_43] : memref<1x1x16xf32, #tpu.memory_space<vmem>>, vector<1x1x16xf32>
    %21 = vector.shape_cast %20 : vector<1x1x16xf32> to vector<1x16xf32>
    %c0_44 = arith.constant 0 : index
    %c0_45 = arith.constant 0 : index
    %c0_46 = arith.constant 0 : index
    %22 = vector.load %arg1[%c0_44, %c0_45, %c0_46] : memref<1x8x32xf32, #tpu.memory_space<vmem>>, vector<1x8x32xf32>
    %23 = vector.shape_cast %22 : vector<1x8x32xf32> to vector<8x32xf32>
    %c0_47 = arith.constant 0 : index
    %c0_48 = arith.constant 0 : index
    %c0_49 = arith.constant 0 : index
    %24 = vector.load %arg2[%c0_47, %c0_48, %c0_49] : memref<1x8x32xf32, #tpu.memory_space<vmem>>, vector<1x8x32xf32>
    %25 = vector.shape_cast %24 : vector<1x8x32xf32> to vector<8x32xf32>
    %c0_50 = arith.constant 0 : index
    %c0_51 = arith.constant 0 : index
    %c0_52 = arith.constant 0 : index
    %26 = vector.load %arg3[%c0_50, %c0_51, %c0_52] : memref<1x16x32xf32, #tpu.memory_space<vmem>>, vector<1x16x32xf32>
    %27 = vector.shape_cast %26 : vector<1x16x32xf32> to vector<16x32xf32>
    %c0_53 = arith.constant 0 : index
    %c0_54 = arith.constant 0 : index
    %c0_55 = arith.constant 0 : index
    %28 = vector.load %arg4[%c0_53, %c0_54, %c0_55] : memref<1x16x32xf32, #tpu.memory_space<vmem>>, vector<1x16x32xf32>
    %29 = vector.shape_cast %28 : vector<1x16x32xf32> to vector<16x32xf32>
    %30 = arith.addf %27, %29 : vector<16x32xf32>
    %31 = arith.truncf %30 : vector<16x32xf32> to vector<16x32xbf16>
    %32 = arith.truncf %27 : vector<16x32xf32> to vector<16x32xbf16>
    %cst = arith.constant dense<0.000000e+00> : vector<16x32xf32>
    %33 = tpu.matmul %31, %8, %cst {dimension_numbers = #tpu.dot_dimension_numbers<[1], [0], [0], [1], [0, 0, 1, 1], [], []>} : vector<16x32xbf16>, vector<32x32xbf16>, vector<16x32xf32> -> vector<16x32xf32>
    %34 = vector.broadcast %9 : vector<1x32xf32> to vector<16x32xf32>
    %35 = arith.addf %33, %34 : vector<16x32xf32>
    %36 = arith.truncf %35 : vector<16x32xf32> to vector<16x32xbf16>
    %cst_56 = arith.constant dense<0.000000e+00> : vector<16x32xf32>
    %37 = tpu.matmul %32, %10, %cst_56 {dimension_numbers = #tpu.dot_dimension_numbers<[1], [0], [0], [1], [0, 0, 1, 1], [], []>} : vector<16x32xbf16>, vector<32x32xbf16>, vector<16x32xf32> -> vector<16x32xf32>
    %38 = vector.broadcast %11 : vector<1x32xf32> to vector<16x32xf32>
    %39 = arith.addf %37, %38 : vector<16x32xf32>
    %40 = arith.truncf %39 : vector<16x32xf32> to vector<16x32xbf16>
    %c0_i32 = arith.constant 0 : i32
    %c2_i32 = arith.constant 2 : i32
    %41 = arith.addi %c0_i32, %c2_i32 : i32
    %c1_i32 = arith.constant 1 : i32
    %42 = scf.for %arg27 = %c0_i32 to %41 step %c1_i32 iter_args(%arg28 = %23) -> (vector<8x32xf32>)  : i32 {
      %46 = arith.addf %arg28, %25 : vector<8x32xf32>
      %47 = arith.truncf %46 : vector<8x32xf32> to vector<8x32xbf16>
      %cst_60 = arith.constant dense<0.000000e+00> : vector<8x64xf32>
      %48 = tpu.matmul %47, %0, %cst_60 {dimension_numbers = #tpu.dot_dimension_numbers<[1], [0], [0], [1], [0, 0, 1, 1], [], []>} : vector<8x32xbf16>, vector<32x64xbf16>, vector<8x64xf32> -> vector<8x64xf32>
      %49 = vector.broadcast %1 : vector<1x64xf32> to vector<8x64xf32>
      %50 = arith.addf %48, %49 : vector<8x64xf32>
      %51 = arith.truncf %50 : vector<8x64xf32> to vector<8x64xbf16>
      %52 = arith.truncf %arg28 : vector<8x32xf32> to vector<8x32xbf16>
      %cst_61 = arith.constant dense<0.000000e+00> : vector<8x32xf32>
      %53 = tpu.matmul %52, %2, %cst_61 {dimension_numbers = #tpu.dot_dimension_numbers<[1], [0], [0], [1], [0, 0, 1, 1], [], []>} : vector<8x32xbf16>, vector<32x32xbf16>, vector<8x32xf32> -> vector<8x32xf32>
      %54 = vector.broadcast %3 : vector<1x32xf32> to vector<8x32xf32>
      %55 = arith.addf %53, %54 : vector<8x32xf32>
      %56 = arith.truncf %55 : vector<8x32xf32> to vector<8x32xbf16>
      %57 = vector.extract_strided_slice %51 {offsets = [0, 0], sizes = [8, 32], strides = [1, 1]} : vector<8x64xbf16> to vector<8x32xbf16>
      %58 = vector.extract_strided_slice %51 {offsets = [0, 32], sizes = [8, 32], strides = [1, 1]} : vector<8x64xbf16> to vector<8x32xbf16>
      %59 = vector.extract_strided_slice %57 {offsets = [0, 0], sizes = [8, 8], strides = [1, 1]} : vector<8x32xbf16> to vector<8x8xbf16>
      %60 = vector.extract_strided_slice %58 {offsets = [0, 0], sizes = [8, 8], strides = [1, 1]} : vector<8x32xbf16> to vector<8x8xbf16>
      %cst_62 = arith.constant dense<0.000000e+00> : vector<8x8xf32>
      %61 = tpu.matmul %59, %60, %cst_62 {dimension_numbers = #tpu.dot_dimension_numbers<[1], [1], [0], [0], [0, 0, 1, 0], [], []>} : vector<8x8xbf16>, vector<8x8xbf16>, vector<8x8xf32> -> vector<8x8xf32>
      %cst_63 = arith.constant dense<0xFF800000> : vector<8xf32>
      %62 = vector.multi_reduction <maximumf>, %61, %cst_63 [1] : vector<8x8xf32> to vector<8xf32>
      %63 = vector.shape_cast %62 : vector<8xf32> to vector<8x1xf32>
      %64 = vector.broadcast %63 : vector<8x1xf32> to vector<8x8xf32>
      %65 = arith.subf %61, %64 : vector<8x8xf32>
      %66 = math.exp %65 : vector<8x8xf32>
      %cst_64 = arith.constant dense<0.000000e+00> : vector<8xf32>
      %67 = vector.multi_reduction <add>, %66, %cst_64 [1] : vector<8x8xf32> to vector<8xf32>
      %68 = vector.shape_cast %67 : vector<8xf32> to vector<8x1xf32>
      %69 = tpu.reciprocal %68 {approx = true} : vector<8x1xf32> -> vector<8x1xf32>
      %70 = arith.truncf %66 : vector<8x8xf32> to vector<8x8xbf16>
      %71 = vector.extract_strided_slice %56 {offsets = [0, 0], sizes = [8, 8], strides = [1, 1]} : vector<8x32xbf16> to vector<8x8xbf16>
      %cst_65 = arith.constant dense<0.000000e+00> : vector<8x8xf32>
      %72 = tpu.matmul %70, %71, %cst_65 {dimension_numbers = #tpu.dot_dimension_numbers<[1], [0], [0], [1], [0, 0, 1, 1], [], []>} : vector<8x8xbf16>, vector<8x8xbf16>, vector<8x8xf32> -> vector<8x8xf32>
      %73 = vector.broadcast %69 : vector<8x1xf32> to vector<8x8xf32>
      %74 = arith.mulf %72, %73 : vector<8x8xf32>
      %75 = vector.extract_strided_slice %57 {offsets = [0, 8], sizes = [8, 8], strides = [1, 1]} : vector<8x32xbf16> to vector<8x8xbf16>
      %76 = vector.extract_strided_slice %58 {offsets = [0, 8], sizes = [8, 8], strides = [1, 1]} : vector<8x32xbf16> to vector<8x8xbf16>
      %cst_66 = arith.constant dense<0.000000e+00> : vector<8x8xf32>
      %77 = tpu.matmul %75, %76, %cst_66 {dimension_numbers = #tpu.dot_dimension_numbers<[1], [1], [0], [0], [0, 0, 1, 0], [], []>} : vector<8x8xbf16>, vector<8x8xbf16>, vector<8x8xf32> -> vector<8x8xf32>
      %cst_67 = arith.constant dense<0xFF800000> : vector<8xf32>
      %78 = vector.multi_reduction <maximumf>, %77, %cst_67 [1] : vector<8x8xf32> to vector<8xf32>
      %79 = vector.shape_cast %78 : vector<8xf32> to vector<8x1xf32>
      %80 = vector.broadcast %79 : vector<8x1xf32> to vector<8x8xf32>
      %81 = arith.subf %77, %80 : vector<8x8xf32>
      %82 = math.exp %81 : vector<8x8xf32>
      %cst_68 = arith.constant dense<0.000000e+00> : vector<8xf32>
      %83 = vector.multi_reduction <add>, %82, %cst_68 [1] : vector<8x8xf32> to vector<8xf32>
      %84 = vector.shape_cast %83 : vector<8xf32> to vector<8x1xf32>
      %85 = tpu.reciprocal %84 {approx = true} : vector<8x1xf32> -> vector<8x1xf32>
      %86 = arith.truncf %82 : vector<8x8xf32> to vector<8x8xbf16>
      %87 = vector.extract_strided_slice %56 {offsets = [0, 8], sizes = [8, 8], strides = [1, 1]} : vector<8x32xbf16> to vector<8x8xbf16>
      %cst_69 = arith.constant dense<0.000000e+00> : vector<8x8xf32>
      %88 = tpu.matmul %86, %87, %cst_69 {dimension_numbers = #tpu.dot_dimension_numbers<[1], [0], [0], [1], [0, 0, 1, 1], [], []>} : vector<8x8xbf16>, vector<8x8xbf16>, vector<8x8xf32> -> vector<8x8xf32>
      %89 = vector.broadcast %85 : vector<8x1xf32> to vector<8x8xf32>
      %90 = arith.mulf %88, %89 : vector<8x8xf32>
      %91 = vector.extract_strided_slice %57 {offsets = [0, 16], sizes = [8, 8], strides = [1, 1]} : vector<8x32xbf16> to vector<8x8xbf16>
      %92 = vector.extract_strided_slice %58 {offsets = [0, 16], sizes = [8, 8], strides = [1, 1]} : vector<8x32xbf16> to vector<8x8xbf16>
      %cst_70 = arith.constant dense<0.000000e+00> : vector<8x8xf32>
      %93 = tpu.matmul %91, %92, %cst_70 {dimension_numbers = #tpu.dot_dimension_numbers<[1], [1], [0], [0], [0, 0, 1, 0], [], []>} : vector<8x8xbf16>, vector<8x8xbf16>, vector<8x8xf32> -> vector<8x8xf32>
      %cst_71 = arith.constant dense<0xFF800000> : vector<8xf32>
      %94 = vector.multi_reduction <maximumf>, %93, %cst_71 [1] : vector<8x8xf32> to vector<8xf32>
      %95 = vector.shape_cast %94 : vector<8xf32> to vector<8x1xf32>
      %96 = vector.broadcast %95 : vector<8x1xf32> to vector<8x8xf32>
      %97 = arith.subf %93, %96 : vector<8x8xf32>
      %98 = math.exp %97 : vector<8x8xf32>
      %cst_72 = arith.constant dense<0.000000e+00> : vector<8xf32>
      %99 = vector.multi_reduction <add>, %98, %cst_72 [1] : vector<8x8xf32> to vector<8xf32>
      %100 = vector.shape_cast %99 : vector<8xf32> to vector<8x1xf32>
      %101 = tpu.reciprocal %100 {approx = true} : vector<8x1xf32> -> vector<8x1xf32>
      %102 = arith.truncf %98 : vector<8x8xf32> to vector<8x8xbf16>
      %103 = vector.extract_strided_slice %56 {offsets = [0, 16], sizes = [8, 8], strides = [1, 1]} : vector<8x32xbf16> to vector<8x8xbf16>
      %cst_73 = arith.constant dense<0.000000e+00> : vector<8x8xf32>
      %104 = tpu.matmul %102, %103, %cst_73 {dimension_numbers = #tpu.dot_dimension_numbers<[1], [0], [0], [1], [0, 0, 1, 1], [], []>} : vector<8x8xbf16>, vector<8x8xbf16>, vector<8x8xf32> -> vector<8x8xf32>
      %105 = vector.broadcast %101 : vector<8x1xf32> to vector<8x8xf32>
      %106 = arith.mulf %104, %105 : vector<8x8xf32>
      %107 = vector.extract_strided_slice %57 {offsets = [0, 24], sizes = [8, 8], strides = [1, 1]} : vector<8x32xbf16> to vector<8x8xbf16>
      %108 = vector.extract_strided_slice %58 {offsets = [0, 24], sizes = [8, 8], strides = [1, 1]} : vector<8x32xbf16> to vector<8x8xbf16>
      %cst_74 = arith.constant dense<0.000000e+00> : vector<8x8xf32>
      %109 = tpu.matmul %107, %108, %cst_74 {dimension_numbers = #tpu.dot_dimension_numbers<[1], [1], [0], [0], [0, 0, 1, 0], [], []>} : vector<8x8xbf16>, vector<8x8xbf16>, vector<8x8xf32> -> vector<8x8xf32>
      %cst_75 = arith.constant dense<0xFF800000> : vector<8xf32>
      %110 = vector.multi_reduction <maximumf>, %109, %cst_75 [1] : vector<8x8xf32> to vector<8xf32>
      %111 = vector.shape_cast %110 : vector<8xf32> to vector<8x1xf32>
      %112 = vector.broadcast %111 : vector<8x1xf32> to vector<8x8xf32>
      %113 = arith.subf %109, %112 : vector<8x8xf32>
      %114 = math.exp %113 : vector<8x8xf32>
      %cst_76 = arith.constant dense<0.000000e+00> : vector<8xf32>
      %115 = vector.multi_reduction <add>, %114, %cst_76 [1] : vector<8x8xf32> to vector<8xf32>
      %116 = vector.shape_cast %115 : vector<8xf32> to vector<8x1xf32>
      %117 = tpu.reciprocal %116 {approx = true} : vector<8x1xf32> -> vector<8x1xf32>
      %118 = arith.truncf %114 : vector<8x8xf32> to vector<8x8xbf16>
      %119 = vector.extract_strided_slice %56 {offsets = [0, 24], sizes = [8, 8], strides = [1, 1]} : vector<8x32xbf16> to vector<8x8xbf16>
      %cst_77 = arith.constant dense<0.000000e+00> : vector<8x8xf32>
      %120 = tpu.matmul %118, %119, %cst_77 {dimension_numbers = #tpu.dot_dimension_numbers<[1], [0], [0], [1], [0, 0, 1, 1], [], []>} : vector<8x8xbf16>, vector<8x8xbf16>, vector<8x8xf32> -> vector<8x8xf32>
      %121 = vector.broadcast %117 : vector<8x1xf32> to vector<8x8xf32>
      %122 = arith.mulf %120, %121 : vector<8x8xf32>
      %123 = tpu.concatenate %74, %90, %106, %122 in 1 : vector<8x8xf32>, vector<8x8xf32>, vector<8x8xf32>, vector<8x8xf32> -> vector<8x32xf32>
      %124 = arith.truncf %123 : vector<8x32xf32> to vector<8x32xbf16>
      %cst_78 = arith.constant dense<0.000000e+00> : vector<8x32xf32>
      %125 = tpu.matmul %124, %4, %cst_78 {dimension_numbers = #tpu.dot_dimension_numbers<[1], [0], [0], [1], [0, 0, 1, 1], [], []>} : vector<8x32xbf16>, vector<32x32xbf16>, vector<8x32xf32> -> vector<8x32xf32>
      %126 = vector.broadcast %5 : vector<1x32xf32> to vector<8x32xf32>
      %127 = arith.addf %125, %126 : vector<8x32xf32>
      %128 = arith.addf %arg28, %127 : vector<8x32xf32>
      %cst_79 = arith.constant dense<0.000000e+00> : vector<8xf32>
      %129 = vector.multi_reduction <add>, %128, %cst_79 [1] : vector<8x32xf32> to vector<8xf32>
      %130 = vector.shape_cast %129 : vector<8xf32> to vector<8x1xf32>
      %cst_80 = arith.constant 3.200000e+01 : f32
      %131 = vector.broadcast %cst_80 : f32 to vector<8x1xf32>
      %132 = arith.divf %130, %131 : vector<8x1xf32>
      %133 = vector.broadcast %132 : vector<8x1xf32> to vector<8x32xf32>
      %134 = arith.subf %128, %133 : vector<8x32xf32>
      %135 = arith.mulf %134, %134 : vector<8x32xf32>
      %cst_81 = arith.constant dense<0.000000e+00> : vector<8xf32>
      %136 = vector.multi_reduction <add>, %135, %cst_81 [1] : vector<8x32xf32> to vector<8xf32>
      %137 = vector.shape_cast %136 : vector<8xf32> to vector<8x1xf32>
      %cst_82 = arith.constant 3.200000e+01 : f32
      %138 = vector.broadcast %cst_82 : f32 to vector<8x1xf32>
      %139 = arith.divf %137, %138 : vector<8x1xf32>
      %cst_83 = arith.constant 9.99999974E-6 : f32
      %140 = vector.broadcast %cst_83 : f32 to vector<8x1xf32>
      %141 = arith.addf %139, %140 : vector<8x1xf32>
      %142 = math.rsqrt %141 : vector<8x1xf32>
      %143 = vector.broadcast %142 : vector<8x1xf32> to vector<8x32xf32>
      %144 = arith.mulf %134, %143 : vector<8x32xf32>
      %145 = vector.extract_strided_slice %18 {offsets = [0, 0, 0], sizes = [1, 1, 32], strides = [1, 1, 1]} : vector<3x1x32xf32> to vector<1x1x32xf32>
      %146 = vector.shape_cast %145 : vector<1x1x32xf32> to vector<1x32xf32>
      %147 = vector.broadcast %146 : vector<1x32xf32> to vector<8x32xf32>
      %148 = arith.mulf %144, %147 : vector<8x32xf32>
      %149 = vector.extract_strided_slice %19 {offsets = [0, 0, 0], sizes = [1, 1, 32], strides = [1, 1, 1]} : vector<3x1x32xf32> to vector<1x1x32xf32>
      %150 = vector.shape_cast %149 : vector<1x1x32xf32> to vector<1x32xf32>
      %151 = vector.broadcast %150 : vector<1x32xf32> to vector<8x32xf32>
      %152 = arith.addf %148, %151 : vector<8x32xf32>
      %153 = arith.addf %152, %25 : vector<8x32xf32>
      %154 = arith.truncf %153 : vector<8x32xf32> to vector<8x32xbf16>
      %cst_84 = arith.constant dense<0.000000e+00> : vector<8x32xf32>
      %155 = tpu.matmul %154, %6, %cst_84 {dimension_numbers = #tpu.dot_dimension_numbers<[1], [0], [0], [1], [0, 0, 1, 1], [], []>} : vector<8x32xbf16>, vector<32x32xbf16>, vector<8x32xf32> -> vector<8x32xf32>
      %156 = vector.broadcast %7 : vector<1x32xf32> to vector<8x32xf32>
      %157 = arith.addf %155, %156 : vector<8x32xf32>
      %158 = arith.truncf %157 : vector<8x32xf32> to vector<8x32xbf16>
      %159 = vector.extract_strided_slice %158 {offsets = [0, 0], sizes = [8, 8], strides = [1, 1]} : vector<8x32xbf16> to vector<8x8xbf16>
      %160 = vector.extract_strided_slice %36 {offsets = [0, 0], sizes = [16, 8], strides = [1, 1]} : vector<16x32xbf16> to vector<16x8xbf16>
      %cst_85 = arith.constant dense<0.000000e+00> : vector<8x16xf32>
      %161 = tpu.matmul %159, %160, %cst_85 {dimension_numbers = #tpu.dot_dimension_numbers<[1], [1], [0], [0], [0, 0, 1, 0], [], []>} : vector<8x8xbf16>, vector<16x8xbf16>, vector<8x16xf32> -> vector<8x16xf32>
      %162 = vector.broadcast %21 : vector<1x16xf32> to vector<8x16xf32>
      %163 = arith.addf %161, %162 : vector<8x16xf32>
      %cst_86 = arith.constant dense<0xFF800000> : vector<8xf32>
      %164 = vector.multi_reduction <maximumf>, %163, %cst_86 [1] : vector<8x16xf32> to vector<8xf32>
      %165 = vector.shape_cast %164 : vector<8xf32> to vector<8x1xf32>
      %166 = vector.broadcast %165 : vector<8x1xf32> to vector<8x16xf32>
      %167 = arith.subf %163, %166 : vector<8x16xf32>
      %168 = math.exp %167 : vector<8x16xf32>
      %cst_87 = arith.constant dense<0.000000e+00> : vector<8xf32>
      %169 = vector.multi_reduction <add>, %168, %cst_87 [1] : vector<8x16xf32> to vector<8xf32>
      %170 = vector.shape_cast %169 : vector<8xf32> to vector<8x1xf32>
      %171 = tpu.reciprocal %170 {approx = true} : vector<8x1xf32> -> vector<8x1xf32>
      %172 = arith.truncf %168 : vector<8x16xf32> to vector<8x16xbf16>
      %173 = vector.extract_strided_slice %40 {offsets = [0, 0], sizes = [16, 8], strides = [1, 1]} : vector<16x32xbf16> to vector<16x8xbf16>
      %cst_88 = arith.constant dense<0.000000e+00> : vector<8x8xf32>
      %174 = tpu.matmul %172, %173, %cst_88 {dimension_numbers = #tpu.dot_dimension_numbers<[1], [0], [0], [1], [0, 0, 1, 1], [], []>} : vector<8x16xbf16>, vector<16x8xbf16>, vector<8x8xf32> -> vector<8x8xf32>
      %175 = vector.broadcast %171 : vector<8x1xf32> to vector<8x8xf32>
      %176 = arith.mulf %174, %175 : vector<8x8xf32>
      %177 = vector.extract_strided_slice %158 {offsets = [0, 8], sizes = [8, 8], strides = [1, 1]} : vector<8x32xbf16> to vector<8x8xbf16>
      %178 = vector.extract_strided_slice %36 {offsets = [0, 8], sizes = [16, 8], strides = [1, 1]} : vector<16x32xbf16> to vector<16x8xbf16>
      %cst_89 = arith.constant dense<0.000000e+00> : vector<8x16xf32>
      %179 = tpu.matmul %177, %178, %cst_89 {dimension_numbers = #tpu.dot_dimension_numbers<[1], [1], [0], [0], [0, 0, 1, 0], [], []>} : vector<8x8xbf16>, vector<16x8xbf16>, vector<8x16xf32> -> vector<8x16xf32>
      %180 = vector.broadcast %21 : vector<1x16xf32> to vector<8x16xf32>
      %181 = arith.addf %179, %180 : vector<8x16xf32>
      %cst_90 = arith.constant dense<0xFF800000> : vector<8xf32>
      %182 = vector.multi_reduction <maximumf>, %181, %cst_90 [1] : vector<8x16xf32> to vector<8xf32>
      %183 = vector.shape_cast %182 : vector<8xf32> to vector<8x1xf32>
      %184 = vector.broadcast %183 : vector<8x1xf32> to vector<8x16xf32>
      %185 = arith.subf %181, %184 : vector<8x16xf32>
      %186 = math.exp %185 : vector<8x16xf32>
      %cst_91 = arith.constant dense<0.000000e+00> : vector<8xf32>
      %187 = vector.multi_reduction <add>, %186, %cst_91 [1] : vector<8x16xf32> to vector<8xf32>
      %188 = vector.shape_cast %187 : vector<8xf32> to vector<8x1xf32>
      %189 = tpu.reciprocal %188 {approx = true} : vector<8x1xf32> -> vector<8x1xf32>
      %190 = arith.truncf %186 : vector<8x16xf32> to vector<8x16xbf16>
      %191 = vector.extract_strided_slice %40 {offsets = [0, 8], sizes = [16, 8], strides = [1, 1]} : vector<16x32xbf16> to vector<16x8xbf16>
      %cst_92 = arith.constant dense<0.000000e+00> : vector<8x8xf32>
      %192 = tpu.matmul %190, %191, %cst_92 {dimension_numbers = #tpu.dot_dimension_numbers<[1], [0], [0], [1], [0, 0, 1, 1], [], []>} : vector<8x16xbf16>, vector<16x8xbf16>, vector<8x8xf32> -> vector<8x8xf32>
      %193 = vector.broadcast %189 : vector<8x1xf32> to vector<8x8xf32>
      %194 = arith.mulf %192, %193 : vector<8x8xf32>
      %195 = vector.extract_strided_slice %158 {offsets = [0, 16], sizes = [8, 8], strides = [1, 1]} : vector<8x32xbf16> to vector<8x8xbf16>
      %196 = vector.extract_strided_slice %36 {offsets = [0, 16], sizes = [16, 8], strides = [1, 1]} : vector<16x32xbf16> to vector<16x8xbf16>
      %cst_93 = arith.constant dense<0.000000e+00> : vector<8x16xf32>
      %197 = tpu.matmul %195, %196, %cst_93 {dimension_numbers = #tpu.dot_dimension_numbers<[1], [1], [0], [0], [0, 0, 1, 0], [], []>} : vector<8x8xbf16>, vector<16x8xbf16>, vector<8x16xf32> -> vector<8x16xf32>
      %198 = vector.broadcast %21 : vector<1x16xf32> to vector<8x16xf32>
      %199 = arith.addf %197, %198 : vector<8x16xf32>
      %cst_94 = arith.constant dense<0xFF800000> : vector<8xf32>
      %200 = vector.multi_reduction <maximumf>, %199, %cst_94 [1] : vector<8x16xf32> to vector<8xf32>
      %201 = vector.shape_cast %200 : vector<8xf32> to vector<8x1xf32>
      %202 = vector.broadcast %201 : vector<8x1xf32> to vector<8x16xf32>
      %203 = arith.subf %199, %202 : vector<8x16xf32>
      %204 = math.exp %203 : vector<8x16xf32>
      %cst_95 = arith.constant dense<0.000000e+00> : vector<8xf32>
      %205 = vector.multi_reduction <add>, %204, %cst_95 [1] : vector<8x16xf32> to vector<8xf32>
      %206 = vector.shape_cast %205 : vector<8xf32> to vector<8x1xf32>
      %207 = tpu.reciprocal %206 {approx = true} : vector<8x1xf32> -> vector<8x1xf32>
      %208 = arith.truncf %204 : vector<8x16xf32> to vector<8x16xbf16>
      %209 = vector.extract_strided_slice %40 {offsets = [0, 16], sizes = [16, 8], strides = [1, 1]} : vector<16x32xbf16> to vector<16x8xbf16>
      %cst_96 = arith.constant dense<0.000000e+00> : vector<8x8xf32>
      %210 = tpu.matmul %208, %209, %cst_96 {dimension_numbers = #tpu.dot_dimension_numbers<[1], [0], [0], [1], [0, 0, 1, 1], [], []>} : vector<8x16xbf16>, vector<16x8xbf16>, vector<8x8xf32> -> vector<8x8xf32>
      %211 = vector.broadcast %207 : vector<8x1xf32> to vector<8x8xf32>
      %212 = arith.mulf %210, %211 : vector<8x8xf32>
      %213 = vector.extract_strided_slice %158 {offsets = [0, 24], sizes = [8, 8], strides = [1, 1]} : vector<8x32xbf16> to vector<8x8xbf16>
      %214 = vector.extract_strided_slice %36 {offsets = [0, 24], sizes = [16, 8], strides = [1, 1]} : vector<16x32xbf16> to vector<16x8xbf16>
      %cst_97 = arith.constant dense<0.000000e+00> : vector<8x16xf32>
      %215 = tpu.matmul %213, %214, %cst_97 {dimension_numbers = #tpu.dot_dimension_numbers<[1], [1], [0], [0], [0, 0, 1, 0], [], []>} : vector<8x8xbf16>, vector<16x8xbf16>, vector<8x16xf32> -> vector<8x16xf32>
      %216 = vector.broadcast %21 : vector<1x16xf32> to vector<8x16xf32>
      %217 = arith.addf %215, %216 : vector<8x16xf32>
      %cst_98 = arith.constant dense<0xFF800000> : vector<8xf32>
      %218 = vector.multi_reduction <maximumf>, %217, %cst_98 [1] : vector<8x16xf32> to vector<8xf32>
      %219 = vector.shape_cast %218 : vector<8xf32> to vector<8x1xf32>
      %220 = vector.broadcast %219 : vector<8x1xf32> to vector<8x16xf32>
      %221 = arith.subf %217, %220 : vector<8x16xf32>
      %222 = math.exp %221 : vector<8x16xf32>
      %cst_99 = arith.constant dense<0.000000e+00> : vector<8xf32>
      %223 = vector.multi_reduction <add>, %222, %cst_99 [1] : vector<8x16xf32> to vector<8xf32>
      %224 = vector.shape_cast %223 : vector<8xf32> to vector<8x1xf32>
      %225 = tpu.reciprocal %224 {approx = true} : vector<8x1xf32> -> vector<8x1xf32>
      %226 = arith.truncf %222 : vector<8x16xf32> to vector<8x16xbf16>
      %227 = vector.extract_strided_slice %40 {offsets = [0, 24], sizes = [16, 8], strides = [1, 1]} : vector<16x32xbf16> to vector<16x8xbf16>
      %cst_100 = arith.constant dense<0.000000e+00> : vector<8x8xf32>
      %228 = tpu.matmul %226, %227, %cst_100 {dimension_numbers = #tpu.dot_dimension_numbers<[1], [0], [0], [1], [0, 0, 1, 1], [], []>} : vector<8x16xbf16>, vector<16x8xbf16>, vector<8x8xf32> -> vector<8x8xf32>
      %229 = vector.broadcast %225 : vector<8x1xf32> to vector<8x8xf32>
      %230 = arith.mulf %228, %229 : vector<8x8xf32>
      %231 = tpu.concatenate %176, %194, %212, %230 in 1 : vector<8x8xf32>, vector<8x8xf32>, vector<8x8xf32>, vector<8x8xf32> -> vector<8x32xf32>
      %232 = arith.truncf %231 : vector<8x32xf32> to vector<8x32xbf16>
      %cst_101 = arith.constant dense<0.000000e+00> : vector<8x32xf32>
      %233 = tpu.matmul %232, %12, %cst_101 {dimension_numbers = #tpu.dot_dimension_numbers<[1], [0], [0], [1], [0, 0, 1, 1], [], []>} : vector<8x32xbf16>, vector<32x32xbf16>, vector<8x32xf32> -> vector<8x32xf32>
      %234 = vector.broadcast %13 : vector<1x32xf32> to vector<8x32xf32>
      %235 = arith.addf %233, %234 : vector<8x32xf32>
      %236 = arith.addf %152, %235 : vector<8x32xf32>
      %cst_102 = arith.constant dense<0.000000e+00> : vector<8xf32>
      %237 = vector.multi_reduction <add>, %236, %cst_102 [1] : vector<8x32xf32> to vector<8xf32>
      %238 = vector.shape_cast %237 : vector<8xf32> to vector<8x1xf32>
      %cst_103 = arith.constant 3.200000e+01 : f32
      %239 = vector.broadcast %cst_103 : f32 to vector<8x1xf32>
      %240 = arith.divf %238, %239 : vector<8x1xf32>
      %241 = vector.broadcast %240 : vector<8x1xf32> to vector<8x32xf32>
      %242 = arith.subf %236, %241 : vector<8x32xf32>
      %243 = arith.mulf %242, %242 : vector<8x32xf32>
      %cst_104 = arith.constant dense<0.000000e+00> : vector<8xf32>
      %244 = vector.multi_reduction <add>, %243, %cst_104 [1] : vector<8x32xf32> to vector<8xf32>
      %245 = vector.shape_cast %244 : vector<8xf32> to vector<8x1xf32>
      %cst_105 = arith.constant 3.200000e+01 : f32
      %246 = vector.broadcast %cst_105 : f32 to vector<8x1xf32>
      %247 = arith.divf %245, %246 : vector<8x1xf32>
      %cst_106 = arith.constant 9.99999974E-6 : f32
      %248 = vector.broadcast %cst_106 : f32 to vector<8x1xf32>
      %249 = arith.addf %247, %248 : vector<8x1xf32>
      %250 = math.rsqrt %249 : vector<8x1xf32>
      %251 = vector.broadcast %250 : vector<8x1xf32> to vector<8x32xf32>
      %252 = arith.mulf %242, %251 : vector<8x32xf32>
      %253 = vector.extract_strided_slice %18 {offsets = [1, 0, 0], sizes = [1, 1, 32], strides = [1, 1, 1]} : vector<3x1x32xf32> to vector<1x1x32xf32>
      %254 = vector.shape_cast %253 : vector<1x1x32xf32> to vector<1x32xf32>
      %255 = vector.broadcast %254 : vector<1x32xf32> to vector<8x32xf32>
      %256 = arith.mulf %252, %255 : vector<8x32xf32>
      %257 = vector.extract_strided_slice %19 {offsets = [1, 0, 0], sizes = [1, 1, 32], strides = [1, 1, 1]} : vector<3x1x32xf32> to vector<1x1x32xf32>
      %258 = vector.shape_cast %257 : vector<1x1x32xf32> to vector<1x32xf32>
      %259 = vector.broadcast %258 : vector<1x32xf32> to vector<8x32xf32>
      %260 = arith.addf %256, %259 : vector<8x32xf32>
      %261 = arith.truncf %260 : vector<8x32xf32> to vector<8x32xbf16>
      %cst_107 = arith.constant dense<0.000000e+00> : vector<8x64xf32>
      %262 = tpu.matmul %261, %14, %cst_107 {dimension_numbers = #tpu.dot_dimension_numbers<[1], [0], [0], [1], [0, 0, 1, 1], [], []>} : vector<8x32xbf16>, vector<32x64xbf16>, vector<8x64xf32> -> vector<8x64xf32>
      %263 = vector.broadcast %15 : vector<1x64xf32> to vector<8x64xf32>
      %264 = arith.addf %262, %263 : vector<8x64xf32>
      %cst_108 = arith.constant 0.000000e+00 : f32
      %265 = vector.broadcast %cst_108 : f32 to vector<8x64xf32>
      %266 = arith.maximumf %264, %265 : vector<8x64xf32>
      %267 = arith.truncf %266 : vector<8x64xf32> to vector<8x64xbf16>
      %cst_109 = arith.constant dense<0.000000e+00> : vector<8x32xf32>
      %268 = tpu.matmul %267, %16, %cst_109 {dimension_numbers = #tpu.dot_dimension_numbers<[1], [0], [0], [1], [0, 0, 1, 1], [], []>} : vector<8x64xbf16>, vector<64x32xbf16>, vector<8x32xf32> -> vector<8x32xf32>
      %269 = vector.broadcast %17 : vector<1x32xf32> to vector<8x32xf32>
      %270 = arith.addf %268, %269 : vector<8x32xf32>
      %271 = arith.addf %260, %270 : vector<8x32xf32>
      %cst_110 = arith.constant dense<0.000000e+00> : vector<8xf32>
      %272 = vector.multi_reduction <add>, %271, %cst_110 [1] : vector<8x32xf32> to vector<8xf32>
      %273 = vector.shape_cast %272 : vector<8xf32> to vector<8x1xf32>
      %cst_111 = arith.constant 3.200000e+01 : f32
      %274 = vector.broadcast %cst_111 : f32 to vector<8x1xf32>
      %275 = arith.divf %273, %274 : vector<8x1xf32>
      %276 = vector.broadcast %275 : vector<8x1xf32> to vector<8x32xf32>
      %277 = arith.subf %271, %276 : vector<8x32xf32>
      %278 = arith.mulf %277, %277 : vector<8x32xf32>
      %cst_112 = arith.constant dense<0.000000e+00> : vector<8xf32>
      %279 = vector.multi_reduction <add>, %278, %cst_112 [1] : vector<8x32xf32> to vector<8xf32>
      %280 = vector.shape_cast %279 : vector<8xf32> to vector<8x1xf32>
      %cst_113 = arith.constant 3.200000e+01 : f32
      %281 = vector.broadcast %cst_113 : f32 to vector<8x1xf32>
      %282 = arith.divf %280, %281 : vector<8x1xf32>
      %cst_114 = arith.constant 9.99999974E-6 : f32
      %283 = vector.broadcast %cst_114 : f32 to vector<8x1xf32>
      %284 = arith.addf %282, %283 : vector<8x1xf32>
      %285 = math.rsqrt %284 : vector<8x1xf32>
      %286 = vector.broadcast %285 : vector<8x1xf32> to vector<8x32xf32>
      %287 = arith.mulf %277, %286 : vector<8x32xf32>
      %288 = vector.extract_strided_slice %18 {offsets = [2, 0, 0], sizes = [1, 1, 32], strides = [1, 1, 1]} : vector<3x1x32xf32> to vector<1x1x32xf32>
      %289 = vector.shape_cast %288 : vector<1x1x32xf32> to vector<1x32xf32>
      %290 = vector.broadcast %289 : vector<1x32xf32> to vector<8x32xf32>
      %291 = arith.mulf %287, %290 : vector<8x32xf32>
      %292 = vector.extract_strided_slice %19 {offsets = [2, 0, 0], sizes = [1, 1, 32], strides = [1, 1, 1]} : vector<3x1x32xf32> to vector<1x1x32xf32>
      %293 = vector.shape_cast %292 : vector<1x1x32xf32> to vector<1x32xf32>
      %294 = vector.broadcast %293 : vector<1x32xf32> to vector<8x32xf32>
      %295 = arith.addf %291, %294 : vector<8x32xf32>
      scf.yield %295 : vector<8x32xf32>
    }
    %c0_57 = arith.constant 0 : index
    %c0_58 = arith.constant 0 : index
    %c0_59 = arith.constant 0 : index
    %43 = vector.load %arg26[%c0_57, %c0_58, %c0_59] : memref<1x8x32xf32, #tpu.memory_space<vmem>>, vector<1x8x32xf32>
    %44 = vector.shape_cast %43 : vector<1x8x32xf32> to vector<8x32xf32>
    %45 = vector.shape_cast %42 : vector<8x32xf32> to vector<1x8x32xf32>
    tpu.vector_store %arg26[%c0_57, %c0_58, %c0_59], %45 {strides = array<i32>} : memref<1x8x32xf32, #tpu.memory_space<vmem>>, vector<1x8x32xf32>,
    return
  }
  func.func @transform_0(%arg0: i32) -> (i32, i32, i32) {
    %c0_i32 = arith.constant 0 : i32
    %c0_i32_0 = arith.constant 0 : i32
    %c0_i32_1 = arith.constant 0 : i32
    return %arg0, %c0_i32, %c0_i32_0 : i32, i32, i32
  }
  func.func @transform_1(%arg0: i32) -> (i32, i32, i32) {
    %c0_i32 = arith.constant 0 : i32
    %c0_i32_0 = arith.constant 0 : i32
    %c0_i32_1 = arith.constant 0 : i32
    return %arg0, %c0_i32, %c0_i32_0 : i32, i32, i32
  }
  func.func @transform_2(%arg0: i32) -> (i32, i32, i32) {
    %c0_i32 = arith.constant 0 : i32
    %c0_i32_0 = arith.constant 0 : i32
    %c0_i32_1 = arith.constant 0 : i32
    return %arg0, %c0_i32, %c0_i32_0 : i32, i32, i32
  }
  func.func @transform_3(%arg0: i32) -> (i32, i32, i32) {
    %c0_i32 = arith.constant 0 : i32
    %c0_i32_0 = arith.constant 0 : i32
    %c0_i32_1 = arith.constant 0 : i32
    return %arg0, %c0_i32, %c0_i32_0 : i32, i32, i32
  }
  func.func @transform_4(%arg0: i32) -> (i32, i32, i32) {
    %c0_i32 = arith.constant 0 : i32
    %c0_i32_0 = arith.constant 0 : i32
    %c0_i32_1 = arith.constant 0 : i32
    return %arg0, %c0_i32, %c0_i32_0 : i32, i32, i32
  }
  func.func @transform_5(%arg0: i32) -> (i32, i32) {
    %c0_i32 = arith.constant 0 : i32
    %c0_i32_0 = arith.constant 0 : i32
    %c0_i32_1 = arith.constant 0 : i32
    return %c0_i32, %c0_i32_0 : i32, i32
  }
  func.func @transform_6(%arg0: i32) -> (i32, i32) {
    %c0_i32 = arith.constant 0 : i32
    %c0_i32_0 = arith.constant 0 : i32
    %c0_i32_1 = arith.constant 0 : i32
    return %c0_i32, %c0_i32_0 : i32, i32
  }
  func.func @transform_7(%arg0: i32) -> (i32, i32) {
    %c0_i32 = arith.constant 0 : i32
    %c0_i32_0 = arith.constant 0 : i32
    %c0_i32_1 = arith.constant 0 : i32
    return %c0_i32, %c0_i32_0 : i32, i32
  }
  func.func @transform_8(%arg0: i32) -> (i32, i32) {
    %c0_i32 = arith.constant 0 : i32
    %c0_i32_0 = arith.constant 0 : i32
    %c0_i32_1 = arith.constant 0 : i32
    return %c0_i32, %c0_i32_0 : i32, i32
  }
  func.func @transform_9(%arg0: i32) -> (i32, i32) {
    %c0_i32 = arith.constant 0 : i32
    %c0_i32_0 = arith.constant 0 : i32
    %c0_i32_1 = arith.constant 0 : i32
    return %c0_i32, %c0_i32_0 : i32, i32
  }
  func.func @transform_10(%arg0: i32) -> (i32, i32) {
    %c0_i32 = arith.constant 0 : i32
    %c0_i32_0 = arith.constant 0 : i32
    %c0_i32_1 = arith.constant 0 : i32
    return %c0_i32, %c0_i32_0 : i32, i32
  }
  func.func @transform_11(%arg0: i32) -> (i32, i32) {
    %c0_i32 = arith.constant 0 : i32
    %c0_i32_0 = arith.constant 0 : i32
    %c0_i32_1 = arith.constant 0 : i32
    return %c0_i32, %c0_i32_0 : i32, i32
  }
  func.func @transform_12(%arg0: i32) -> (i32, i32) {
    %c0_i32 = arith.constant 0 : i32
    %c0_i32_0 = arith.constant 0 : i32
    %c0_i32_1 = arith.constant 0 : i32
    return %c0_i32, %c0_i32_0 : i32, i32
  }
  func.func @transform_13(%arg0: i32) -> (i32, i32) {
    %c0_i32 = arith.constant 0 : i32
    %c0_i32_0 = arith.constant 0 : i32
    %c0_i32_1 = arith.constant 0 : i32
    return %c0_i32, %c0_i32_0 : i32, i32
  }
  func.func @transform_14(%arg0: i32) -> (i32, i32) {
    %c0_i32 = arith.constant 0 : i32
    %c0_i32_0 = arith.constant 0 : i32
    %c0_i32_1 = arith.constant 0 : i32
    return %c0_i32, %c0_i32_0 : i32, i32
  }
  func.func @transform_15(%arg0: i32) -> (i32, i32) {
    %c0_i32 = arith.constant 0 : i32
    %c0_i32_0 = arith.constant 0 : i32
    %c0_i32_1 = arith.constant 0 : i32
    return %c0_i32, %c0_i32_0 : i32, i32
  }
  func.func @transform_16(%arg0: i32) -> (i32, i32) {
    %c0_i32 = arith.constant 0 : i32
    %c0_i32_0 = arith.constant 0 : i32
    %c0_i32_1 = arith.constant 0 : i32
    return %c0_i32, %c0_i32_0 : i32, i32
  }
  func.func @transform_17(%arg0: i32) -> (i32, i32) {
    %c0_i32 = arith.constant 0 : i32
    %c0_i32_0 = arith.constant 0 : i32
    %c0_i32_1 = arith.constant 0 : i32
    return %c0_i32, %c0_i32_0 : i32, i32
  }
  func.func @transform_18(%arg0: i32) -> (i32, i32) {
    %c0_i32 = arith.constant 0 : i32
    %c0_i32_0 = arith.constant 0 : i32
    %c0_i32_1 = arith.constant 0 : i32
    return %c0_i32, %c0_i32_0 : i32, i32
  }
  func.func @transform_19(%arg0: i32) -> (i32, i32) {
    %c0_i32 = arith.constant 0 : i32
    %c0_i32_0 = arith.constant 0 : i32
    %c0_i32_1 = arith.constant 0 : i32
    return %c0_i32, %c0_i32_0 : i32, i32
  }
  func.func @transform_20(%arg0: i32) -> (i32, i32) {
    %c0_i32 = arith.constant 0 : i32
    %c0_i32_0 = arith.constant 0 : i32
    %c0_i32_1 = arith.constant 0 : i32
    return %c0_i32, %c0_i32_0 : i32, i32
  }
  func.func @transform_21(%arg0: i32) -> (i32, i32) {
    %c0_i32 = arith.constant 0 : i32
    %c0_i32_0 = arith.constant 0 : i32
    %c0_i32_1 = arith.constant 0 : i32
    return %c0_i32, %c0_i32_0 : i32, i32
  }
  func.func @transform_22(%arg0: i32) -> (i32, i32) {
    %c0_i32 = arith.constant 0 : i32
    %c0_i32_0 = arith.constant 0 : i32
    %c0_i32_1 = arith.constant 0 : i32
    return %c0_i32, %c0_i32_0 : i32, i32
  }
  func.func @transform_23(%arg0: i32) -> (i32, i32, i32) {
    %c0_i32 = arith.constant 0 : i32
    %c0_i32_0 = arith.constant 0 : i32
    %c0_i32_1 = arith.constant 0 : i32
    %c0_i32_2 = arith.constant 0 : i32
    return %c0_i32, %c0_i32_0, %c0_i32_1 : i32, i32, i32
  }
  func.func @transform_24(%arg0: i32) -> (i32, i32, i32) {
    %c0_i32 = arith.constant 0 : i32
    %c0_i32_0 = arith.constant 0 : i32
    %c0_i32_1 = arith.constant 0 : i32
    %c0_i32_2 = arith.constant 0 : i32
    return %c0_i32, %c0_i32_0, %c0_i32_1 : i32, i32, i32
  }
  func.func @transform_25(%arg0: i32) -> (i32, i32, i32) {
    %c0_i32 = arith.constant 0 : i32
    %c0_i32_0 = arith.constant 0 : i32
    %c0_i32_1 = arith.constant 0 : i32
    return %arg0, %c0_i32, %c0_i32_0 : i32, i32, i32
  }
}

</mosaic_0001>

<bundles_post_ra>
// kernel: tpu_custom_call.1
= control target key start
LH: loop header
LB: loop body
LE: loop exit
PB: predicated region body
PF: predicated region fallthrough
CT: control target
= control target key end

     0   :  { %s6079_s0 = inlined_call_operand.hbm [shape: f32[2,8,32], index: 0, kind: input, shape index: {}]   ;;  %s6080_s1 = inlined_call_operand.hbm [shape: f32[2,8,32], index: 1, kind: input, shape index: {}]   ;;  %s6081_s2 = inlined_call_operand.hbm [shape: f32[2,16,32], index: 2, kind: input, shape index: {}]   ;;  %s6082_s3 = inlined_call_operand.hbm [shape: f32[2,16,32], index: 3, kind: input, shape index: {}]   ;;  %s6083_s4 = inlined_call_operand.hbm [shape: f32[2,1,16], index: 4, kind: input, shape index: {}]   ;;  %s6084_s5 = inlined_call_operand.hbm [shape: bf16[32,64], index: 5, kind: input, shape index: {}]   ;;  %s6085_s6 = inlined_call_operand.hbm [shape: f32[1,64], index: 6, kind: input, shape index: {}]   ;;  %s6086_s7 = inlined_call_operand.hbm [shape: bf16[32,32], index: 7, kind: input, shape index: {}]   ;;  %s6087_s8 = inlined_call_operand.hbm [shape: f32[1,32], index: 8, kind: input, shape index: {}]   ;;  %s6088_s9 = inlined_call_operand.hbm [shape: bf16[32,32], index: 9, kind: input, shape index: {}]   ;;  %s6089_s10 = inlined_call_operand.hbm [shape: f32[1,32], index: 10, kind: input, shape index: {}]   ;;  %s6090_s11 = inlined_call_operand.hbm [shape: bf16[32,32], index: 11, kind: input, shape index: {}]   ;;  %s6091_s12 = inlined_call_operand.hbm [shape: f32[1,32], index: 12, kind: input, shape index: {}]   ;;  %s6092_s13 = inlined_call_operand.hbm [shape: bf16[32,32], index: 13, kind: input, shape index: {}]   ;;  %s6093_s14 = inlined_call_operand.hbm [shape: f32[1,32], index: 14, kind: input, shape index: {}]   ;;  %s6094_s15 = inlined_call_operand.hbm [shape: bf16[32,32], index: 15, kind: input, shape index: {}]   ;;  %s6095_s16 = inlined_call_operand.hbm [shape: f32[1,32], index: 16, kind: input, shape index: {}]   ;;  %s6096_s17 = inlined_call_operand.hbm [shape: bf16[32,32], index: 17, kind: input, shape index: {}]   ;;  %s6097_s18 = inlined_call_operand.hbm [shape: f32[1,32], index: 18, kind: input, shape index: {}]   ;;  %s6098_s19 = inlined_call_operand.hbm [shape: bf16[32,64], index: 19, kind: input, shape index: {}]   ;;  %s6099_s20 = inlined_call_operand.hbm [shape: f32[1,64], index: 20, kind: input, shape index: {}]   ;;  %s6100_s21 = inlined_call_operand.hbm [shape: bf16[64,32], index: 21, kind: input, shape index: {}]   ;;  %s6101_s22 = inlined_call_operand.hbm [shape: f32[1,32], index: 22, kind: input, shape index: {}]   ;;  %s6102_s23 = inlined_call_operand.hbm [shape: f32[3,1,32], index: 23, kind: input, shape index: {}]   ;;  %s6103_s24 = inlined_call_operand.hbm [shape: f32[3,1,32], index: 24, kind: input, shape index: {}]   ;;  %s6104_s25 = inlined_call_operand.hbm [shape: f32[2,8,32], index: 25, kind: output, shape index: {}]  }
   0x1   :  { %6163 = sst [smem:[#allocation69_spill]] %s6079_s0 }
   0x2   :  { %6164 = sst [smem:[#allocation70_spill]] %s6080_s1 }
   0x3   :  { %6165 = sst [smem:[#allocation71_spill]] %s6081_s2 }
   0x4   :  { %6166 = sst [smem:[#allocation72_spill]] %s6082_s3 }
   0x5   :  { %6167 = sst [smem:[#allocation73_spill]] %s6083_s4 }
   0x6   :  { %6168 = sst [smem:[#allocation74_spill]] %s6084_s5 }
   0x7   :  { %6169 = sst [smem:[#allocation75_spill]] %s6085_s6 }
   0x8   :  { %6170 = sst [smem:[#allocation76_spill]] %s6086_s7 }
   0x9   :  { %6171 = sst [smem:[#allocation77_spill]] %s6087_s8 }
   0xa   :  { %6172 = sst [smem:[#allocation78_spill]] %s6088_s9 }
   0xb   :  { %6173 = sst [smem:[#allocation79_spill]] %s6089_s10 }
   0xc   :  { %6174 = sst [smem:[#allocation80_spill]] %s6090_s11 }
   0xd   :  { %6175 = sst [smem:[#allocation81_spill]] %s6091_s12 }
   0xe   :  { %6176 = sst [smem:[#allocation82_spill]] %s6092_s13 }
   0xf   :  { %6177 = sst [smem:[#allocation83_spill]] %s6093_s14 }
  0x10   :  { %6178 = sst [smem:[#allocation84_spill]] %s6094_s15 }
  0x11   :  { %6179 = sst [smem:[#allocation85_spill]] %s6095_s16 }
  0x12   :  { %6180 = sst [smem:[#allocation86_spill]] %s6096_s17 }
  0x13   :  { %6181 = sst [smem:[#allocation87_spill]] %s6097_s18 }
  0x14   :  { %6182 = sst [smem:[#allocation88_spill]] %s6098_s19 }
  0x15   :  { %6183 = sst [smem:[#allocation89_spill]] %s6099_s20 }
  0x16   :  { %6184 = sst [smem:[#allocation90_spill]] %s6100_s21 }
  0x17   :  { %6185 = sst [smem:[#allocation91_spill]] %s6101_s22 }
  0x18   :  { %6186 = sst [smem:[#allocation92_spill]] %s6102_s23 }
  0x19   :  { %6187 = sst [smem:[#allocation93_spill]] %s6103_s24 }
  0x1a   :  { %6188 = sst [smem:[#allocation94_spill]] %s6104_s25 }
  0x1b   :  { %30 = vsyncpa [#allocation3], 0 }
  0x1c   :  { %32 = vsyncpa [#allocation3 + $0x1], 0 }
  0x1d   :  { %33 = vsyncpa [#allocation6], 0 }
  0x1e   :  { %35 = vsyncpa [#allocation6 + $0x1], 0 }
  0x1f   :  { %36 = vsyncpa [#allocation9], 0 }
  0x20   :  { %38 = vsyncpa [#allocation9 + $0x1], 0 }
  0x21   :  { %39 = vsyncpa [#allocation12], 0 }
  0x22   :  { %40 = vsyncpa [#allocation15], 0 }
  0x23   :  { %41 = vsyncpa [#allocation18], 0 }
  0x24   :  { %42 = vsyncpa [#allocation21], 0 }
  0x25   :  { %43 = vsyncpa [#allocation24], 0 }
  0x26   :  { %44 = vsyncpa [#allocation27], 0 }
  0x27   :  { %45 = vsyncpa [#allocation30], 0 }
  0x28   :  { %46 = vsyncpa [#allocation33], 0 }
  0x29   :  { %47 = vsyncpa [#allocation36], 0 }
  0x2a   :  { %48 = vsyncpa [#allocation39], 0 }
  0x2b   :  { %49 = vsyncpa [#allocation4], 0 }
  0x2c   :  { %51 = vsyncpa [#allocation4 + $0x1], 0  ;;  %s4931_s29 = smov 0   ;;  %s4933_s2 = smov 0  }
  0x2d   :  { %s4935_s6 = smov 0   ;;  %s4937_s30 = smov 0  }
  0x2e LB: > { %6189 = sst [smem:[#allocation56_spill]] %s4733_s29  ;;  %s4755_s7 = smov [#allocation11]   ;;  %s4745_s30 = sphi %s4937_s30, %s6290_s30   ;;  %s4741_s6 = sphi %s4935_s6, %s6292_s6   ;;  %s4737_s2 = sphi %s4933_s2, %s6294_s2   ;;  %s4733_s29 = sphi %s4931_s29, %s6293_s29  }
  0x2f   : > { %6190 = sst [smem:[#allocation57_spill]] %s4741_s6  ;;  %s650_s3 = sshll.u32 %s4755_s7, 4  ;;  %s4957_s3 = int_to_ptr.vmem [resolvable:$true] %s650_s3 }
  0x30   : > { %s4952_s26 = sadd.s32 4294967295, %s4745_s30   ;;  %p3209_p0 = scmp.ge.s32.totalorder %s4745_s30, 1 }
  0x31   : > { %6191 = sst [smem:[#allocation58_spill]] %s4952_s26  ;;  %p6126_p1 = scmp.eq.s32.totalorder %s4952_s26, 0 }
  0x32   : > { %p638_p2 = scmp.lt.s32.totalorder %s4745_s30, 3  ;;  %s4756_s8 = smov [#allocation14]  }
  0x33   : > { %s674_s27 = sshll.u32 %s4756_s8, 4  ;;  %s4757_s28 = smov [#allocation17]   ;;  %s4972_s27 = int_to_ptr.vmem [resolvable:$true] %s674_s27 }
  0x34   : > { %p4959_p3 = pnand %p3209_p0, %p638_p2  ;;  %s698_s9 = sshll.u32 %s4757_s28, 4  ;;  %s4974_s9 = int_to_ptr.vmem [resolvable:$true] %s698_s9 }
  0x35   : > { %s6195_s7 = sld [smem:[#allocation74_spill]] }
  0x36   : > { %s6192_s1 = scalar_select %p4959_p3, 1, 0 }
  0x37   : > { %p3660_p5 = pneg %p4959_p3 }
  0x38   : > { %6193 = sst [smem:[#allocation59_spill]] %s6192_s1 }
  0x39   : > { %p4968_p6 = pnand %p3660_p5, %p6126_p1 }
  0x3b   : > { %s6194_s4 = scalar_select %p4968_p6, 1, 0 }
  0x3c   : > { %s3913_s25 = scalar_lea.hbm %s6195_s7, 256  ;;  %p4984_p8 = pneg %p4968_p6 }
  0x3d   : > { %p3914_p7 = scmp.ne.s32.totalorder %s6195_s7, %s3913_s25  ;;  %p3920_p11 = scmp.lt.u32.totalorder %s3913_s25, %s6195_s7 }
  0x3e   : > { %s6196_s8 = scalar_select %p4984_p8, 1, 0 }
  0x3f   : > { %p3916_p9 = pnand %p4984_p8, %p3914_p7 }
  0x41   : > { %p3917_p10 = pneg %p3916_p9 }
  0x43   : > { %p3922_p12 = pnand %p3920_p11, %p3917_p10 }
  0x45   : > { %3925 = shalt.err (!%p3922_p12)
}
  0x46   : > { %s3926_s24 = scalar_lea.vmem %s4957_s3, 256  ;;  %p3934_p5 = scmp.lt.s32.totalorder %s4957_s3, %s4957_s3 }
  0x47   : > { %p3927_p13 = scmp.ne.s32.totalorder %s4957_s3, %s3926_s24  ;;  %p3935_p4 = scmp.lt.s32.totalorder %s3926_s24, %s3926_s24 }
  0x49   : > { %p3929_p0 = pnand %p3927_p13, %p4984_p8  ;;  %p3936_p7 = por %p3935_p4, %p3934_p5 }
  0x4b   : > { %p3930_p2 = pneg %p3929_p0 }
  0x4d   : > { %p3937_p9 = pnand %p3936_p7, %p3930_p2 }
  0x4f   : > { %3940 = shalt.err (!%p3937_p9)
}
  0x50   : > { %s4758_s1 = smov 64   ;;  %s4759_s22 = smov 4  }
  0x51   : > { %3663 = dma.hbm_to_vmem [thread:$0]  (!%p4968_p6), %s6195_s7, 256, %s4957_s3, [#allocation12], %s4758_s1, %s4758_s1, %s4759_s22  }
  0x52   : > { %s6197_s20 = sld [smem:[#allocation76_spill]] }
  0x58   : > { %s3941_s24 = scalar_lea.hbm %s6197_s20, 256 }
  0x59   : > { %p3942_p4 = scmp.ne.s32.totalorder %s6197_s20, %s3941_s24  ;;  %p3948_p12 = scmp.lt.u32.totalorder %s3941_s24, %s6197_s20 }
  0x5b   : > { %p3944_p10 = pnand %p3942_p4, %p4984_p8 }
  0x5d   : > { %p3945_p11 = pneg %p3944_p10 }
  0x5f   : > { %p3950_p13 = pnand %p3948_p12, %p3945_p11 }
  0x61   : > { %3953 = shalt.err (!%p3950_p13)
}
  0x62   : > { %s3954_s3 = scalar_lea.vmem %s4972_s27, 256  ;;  %p3962_p7 = scmp.lt.s32.totalorder %s4972_s27, %s4972_s27 }
  0x63   : > { %p3955_p0 = scmp.ne.s32.totalorder %s4972_s27, %s3954_s3  ;;  %p3963_p9 = scmp.lt.s32.totalorder %s3954_s3, %s3954_s3 }
  0x65   : > { %p3957_p2 = pnand %p3955_p0, %p4984_p8  ;;  %p3964_p4 = por %p3963_p9, %p3962_p7 }
  0x67   : > { %p3958_p5 = pneg %p3957_p2 }
  0x69   : > { %p3965_p10 = pnand %p3964_p4, %p3958_p5 }
  0x6b   : > { %3968 = shalt.err (!%p3965_p10)
}
  0x6c   : > { %3669 = dma.hbm_to_vmem [thread:$0]  (!%p4968_p6), %s6197_s20, 256, %s4972_s27, [#allocation15], %s4758_s1, %s4758_s1, %s4759_s22  }
  0x6d   : > { %s6198_s25 = sld [smem:[#allocation78_spill]] }
  0x73   : > { %s3969_s5 = scalar_lea.hbm %s6198_s25, 256 }
  0x74   : > { %p3970_p11 = scmp.ne.s32.totalorder %s6198_s25, %s3969_s5  ;;  %p3976_p0 = scmp.lt.u32.totalorder %s3969_s5, %s6198_s25 }
  0x76   : > { %p3972_p12 = pnand %p3970_p11, %p4984_p8 }
  0x78   : > { %p3973_p13 = pneg %p3972_p12 }
  0x7a   : > { %p3978_p2 = pnand %p3976_p0, %p3973_p13 }
  0x7c   : > { %3981 = shalt.err (!%p3978_p2)
}
  0x7d   : > { %s3982_s27 = scalar_lea.vmem %s4974_s9, 256  ;;  %p3990_p4 = scmp.lt.s32.totalorder %s4974_s9, %s4974_s9 }
  0x7e   : > { %p3983_p5 = scmp.ne.s32.totalorder %s4974_s9, %s3982_s27  ;;  %p3991_p10 = scmp.lt.s32.totalorder %s3982_s27, %s3982_s27 }
  0x80   : > { %p3985_p7 = pnand %p3983_p5, %p4984_p8  ;;  %p3992_p11 = por %p3991_p10, %p3990_p4 }
  0x82   : > { %p3986_p9 = pneg %p3985_p7 }
  0x84   : > { %p3993_p12 = pnand %p3992_p11, %p3986_p9 }
  0x86   : > { %3996 = shalt.err (!%p3993_p12)
}
  0x87   : > { %3675 = dma.hbm_to_vmem [thread:$0]  (!%p4968_p6), %s6198_s25, 256, %s4974_s9, [#allocation18], %s4758_s1, %s4758_s1, %s4759_s22  }
  0x88   : > { %s4760_s16 = smov [#allocation20]   ;;  %s4761_s5 = smov [#allocation23]  }
  0x89   : > { %s722_s18 = sshll.u32 %s4760_s16, 4  ;;  %s746_s0 = sshll.u32 %s4761_s5, 4  ;;  %s723_s18 = int_to_ptr.vmem [resolvable:$true] %s722_s18  ;;  %s747_s0 = int_to_ptr.vmem [resolvable:$true] %s746_s0 }
  0x8a   : > { %s6199_s11 = sld [smem:[#allocation80_spill]] }
  0x90   : > { %s3997_s3 = scalar_lea.hbm %s6199_s11, 256 }
  0x91   : > { %p3998_p13 = scmp.ne.s32.totalorder %s6199_s11, %s3997_s3  ;;  %p4004_p5 = scmp.lt.u32.totalorder %s3997_s3, %s6199_s11 }
  0x93   : > { %p4000_p0 = pnand %p3998_p13, %p4984_p8 }
  0x95   : > { %p4001_p2 = pneg %p4000_p0 }
  0x97   : > { %p4006_p7 = pnand %p4004_p5, %p4001_p2 }
  0x99   : > { %4009 = shalt.err (!%p4006_p7)
}
  0x9a   : > { %s4010_s9 = scalar_lea.vmem %s723_s18, 256  ;;  %p4018_p11 = scmp.lt.s32.totalorder %s723_s18, %s723_s18 }
  0x9b   : > { %p4011_p9 = scmp.ne.s32.totalorder %s723_s18, %s4010_s9  ;;  %p4019_p12 = scmp.lt.s32.totalorder %s4010_s9, %s4010_s9 }
  0x9d   : > { %p4013_p4 = pnand %p4011_p9, %p4984_p8  ;;  %p4020_p1 = por %p4019_p12, %p4018_p11 }
  0x9f   : > { %p4014_p10 = pneg %p4013_p4 }
  0xa1   : > { %p4021_p3 = pnand %p4020_p1, %p4014_p10 }
  0xa3   : > { %4024 = shalt.err (!%p4021_p3)
}
  0xa4   : > { %3681 = dma.hbm_to_vmem [thread:$0]  (!%p4968_p6), %s6199_s11, 256, %s723_s18, [#allocation21], %s4758_s1, %s4758_s1, %s4759_s22  }
  0xa5   : > { %s6200_s13 = sld [smem:[#allocation82_spill]] }
  0xab   : > { %s4025_s5 = scalar_lea.hbm %s6200_s13, 256 }
  0xac   : > { %p4026_p1 = scmp.ne.s32.totalorder %s6200_s13, %s4025_s5  ;;  %p4032_p0 = scmp.lt.u32.totalorder %s4025_s5, %s6200_s13 }
  0xae   : > { %p4028_p3 = pnand %p4026_p1, %p4984_p8 }
  0xb0   : > { %p4029_p13 = pneg %p4028_p3 }
  0xb2   : > { %p4034_p2 = pnand %p4032_p0, %p4029_p13 }
  0xb4   : > { %4037 = shalt.err (!%p4034_p2)
}
  0xb5   : > { %s4038_s12 = scalar_lea.vmem %s747_s0, 256  ;;  %p4046_p4 = scmp.lt.s32.totalorder %s747_s0, %s747_s0 }
  0xb6   : > { %p4039_p5 = scmp.ne.s32.totalorder %s747_s0, %s4038_s12  ;;  %p4047_p10 = scmp.lt.s32.totalorder %s4038_s12, %s4038_s12 }
  0xb8   : > { %p4041_p7 = pnand %p4039_p5, %p4984_p8  ;;  %p4048_p11 = por %p4047_p10, %p4046_p4 }
  0xba   : > { %p4042_p9 = pneg %p4041_p7 }
  0xbc   : > { %p4049_p12 = pnand %p4048_p11, %p4042_p9 }
  0xbe   : > { %4052 = shalt.err (!%p4049_p12)
}
  0xbf   : > { %3687 = dma.hbm_to_vmem [thread:$0]  (!%p4968_p6), %s6200_s13, 256, %s747_s0, [#allocation24], %s4758_s1, %s4758_s1, %s4759_s22  }
  0xc0   : > { %s4762_s20 = smov [#allocation26]   ;;  %s4763_s14 = smov [#allocation29]  }
  0xc1   : > { %s770_s7 = sshll.u32 %s4762_s20, 4  ;;  %s794_s16 = sshll.u32 %s4763_s14, 4  ;;  %s771_s7 = int_to_ptr.vmem [resolvable:$true] %s770_s7  ;;  %s795_s16 = int_to_ptr.vmem [resolvable:$true] %s794_s16 }
  0xc2   : > { %s6201_s15 = sld [smem:[#allocation84_spill]] }
  0xc8   : > { %s4053_s24 = scalar_lea.hbm %s6201_s15, 256 }
  0xc9   : > { %p4054_p1 = scmp.ne.s32.totalorder %s6201_s15, %s4053_s24  ;;  %p4060_p0 = scmp.lt.u32.totalorder %s4053_s24, %s6201_s15 }
  0xcb   : > { %p4056_p3 = pnand %p4054_p1, %p4984_p8 }
  0xcd   : > { %p4057_p13 = pneg %p4056_p3 }
  0xcf   : > { %p4062_p2 = pnand %p4060_p0, %p4057_p13 }
  0xd1   : > { %4065 = shalt.err (!%p4062_p2)
}
  0xd2   : > { %s4066_s0 = scalar_lea.vmem %s771_s7, 256  ;;  %p4074_p4 = scmp.lt.s32.totalorder %s771_s7, %s771_s7 }
  0xd3   : > { %p4067_p5 = scmp.ne.s32.totalorder %s771_s7, %s4066_s0  ;;  %p4075_p10 = scmp.lt.s32.totalorder %s4066_s0, %s4066_s0 }
  0xd5   : > { %p4069_p7 = pnand %p4067_p5, %p4984_p8  ;;  %p4076_p11 = por %p4075_p10, %p4074_p4 }
  0xd7   : > { %p4070_p9 = pneg %p4069_p7 }
  0xd9   : > { %p4077_p12 = pnand %p4076_p11, %p4070_p9 }
  0xdb   : > { %4080 = shalt.err (!%p4077_p12)
}
  0xdc   : > { %3693 = dma.hbm_to_vmem [thread:$0]  (!%p4968_p6), %s6201_s15, 256, %s771_s7, [#allocation27], %s4758_s1, %s4758_s1, %s4759_s22  }
  0xdd   : > { %s6202_s17 = sld [smem:[#allocation86_spill]] }
  0xe3   : > { %s4081_s28 = scalar_lea.hbm %s6202_s17, 256 }
  0xe4   : > { %p4082_p1 = scmp.ne.s32.totalorder %s6202_s17, %s4081_s28  ;;  %p4088_p0 = scmp.lt.u32.totalorder %s4081_s28, %s6202_s17 }
  0xe6   : > { %p4084_p3 = pnand %p4082_p1, %p4984_p8 }
  0xe8   : > { %p4085_p13 = pneg %p4084_p3 }
  0xea   : > { %p4090_p2 = pnand %p4088_p0, %p4085_p13 }
  0xec   : > { %4093 = shalt.err (!%p4090_p2)
}
  0xed   : > { %s4094_s18 = scalar_lea.vmem %s795_s16, 256  ;;  %p4102_p4 = scmp.lt.s32.totalorder %s795_s16, %s795_s16 }
  0xee   : > { %p4095_p5 = scmp.ne.s32.totalorder %s795_s16, %s4094_s18  ;;  %p4103_p10 = scmp.lt.s32.totalorder %s4094_s18, %s4094_s18 }
  0xf0   : > { %p4097_p7 = pnand %p4095_p5, %p4984_p8  ;;  %p4104_p11 = por %p4103_p10, %p4102_p4 }
  0xf2   : > { %p4098_p9 = pneg %p4097_p7 }
  0xf4   : > { %p4105_p12 = pnand %p4104_p11, %p4098_p9 }
  0xf6   : > { %4108 = shalt.err (!%p4105_p12)
}
  0xf7   : > { %3699 = dma.hbm_to_vmem [thread:$0]  (!%p4968_p6), %s6202_s17, 256, %s795_s16, [#allocation30], %s4758_s1, %s4758_s1, %s4759_s22  }
  0xf8   : > { %s4764_s9 = smov [#allocation32]   ;;  %s4765_s14 = smov [#allocation35]  }
  0xf9   : > { %s818_s20 = sshll.u32 %s4764_s9, 4  ;;  %s842_s5 = sshll.u32 %s4765_s14, 4  ;;  %s819_s20 = int_to_ptr.vmem [resolvable:$true] %s818_s20  ;;  %s843_s5 = int_to_ptr.vmem [resolvable:$true] %s842_s5 }
  0xfa   : > { %s6203_s19 = sld [smem:[#allocation88_spill]] }
 0x100   : > { %s4109_s3 = scalar_lea.hbm %s6203_s19, 256 }
 0x101   : > { %p4110_p1 = scmp.ne.s32.totalorder %s6203_s19, %s4109_s3  ;;  %p4116_p0 = scmp.lt.u32.totalorder %s4109_s3, %s6203_s19 }
 0x103   : > { %p4112_p3 = pnand %p4110_p1, %p4984_p8 }
 0x105   : > { %p4113_p13 = pneg %p4112_p3 }
 0x107   : > { %p4118_p2 = pnand %p4116_p0, %p4113_p13 }
 0x109   : > { %4121 = shalt.err (!%p4118_p2)
}
 0x10a   : > { %s4122_s16 = scalar_lea.vmem %s819_s20, 256  ;;  %p4130_p4 = scmp.lt.s32.totalorder %s819_s20, %s819_s20 }
 0x10b   : > { %p4123_p5 = scmp.ne.s32.totalorder %s819_s20, %s4122_s16  ;;  %p4131_p10 = scmp.lt.s32.totalorder %s4122_s16, %s4122_s16 }
 0x10d   : > { %p4125_p7 = pnand %p4123_p5, %p4984_p8  ;;  %p4132_p11 = por %p4131_p10, %p4130_p4 }
 0x10f   : > { %p4126_p9 = pneg %p4125_p7 }
 0x111   : > { %p4133_p12 = pnand %p4132_p11, %p4126_p9 }
 0x113   : > { %4136 = shalt.err (!%p4133_p12)
}
 0x114   : > { %3705 = dma.hbm_to_vmem [thread:$0]  (!%p4968_p6), %s6203_s19, 256, %s819_s20, [#allocation33], %s4758_s1, %s4758_s1, %s4759_s22  }
 0x115   : > { %s6204_s21 = sld [smem:[#allocation90_spill]] }
 0x11b   : > { %s4137_s24 = scalar_lea.hbm %s6204_s21, 512 }
 0x11c   : > { %p4138_p1 = scmp.ne.s32.totalorder %s6204_s21, %s4137_s24  ;;  %p4144_p0 = scmp.lt.u32.totalorder %s4137_s24, %s6204_s21 }
 0x11e   : > { %p4140_p3 = pnand %p4138_p1, %p4984_p8 }
 0x120   : > { %p4141_p13 = pneg %p4140_p3 }
 0x122   : > { %p4146_p2 = pnand %p4144_p0, %p4141_p13 }
 0x124   : > { %4149 = shalt.err (!%p4146_p2)
}
 0x125   : > { %s4150_s7 = scalar_lea.vmem %s843_s5, 512  ;;  %p4158_p4 = scmp.lt.s32.totalorder %s843_s5, %s843_s5 }
 0x126   : > { %p4151_p5 = scmp.ne.s32.totalorder %s843_s5, %s4150_s7  ;;  %p4159_p10 = scmp.lt.s32.totalorder %s4150_s7, %s4150_s7 }
 0x128   : > { %p4153_p7 = pnand %p4151_p5, %p4984_p8  ;;  %p4160_p11 = por %p4159_p10, %p4158_p4 }
 0x12a   : > { %p4154_p9 = pneg %p4153_p7 }
 0x12c   : > { %p4161_p12 = pnand %p4160_p11, %p4154_p9 }
 0x12e   : > { %4164 = shalt.err (!%p4161_p12)
}
 0x12f   : > { %3711 = dma.hbm_to_vmem [thread:$0]  (!%p4968_p6), %s6204_s21, 512, %s843_s5, [#allocation36], %s4758_s1, %s4758_s1, %s4759_s22  }
 0x130   : > { %s4766_s0 = smov [#allocation38]   ;;  %s6205_s23 = sld [smem:[#allocation92_spill]] }
 0x131   : > { %s866_s9 = sshll.u32 %s4766_s0, 4  ;;  %s867_s9 = int_to_ptr.vmem [resolvable:$true] %s866_s9 }
 0x136   : > { %s4165_s24 = scalar_lea.hbm %s6205_s23, 48 }
 0x137   : > { %p4166_p1 = scmp.ne.s32.totalorder %s6205_s23, %s4165_s24  ;;  %p4172_p0 = scmp.lt.u32.totalorder %s4165_s24, %s6205_s23 }
 0x139   : > { %p4168_p3 = pnand %p4166_p1, %p4984_p8 }
 0x13b   : > { %p4169_p13 = pneg %p4168_p3 }
 0x13d   : > { %p4174_p2 = pnand %p4172_p0, %p4169_p13 }
 0x13f   : > { %4177 = shalt.err (!%p4174_p2)
}
 0x140   : > { %s4178_s1 = scalar_lea.vmem %s867_s9, 48  ;;  %s4185_s22 = scalar_lea.vmem %s867_s9, 64 }
 0x141   : > { %p4179_p5 = scmp.ne.s32.totalorder %s867_s9, %s4178_s1  ;;  %p4186_p4 = scmp.lt.s32.totalorder %s867_s9, %s867_s9 }
 0x142   : > { %p4187_p10 = scmp.lt.s32.totalorder %s4185_s22, %s4178_s1 }
 0x143   : > { %p4181_p7 = pnand %p4179_p5, %p4984_p8 }
 0x144   : > { %p4188_p11 = por %p4187_p10, %p4186_p4 }
 0x145   : > { %p4182_p9 = pneg %p4181_p7 }
 0x147   : > { %p4189_p12 = pnand %p4188_p11, %p4182_p9 }
 0x149   : > { %4192 = shalt.err (!%p4189_p12)
}
 0x14a   : > { %s6128_s5 = smov 16   ;;  %s6129_s7 = smov 1  }
 0x14b   : > { %3717 = dma.hbm_to_vmem [thread:$0]  (!%p4968_p6), %s6205_s23, 48, %s867_s9, [#allocation39], %s6128_s5, %s6128_s5, %s6129_s7  }
 0x14c   : > { %s3208_s0 = sadd.s32 4294967294, %s4745_s30   ;;  %s5209_s14 = sadd.s32 1, %s4745_s30  }
 0x14d   : > { %6206 = sst [smem:[#allocation60_spill]] %s5209_s14  ;;  %s61_s28 = ssub.s32 %s4745_s30, %s5209_s14 }
 0x14e   : > { %s64_s24 = sadd.s32 1, %s4741_s6  ;;  %p62_p1 = scmp.eq.s32.totalorder %s61_s28, 0 }
 0x14f   : > { %p71_p3 = scmp.ne.s32.totalorder %s4741_s6, %s4737_s2  ;;  %p72_p13 = scmp.eq.s32.totalorder %s4745_s30, 0 }
 0x150   : > { %p77_p0 = scmp.ne.s32.totalorder %s4737_s2, %s4733_s29  ;;  %p6208_p5 = scmp.eq.s32.totalorder %s4952_s26, 0 }
 0x151   : > { %s5220_s3 = scalar_select %p62_p1, %s4741_s6, %s64_s24  }
 0x152   : > { %p73_p2 = por %p72_p13, %p71_p3  ;;  %p5224_p7 = por %p6208_p5, %p77_p0 }
 0x153   : > { %6207 = sst [smem:[#allocation61_spill]] %s5220_s3  ;;  %p625_p9 = scmp.eq.s32.totalorder %s4952_s26, 1 }
 0x154   : > { %s6209_s27 = scalar_select %p5224_p7, 1, 0 }
 0x155   : > { %p631_p4 = scmp.eq.s32.totalorder %s3208_s0, 1  ;;  %p3761_p10 = scmp.lt.s32.totalorder %s4745_s30, 2 }
 0x156   : > { %s5231_s9 = sand.u32 1, %s4741_s6   ;;  %p5233_p11 = por %p625_p9, %p71_p3 }
 0x157   : > { %p5237_p12 = por %p631_p4, %p77_p0  ;;  %s6130_s1 = sshll.u32 %s5231_s9, 3 }
 0x158   : > { %s6210_s12 = scalar_select %p5233_p11, 1, 0 }
 0x159   : > { %s6212_s18 = scalar_select %p5237_p12, 1, 0 }
 0x15a   : > { %6211 = sst [smem:[#allocation62_spill]] %s6210_s12  ;;  %s6131_s22 = sshll.u32 %s4745_s30, 7 }
 0x15b   : > { %6213 = sst [smem:[#allocation63_spill]] %s6212_s18  ;;  %p5243_p1 = pnand %p3761_p10, %p73_p2 }
 0x15c   : > { %s6133_s16 = sand.u32 1, %s4745_s30   ;;  %s6215_s24 = sld [smem:[#allocation70_spill]] }
 0x15d   : > { %s6214_s20 = scalar_select %p5243_p1, 1, 0 }
 0x15e   : > { %s915_s7 = scalar_lea.vmem [#allocation5], %s6130_s1  ;;  %s5262_s15 = scalar_lea.sflag [#allocation6], %s6133_s16 }
 0x15f   : > { %s922_s11 = sshll.u32 %s915_s7, 4  ;;  %p5268_p13 = pneg %p5243_p1  ;;  %s5257_s11 = int_to_ptr.vmem [resolvable:$true] %s922_s11 }
 0x161   : > { %s6216_s0 = scalar_select %p5268_p13, 1, 0 }
 0x162   : > { %s5253_s5 = scalar_lea.hbm %s6215_s24, %s6131_s22  ;;  %s4198_s7 = scalar_lea.hbm %s6215_s24, 256 }
 0x163   : > { %s4193_s17 = scalar_lea.hbm %s5253_s5, 128  ;;  %p4199_p5 = scmp.lt.u32.totalorder %s5253_s5, %s6215_s24 }
 0x164   : > { %p4194_p3 = scmp.ne.s32.totalorder %s5253_s5, %s4193_s17  ;;  %p4200_p9 = scmp.lt.u32.totalorder %s4198_s7, %s4193_s17 }
 0x165   : > { %p4202_p10 = scmp.lt.u32.totalorder %s4193_s17, %s5253_s5 }
 0x166   : > { %p4196_p0 = pnand %p5268_p13, %p4194_p3  ;;  %p4201_p4 = por %p4200_p9, %p4199_p5 }
 0x168   : > { %p4197_p2 = pneg %p4196_p0  ;;  %p4203_p12 = por %p4202_p10, %p4201_p4 }
 0x16a   : > { %p4204_p11 = pnand %p4203_p12, %p4197_p2 }
 0x16c   : > { %4207 = shalt.err (!%p4204_p11)
}
 0x16d   : > { %s4208_s16 = scalar_lea.vmem %s5257_s11, 128  ;;  %s4769_s1 = smov [#allocation5]  }
 0x16e   : > { %p4209_p3 = scmp.ne.s32.totalorder %s5257_s11, %s4208_s16  ;;  %s4213_s28 = sshll.u32 %s4769_s1, 4  ;;  %s4214_s28 = int_to_ptr.vmem [resolvable:$false] %s4213_s28 }
 0x16f   : > { %s4215_s13 = scalar_lea.vmem %s4214_s28, 256  ;;  %p4216_p6 = scmp.lt.s32.totalorder %s5257_s11, %s4214_s28 }
 0x170   : > { %p4211_p0 = pnand %p4209_p3, %p5268_p13  ;;  %p4217_p8 = scmp.lt.s32.totalorder %s4215_s13, %s4208_s16 }
 0x172   : > { %p4212_p7 = pneg %p4211_p0  ;;  %p4218_p5 = por %p4217_p8, %p4216_p6 }
 0x174   : > { %p4219_p9 = pnand %p4218_p5, %p4212_p7 }
 0x176   : > { %4222 = shalt.err (!%p4219_p9)
}
 0x177   : > { %3727 = dma.hbm_to_vmem [thread:$0]  (!%p5243_p1), %s5253_s5, 128, %s5257_s11, %s5262_s15  }
 0x178   : > { %s3333_s17 = sshll.u32 %s4745_s30, 8  ;;  %s6217_s1 = sld [smem:[#allocation71_spill]] }
 0x179   : > { %s6218_s16 = sshll.u32 %s5231_s9, 4  ;;  %s6219_s24 = sld [smem:[#allocation72_spill]] }
 0x17a   : > { %s933_s13 = scalar_lea.vmem [#allocation7], %s6218_s16  ;;  %s6220_s3 = smov %s6218_s16 }
 0x17b   : > { %s940_s19 = sshll.u32 %s933_s13, 4  ;;  %s954_s11 = scalar_lea.vmem [#allocation8], %s6220_s3  ;;  %s5300_s19 = int_to_ptr.vmem [resolvable:$true] %s940_s19 }
 0x17c   : > { %s961_s5 = sshll.u32 %s954_s11, 4  ;;  %s6221_s22 = sand.u32 1, %s4745_s30   ;;  %s5309_s5 = int_to_ptr.vmem [resolvable:$true] %s961_s5 }
 0x17d   : > { %s5313_s7 = scalar_lea.sflag [#allocation9], %s6221_s22 }
 0x17e   : > { %s5296_s28 = scalar_lea.hbm %s6217_s1, %s3333_s17 }
 0x17f   : > { %s5305_s25 = scalar_lea.hbm %s6219_s24, %s3333_s17  ;;  %s4228_s17 = scalar_lea.hbm %s6219_s24, 512 }
 0x180   : > { %s4223_s16 = scalar_lea.hbm %s5305_s25, 256  ;;  %p4229_p11 = scmp.lt.u32.totalorder %s5305_s25, %s6219_s24 }
 0x181   : > { %p4224_p6 = scmp.ne.s32.totalorder %s5305_s25, %s4223_s16  ;;  %p4230_p12 = scmp.lt.u32.totalorder %s4228_s17, %s4223_s16 }
 0x182   : > { %p4232_p4 = scmp.lt.u32.totalorder %s4223_s16, %s5305_s25 }
 0x183   : > { %p4226_p8 = pnand %p4224_p6, %p5268_p13  ;;  %p4231_p2 = por %p4230_p12, %p4229_p11 }
 0x185   : > { %p4227_p7 = pneg %p4226_p8  ;;  %p4233_p10 = por %p4232_p4, %p4231_p2 }
 0x187   : > { %p4234_p3 = pnand %p4233_p10, %p4227_p7 }
 0x189   : > { %4237 = shalt.err (!%p4234_p3)
}
 0x18a   : > { %s4238_s3 = scalar_lea.vmem %s5309_s5, 256  ;;  %s4770_s11 = smov [#allocation8]  }
 0x18b   : > { %p4239_p0 = scmp.ne.s32.totalorder %s5309_s5, %s4238_s3  ;;  %s4243_s22 = sshll.u32 %s4770_s11, 4  ;;  %s4244_s22 = int_to_ptr.vmem [resolvable:$false] %s4243_s22 }
 0x18c   : > { %s4245_s6 = scalar_lea.vmem %s4244_s22, 512  ;;  %p4246_p6 = scmp.lt.s32.totalorder %s5309_s5, %s4244_s22 }
 0x18d   : > { %p4241_p5 = pnand %p4239_p0, %p5268_p13  ;;  %p4247_p8 = scmp.lt.s32.totalorder %s4245_s6, %s4238_s3 }
 0x18f   : > { %p4242_p9 = pneg %p4241_p5  ;;  %p4248_p11 = por %p4247_p8, %p4246_p6 }
 0x191   : > { %p4249_p12 = pnand %p4248_p11, %p4242_p9 }
 0x193   : > { %4252 = shalt.err (!%p4249_p12)
}
 0x194   : > { %s6155_s16 = smov 128   ;;  %s6156_s21 = smov 8  }
 0x195   : > { %3733 = dma.hbm_to_vmem [thread:$0]  (!%p5243_p1), %s5305_s25, 256, %s5309_s5, %s5313_s7, %s6155_s16, %s6155_s16, %s6156_s21  }
 0x196   : > { %s4773_s23 = smov [#allocation13]   ;;  %s4774_s13 = smov [#allocation16]  }
 0x197   : > { %s664_s17 = sshll.u32 %s4773_s23, 4  ;;  %s688_s3 = sshll.u32 %s4774_s13, 4  ;;  %s665_s17 = int_to_ptr.vmem [resolvable:$true] %s664_s17  ;;  %s689_s3 = int_to_ptr.vmem [resolvable:$true] %s688_s3 }
 0x198   : > { %s6222_s6 = sld [smem:[#allocation75_spill]]  ;;  %p6224_p2 = scmp.ne.s32.totalorder %s6196_s8, 0 }
 0x19e   : > { %s6223_s24 = smov %s6222_s6  ;;  %s4253_s14 = scalar_lea.hbm %s6222_s6, 16 }
 0x19f   : > { %p4254_p7 = scmp.ne.s32.totalorder %s6223_s24, %s4253_s14  ;;  %p4260_p3 = scmp.lt.u32.totalorder %s4253_s14, %s6223_s24 }
 0x1a1   : > { %p4256_p4 = pnand %p4254_p7, %p6224_p2 }
 0x1a3   : > { %p4257_p10 = pneg %p4256_p4 }
 0x1a5   : > { %p4262_p0 = pnand %p4260_p3, %p4257_p10 }
 0x1a7   : > { %4265 = shalt.err (!%p4262_p0)
}
 0x1a8   : > { %s4266_s25 = scalar_lea.vmem %s665_s17, 16  ;;  %s4273_s5 = scalar_lea.vmem %s665_s17, 32 }
 0x1a9   : > { %p4267_p5 = scmp.ne.s32.totalorder %s665_s17, %s4266_s25  ;;  %p4274_p8 = scmp.lt.s32.totalorder %s665_s17, %s665_s17 }
 0x1aa   : > { %p4275_p11 = scmp.lt.s32.totalorder %s4273_s5, %s4266_s25 }
 0x1ab   : > { %p4269_p9 = pnand %p4267_p5, %p6224_p2 }
 0x1ac   : > { %p4276_p12 = por %p4275_p11, %p4274_p8 }
 0x1ad   : > { %p4270_p6 = pneg %p4269_p9 }
 0x1af   : > { %p4277_p1 = pnand %p4276_p12, %p4270_p6 }
 0x1b1   : > { %4280 = shalt.err (!%p4277_p1)
}
 0x1b2   : > { %p6225_p7 = scmp.ne.s32.totalorder %s6194_s4, 0  ;;  %s6226_s12 = sld [smem:[#allocation77_spill]] }
 0x1b4   : > { %3666 = dma.hbm_to_vmem [thread:$0]  (!%p6225_p7), %s6223_s24, 16, %s665_s17, [#allocation12]  }
 0x1b8   : > { %s4281_s23 = scalar_lea.hbm %s6226_s12, 16 }
 0x1b9   : > { %p4282_p4 = scmp.ne.s32.totalorder %s6226_s12, %s4281_s23  ;;  %p4288_p1 = scmp.lt.u32.totalorder %s4281_s23, %s6226_s12 }
 0x1bb   : > { %p4284_p10 = pnand %p4282_p4, %p6224_p2 }
 0x1bd   : > { %p4285_p3 = pneg %p4284_p10 }
 0x1bf   : > { %p4290_p0 = pnand %p4288_p1, %p4285_p3 }
 0x1c1   : > { %4293 = shalt.err (!%p4290_p0)
}
 0x1c2   : > { %s4294_s25 = scalar_lea.vmem %s689_s3, 16  ;;  %s4301_s17 = scalar_lea.vmem %s689_s3, 32 }
 0x1c3   : > { %p4295_p5 = scmp.ne.s32.totalorder %s689_s3, %s4294_s25  ;;  %p4302_p8 = scmp.lt.s32.totalorder %s689_s3, %s689_s3 }
 0x1c4   : > { %p4303_p11 = scmp.lt.s32.totalorder %s4301_s17, %s4294_s25 }
 0x1c5   : > { %p4297_p9 = pnand %p4295_p5, %p6224_p2 }
 0x1c6   : > { %p4304_p12 = por %p4303_p11, %p4302_p8 }
 0x1c7   : > { %p4298_p6 = pneg %p4297_p9 }
 0x1c9   : > { %p4305_p13 = pnand %p4304_p12, %p4298_p6 }
 0x1cb   : > { %4308 = shalt.err (!%p4305_p13)
}
 0x1cc   : > { %3672 = dma.hbm_to_vmem [thread:$0]  (!%p6225_p7), %s6226_s12, 16, %s689_s3, [#allocation15]  }
 0x1cd   : > { %s4775_s18 = smov [#allocation19]   ;;  %s4776_s14 = smov [#allocation22]  }
 0x1ce   : > { %s712_s26 = sshll.u32 %s4775_s18, 4  ;;  %s736_s23 = sshll.u32 %s4776_s14, 4  ;;  %s713_s26 = int_to_ptr.vmem [resolvable:$true] %s712_s26  ;;  %s737_s23 = int_to_ptr.vmem [resolvable:$true] %s736_s23 }
 0x1cf   : > { %s6227_s10 = sld [smem:[#allocation79_spill]] }
 0x1d5   : > { %s4309_s22 = scalar_lea.hbm %s6227_s10, 16 }
 0x1d6   : > { %p4310_p13 = scmp.ne.s32.totalorder %s6227_s10, %s4309_s22  ;;  %p4316_p3 = scmp.lt.u32.totalorder %s4309_s22, %s6227_s10 }
 0x1d8   : > { %p4312_p4 = pnand %p4310_p13, %p6224_p2 }
 0x1da   : > { %p4313_p10 = pneg %p4312_p4 }
 0x1dc   : > { %p4318_p1 = pnand %p4316_p3, %p4313_p10 }
 0x1de   : > { %4321 = shalt.err (!%p4318_p1)
}
 0x1df   : > { %s4322_s3 = scalar_lea.vmem %s713_s26, 16  ;;  %s4329_s29 = scalar_lea.vmem %s713_s26, 32 }
 0x1e0   : > { %p4323_p0 = scmp.ne.s32.totalorder %s713_s26, %s4322_s3  ;;  %p4330_p6 = scmp.lt.s32.totalorder %s713_s26, %s713_s26 }
 0x1e1   : > { %p4331_p8 = scmp.lt.s32.totalorder %s4329_s29, %s4322_s3 }
 0x1e2   : > { %p4325_p5 = pnand %p4323_p0, %p6224_p2 }
 0x1e3   : > { %p4332_p11 = por %p4331_p8, %p4330_p6 }
 0x1e4   : > { %p4326_p9 = pneg %p4325_p5 }
 0x1e6   : > { %p4333_p12 = pnand %p4332_p11, %p4326_p9 }
 0x1e8   : > { %4336 = shalt.err (!%p4333_p12)
}
 0x1e9   : > { %3678 = dma.hbm_to_vmem [thread:$0]  (!%p6225_p7), %s6227_s10, 16, %s713_s26, [#allocation18]  }
 0x1ea   : > { %s6228_s22 = sld [smem:[#allocation81_spill]] }
 0x1f0   : > { %s4337_s6 = scalar_lea.hbm %s6228_s22, 16 }
 0x1f1   : > { %p4338_p13 = scmp.ne.s32.totalorder %s6228_s22, %s4337_s6  ;;  %p4344_p3 = scmp.lt.u32.totalorder %s4337_s6, %s6228_s22 }
 0x1f3   : > { %p4340_p4 = pnand %p4338_p13, %p6224_p2 }
 0x1f5   : > { %p4341_p10 = pneg %p4340_p4 }
 0x1f7   : > { %p4346_p1 = pnand %p4344_p3, %p4341_p10 }
 0x1f9   : > { %4349 = shalt.err (!%p4346_p1)
}
 0x1fa   : > { %s4350_s29 = scalar_lea.vmem %s737_s23, 16  ;;  %s4357_s26 = scalar_lea.vmem %s737_s23, 32 }
 0x1fb   : > { %p4351_p0 = scmp.ne.s32.totalorder %s737_s23, %s4350_s29  ;;  %p4358_p6 = scmp.lt.s32.totalorder %s737_s23, %s737_s23 }
 0x1fc   : > { %p4359_p8 = scmp.lt.s32.totalorder %s4357_s26, %s4350_s29 }
 0x1fd   : > { %p4353_p5 = pnand %p4351_p0, %p6224_p2 }
 0x1fe   : > { %p4360_p11 = por %p4359_p8, %p4358_p6 }
 0x1ff   : > { %p4354_p9 = pneg %p4353_p5 }
 0x201   : > { %p4361_p12 = pnand %p4360_p11, %p4354_p9 }
 0x203   : > { %4364 = shalt.err (!%p4361_p12)
}
 0x204   : > { %3684 = dma.hbm_to_vmem [thread:$0]  (!%p6225_p7), %s6228_s22, 16, %s737_s23, [#allocation21]  }
 0x205   : > { %s4777_s13 = smov [#allocation25]   ;;  %s4778_s6 = smov [#allocation28]  }
 0x206   : > { %s760_s11 = sshll.u32 %s4777_s13, 4  ;;  %s784_s25 = sshll.u32 %s4778_s6, 4  ;;  %s761_s11 = int_to_ptr.vmem [resolvable:$true] %s760_s11  ;;  %s785_s25 = int_to_ptr.vmem [resolvable:$true] %s784_s25 }
 0x207   : > { %s6229_s3 = sld [smem:[#allocation83_spill]] }
 0x20d   : > { %s4365_s16 = scalar_lea.hbm %s6229_s3, 16 }
 0x20e   : > { %p4366_p13 = scmp.ne.s32.totalorder %s6229_s3, %s4365_s16  ;;  %p4372_p3 = scmp.lt.u32.totalorder %s4365_s16, %s6229_s3 }
 0x210   : > { %p4368_p4 = pnand %p4366_p13, %p6224_p2 }
 0x212   : > { %p4369_p10 = pneg %p4368_p4 }
 0x214   : > { %p4374_p1 = pnand %p4372_p3, %p4369_p10 }
 0x216   : > { %4377 = shalt.err (!%p4374_p1)
}
 0x217   : > { %s4378_s23 = scalar_lea.vmem %s761_s11, 16  ;;  %s4385_s14 = scalar_lea.vmem %s761_s11, 32 }
 0x218   : > { %p4379_p0 = scmp.ne.s32.totalorder %s761_s11, %s4378_s23  ;;  %p4386_p6 = scmp.lt.s32.totalorder %s761_s11, %s761_s11 }
 0x219   : > { %p4387_p8 = scmp.lt.s32.totalorder %s4385_s14, %s4378_s23 }
 0x21a   : > { %p4381_p5 = pnand %p4379_p0, %p6224_p2 }
 0x21b   : > { %p4388_p11 = por %p4387_p8, %p4386_p6 }
 0x21c   : > { %p4382_p9 = pneg %p4381_p5 }
 0x21e   : > { %p4389_p12 = pnand %p4388_p11, %p4382_p9 }
 0x220   : > { %4392 = shalt.err (!%p4389_p12)
}
 0x221   : > { %3690 = dma.hbm_to_vmem [thread:$0]  (!%p6225_p7), %s6229_s3, 16, %s761_s11, [#allocation24]  }
 0x222   : > { %s6230_s17 = sld [smem:[#allocation85_spill]] }
 0x228   : > { %s4393_s5 = scalar_lea.hbm %s6230_s17, 16 }
 0x229   : > { %p4394_p13 = scmp.ne.s32.totalorder %s6230_s17, %s4393_s5  ;;  %p4400_p3 = scmp.lt.u32.totalorder %s4393_s5, %s6230_s17 }
 0x22b   : > { %p4396_p4 = pnand %p4394_p13, %p6224_p2 }
 0x22d   : > { %p4397_p10 = pneg %p4396_p4 }
 0x22f   : > { %p4402_p1 = pnand %p4400_p3, %p4397_p10 }
 0x231   : > { %4405 = shalt.err (!%p4402_p1)
}
 0x232   : > { %s4406_s14 = scalar_lea.vmem %s785_s25, 16  ;;  %s4413_s11 = scalar_lea.vmem %s785_s25, 32 }
 0x233   : > { %p4407_p0 = scmp.ne.s32.totalorder %s785_s25, %s4406_s14  ;;  %p4414_p6 = scmp.lt.s32.totalorder %s785_s25, %s785_s25 }
 0x234   : > { %p4415_p8 = scmp.lt.s32.totalorder %s4413_s11, %s4406_s14 }
 0x235   : > { %p4409_p5 = pnand %p4407_p0, %p6224_p2 }
 0x236   : > { %p4416_p11 = por %p4415_p8, %p4414_p6 }
 0x237   : > { %p4410_p9 = pneg %p4409_p5 }
 0x239   : > { %p4417_p12 = pnand %p4416_p11, %p4410_p9 }
 0x23b   : > { %4420 = shalt.err (!%p4417_p12)
}
 0x23c   : > { %3696 = dma.hbm_to_vmem [thread:$0]  (!%p6225_p7), %s6230_s17, 16, %s785_s25, [#allocation27]  }
 0x23d   : > { %s4779_s16 = smov [#allocation31]   ;;  %s4780_s5 = smov [#allocation34]  }
 0x23e   : > { %s808_s21 = sshll.u32 %s4779_s16, 4  ;;  %s832_s29 = sshll.u32 %s4780_s5, 4  ;;  %s809_s21 = int_to_ptr.vmem [resolvable:$true] %s808_s21  ;;  %s833_s29 = int_to_ptr.vmem [resolvable:$true] %s832_s29 }
 0x23f   : > { %s6231_s23 = sld [smem:[#allocation87_spill]] }
 0x245   : > { %s4421_s3 = scalar_lea.hbm %s6231_s23, 16 }
 0x246   : > { %p4422_p13 = scmp.ne.s32.totalorder %s6231_s23, %s4421_s3  ;;  %p4428_p3 = scmp.lt.u32.totalorder %s4421_s3, %s6231_s23 }
 0x248   : > { %p4424_p4 = pnand %p4422_p13, %p6224_p2 }
 0x24a   : > { %p4425_p10 = pneg %p4424_p4 }
 0x24c   : > { %p4430_p1 = pnand %p4428_p3, %p4425_p10 }
 0x24e   : > { %4433 = shalt.err (!%p4430_p1)
}
 0x24f   : > { %s4434_s25 = scalar_lea.vmem %s809_s21, 16  ;;  %s4441_s6 = scalar_lea.vmem %s809_s21, 32 }
 0x250   : > { %p4435_p0 = scmp.ne.s32.totalorder %s809_s21, %s4434_s25  ;;  %p4442_p6 = scmp.lt.s32.totalorder %s809_s21, %s809_s21 }
 0x251   : > { %p4443_p8 = scmp.lt.s32.totalorder %s4441_s6, %s4434_s25 }
 0x252   : > { %p4437_p5 = pnand %p4435_p0, %p6224_p2 }
 0x253   : > { %p4444_p11 = por %p4443_p8, %p4442_p6 }
 0x254   : > { %p4438_p9 = pneg %p4437_p5 }
 0x256   : > { %p4445_p12 = pnand %p4444_p11, %p4438_p9 }
 0x258   : > { %4448 = shalt.err (!%p4445_p12)
}
 0x259   : > { %3702 = dma.hbm_to_vmem [thread:$0]  (!%p6225_p7), %s6231_s23, 16, %s809_s21, [#allocation30]  }
 0x25a   : > { %s6232_s26 = sld [smem:[#allocation89_spill]] }
 0x260   : > { %s4449_s18 = scalar_lea.hbm %s6232_s26, 16 }
 0x261   : > { %p4450_p13 = scmp.ne.s32.totalorder %s6232_s26, %s4449_s18  ;;  %p4456_p3 = scmp.lt.u32.totalorder %s4449_s18, %s6232_s26 }
 0x263   : > { %p4452_p4 = pnand %p4450_p13, %p6224_p2 }
 0x265   : > { %p4453_p10 = pneg %p4452_p4 }
 0x267   : > { %p4458_p1 = pnand %p4456_p3, %p4453_p10 }
 0x269   : > { %4461 = shalt.err (!%p4458_p1)
}
 0x26a   : > { %s4462_s6 = scalar_lea.vmem %s833_s29, 16  ;;  %s4469_s21 = scalar_lea.vmem %s833_s29, 32 }
 0x26b   : > { %p4463_p0 = scmp.ne.s32.totalorder %s833_s29, %s4462_s6  ;;  %p4470_p6 = scmp.lt.s32.totalorder %s833_s29, %s833_s29 }
 0x26c   : > { %p4471_p8 = scmp.lt.s32.totalorder %s4469_s21, %s4462_s6 }
 0x26d   : > { %p4465_p5 = pnand %p4463_p0, %p6224_p2 }
 0x26e   : > { %p4472_p11 = por %p4471_p8, %p4470_p6 }
 0x26f   : > { %p4466_p9 = pneg %p4465_p5 }
 0x271   : > { %p4473_p12 = pnand %p4472_p11, %p4466_p9 }
 0x273   : > { %4476 = shalt.err (!%p4473_p12)
}
 0x274   : > { %3708 = dma.hbm_to_vmem [thread:$0]  (!%p6225_p7), %s6232_s26, 16, %s833_s29, [#allocation33]  }
 0x275   : > { %s4781_s10 = smov [#allocation37]   ;;  %s4782_s18 = smov [#allocation40]  }
 0x276   : > { %s856_s3 = sshll.u32 %s4781_s10, 4  ;;  %s879_s14 = sshll.u32 %s4782_s18, 4  ;;  %s857_s3 = int_to_ptr.vmem [resolvable:$true] %s856_s3  ;;  %s880_s14 = int_to_ptr.vmem [resolvable:$true] %s879_s14 }
 0x277   : > { %s6233_s25 = sld [smem:[#allocation91_spill]] }
 0x27d   : > { %s4477_s12 = scalar_lea.hbm %s6233_s25, 16 }
 0x27e   : > { %p4478_p13 = scmp.ne.s32.totalorder %s6233_s25, %s4477_s12  ;;  %p4484_p3 = scmp.lt.u32.totalorder %s4477_s12, %s6233_s25 }
 0x280   : > { %p4480_p4 = pnand %p4478_p13, %p6224_p2 }
 0x282   : > { %p4481_p10 = pneg %p4480_p4 }
 0x284   : > { %p4486_p1 = pnand %p4484_p3, %p4481_p10 }
 0x286   : > { %4489 = shalt.err (!%p4486_p1)
}
 0x287   : > { %s4490_s29 = scalar_lea.vmem %s857_s3, 16  ;;  %s4497_s5 = scalar_lea.vmem %s857_s3, 32 }
 0x288   : > { %p4491_p0 = scmp.ne.s32.totalorder %s857_s3, %s4490_s29  ;;  %p4498_p6 = scmp.lt.s32.totalorder %s857_s3, %s857_s3 }
 0x289   : > { %p4499_p8 = scmp.lt.s32.totalorder %s4497_s5, %s4490_s29 }
 0x28a   : > { %p4493_p5 = pnand %p4491_p0, %p6224_p2 }
 0x28b   : > { %p4500_p11 = por %p4499_p8, %p4498_p6 }
 0x28c   : > { %p4494_p9 = pneg %p4493_p5 }
 0x28e   : > { %p4501_p12 = pnand %p4500_p11, %p4494_p9 }
 0x290   : > { %4504 = shalt.err (!%p4501_p12)
}
 0x291   : > { %3714 = dma.hbm_to_vmem [thread:$0]  (!%p6225_p7), %s6233_s25, 16, %s857_s3, [#allocation36]  }
 0x292   : > { %s6234_s11 = sld [smem:[#allocation93_spill]] }
 0x298   : > { %s4505_s13 = scalar_lea.hbm %s6234_s11, 48 }
 0x299   : > { %p4506_p13 = scmp.ne.s32.totalorder %s6234_s11, %s4505_s13  ;;  %p4512_p3 = scmp.lt.u32.totalorder %s4505_s13, %s6234_s11 }
 0x29b   : > { %p4508_p4 = pnand %p4506_p13, %p6224_p2 }
 0x29d   : > { %p4509_p10 = pneg %p4508_p4 }
 0x29f   : > { %p4514_p1 = pnand %p4512_p3, %p4509_p10 }
 0x2a1   : > { %4517 = shalt.err (!%p4514_p1)
}
 0x2a2   : > { %s4518_s5 = scalar_lea.vmem %s880_s14, 48  ;;  %s4525_s3 = scalar_lea.vmem %s880_s14, 64 }
 0x2a3   : > { %p4519_p0 = scmp.ne.s32.totalorder %s880_s14, %s4518_s5  ;;  %p4526_p6 = scmp.lt.s32.totalorder %s880_s14, %s880_s14 }
 0x2a4   : > { %p4527_p8 = scmp.lt.s32.totalorder %s4525_s3, %s4518_s5 }
 0x2a5   : > { %p4521_p5 = pnand %p4519_p0, %p6224_p2 }
 0x2a6   : > { %p4528_p11 = por %p4527_p8, %p4526_p6 }
 0x2a7   : > { %p4522_p9 = pneg %p4521_p5 }
 0x2a9   : > { %p4529_p12 = pnand %p4528_p11, %p4522_p9 }
 0x2ab   : > { %4532 = shalt.err (!%p4529_p12)
}
 0x2ac   : > { %s6235_s10 = smov 1   ;;  %s6236_s18 = smov 16  }
 0x2ad   : > { %3720 = dma.hbm_to_vmem [thread:$0]  (!%p6225_p7), %s6234_s11, 48, %s880_s14, [#allocation39], %s6236_s18, %s6236_s18, %s6235_s10  }
 0x2ae   : > { %s6237_s8 = sshll.u32 %s4745_s30, 7  ;;  %s6238_s21 = sld [smem:[#allocation69_spill]] }
 0x2af   : > { %s6239_s29 = sshll.u32 %s5231_s9, 3  ;;  %s3241_s3 = sshll.u32 %s4745_s30, 4 }
 0x2b0   : > { %s897_s4 = scalar_lea.vmem [#allocation2], %s6239_s29  ;;  %s894_s12 = scalar_lea.sflag [#allocation3], %s5231_s9 }
 0x2b1   : > { %s904_s5 = sshll.u32 %s897_s4, 4  ;;  %p6240_p7 = scmp.ne.s32.totalorder %s6216_s0, 0  ;;  %s5532_s5 = int_to_ptr.vmem [resolvable:$true] %s904_s5 }
 0x2b4   : > { %s5528_s16 = scalar_lea.hbm %s6238_s21, %s6237_s8  ;;  %s4538_s18 = scalar_lea.hbm %s6238_s21, 256 }
 0x2b5   : > { %s4533_s17 = scalar_lea.hbm %s5528_s16, 128  ;;  %p4539_p10 = scmp.lt.u32.totalorder %s5528_s16, %s6238_s21 }
 0x2b6   : > { %p4534_p2 = scmp.ne.s32.totalorder %s5528_s16, %s4533_s17  ;;  %p4540_p3 = scmp.lt.u32.totalorder %s4538_s18, %s4533_s17 }
 0x2b7   : > { %p4542_p0 = scmp.lt.u32.totalorder %s4533_s17, %s5528_s16 }
 0x2b8   : > { %p4536_p13 = pnand %p4534_p2, %p6240_p7  ;;  %p4541_p1 = por %p4540_p3, %p4539_p10 }
 0x2ba   : > { %p4537_p4 = pneg %p4536_p13  ;;  %p4543_p5 = por %p4542_p0, %p4541_p1 }
 0x2bc   : > { %p4544_p9 = pnand %p4543_p5, %p4537_p4 }
 0x2be   : > { %4547 = shalt.err (!%p4544_p9)
}
 0x2bf   : > { %s4548_s6 = scalar_lea.vmem %s5532_s5, 128  ;;  %s4783_s29 = smov [#allocation2]  }
 0x2c0   : > { %p4549_p6 = scmp.ne.s32.totalorder %s5532_s5, %s4548_s6  ;;  %s4553_s4 = sshll.u32 %s4783_s29, 4  ;;  %s4554_s4 = int_to_ptr.vmem [resolvable:$false] %s4553_s4 }
 0x2c1   : > { %s4555_s14 = scalar_lea.vmem %s4554_s4, 256  ;;  %p4556_p12 = scmp.lt.s32.totalorder %s5532_s5, %s4554_s4 }
 0x2c2   : > { %p4551_p8 = pnand %p4549_p6, %p6240_p7  ;;  %p4557_p2 = scmp.lt.s32.totalorder %s4555_s14, %s4548_s6 }
 0x2c4   : > { %p4552_p11 = pneg %p4551_p8  ;;  %p4558_p13 = por %p4557_p2, %p4556_p12 }
 0x2c6   : > { %p4559_p10 = pnand %p4558_p13, %p4552_p11 }
 0x2c8   : > { %4562 = shalt.err (!%p4559_p10)
}
 0x2c9   : > { %p6241_p4 = scmp.ne.s32.totalorder %s6214_s20, 0  ;;  %s4563_s17 = scalar_lea.hbm %s5296_s28, 256 }
 0x2ca   : > { %p4564_p3 = scmp.ne.s32.totalorder %s5296_s28, %s4563_s17  ;;  %s4568_s8 = scalar_lea.hbm %s6217_s1, 512 }
 0x2cb   : > { %3724 = dma.hbm_to_vmem [thread:$0]  (!%p6241_p4), %s5528_s16, 128, %s5532_s5, %s894_s12  }
 0x2cc   : > { %p4566_p1 = pnand %p4564_p3, %p6240_p7  ;;  %p4569_p5 = scmp.lt.u32.totalorder %s5296_s28, %s6217_s1 }
 0x2cd   : > { %p4570_p9 = scmp.lt.u32.totalorder %s4568_s8, %s4563_s17  ;;  %p4572_p8 = scmp.lt.u32.totalorder %s4563_s17, %s5296_s28 }
 0x2ce   : > { %p4567_p0 = pneg %p4566_p1 }
 0x2cf   : > { %p4571_p6 = por %p4570_p9, %p4569_p5 }
 0x2d1   : > { %p4573_p11 = por %p4572_p8, %p4571_p6 }
 0x2d3   : > { %p4574_p12 = pnand %p4573_p11, %p4567_p0 }
 0x2d5   : > { %4577 = shalt.err (!%p4574_p12)
}
 0x2d6   : > { %s4578_s16 = scalar_lea.vmem %s5300_s19, 256  ;;  %s4784_s5 = smov [#allocation7]  }
 0x2d7   : > { %p4579_p2 = scmp.ne.s32.totalorder %s5300_s19, %s4578_s16  ;;  %s4583_s12 = sshll.u32 %s4784_s5, 4  ;;  %s4584_s12 = int_to_ptr.vmem [resolvable:$false] %s4583_s12 }
 0x2d8   : > { %s4585_s29 = scalar_lea.vmem %s4584_s12, 512  ;;  %p4586_p3 = scmp.lt.s32.totalorder %s5300_s19, %s4584_s12 }
 0x2d9   : > { %p4581_p13 = pnand %p4579_p2, %p6240_p7  ;;  %p4587_p1 = scmp.lt.s32.totalorder %s4585_s29, %s4578_s16 }
 0x2db   : > { %p4582_p10 = pneg %p4581_p13  ;;  %p4588_p5 = por %p4587_p1, %p4586_p3 }
 0x2dd   : > { %p4589_p9 = pnand %p4588_p5, %p4582_p10 }
 0x2df   : > { %4592 = shalt.err (!%p4589_p9)
}
 0x2e0   : > { %s6242_s4 = smov 8   ;;  %s6243_s14 = smov 128  }
 0x2e1   : > { %3730 = dma.hbm_to_vmem [thread:$0]  (!%p6241_p4), %s5296_s28, 256, %s5300_s19, %s5262_s15, %s6243_s14, %s6243_s14, %s6242_s4  }
 0x2e2   : > { %s6244_s18 = sld [smem:[#allocation73_spill]]  ;;  %s974_s13 = scalar_lea.vmem [#allocation10], %s5231_s9 }
 0x2e3   : > { %s981_s6 = sshll.u32 %s974_s13, 4  ;;  %s982_s6 = int_to_ptr.vmem [resolvable:$true] %s981_s6 }
 0x2e8   : > { %s5587_s8 = scalar_lea.hbm %s6244_s18, %s3241_s3  ;;  %s4598_s19 = scalar_lea.hbm %s6244_s18, 32 }
 0x2e9   : > { %s4593_s16 = scalar_lea.hbm %s5587_s8, 16  ;;  %p4599_p11 = scmp.lt.u32.totalorder %s5587_s8, %s6244_s18 }
 0x2ea   : > { %p4594_p0 = scmp.ne.s32.totalorder %s5587_s8, %s4593_s16  ;;  %p4600_p12 = scmp.lt.u32.totalorder %s4598_s19, %s4593_s16 }
 0x2eb   : > { %p4602_p13 = scmp.lt.u32.totalorder %s4593_s16, %s5587_s8 }
 0x2ec   : > { %p4596_p6 = pnand %p4594_p0, %p6240_p7  ;;  %p4601_p2 = por %p4600_p12, %p4599_p11 }
 0x2ee   : > { %p4597_p8 = pneg %p4596_p6  ;;  %p4603_p10 = por %p4602_p13, %p4601_p2 }
 0x2f0   : > { %p4604_p3 = pnand %p4603_p10, %p4597_p8 }
 0x2f2   : > { %4607 = shalt.err (!%p4604_p3)
}
 0x2f3   : > { %s4608_s9 = scalar_lea.vmem %s982_s6, 16  ;;  %s4785_s3 = smov [#allocation10]  }
 0x2f4   : > { %p4609_p1 = scmp.ne.s32.totalorder %s982_s6, %s4608_s9  ;;  %s4613_s29 = sshll.u32 %s4785_s3, 4  ;;  %s4614_s29 = int_to_ptr.vmem [resolvable:$false] %s4613_s29 }
 0x2f5   : > { %s4615_s4 = scalar_lea.vmem %s4614_s29, 32  ;;  %p4616_p0 = scmp.lt.s32.totalorder %s982_s6, %s4614_s29 }
 0x2f6   : > { %p4611_p5 = pnand %p4609_p1, %p6240_p7  ;;  %p4617_p6 = scmp.lt.s32.totalorder %s4615_s4, %s4608_s9 }
 0x2f8   : > { %p4612_p9 = pneg %p4611_p5  ;;  %p4618_p4 = por %p4617_p6, %p4616_p0 }
 0x2fa   : > { %p4619_p11 = pnand %p4618_p4, %p4612_p9 }
 0x2fc   : > { %4622 = shalt.err (!%p4619_p11)
}
 0x2fd   : > { %p6245_p12 = scmp.ne.s32.totalorder %s6214_s20, 0  ;;  %s6246_s14 = sld [smem:[#allocation59_spill]] }
 0x2ff   : > { %3736 = dma.hbm_to_vmem [thread:$0]  (!%p6245_p12), %s5587_s8, 16, %s982_s6, %s5313_s7  }
 0x303   : > { %p6247_p8 = scmp.ne.s32.totalorder %s6246_s14, 0 }
 0x305   : > { %990 = sbr.rel (%p6247_p8) target bundleno = 5058 (0x13c2), region = 120 }
 0x30c   : > { %s5611_s0 = sand.u32 1, %s4737_s2   ;;  %p6248_p7 = scmp.ne.s32.totalorder %s6209_s27, 0 }
 0x30d   : > { %s5614_s17 = sshll.u32 %s5611_s0, 3  ;;  %s993_s10 = scalar_lea.sflag [#allocation3], %s5611_s0 }
 0x30e   : > { %s996_s13 = scalar_lea.vmem [#allocation2], %s5614_s17 }
 0x30f   : > { %4676 = dma.done.wait (%p6248_p7), %s993_s10, 128  }
 0x310   : > { %4678 = vsyncadd (%p6248_p7), %s993_s10, 4294967168  ;;  %s6249_s20 = sld [smem:[#allocation58_spill]]  ;;  %s1005_s6 = scalar_lea.vmem [#allocation5], %s5614_s17 }
 0x316   : > { %s1001_s7 = sand.u32 1, %s6249_s20  }
 0x317   : > { %s1002_s8 = scalar_lea.sflag [#allocation6], %s1001_s7 }
 0x318   : > { %4680 = dma.done.wait (%p6248_p7), %s1002_s8, 384  }
 0x319   : > { %4682 = vsyncadd (%p6248_p7), %s1002_s8, 4294966912  ;;  %s3245_s16 = sshll.u32 %s5611_s0, 4  ;;  %s1020_s15 = scalar_lea.sflag [#allocation9], %s1001_s7 }
 0x31a   : > { %s5629_s5 = scalar_lea.vmem [#allocation7], %s3245_s16  ;;  %s5631_s19 = scalar_lea.vmem [#allocation8], %s3245_s16 }
 0x31b   : > { %4684 = dma.done.wait (%p6248_p7), %s1020_s15, 272  }
 0x31c   : > { %4686 = vsyncadd (%p6248_p7), %s1020_s15, 4294967024  ;;  %s1031_s28 = scalar_lea.vmem [#allocation10], %s5611_s0  ;;  %p6250_p4 = scmp.eq.s32.totalorder %s6249_s20, 0 }
 0x31e   : > { %4688 = dma.done.wait (%p6250_p4), [#allocation12], 272   ;;  %p6251_p2 = pmov %p6250_p4 }
 0x320   : > { %4690 = vsyncadd (%p6251_p2), [#allocation12], 4294967024  ;;  %p6252_p13 = pmov %p6251_p2 }
 0x321   : > { %p6253_p10 = pmov %p6251_p2 }
 0x322   : > { %4692 = dma.done.wait (%p6252_p13), [#allocation15], 272  }
 0x323   : > { %4694 = vsyncadd (%p6253_p10), [#allocation15], 4294967024  ;;  %p6254_p3 = pmov %p6251_p2 }
 0x324   : > { %p6255_p1 = pmov %p6251_p2 }
 0x325   : > { %4696 = dma.done.wait (%p6254_p3), [#allocation18], 272  }
 0x326   : > { %4698 = vsyncadd (%p6255_p1), [#allocation18], 4294967024  ;;  %p6256_p5 = pmov %p6255_p1 }
 0x327   : > { %p6257_p9 = pmov %p6255_p1 }
 0x328   : > { %4700 = dma.done.wait (%p6256_p5), [#allocation21], 272  }
 0x329   : > { %4702 = vsyncadd (%p6257_p9), [#allocation21], 4294967024  ;;  %p6258_p0 = pmov %p6255_p1 }
 0x32b   : > { %4704 = dma.done.wait (%p6258_p0), [#allocation24], 272   ;;  %p6259_p6 = pmov %p6258_p0 }
 0x32c   : > { %p6260_p11 = pmov %p6258_p0 }
 0x32d   : > { %4706 = vsyncadd (%p6259_p6), [#allocation24], 4294967024 }
 0x32e   : > { %4708 = dma.done.wait (%p6260_p11), [#allocation27], 272   ;;  %p6261_p12 = pmov %p6258_p0 }
 0x32f   : > { %p6262_p8 = pmov %p6258_p0 }
 0x330   : > { %4710 = vsyncadd (%p6261_p12), [#allocation27], 4294967024 }
 0x331   : > { %4712 = dma.done.wait (%p6262_p8), [#allocation30], 272   ;;  %p6263_p7 = pmov %p6258_p0 }
 0x332   : > { %p6264_p4 = pmov %p6258_p0 }
 0x333   : > { %4714 = vsyncadd (%p6263_p7), [#allocation30], 4294967024 }
 0x334   : > { %4716 = dma.done.wait (%p6264_p4), [#allocation33], 272   ;;  %p6265_p2 = pmov %p6258_p0 }
 0x335   : > { %p6266_p13 = pmov %p6258_p0 }
 0x336   : > { %4718 = vsyncadd (%p6265_p2), [#allocation33], 4294967024 }
 0x337   : > { %4720 = dma.done.wait (%p6266_p13), [#allocation36], 528   ;;  %p6267_p10 = pmov %p6258_p0 }
 0x338   : > { %p6268_p3 = pmov %p6258_p0 }
 0x339   : > { %4722 = vsyncadd (%p6267_p10), [#allocation36], 4294966768 }
 0x33a   : > { %4724 = dma.done.wait (%p6268_p3), [#allocation39], 96   ;;  %p6269_p1 = pmov %p6258_p0 }
 0x33b   : > { %v4786_v0 = vmov 0.0   ;;  %vm4787_vm0 = vmmov 0   ;;  %v5678_v1 = vld [vmem:[#allocation11] sm:$0xf]  ;;  %v5680_v2 = vld [vmem:[#allocation11 + $0x4] sm:$0xf] }
 0x33c   : > { %4726 = vsyncadd (%p6269_p1), [#allocation39], 4294967200  ;;  %3396 = vmatprep.subr.bf16.mxu0 %v4786_v0  ;;  %3404 = vmatprep.subr.bf16.mxu1 %v4786_v0  ;;  %6270 = vst [vmem:[#allocation64_spill] sm:$0xff] %v5678_v1  ;;  %v5682_v3 = vld [vmem:[#allocation11 + $0x8] sm:$0xf]  ;;  %v5776_v48 = vld [vmem:[%s1005_s6] sm:$0xff] }
 0x33d   : > { %3400 = vmatprep.mubr.msk.bf16.mxu0 %vm4787_vm0, %v4786_v0  ;;  %3408 = vmatprep.mubr.msk.bf16.mxu1 %vm4787_vm0, %v4786_v0  ;;  %6271 = vst [vmem:[#allocation65_spill] sm:$0xff] %v5680_v2  ;;  %6272 = vst [vmem:[#allocation66_spill] sm:$0xff] %v5682_v3  ;;  %v5684_v4 = vld [vmem:[#allocation11 + $0xc] sm:$0xf]  ;;  %v5686_v5 = vld [vmem:[#allocation13] ss:$0 sm:$0xff] }
 0x33e   : > { %v5688_v6 = vld [vmem:[#allocation14] sm:$0xf]  ;;  %v5690_v7 = vld [vmem:[#allocation14 + $0x4] sm:$0xf]  ;;  %v5692_v8 = vld [vmem:[#allocation14 + $0x8] sm:$0xf] }
 0x33f   : > { %v5694_v9 = vld [vmem:[#allocation14 + $0xc] sm:$0xf]  ;;  %v5696_v10 = vld [vmem:[#allocation16] ss:$0 sm:$0xff]  ;;  %v5698_v11 = vld [vmem:[#allocation17] sm:$0xf] }
 0x340   : > { %v5700_v12 = vld [vmem:[#allocation17 + $0x4] sm:$0xf]  ;;  %v5702_v13 = vld [vmem:[#allocation17 + $0x8] sm:$0xf]  ;;  %v5704_v14 = vld [vmem:[#allocation17 + $0xc] sm:$0xf] }
 0x341   : > { %v5706_v15 = vld [vmem:[#allocation19] ss:$0 sm:$0xff]  ;;  %v5708_v16 = vld [vmem:[#allocation20] sm:$0xf]  ;;  %v5710_v17 = vld [vmem:[#allocation20 + $0x4] sm:$0xf] }
 0x342   : > { %v5712_v18 = vld [vmem:[#allocation20 + $0x8] sm:$0xf]  ;;  %v5714_v19 = vld [vmem:[#allocation20 + $0xc] sm:$0xf]  ;;  %v5716_v20 = vld [vmem:[#allocation22] ss:$0 sm:$0xff] }
 0x343   : > { %v5718_v21 = vld [vmem:[#allocation29] sm:$0xf]  ;;  %v5720_v22 = vld [vmem:[#allocation29 + $0x4] sm:$0xf]  ;;  %v5722_v23 = vld [vmem:[#allocation29 + $0x8] sm:$0xf] }
 0x344   : > { %v5724_v24 = vld [vmem:[#allocation29 + $0xc] sm:$0xf]  ;;  %v5726_v25 = vld [vmem:[#allocation31] ss:$0 sm:$0xff]  ;;  %v5728_v26 = vld [vmem:[#allocation32] sm:$0xf] }
 0x345   : > { %v5730_v27 = vld [vmem:[#allocation32 + $0x4] sm:$0xf]  ;;  %v5732_v28 = vld [vmem:[#allocation32 + $0x8] sm:$0xf]  ;;  %v5734_v29 = vld [vmem:[#allocation32 + $0xc] sm:$0xf] }
 0x346   : > { %v5736_v30 = vld [vmem:[#allocation34] ss:$0 sm:$0xff]  ;;  %v5738_v31 = vld [vmem:[#allocation35] sm:$0xf]  ;;  %v5740_v32 = vld [vmem:[#allocation35 + $0x4] sm:$0xf] }
 0x347   : > { %v5742_v33 = vld [vmem:[#allocation35 + $0x8] sm:$0xf]  ;;  %v5744_v34 = vld [vmem:[#allocation35 + $0xc] sm:$0xf]  ;;  %v5746_v35 = vld [vmem:[#allocation35 + $0x10] sm:$0xf] }
 0x348   : > { %v5748_v36 = vld [vmem:[#allocation35 + $0x14] sm:$0xf]  ;;  %v5750_v37 = vld [vmem:[#allocation35 + $0x18] sm:$0xf]  ;;  %v5752_v38 = vld [vmem:[#allocation35 + $0x1c] sm:$0xf] }
 0x349   : > { %v5754_v39 = vld [vmem:[#allocation37] ss:$0 sm:$0xff]  ;;  %v5756_v40 = vld [vmem:[#allocation38] ss:$0 sm:$0xff]  ;;  %v5758_v41 = vld [vmem:[#allocation38 + $0x1] ss:$0 sm:$0xff] }
 0x34a   : > { %v5760_v42 = vld [vmem:[#allocation38 + $0x2] ss:$0 sm:$0xff]  ;;  %v5762_v43 = vld [vmem:[#allocation40] ss:$0 sm:$0xff]  ;;  %v5764_v44 = vld [vmem:[#allocation40 + $0x1] ss:$0 sm:$0xff] }
 0x34b   : > { %6273 = vst [vmem:[#allocation67_spill] sm:$0xff] %v5760_v42  ;;  %v5766_v45 = vld [vmem:[#allocation40 + $0x2] ss:$0 sm:$0xff]  ;;  %v5770_v46 = vld [vmem:[%s1031_s28] ss:$0 sm:$0xff]  ;;  %v3871_v49 = vld [vmem:[#allocation23] sm:$0xff]  }
 0x34c   : > { %6274 = vst [vmem:[#allocation68_spill] sm:$0xff] %v5766_v45  ;;  %v1254_v47 = vld [vmem:[%s996_s13] sm:$0xff]   ;;  %3397 = vmatpush3.bf16.msra.mxu0 %v3871_v49  ;;  %v3873_v51 = vld [vmem:[#allocation23 + $0x8] sm:$0xff]   ;;  %vm1282_vm1 = vcmask 261120   ;;  %v3268_v61 = vld [vmem:[#allocation25] ss:$0 sm:$0xff] }
 0x34d   : > { %v3872_v50 = vld [vmem:[#allocation26] sm:$0xff]   ;;  %3398 = vmatprep.subr.bf16.mxu0 %v4786_v0  ;;  %v3874_v52 = vld [vmem:[#allocation26 + $0x8] sm:$0xff]   ;;  %v3272_v63 = vld [vmem:[#allocation28] ss:$0 sm:$0xff]  ;;  %s1196_s27 = scalar_lea.vmem [#allocation41], %s5614_s17  ;;  %s5791_s12 = smov 0  }
 0x34e   : > { %3405 = vmatpush3.bf16.msra.mxu1 %v3872_v50  ;;  %v1256_v53 = vld [vmem:[%s5629_s5] sm:$0xff]  ;;  %v1257_v54 = vld [vmem:[%s5629_s5 + $0x8] sm:$0xff] }
 0x34f   : > { %3406 = vmatprep.subr.bf16.mxu1 %v4786_v0  ;;  %v1258_v55 = vld [vmem:[%s5631_s19] sm:$0xff]  ;;  %v1259_v56 = vld [vmem:[%s5631_s19 + $0x8] sm:$0xff]  ;;  %v1263_v59 = vpack.c.bf16 %v1257_v54, %v1256_v53 }
 0x350   : > { %v1260_v57 = vadd.f32 %v1258_v55, %v1256_v53  ;;  %3399 = vmatpush3.bf16.msra.mxu0 %v3873_v51  ;;  %v1261_v58 = vadd.f32 %v1259_v56, %v1257_v54 }
 0x352   : > { %3407 = vmatpush3.bf16.msra.mxu1 %v3874_v52  ;;  %v1262_v60 = vpack.c.bf16 %v1261_v58, %v1260_v57 }
 0x354   : > { %3401 = vmatmul.mubr.msk.bf16.vlgmr.msra.gmra.mrb[0].mxu0 %vm1282_vm1, %v1262_v60 }
 0x355   : > { %3409 = vmatmul.mubr.msk.bf16.vlgmr.msra.gmra.mrb[0].mxu1 %vm1282_vm1, %v1263_v59 }
 0x427   : > { %v1320_v62 = vpop.f32.mrb[0].mxu0 }
 0x428   : > { %v1383_v0 = vpop.f32.mrb[0].mxu1  ;;  %v3402_v49 = vpop.f32.mrb[1].mxu0  ;;  %v1321_v55 = vadd.f32 %v3268_v61, %v1320_v62 }
 0x429   : > { %v3410_v50 = vpop.f32.mrb[1].mxu1  ;;  %v1323_v45 = vpop.f32.mrb[2].mxu0  ;;  %v1384_v51 = vadd.f32 %v3272_v63, %v1383_v0 }
 0x42a   : > { %v1386_v42 = vpop.f32.mrb[2].mxu1  ;;  %v1324_v56 = vadd.f32 %v3268_v61, %v1323_v45  ;;  %v3403_v52 = vpop.f32.mrb[3].mxu0 }
 0x42b   : > { %v1387_v53 = vadd.f32 %v3272_v63, %v1386_v42  ;;  %v3411_v54 = vpop.f32.mrb[3].mxu1 }
 0x42c   : > { %v5784_v57 = vpack.c.bf16 %v1324_v56, %v1321_v55 }
 0x42d   : > { %v5786_v58 = vpack.c.bf16 %v1387_v53, %v1384_v51 }
 0x42e LB: >> { %v6275_v2 = vld [vmem:[#allocation65_spill] sm:$0xff]  ;;  %v6276_v1 = vld [vmem:[#allocation64_spill] sm:$0xff]  ;;  %v6161_v45 = vmov 0.0   ;;  %vm4789_vm2 = vmmov 0   ;;  %v6277_v3 = vld [vmem:[#allocation66_spill] sm:$0xff]  ;;  %v1398_v60 = vadd.f32 %v4749_v47, %v5776_v48  ;;  %v3281_v50 = vcombine.low %v5688_v6, %v5690_v7  ;;  %s4790_s9 = smov 120   ;;  %s4753_s12 = sphi %s5791_s12, %s1396_s12   ;;  %v4749_v47 = vphi %v1254_v47, %v6281_v47  }
 0x42f   : >> { %v3277_v42 = vcombine.low %v6276_v1, %v6275_v2  ;;  %3412 = vmatprep.subr.bf16.mxu1 %v6161_v45  ;;  %3416 = vmatprep.mubr.msk.bf16.mxu1 %vm4789_vm2, %v6161_v45  ;;  %v3278_v59 = vcombine.low %v6277_v3, %v5684_v4  ;;  %v3282_v56 = vcombine.low %v5692_v8, %v5694_v9  ;;  %s4791_s3 = smov 96   ;;  %s4792_s29 = smov 80   ;;  %vm1528_vm3 = vcmask 64512  }
 0x430   : >> { %3428 = vmatprep.subr.bf16.mxu0 %v6161_v45  ;;  %3430 = vmatprep.mubr.msk.bf16.mxu0 %vm4789_vm2, %v6161_v45  ;;  %v1399_v61 = vpack.c.bf16 %v1398_v60, %v1398_v60  ;;  %s4793_s4 = smov 88   ;;  %v1462_v53 = vpack.c.bf16 %v4749_v47, %v4749_v47  ;;  %s4794_s14 = smov 72   ;;  %vm1589_vm4 = vcmask 1043456   ;;  %v6278_v2 = vmov 0.0  }
 0x431   : >> { %3413 = vmatpush3.bf16.msra.mxu1 %v3277_v42  ;;  %s4795_s10 = smov 112   ;;  %s4796_s13 = smov 104   ;;  %vm1978_vm5 = vcmask 130048   ;;  %vm1980_vm6 = vcmask 195584   ;;  %vm2770_vm7 = vcmask 523264  }
 0x432   : >> { %3414 = vmatprep.subr.bf16.mxu1 %v6161_v45  ;;  %s4797_s20 = smov 8   ;;  %s4798_s7 = smov 16  }
 0x433   : >> { %s4799_s8 = smov 24   ;;  %s1396_s12 = sadd.s32 1, %s4753_s12  }
 0x434   : >> { %p1393_p5 = scmp.ge.s32.totalorder %s1396_s12, 2  }
 0x435   : >> { %3415 = vmatpush3.bf16.msra.mxu1 %v3278_v59  ;;  %s6282_s6 = sld [smem:[#allocation58_spill]] (%p1393_p5)  ;;  %s6283_s16 = sld [smem:[#allocation62_spill]] (%p1393_p5) }
 0x436   : >> { %3420 = vmatprep.subr.bf16.mxu1 %v6161_v45  ;;  %s6284_s28 = sld [smem:[#allocation94_spill]] (%p1393_p5) }
 0x438   : >> { %3417 = vmatmul.mubr.msk.bf16.vlgmr.msra.gmra.mrb[0].mxu1 %vm1282_vm1, %v1399_v61 }
 0x439   : >> { %3424 = vmatprep.mubr.msk.bf16.mxu1 %vm4789_vm2, %v6161_v45  ;;  %3421 = vmatpush3.bf16.msra.mxu1 %v3281_v50 }
 0x43a   : >> { %3422 = vmatprep.subr.bf16.mxu1 %v6161_v45 }
 0x43b   : > { %s3330_s5 = sshll.u32 (%p1393_p5), %s6282_s6, 7  ;;  %p6285_p0 = scmp.ne.s32.totalorder (%p1393_p5), %s6283_s16, 0 }
 0x43d   : >> { %3423 = vmatpush3.bf16.msra.mxu1 %v3282_v56 }
 0x43e   : >> { %3434 = vmatprep.subr.bf16.mxu1 %v6161_v45 }
 0x440   : >> { %3425 = vmatmul.mubr.msk.bf16.vlgmr.msra.gmra.mrb[4].mxu1 %vm1282_vm1, %v1462_v53 }
 0x441   : >> { %3436 = vmatprep.mubr.msk.bf16.mxu1 %vm4789_vm2, %v6161_v45 }
 0x50b   : >> { %v1455_v62 = vpop.f32.mrb[0].mxu1 }
 0x50c   : >> { %v1456_v63 = vadd.f32 %v5686_v5, %v1455_v62  ;;  %v3418_v0 = vpop.f32.mrb[1].mxu1 }
 0x50d   : >> { %v1458_v49 = vpop.f32.mrb[2].mxu1 }
 0x50e   : >> { %v1461_v55 = vpack.c.bf16 %v1456_v63, %v1456_v63  ;;  %v3419_v51 = vpop.f32.mrb[3].mxu1 }
 0x510   : >> { %1634 = vrot.lane.b32.xlu1 %v1461_v55, %s4790_s9  ;;  %1526 = vrot.lane.b32.xlu0 %v1461_v55, %s4791_s3  ;;  %s2857_s3 = sshll.u32 (%p1393_p5), %s1196_s27, 4  ;;  %s2858_s3 = int_to_ptr.vmem [resolvable:$true] %s2857_s3 }
 0x511   : > { %s4623_s12 = scalar_lea.vmem (%p1393_p5), %s2858_s3, 128 }
 0x512   : > { %p4624_p9 = scmp.ne.s32.totalorder (%p1393_p5), %s2858_s3, %s4623_s12 }
 0x514   : >> { %1747 = vrot.lane.b32.xlu1 %v1461_v55, %s4792_s29  ;;  %1636 = vrot.lane.b32.xlu0 %v1461_v55, %s4793_s4  ;;  %s2844_s29 = scalar_lea.sflag (%p1393_p5), [#allocation4], %s5611_s0  ;;  %p4625_p6 = pnand (%p1393_p5), %p4624_p9, %p6285_p0 }
 0x515   : > { %s4800_s4 = smov (%p1393_p5), [#allocation41]  }
 0x516   : > { %p4626_p11 = pneg (%p1393_p5), %p4625_p6 }
 0x518   : >> { %1857 = vrot.lane.b32.xlu1 %v1461_v55, %s4794_s14  ;;  %1745 = vrot.lane.b32.xlu0 %v1461_v55, %s4795_s10  ;;  %s4627_s14 = sshll.u32 (%p1393_p5), %s4800_s4, 4  ;;  %s4628_s14 = int_to_ptr.vmem [resolvable:$false] %s4627_s14 }
 0x519   : > { %p4630_p12 = scmp.lt.s32.totalorder (%p1393_p5), %s2858_s3, %s4628_s14 }
 0x51c   : >> { %1855 = vrot.lane.b32.xlu0 %v1461_v55, %s4796_s13 }
 0x582   : >> { %v1527_v52 = vpop.permute.xlu0 %1526  ;;  %v1635_v59 = vpop.permute.xlu1 %1634 }
 0x583   : >> { %v1533_v54 = vsel %vm1528_vm3, %v1527_v52, 0 }
 0x584   : >> { %3429 = vmatpush3.bf16.xpose.msra.mxu0 %v1533_v54 }
 0x585   : >> { %3440 = vmatprep.subr.bf16.mxu0 %v6161_v45 }
 0x586   : >> { %v1637_v42 = vpop.permute.xlu0 %1636  ;;  %v1748_v61 = vpop.permute.xlu1 %1747 }
 0x587   : >> { %v1642_v60 = vsel %vm1528_vm3, %v1637_v42, 0  ;;  %v1753_v62 = vsel %vm1528_vm3, %v1748_v61, 0 }
 0x58a   : >> { %v1858_v63 = vpop.permute.xlu1 %1857  ;;  %v1746_v0 = vpop.permute.xlu0 %1745 }
 0x58b   : >> { %3431 = vmatmul.mubr.msk.bf16.vlgmr.msra.gmra.mrb[0].mxu0 %vm1528_vm3, %v1461_v55  ;;  %v1863_v49 = vsel %vm1528_vm3, %v1858_v63, 0  ;;  %v1518_v55 = vpop.f32.mrb[4].mxu1 }
 0x58c   : >> { %3441 = vmatpush3.bf16.xpose.msra.mxu0 %v1642_v60  ;;  %3442 = vmatprep.mubr.msk.bf16.mxu0 %vm4789_vm2, %v6161_v45  ;;  %v1519_v51 = vadd.f32 %v5696_v10, %v1518_v55  ;;  %v3426_v56 = vpop.f32.mrb[5].mxu1 }
 0x58d   : >> { %3452 = vmatprep.subr.bf16.mxu0 %v6161_v45  ;;  %v1521_v53 = vpop.f32.mrb[6].mxu1 }
 0x58e   : >> { %v1856_v50 = vpop.permute.xlu0 %1855  ;;  %v3427_v52 = vpop.f32.mrb[7].mxu1  ;;  %v1524_v54 = vpack.c.bf16 %v1519_v51, %v1519_v51 }
 0x590   : >> { %v1591_v42 = vsel %vm1589_vm4, %v1524_v54, 0 }
 0x591   : >> { %3435 = vmatpush3.bf16.msra.mxu1 %v1591_v42 }
 0x592   : >> { %3446 = vmatprep.subr.bf16.mxu1 %v6161_v45 }
 0x593   : >> { %3443 = vmatmul.mubr.msk.bf16.vlgmr.msra.gmra.mrb[4].mxu0 %vm1528_vm3, %v1635_v59 }
 0x594   : >> { %3453 = vmatpush3.bf16.xpose.msra.mxu0 %v1753_v62  ;;  %3454 = vmatprep.mubr.msk.bf16.mxu0 %vm4789_vm2, %v6161_v45 }
 0x595   : >> { %3464 = vmatprep.subr.bf16.mxu0 %v6161_v45 }
 0x59b   : >> { %3455 = vmatmul.mubr.msk.bf16.vlgmr.msra.gmra.mrb[8].mxu0 %vm1528_vm3, %v1746_v0 }
 0x59c   : >> { %3465 = vmatpush3.bf16.xpose.msra.mxu0 %v1863_v49  ;;  %3466 = vmatprep.mubr.msk.bf16.mxu0 %vm4789_vm2, %v6161_v45 }
 0x59d   : >> { %3476 = vmatprep.subr.bf16.mxu0 %v6161_v45 }
 0x5a3   : >> { %3467 = vmatmul.mubr.msk.bf16.vlgmr.msra.gmra.mrb[12].mxu0 %vm1528_vm3, %v1856_v50 }
 0x5a4   : >> { %3480 = vmatprep.mubr.msk.bf16.mxu0 %vm4789_vm2, %v6161_v45 }
 0x65e   : >> { %v1569_v59 = vpop.f32.mrb[0].mxu0 }
 0x65f   : >> { %v3432_v60 = vpop.f32.mrb[1].mxu0  ;;  %v1575_v61 = vsel %vm1528_vm3, %v1569_v59, -inf }
 0x660   : >> { %1576 = vmax.xlane.f32.xlu1 %v1575_v61  ;;  %v1572_v62 = vpop.f32.mrb[2].mxu0 }
 0x661   : >> { %v3433_v63 = vpop.f32.mrb[3].mxu0 }
 0x666   : >> { %v1678_v0 = vpop.f32.mrb[4].mxu0 }
 0x667   : >> { %v3444_v49 = vpop.f32.mrb[5].mxu0  ;;  %v1684_v50 = vsel %vm1528_vm3, %v1678_v0, -inf }
 0x668   : >> { %1685 = vmax.xlane.f32.xlu0 %v1684_v50  ;;  %v1681_v55 = vpop.f32.mrb[6].mxu0 }
 0x669   : >> { %v3445_v51 = vpop.f32.mrb[7].mxu0 }
 0x66e   : >> { %v1789_v56 = vpop.f32.mrb[8].mxu0 }
 0x66f   : >> { %v3456_v53 = vpop.f32.mrb[9].mxu0  ;;  %v1795_v52 = vsel %vm1528_vm3, %v1789_v56, -inf }
 0x670   : >> { %1796 = vmax.xlane.f32.xlu0 %v1795_v52  ;;  %v1792_v42 = vpop.f32.mrb[10].mxu0 }
 0x671   : >> { %v3457_v45 = vpop.f32.mrb[11].mxu0  ;;  %1806 = vrot.lane.b32.xlu1 %v1524_v54, %s4795_s10 }
 0x676   : >> { %v1899_v60 = vpop.f32.mrb[12].mxu0 }
 0x677   : >> { %v3468_v61 = vpop.f32.mrb[13].mxu0  ;;  %v1905_v49 = vsel %vm1528_vm3, %v1899_v60, -inf }
 0x678   : >> { %v1902_v62 = vpop.f32.mrb[14].mxu0 }
 0x679   : >> { %v3469_v63 = vpop.f32.mrb[15].mxu0 }
 0x686   : >> { %1696 = vrot.lane.b32.xlu0 %v1524_v54, %s4790_s9 }
 0x695   : >> { %1906 = vmax.xlane.f32.xlu1 %v1905_v49 }
 0x6a6   : >> { %1916 = vrot.lane.b32.xlu1 %v1524_v54, %s4796_s13 }
 0x6ed   : >> { %v1577_v50 = vpop.xlane.xlu1 %1576 }
 0x6ee   : >> { %v1578_v55 = vsub.f32 %v1569_v59, %v1577_v50 }
 0x6f0   : >> { %v1579_v51 = vmul.f32 1.442695, %v1578_v55 }
 0x6f1   : >> { %v1807_v50 = vpop.permute.xlu1 %1806 }
 0x6f2   : >> { %3875 = vpow2.f32 %v1579_v51 }
 0x6f5   : >> { %v1686_v53 = vpop.xlane.xlu0 %1685 }
 0x6f6   : >> { %v1687_v52 = vsub.f32 %v1678_v0, %v1686_v53 }
 0x6f8   : >> { %v1688_v45 = vmul.f32 1.442695, %v1687_v52 }
 0x6fa   : >> { %3877 = vpow2.f32 %v1688_v45 }
 0x6fc   : >> { %v3876_v42 = vpop.eup %3875 }
 0x6fd   : >> { %v1797_v1 = vpop.xlane.xlu0 %1796  ;;  %v1585_v61 = vpack.c.bf16 %v3876_v42, %v3876_v42 }
 0x6fe   : >> { %v1798_v62 = vsub.f32 %v1789_v56, %v1797_v1  ;;  %v1812_v1 = vsel %vm1589_vm4, %v1807_v50, 0 }
 0x6ff   : >> { %3437 = vmatmul.mubr.msk.bf16.vlgmr.msra.gmra.mrb[8].mxu1 %vm1528_vm3, %v1585_v61 }
 0x700   : >> { %v1799_v63 = vmul.f32 1.442695, %v1798_v62  ;;  %3448 = vmatprep.mubr.msk.bf16.mxu1 %vm4789_vm2, %v6278_v2 }
 0x701   : >> { %v1697_v49 = vpop.permute.xlu0 %1696 }
 0x702   : >> { %3879 = vpow2.f32 %v1799_v63  ;;  %v1702_v54 = vsel %vm1589_vm4, %v1697_v49, 0 }
 0x703   : >> { %3447 = vmatpush3.bf16.msra.mxu1 %v1702_v54 }
 0x704   : >> { %v3878_v59 = vpop.eup %3877  ;;  %3458 = vmatprep.subr.bf16.mxu1 %v6278_v2 }
 0x705   : >> { %v1690_v0 = vsel %vm1528_vm3, %v3878_v59, 0.0  ;;  %v1694_v55 = vpack.c.bf16 %v3878_v59, %v3878_v59 }
 0x706   : >> { %1691 = vadd.xlane.f32.xlu0 %v1690_v0 }
 0x707   : >> { %3449 = vmatmul.mubr.msk.bf16.vlgmr.msra.gmra.mrb[12].mxu1 %vm1528_vm3, %v1694_v55 }
 0x708   : >> { %3459 = vmatpush3.bf16.msra.mxu1 %v1812_v1  ;;  %3460 = vmatprep.mubr.msk.bf16.mxu1 %vm4789_vm2, %v6278_v2 }
 0x709   : >> { %3470 = vmatprep.subr.bf16.mxu1 %v6278_v2 }
 0x70c   : >> { %v3880_v56 = vpop.eup %3879 }
 0x70d   : >> { %v1801_v51 = vsel %vm1528_vm3, %v3880_v56, 0.0  ;;  %v1805_v53 = vpack.c.bf16 %v3880_v56, %v3880_v56 }
 0x70e   : >> { %1802 = vadd.xlane.f32.xlu1 %v1801_v51 }
 0x70f   : >> { %3461 = vmatmul.mubr.msk.bf16.vlgmr.msra.gmra.mrb[16].mxu1 %vm1528_vm3, %v1805_v53  ;;  %v3293_v53 = vcombine.low %v5698_v11, %v5700_v12 }
 0x710   : >> { %3472 = vmatprep.mubr.msk.bf16.mxu1 %vm4789_vm2, %v6278_v2 }
 0x711   : >> { %3477 = vmatpush3.bf16.msra.mxu0 %v3293_v53 }
 0x712   : >> { %3478 = vmatprep.subr.bf16.mxu0 %v6278_v2 }
 0x722   : >> { %v1907_v52 = vpop.xlane.xlu1 %1906 }
 0x723   : >> { %v1908_v45 = vsub.f32 %v1899_v60, %v1907_v52  ;;  %v1581_v60 = vsel %vm1528_vm3, %v3876_v42, 0.0 }
 0x725   : >> { %v1909_v61 = vmul.f32 1.442695, %v1908_v45 }
 0x726   : >> { %v1917_v62 = vpop.permute.xlu1 %1916 }
 0x727   : >> { %3881 = vpow2.f32 %v1909_v61  ;;  %v1922_v63 = vsel %vm1589_vm4, %v1917_v62, 0 }
 0x728   : >> { %3471 = vmatpush3.bf16.msra.mxu1 %v1922_v63 }
 0x729   : >> { %3484 = vmatprep.subr.bf16.mxu1 %v6278_v2 }
 0x731   : >> { %v3882_v49 = vpop.eup %3881 }
 0x732   : >> { %v1911_v54 = vsel %vm1528_vm3, %v3882_v49, 0.0  ;;  %v1915_v59 = vpack.c.bf16 %v3882_v49, %v3882_v49 }
 0x733   : >> { %1912 = vadd.xlane.f32.xlu0 %v1911_v54 }
 0x734   : >> { %3473 = vmatmul.mubr.msk.bf16.vlgmr.msra.gmra.mrb[20].mxu1 %vm1528_vm3, %v1915_v59 }
 0x735   : >> { %3488 = vmatprep.mubr.msk.bf16.mxu1 %vm4789_vm2, %v6278_v2 }
 0x737   : >> { %1582 = vadd.xlane.f32.xlu0 %v1581_v60 }
 0x793   : >> { %v1692_v50 = vpop.xlane.xlu0 %1691 }
 0x794   : >> { %3883 = vrcp.f32 %v1692_v50 }
 0x79b   : >> { %v1803_v56 = vpop.xlane.xlu1 %1802 }
 0x79c   : >> { %3885 = vrcp.f32 %v1803_v56  ;;  %v3294_v56 = vcombine.low %v5702_v13, %v5704_v14 }
 0x79e   : >> { %v3884_v52 = vpop.eup %3883  ;;  %3479 = vmatpush3.bf16.msra.mxu0 %v3294_v56 }
 0x79f   : >> { %3492 = vmatprep.subr.bf16.mxu0 %v6278_v2 }
 0x7a6   : >> { %v3886_v49 = vpop.eup %3885 }
 0x7d2   : >> { %v1627_v0 = vpop.f32.mrb[8].mxu1 }
 0x7d3   : >> { %v3438_v55 = vpop.f32.mrb[9].mxu1 }
 0x7d4   : >> { %v1630_v1 = vpop.f32.mrb[10].mxu1 }
 0x7d5   : >> { %v3439_v51 = vpop.f32.mrb[11].mxu1  ;;  %v1913_v1 = vpop.xlane.xlu0 %1912 }
 0x7d6   : >> { %3887 = vrcp.f32 %v1913_v1 }
 0x7da   : >> { %v1738_v45 = vpop.f32.mrb[12].mxu1 }
 0x7db   : >> { %v1744_v61 = vmul.f32 %v3884_v52, %v1738_v45  ;;  %v3450_v62 = vpop.f32.mrb[13].mxu1 }
 0x7dc   : >> { %v1741_v42 = vpop.f32.mrb[14].mxu1 }
 0x7dd   : >> { %1966 = vrot.lane.b32.xlu1 %v1744_v61, %s4797_s20  ;;  %v3451_v63 = vpop.f32.mrb[15].mxu1  ;;  %v1583_v42 = vpop.xlane.xlu0 %1582 }
 0x7de   : >> { %3889 = vrcp.f32 %v1583_v42 }
 0x7e0   : >> { %v3888_v51 = vpop.eup %3887 }
 0x7e2   : >> { %v1848_v54 = vpop.f32.mrb[16].mxu1 }
 0x7e3   : >> { %v1854_v59 = vmul.f32 %v3886_v49, %v1848_v54  ;;  %v3462_v60 = vpop.f32.mrb[17].mxu1 }
 0x7e4   : >> { %v1851_v50 = vpop.f32.mrb[18].mxu1 }
 0x7e5   : >> { %1970 = vrot.lane.b32.xlu0 %v1854_v59, %s4798_s7  ;;  %v3463_v55 = vpop.f32.mrb[19].mxu1 }
 0x7e8   : >> { %v3890_v63 = vpop.eup %3889 }
 0x7e9   : >> { %v1633_v54 = vmul.f32 %v3890_v63, %v1627_v0 }
 0x807   : >> { %v1958_v53 = vpop.f32.mrb[20].mxu1 }
 0x808   : >> { %v1964_v52 = vmul.f32 %v3888_v51, %v1958_v53  ;;  %v3474_v45 = vpop.f32.mrb[21].mxu1 }
 0x809   : >> { %v1961_v61 = vpop.f32.mrb[22].mxu1 }
 0x80a   : >> { %1974 = vrot.lane.b32.xlu1 %v1964_v52, %s4799_s8  ;;  %v3475_v62 = vpop.f32.mrb[23].mxu1 }
 0x84f   : >> { %v1967_v49 = vpop.permute.xlu1 %1966 }
 0x850   : >> { %v1977_v60 = vsel %vm1528_vm3, %v1633_v54, %v1967_v49 }
 0x857   : >> { %v1971_v59 = vpop.permute.xlu0 %1970 }
 0x858   : >> { %v1979_v50 = vsel %vm1978_vm5, %v1977_v60, %v1971_v59  ;;  %v3299_v60 = vcombine.low %v5708_v16, %v5710_v17 }
 0x85a   : >> { %3485 = vmatpush3.bf16.msra.mxu1 %v3299_v60 }
 0x85b   : >> { %3486 = vmatprep.subr.bf16.mxu1 %v6278_v2 }
 0x87c   : >> { %v1975_v55 = vpop.permute.xlu1 %1974 }
 0x87d   : >> { %v1981_v1 = vsel %vm1980_vm6, %v1979_v50, %v1975_v55  ;;  %v3300_v50 = vcombine.low %v5712_v18, %v5714_v19 }
 0x87e   : >> { %v1982_v56 = vpack.c.bf16 %v1981_v1, %v1981_v1 }
 0x87f   : >> { %3487 = vmatpush3.bf16.msra.mxu1 %v3300_v50 }
 0x880   : >> { %3481 = vmatmul.mubr.msk.bf16.vlgmr.msra.gmra.mrb[16].mxu0 %vm1282_vm1, %v1982_v56  ;;  %3498 = vmatprep.subr.bf16.mxu1 %v6278_v2 }
 0x881   : >> { %3494 = vmatprep.mubr.msk.bf16.mxu0 %vm4789_vm2, %v6278_v2 }
 0x953   : >> { %v2038_v51 = vpop.f32.mrb[16].mxu0 }
 0x954   : >> { %v2039_v53 = vadd.f32 %v5706_v15, %v2038_v51  ;;  %v3482_v0 = vpop.f32.mrb[17].mxu0 }
 0x955   : >> { %v2041_v52 = vpop.f32.mrb[18].mxu0 }
 0x956   : >> { %v3483_v45 = vpop.f32.mrb[19].mxu0  ;;  %v2044_v61 = vadd.f32 %v4749_v47, %v2039_v53  ;;  %v2147_v47 = vsel %vm1528_vm3, %v5784_v57, 0 }
 0x957   : >> { %3493 = vmatpush3.bf16.xpose.msra.mxu0 %v2147_v47 }
 0x958   : >> { %v2045_v62 = vsel %vm1282_vm1, %v2044_v61, 0.0  ;;  %3504 = vmatprep.subr.bf16.mxu0 %v6278_v2 }
 0x959   : >> { %2046 = vadd.xlane.f32.xlu1 %v2045_v62 }
 0x9e6   : >> { %v2047_v42 = vpop.xlane.xlu1 %2046 }
 0x9e7   : >> { %v2049_v63 = vmul.f32 0.03125, %v2047_v42 }
 0x9e9   : >> { %v2050_v49 = vsub.f32 %v2044_v61, %v2049_v63 }
 0x9eb   : >> { %v2051_v54 = vmul.f32 %v2050_v49, %v2050_v49 }
 0x9ed   : >> { %v2052_v59 = vsel %vm1282_vm1, %v2051_v54, 0.0 }
 0x9ee   : >> { %2053 = vadd.xlane.f32.xlu0 %v2052_v59 }
 0xa04   : >> { %2248 = vrot.lane.b32.xlu0 %v5784_v57, %s4790_s9 }
 0xa7b   : >> { %v2054_v55 = vpop.xlane.xlu0 %2053 }
 0xa7c   : >> { %v2055_v1 = vmul.f32 0.03125, %v2054_v55 }
 0xa7e   : >> { %v2056_v56 = vadd.f32 1e-05, %v2055_v1 }
 0xa80   : >> { %3891 = vrsqrt.f32 %v2056_v56 }
 0xa8a   : >> { %v3892_v51 = vpop.eup %3891 }
 0xa8b   : >> { %v2058_v53 = vmul.f32 %v3892_v51, %v2050_v49  ;;  %v2249_v49 = vpop.permute.xlu0 %2248 }
 0xa8c   : >> { %v2254_v50 = vsel %vm1528_vm3, %v2249_v49, 0 }
 0xa8d   : >> { %v2065_v0 = vmul.f32 %v5756_v40, %v2058_v53 }
 0xa8f   : >> { %v5915_v52 = vadd.f32 %v5762_v43, %v2065_v0 }
 0xa91   : >> { %v2073_v45 = vadd.f32 %v5915_v52, %v5776_v48 }
 0xa93   : >> { %v2074_v61 = vpack.c.bf16 %v2073_v45, %v2073_v45 }
 0xa95   : >> { %3489 = vmatmul.mubr.msk.bf16.vlgmr.msra.gmra.mrb[24].mxu1 %vm1282_vm1, %v2074_v61 }
 0xa96   : >> { %3499 = vmatpush3.bf16.msra.mxu1 %v5786_v58  ;;  %3500 = vmatprep.mubr.msk.bf16.mxu1 %vm4789_vm2, %v6278_v2 }
 0xa97   : >> { %3510 = vmatprep.subr.bf16.mxu1 %v6278_v2 }
 0xb68   : >> { %v2130_v62 = vpop.f32.mrb[24].mxu1 }
 0xb69   : >> { %v2131_v42 = vadd.f32 %v5716_v20, %v2130_v62  ;;  %v3490_v63 = vpop.f32.mrb[25].mxu1 }
 0xb6a   : >> { %v2133_v54 = vpop.f32.mrb[26].mxu1 }
 0xb6b   : >> { %v2136_v59 = vpack.c.bf16 %v2131_v42, %v2131_v42  ;;  %v3491_v60 = vpop.f32.mrb[27].mxu1 }
 0xb6d   : >> { %2355 = vrot.lane.b32.xlu0 %v2136_v59, %s4795_s10  ;;  %2245 = vrot.lane.b32.xlu1 %v2136_v59, %s4790_s9 }
 0xb6e   : >> { %3495 = vmatmul.mubr.msk.bf16.vlgmr.msra.gmra.mrb[20].mxu0 %vm1528_vm3, %v2136_v59 }
 0xb6f   : >> { %3505 = vmatpush3.bf16.xpose.msra.mxu0 %v2254_v50  ;;  %3506 = vmatprep.mubr.msk.bf16.mxu0 %vm4789_vm2, %v6278_v2 }
 0xb70   : >> { %3516 = vmatprep.subr.bf16.mxu0 %v6278_v2 }
 0xb71   : >> { %2463 = vrot.lane.b32.xlu0 %v2136_v59, %s4796_s13  ;;  %2357 = vrot.lane.b32.xlu1 %v5784_v57, %s4795_s10 }
 0xb75   : >> { %2465 = vrot.lane.b32.xlu1 %v5784_v57, %s4796_s13 }
 0xbdf   : >> { %v2246_v47 = vpop.permute.xlu1 %2245  ;;  %v2356_v53 = vpop.permute.xlu0 %2355 }
 0xbe0   : >> { %3507 = vmatmul.mubr.msk.bf16.vlgmr.msra.gmra.mrb[24].mxu0 %vm1528_vm3, %v2246_v47 }
 0xbe1   : >> { %3518 = vmatprep.mubr.msk.bf16.mxu0 %vm4789_vm2, %v6278_v2 }
 0xbe3   : >> { %v2358_v55 = vpop.permute.xlu1 %2357  ;;  %v2464_v0 = vpop.permute.xlu0 %2463 }
 0xbe4   : >> { %v2363_v1 = vsel %vm1528_vm3, %v2358_v55, 0 }
 0xbe5   : >> { %3517 = vmatpush3.bf16.xpose.msra.mxu0 %v2363_v1 }
 0xbe6   : >> { %3528 = vmatprep.subr.bf16.mxu0 %v6278_v2 }
 0xbe7   : >> { %v2466_v56 = vpop.permute.xlu1 %2465 }
 0xbe8   : >> { %v2471_v51 = vsel %vm1528_vm3, %v2466_v56, 0 }
 0xbec   : >> { %3519 = vmatmul.mubr.msk.bf16.vlgmr.msra.gmra.mrb[28].mxu0 %vm1528_vm3, %v2356_v53 }
 0xbed   : >> { %3529 = vmatpush3.bf16.xpose.msra.mxu0 %v2471_v51  ;;  %3530 = vmatprep.mubr.msk.bf16.mxu0 %vm4789_vm2, %v6278_v2 }
 0xbee   : >> { %3540 = vmatprep.subr.bf16.mxu0 %v6278_v2 }
 0xbf4   : >> { %3531 = vmatmul.mubr.msk.bf16.vlgmr.msra.gmra.mrb[32].mxu0 %vm1528_vm3, %v2464_v0 }
 0xbf5   : >> { %3544 = vmatprep.mubr.msk.bf16.mxu0 %vm4789_vm2, %v6278_v2 }
 0xc41   : >> { %v2183_v45 = vpop.f32.mrb[20].mxu0 }
 0xc42   : >> { %v2184_v61 = vadd.f32 %v5770_v46, %v2183_v45  ;;  %v3496_v62 = vpop.f32.mrb[21].mxu0 }
 0xc43   : >> { %v2186_v42 = vpop.f32.mrb[22].mxu0 }
 0xc44   : >> { %v3497_v63 = vpop.f32.mrb[23].mxu0  ;;  %v2189_v49 = vsel %vm1978_vm5, %v2184_v61, -inf }
 0xc45   : >> { %2190 = vmax.xlane.f32.xlu1 %v2189_v49 }
 0xc56   : >> { %2416 = vrot.lane.b32.xlu1 %v5786_v58, %s4795_s10  ;;  %s4629_s10 = scalar_lea.vmem (%p1393_p5), %s4628_s14, 256 }
 0xc57   : > { %p4631_p8 = scmp.lt.s32.totalorder (%p1393_p5), %s4629_s10, %s4623_s12 }
 0xc59   : > { %p4632_p7 = por (%p1393_p5), %p4631_p8, %p4630_p12 }
 0xc5b   : > { %p4633_p4 = pnand (%p1393_p5), %p4632_p7, %p4626_p11 }
 0xcb3   : >> { %v2290_v54 = vpop.f32.mrb[24].mxu0 }
 0xcb4   : >> { %v2291_v59 = vadd.f32 %v5770_v46, %v2290_v54  ;;  %v3508_v60 = vpop.f32.mrb[25].mxu0 }
 0xcb5   : >> { %v2293_v50 = vpop.f32.mrb[26].mxu0 }
 0xcb6   : >> { %v3509_v47 = vpop.f32.mrb[27].mxu0  ;;  %v2296_v55 = vsel %vm1978_vm5, %v2291_v59, -inf }
 0xcb7   : >> { %2297 = vmax.xlane.f32.xlu0 %v2296_v55 }
 0xcbf   : >> { %v2399_v1 = vpop.f32.mrb[28].mxu0 }
 0xcc0   : >> { %v2400_v56 = vadd.f32 %v5770_v46, %v2399_v1  ;;  %v3520_v51 = vpop.f32.mrb[29].mxu0 }
 0xcc1   : >> { %v2402_v53 = vpop.f32.mrb[30].mxu0 }
 0xcc2   : >> { %v3521_v0 = vpop.f32.mrb[31].mxu0  ;;  %v2405_v45 = vsel %vm1978_vm5, %v2400_v56, -inf }
 0xcc3   : >> { %2406 = vmax.xlane.f32.xlu0 %v2405_v45 }
 0xcc7   : >> { %v2507_v62 = vpop.f32.mrb[32].mxu0 }
 0xcc8   : >> { %v2508_v42 = vadd.f32 %v5770_v46, %v2507_v62  ;;  %v3532_v63 = vpop.f32.mrb[33].mxu0 }
 0xcc9   : >> { %v2510_v49 = vpop.f32.mrb[34].mxu0 }
 0xcca   : >> { %v3533_v54 = vpop.f32.mrb[35].mxu0  ;;  %v2513_v60 = vsel %vm1978_vm5, %v2508_v42, -inf }
 0xccb   : >> { %2514 = vmax.xlane.f32.xlu1 %v2513_v60 }
 0xcd2   : >> { %v2191_v50 = vpop.xlane.xlu1 %2190 }
 0xcd3   : >> { %v2192_v47 = vsub.f32 %v2184_v61, %v2191_v50 }
 0xcd5   : >> { %v2193_v55 = vmul.f32 1.442695, %v2192_v47 }
 0xcd6   : >> { %v2417_v54 = vpop.permute.xlu1 %2416 }
 0xcd7   : >> { %3893 = vpow2.f32 %v2193_v55 }
 0xcd9   : >> { %2308 = vrot.lane.b32.xlu0 %v5786_v58, %s4790_s9  ;;  %s6039_s9 = scalar_lea.hbm (%p1393_p5), %s6284_s28, %s3330_s5 }
 0xcdc   : >> { %2524 = vrot.lane.b32.xlu1 %v5786_v58, %s4796_s13 }
 0xce1   : >> { %v3894_v1 = vpop.eup %3893 }
 0xce2   : >> { %v2199_v51 = vpack.c.bf16 %v3894_v1, %v3894_v1 }
 0xce4   : >> { %3501 = vmatmul.mubr.msk.bf16.vlgmr.msra.gmra.mrb[28].mxu1 %vm1978_vm5, %v2199_v51 }
 0xce5   : >> { %3512 = vmatprep.mubr.msk.bf16.mxu1 %vm4789_vm2, %v6278_v2 }
 0xd44   : >> { %v2298_v53 = vpop.xlane.xlu0 %2297 }
 0xd45   : >> { %v2299_v0 = vsub.f32 %v2291_v59, %v2298_v53 }
 0xd47   : >> { %v2300_v45 = vmul.f32 1.442695, %v2299_v0 }
 0xd49   : >> { %3895 = vpow2.f32 %v2300_v45 }
 0xd50   : >> { %v2407_v61 = vpop.xlane.xlu0 %2406 }
 0xd51   : >> { %v2408_v62 = vsub.f32 %v2400_v56, %v2407_v61 }
 0xd53   : >> { %v3896_v63 = vpop.eup %3895  ;;  %v2409_v49 = vmul.f32 1.442695, %v2408_v62 }
 0xd54   : >> { %v2309_v60 = vpop.permute.xlu0 %2308  ;;  %v2302_v50 = vsel %vm1978_vm5, %v3896_v63, 0.0  ;;  %v2306_v47 = vpack.c.bf16 %v3896_v63, %v3896_v63  ;;  %v2195_v63 = vsel %vm1978_vm5, %v3894_v1, 0.0 }
 0xd55   : >> { %3897 = vpow2.f32 %v2409_v49  ;;  %2303 = vadd.xlane.f32.xlu0 %v2302_v50  ;;  %3511 = vmatpush3.bf16.msra.mxu1 %v2309_v60 }
 0xd56   : >> { %3522 = vmatprep.subr.bf16.mxu1 %v6278_v2 }
 0xd58   : >> { %3513 = vmatmul.mubr.msk.bf16.vlgmr.msra.gmra.mrb[32].mxu1 %vm1978_vm5, %v2306_v47  ;;  %v2515_v55 = vpop.xlane.xlu1 %2514 }
 0xd59   : >> { %v2516_v59 = vsub.f32 %v2508_v42, %v2515_v55  ;;  %3523 = vmatpush3.bf16.msra.mxu1 %v2417_v54  ;;  %3524 = vmatprep.mubr.msk.bf16.mxu1 %vm4789_vm2, %v6278_v2 }
 0xd5a   : >> { %3534 = vmatprep.subr.bf16.mxu1 %v6278_v2 }
 0xd5b   : >> { %v2517_v56 = vmul.f32 1.442695, %v2516_v59 }
 0xd5c   : >> { %v2525_v45 = vpop.permute.xlu1 %2524 }
 0xd5d   : >> { %3899 = vpow2.f32 %v2517_v56 }
 0xd5f   : >> { %v3898_v51 = vpop.eup %3897 }
 0xd60   : >> { %v2411_v53 = vsel %vm1978_vm5, %v3898_v51, 0.0  ;;  %v2415_v0 = vpack.c.bf16 %v3898_v51, %v3898_v51  ;;  %v3312_v51 = vcombine.low %v5718_v21, %v5720_v22 }
 0xd61   : >> { %2412 = vadd.xlane.f32.xlu1 %v2411_v53 }
 0xd62   : >> { %3525 = vmatmul.mubr.msk.bf16.vlgmr.msra.gmra.mrb[36].mxu1 %vm1978_vm5, %v2415_v0  ;;  %3541 = vmatpush3.bf16.msra.mxu0 %v3312_v51 }
 0xd63   : >> { %3535 = vmatpush3.bf16.msra.mxu1 %v2525_v45  ;;  %3536 = vmatprep.mubr.msk.bf16.mxu1 %vm4789_vm2, %v6278_v2 }
 0xd64   : >> { %3548 = vmatprep.subr.bf16.mxu1 %v6278_v2  ;;  %3542 = vmatprep.subr.bf16.mxu0 %v6278_v2 }
 0xd67   : >> { %v3900_v42 = vpop.eup %3899 }
 0xd68   : >> { %v2519_v61 = vsel %vm1978_vm5, %v3900_v42, 0.0  ;;  %v2523_v62 = vpack.c.bf16 %v3900_v42, %v3900_v42 }
 0xd69   : >> { %2520 = vadd.xlane.f32.xlu0 %v2519_v61  ;;  %v3313_v61 = vcombine.low %v5722_v23, %v5724_v24 }
 0xd6a   : >> { %3537 = vmatmul.mubr.msk.bf16.vlgmr.msra.gmra.mrb[40].mxu1 %vm1978_vm5, %v2523_v62 }
 0xd6b   : >> { %3552 = vmatprep.mubr.msk.bf16.mxu1 %vm4789_vm2, %v6278_v2  ;;  %3543 = vmatpush3.bf16.msra.mxu0 %v3313_v61 }
 0xd6c   : >> { %3556 = vmatprep.subr.bf16.mxu0 %v6278_v2 }
 0xd6d   : >> { %2196 = vadd.xlane.f32.xlu0 %v2195_v63 }
 0xdb7   : >> { %v2237_v49 = vpop.f32.mrb[28].mxu1 }
 0xdb8   : >> { %v3502_v54 = vpop.f32.mrb[29].mxu1 }
 0xdb9   : >> { %v2240_v60 = vpop.f32.mrb[30].mxu1 }
 0xdba   : >> { %v3503_v50 = vpop.f32.mrb[31].mxu1 }
 0xde2   : >> { %v2304_v47 = vpop.xlane.xlu0 %2303 }
 0xde3   : >> { %3901 = vrcp.f32 %v2304_v47 }
 0xded   : >> { %v3902_v59 = vpop.eup %3901 }
 0xdee   : >> { %v2413_v55 = vpop.xlane.xlu1 %2412 }
 0xdef   : >> { %3903 = vrcp.f32 %v2413_v55 }
 0xdf6   : >> { %v2521_v42 = vpop.xlane.xlu0 %2520 }
 0xdf7   : >> { %3905 = vrcp.f32 %v2521_v42 }
 0xdf9   : >> { %v3904_v62 = vpop.eup %3903 }
 0xe01   : >> { %v3906_v55 = vpop.eup %3905 }
 0xe2b   : >> { %v2348_v56 = vpop.f32.mrb[32].mxu1 }
 0xe2c   : >> { %v2354_v53 = vmul.f32 %v3902_v59, %v2348_v56  ;;  %v3514_v0 = vpop.f32.mrb[33].mxu1 }
 0xe2d   : >> { %v2351_v45 = vpop.f32.mrb[34].mxu1 }
 0xe2e   : >> { %2572 = vrot.lane.b32.xlu1 %v2354_v53, %s4797_s20  ;;  %v3515_v1 = vpop.f32.mrb[35].mxu1  ;;  %v2197_v45 = vpop.xlane.xlu0 %2196 }
 0xe2f   : >> { %3907 = vrcp.f32 %v2197_v45 }
 0xe35   : >> { %v2456_v63 = vpop.f32.mrb[36].mxu1 }
 0xe36   : >> { %v2462_v54 = vmul.f32 %v3904_v62, %v2456_v63  ;;  %v3526_v60 = vpop.f32.mrb[37].mxu1 }
 0xe37   : >> { %v2459_v50 = vpop.f32.mrb[38].mxu1 }
 0xe38   : >> { %2576 = vrot.lane.b32.xlu0 %v2462_v54, %s4798_s7  ;;  %v3527_v47 = vpop.f32.mrb[39].mxu1 }
 0xe39   : >> { %v3908_v1 = vpop.eup %3907 }
 0xe3a   : >> { %v2243_v61 = vmul.f32 %v3908_v1, %v2237_v49 }
 0xe3d   : >> { %v2564_v59 = vpop.f32.mrb[40].mxu1 }
 0xe3e   : >> { %v2570_v56 = vmul.f32 %v3906_v55, %v2564_v59  ;;  %v3538_v51 = vpop.f32.mrb[41].mxu1 }
 0xe3f   : >> { %v2567_v53 = vpop.f32.mrb[42].mxu1 }
 0xe40   : >> { %2580 = vrot.lane.b32.xlu1 %v2570_v56, %s4799_s8  ;;  %v3539_v0 = vpop.f32.mrb[43].mxu1 }
 0xea0   : >> { %v2573_v42 = vpop.permute.xlu1 %2572 }
 0xea1   : >> { %v2583_v62 = vsel %vm1528_vm3, %v2243_v61, %v2573_v42  ;;  %v3318_v61 = vcombine.low %v5728_v26, %v5730_v27 }
 0xea3   : >> { %3549 = vmatpush3.bf16.msra.mxu1 %v3318_v61 }
 0xea4   : >> { %3550 = vmatprep.subr.bf16.mxu1 %v6278_v2 }
 0xeaa   : >> { %v2577_v3 = vpop.permute.xlu0 %2576 }
 0xeab   : >> { %v2584_v63 = vsel %vm1978_vm5, %v2583_v62, %v2577_v3  ;;  %v3319_v62 = vcombine.low %v5732_v28, %v5734_v29 }
 0xead   : >> { %3551 = vmatpush3.bf16.msra.mxu1 %v3319_v62 }
 0xeb2   : >> { %v2581_v54 = vpop.permute.xlu1 %2580 }
 0xeb3   : >> { %v2585_v60 = vsel %vm1980_vm6, %v2584_v63, %v2581_v54  ;;  %v3323_v63 = vcombine.low %v5742_v33, %v5744_v34 }
 0xeb4   : >> { %v2586_v50 = vpack.c.bf16 %v2585_v60, %v2585_v60 }
 0xeb6   : >> { %3545 = vmatmul.mubr.msk.bf16.vlgmr.msra.gmra.mrb[36].mxu0 %vm1282_vm1, %v2586_v50 }
 0xeb7   : >> { %3564 = vmatprep.mubr.msk.bf16.mxu0 %vm4789_vm2, %v6278_v2 }
 0xf89   : >> { %v2642_v47 = vpop.f32.mrb[36].mxu0 }
 0xf8a   : >> { %v2643_v55 = vadd.f32 %v5726_v25, %v2642_v47  ;;  %v3546_v59 = vpop.f32.mrb[37].mxu0 }
 0xf8b   : >> { %v2645_v56 = vpop.f32.mrb[38].mxu0 }
 0xf8c   : >> { %v3547_v49 = vpop.f32.mrb[39].mxu0  ;;  %v2648_v51 = vadd.f32 %v2643_v55, %v5915_v52  ;;  %v3322_v52 = vcombine.low %v5738_v31, %v5740_v32 }
 0xf8e   : >> { %v2649_v53 = vsel %vm1282_vm1, %v2648_v51, 0.0  ;;  %3557 = vmatpush3.bf16.msra.mxu0 %v3322_v52 }
 0xf8f   : >> { %2650 = vadd.xlane.f32.xlu1 %v2649_v53  ;;  %3558 = vmatprep.subr.bf16.mxu0 %v6278_v2  ;;  %v3325_v53 = vcombine.low %v5750_v37, %v5752_v38 }
 0xf92   : >> { %3559 = vmatpush3.bf16.msra.mxu0 %v3323_v63 }
 0xf93   : >> { %3560 = vmatprep.subr.bf16.mxu0 %v6278_v2 }
0x101c   : >> { %v2651_v3 = vpop.xlane.xlu1 %2650 }
0x101d   : >> { %v2652_v0 = vmul.f32 0.03125, %v2651_v3 }
0x101f   : >> { %v2653_v45 = vsub.f32 %v2648_v51, %v2652_v0  ;;  %v3324_v51 = vcombine.low %v5746_v35, %v5748_v36 }
0x1021   : >> { %v2654_v1 = vmul.f32 %v2653_v45, %v2653_v45  ;;  %3561 = vmatpush3.bf16.msra.mxu0 %v3324_v51 }
0x1022   : >> { %3562 = vmatprep.subr.bf16.mxu0 %v6278_v2 }
0x1023   : >> { %v2655_v42 = vsel %vm1282_vm1, %v2654_v1, 0.0 }
0x1024   : >> { %2656 = vadd.xlane.f32.xlu0 %v2655_v42 }
0x1025   : >> { %3563 = vmatpush3.bf16.msra.mxu0 %v3325_v53 }
0x10b1   : >> { %v2657_v54 = vpop.xlane.xlu0 %2656 }
0x10b2   : >> { %v2658_v60 = vmul.f32 0.03125, %v2657_v54 }
0x10b4   : >> { %v2659_v50 = vadd.f32 1e-05, %v2658_v60 }
0x10b6   : >> { %3909 = vrsqrt.f32 %v2659_v50 }
0x10c0   : >> { %v3910_v47 = vpop.eup %3909 }
0x10c1   : >> { %v2661_v55 = vmul.f32 %v3910_v47, %v2653_v45 }
0x10c3   : >> { %v2668_v59 = vmul.f32 %v5758_v41, %v2661_v55 }
0x10c5   : >> { %v2675_v56 = vadd.f32 %v5764_v44, %v2668_v59 }
0x10c7   : >> { %v2676_v49 = vpack.c.bf16 %v2675_v56, %v2675_v56 }
0x10c9   : >> { %3553 = vmatmul.mubr.msk.bf16.vlgmr.msra.gmra.mrb[44].mxu1 %vm1282_vm1, %v2676_v49 }
0x119c   : >> { %v2732_v3 = vpop.f32.mrb[44].mxu1 }
0x119d   : >> { %v2733_v0 = vadd.f32 %v5736_v30, %v2732_v3  ;;  %v3554_v45 = vpop.f32.mrb[45].mxu1 }
0x119e   : >> { %v2735_v1 = vpop.f32.mrb[46].mxu1 }
0x119f   : >> { %v2738_v42 = vmax.f32 %v2733_v0, 0.0  ;;  %v3555_v61 = vpop.f32.mrb[47].mxu1 }
0x11a0   : >> { %v6279_v61 = vld [vmem:[#allocation67_spill] sm:$0xff] }
0x11a1   : >> { %v2739_v62 = vpack.c.bf16 %v2738_v42, %v2738_v42 }
0x11a3   : >> { %3565 = vmatmul.mubr.msk.bf16.vlgmr.msra.gmra.mrb[40].mxu0 %vm2770_vm7, %v2739_v62 }
0x1276   : >> { %v2808_v52 = vpop.f32.mrb[40].mxu0 }
0x1277   : >> { %v2809_v63 = vadd.f32 %v5754_v39, %v2808_v52  ;;  %v3566_v54 = vpop.f32.mrb[41].mxu0  ;;  %v6280_v52 = vld [vmem:[#allocation68_spill] sm:$0xff] }
0x1278   : >> { %v2811_v60 = vpop.f32.mrb[42].mxu0 }
0x1279   : >> { %v3567_v2 = vpop.f32.mrb[43].mxu0  ;;  %v2814_v50 = vadd.f32 %v2809_v63, %v2675_v56 }
0x127b   : >> { %v2815_v47 = vsel %vm1282_vm1, %v2814_v50, 0.0 }
0x127c   : >> { %2816 = vadd.xlane.f32.xlu0 %v2815_v47 }
0x1309   : >> { %v2817_v55 = vpop.xlane.xlu0 %2816 }
0x130a   : >> { %v2818_v59 = vmul.f32 0.03125, %v2817_v55 }
0x130c   : >> { %v2819_v49 = vsub.f32 %v2814_v50, %v2818_v59 }
0x130e   : >> { %v2820_v51 = vmul.f32 %v2819_v49, %v2819_v49 }
0x1310   : >> { %v2821_v53 = vsel %vm1282_vm1, %v2820_v51, 0.0 }
0x1311   : >> { %2822 = vadd.xlane.f32.xlu1 %v2821_v53 }
0x139e   : >> { %v2823_v3 = vpop.xlane.xlu1 %2822 }
0x139f   : >> { %v2824_v0 = vmul.f32 0.03125, %v2823_v3 }
0x13a1   : >> { %v2825_v45 = vadd.f32 1e-05, %v2824_v0 }
0x13a3   : >> { %3911 = vrsqrt.f32 %v2825_v45 }
0x13ad   : >> { %v3912_v1 = vpop.eup %3911 }
0x13ae   : >> { %v2827_v42 = vmul.f32 %v3912_v1, %v2819_v49  ;;  %1395 = sbr.rel (!%p1393_p5) target bundleno = 1070 (0x42e), region = 300 }
0x13b0   : >> { %v2834_v62 = vmul.f32 %v6279_v61, %v2827_v42 }
0x13b2   : >> { %v2841_v56 = vadd.f32 %v6280_v52, %v2834_v62  }
0x13b4   : >> { %v6281_v47 = vmov %v2841_v56  ;;  %2842 = vst.msk [vmem:[%s1196_s27] sm:$0xff] (%p1393_p5), %vm1282_vm1, %v2841_v56 }
0x13b5   : > { %4636 = shalt.err (!%p4633_p4)
}
0x13b6   : > { %s4637_s0 = scalar_lea.hbm %s6039_s9, 128  ;;  %s4641_s13 = scalar_lea.hbm %s6284_s28, 256 }
0x13b7   : > { %p4638_p2 = scmp.ne.s32.totalorder %s6039_s9, %s4637_s0  ;;  %p4642_p3 = scmp.lt.u32.totalorder %s6039_s9, %s6284_s28 }
0x13b8   : > { %p4643_p1 = scmp.lt.u32.totalorder %s4641_s13, %s4637_s0  ;;  %p4645_p9 = scmp.lt.u32.totalorder %s4637_s0, %s6039_s9 }
0x13b9   : > { %p4639_p13 = pnand %p4638_p2, %p6285_p0 }
0x13ba   : > { %p4644_p5 = por %p4643_p1, %p4642_p3 }
0x13bb   : > { %p4640_p10 = pneg %p4639_p13 }
0x13bc   : > { %p4646_p6 = por %p4645_p9, %p4644_p5 }
0x13be   : > { %p4647_p11 = pnand %p4646_p6, %p4640_p10 }
0x13c0   : > { %4650 = shalt.err (!%p4647_p11)
}
0x13c1   : > { %3658 = dma.vmem_to_hbm [thread:$0]  (%p6285_p0), %s2858_s3, 128, %s6039_s9, %s2844_s29  }
0x13c2 PF: > { %s6286_s8 = sld [smem:[#allocation56_spill]]  ;;  %s6287_s6 = sld [smem:[#allocation63_spill]] }
0x13c3   : > { %p6289_p8 = scmp.ge.s32.totalorder %s4745_s30, 2 }
0x13c8   : > { %s2869_s5 = sand.u32 1, %s6286_s8   ;;  %p6288_p12 = scmp.ne.s32.totalorder %s6287_s6, 0 }
0x13c9   : > { %s2870_s15 = scalar_lea.sflag [#allocation4], %s2869_s5 }
0x13ca   : > { %p3738_p7 = pnand %p6289_p8, %p6288_p12 }
0x13cc   : > { %4728 = dma.done.wait (!%p3738_p7), %s2870_s15, 128  }
0x13cd   : > { %4730 = vsyncadd (!%p3738_p7), %s2870_s15, 4294967168  ;;  %s6290_s30 = sld [smem:[#allocation60_spill]]  ;;  %s6291_s19 = sld [smem:[#allocation57_spill]] }
0x13ce   : > { %s6292_s6 = sld [smem:[#allocation61_spill]]  ;;  %s6293_s29 = smov %s4737_s2 }
0x13d3   : > { %p54_p4 = scmp.ge.s32.totalorder %s6290_s30, 4   ;;  %s6294_s2 = smov %s6291_s19 }
0x13d5   :  { %56 = sbr.rel (!%p54_p4) target bundleno = 46 (0x2e), region = 311 }
0x13dc   :  { %2875 = vsyncpa [#allocation3], 1 }
0x13dd   :  { %2877 = vsyncpa [#allocation3 + $0x1], 1 }
0x13de   :  { %2878 = vsyncpa [#allocation6], 1 }
0x13df   :  { %2880 = vsyncpa [#allocation6 + $0x1], 1 }
0x13e0   :  { %2881 = vsyncpa [#allocation9], 1 }
0x13e1   :  { %2883 = vsyncpa [#allocation9 + $0x1], 1 }
0x13e2   :  { %2884 = vsyncpa [#allocation12], 1 }
0x13e3   :  { %2885 = vsyncpa [#allocation15], 1 }
0x13e4   :  { %2886 = vsyncpa [#allocation18], 1 }
0x13e5   :  { %2887 = vsyncpa [#allocation21], 1 }
0x13e6   :  { %2888 = vsyncpa [#allocation24], 1 }
0x13e7   :  { %2889 = vsyncpa [#allocation27], 1 }
0x13e8   :  { %2890 = vsyncpa [#allocation30], 1 }
0x13e9   :  { %2891 = vsyncpa [#allocation33], 1 }
0x13ea   :  { %2892 = vsyncpa [#allocation36], 1 }
0x13eb   :  { %2893 = vsyncpa [#allocation39], 1 }
0x13ec   :  { %2894 = vsyncpa [#allocation4], 1 }
0x13ed   :  { %2896 = vsyncpa [#allocation4 + $0x1], 1 }

// kernel: tpu_custom_call.1
= control target key start
LH: loop header
LB: loop body
LE: loop exit
PB: predicated region body
PF: predicated region fallthrough
CT: control target
= control target key end

     0   :  { %s6079_s0 = inlined_call_operand.hbm [shape: f32[2,8,32], index: 0, kind: input, shape index: {}]   ;;  %s6080_s1 = inlined_call_operand.hbm [shape: f32[2,8,32], index: 1, kind: input, shape index: {}]   ;;  %s6081_s2 = inlined_call_operand.hbm [shape: f32[2,16,32], index: 2, kind: input, shape index: {}]   ;;  %s6082_s3 = inlined_call_operand.hbm [shape: f32[2,16,32], index: 3, kind: input, shape index: {}]   ;;  %s6083_s4 = inlined_call_operand.hbm [shape: f32[2,1,16], index: 4, kind: input, shape index: {}]   ;;  %s6084_s5 = inlined_call_operand.hbm [shape: bf16[32,64], index: 5, kind: input, shape index: {}]   ;;  %s6085_s6 = inlined_call_operand.hbm [shape: f32[1,64], index: 6, kind: input, shape index: {}]   ;;  %s6086_s7 = inlined_call_operand.hbm [shape: bf16[32,32], index: 7, kind: input, shape index: {}]   ;;  %s6087_s8 = inlined_call_operand.hbm [shape: f32[1,32], index: 8, kind: input, shape index: {}]   ;;  %s6088_s9 = inlined_call_operand.hbm [shape: bf16[32,32], index: 9, kind: input, shape index: {}]   ;;  %s6089_s10 = inlined_call_operand.hbm [shape: f32[1,32], index: 10, kind: input, shape index: {}]   ;;  %s6090_s11 = inlined_call_operand.hbm [shape: bf16[32,32], index: 11, kind: input, shape index: {}]   ;;  %s6091_s12 = inlined_call_operand.hbm [shape: f32[1,32], index: 12, kind: input, shape index: {}]   ;;  %s6092_s13 = inlined_call_operand.hbm [shape: bf16[32,32], index: 13, kind: input, shape index: {}]   ;;  %s6093_s14 = inlined_call_operand.hbm [shape: f32[1,32], index: 14, kind: input, shape index: {}]   ;;  %s6094_s15 = inlined_call_operand.hbm [shape: bf16[32,32], index: 15, kind: input, shape index: {}]   ;;  %s6095_s16 = inlined_call_operand.hbm [shape: f32[1,32], index: 16, kind: input, shape index: {}]   ;;  %s6096_s17 = inlined_call_operand.hbm [shape: bf16[32,32], index: 17, kind: input, shape index: {}]   ;;  %s6097_s18 = inlined_call_operand.hbm [shape: f32[1,32], index: 18, kind: input, shape index: {}]   ;;  %s6098_s19 = inlined_call_operand.hbm [shape: bf16[32,64], index: 19, kind: input, shape index: {}]   ;;  %s6099_s20 = inlined_call_operand.hbm [shape: f32[1,64], index: 20, kind: input, shape index: {}]   ;;  %s6100_s21 = inlined_call_operand.hbm [shape: bf16[64,32], index: 21, kind: input, shape index: {}]   ;;  %s6101_s22 = inlined_call_operand.hbm [shape: f32[1,32], index: 22, kind: input, shape index: {}]   ;;  %s6102_s23 = inlined_call_operand.hbm [shape: f32[3,1,32], index: 23, kind: input, shape index: {}]   ;;  %s6103_s24 = inlined_call_operand.hbm [shape: f32[3,1,32], index: 24, kind: input, shape index: {}]   ;;  %s6104_s25 = inlined_call_operand.hbm [shape: f32[2,8,32], index: 25, kind: output, shape index: {}]  }
   0x1   :  { %6163 = sst [smem:[#allocation69_spill]] %s6079_s0 }
   0x2   :  { %6164 = sst [smem:[#allocation70_spill]] %s6080_s1 }
   0x3   :  { %6165 = sst [smem:[#allocation71_spill]] %s6081_s2 }
   0x4   :  { %6166 = sst [smem:[#allocation72_spill]] %s6082_s3 }
   0x5   :  { %6167 = sst [smem:[#allocation73_spill]] %s6083_s4 }
   0x6   :  { %6168 = sst [smem:[#allocation74_spill]] %s6084_s5 }
   0x7   :  { %6169 = sst [smem:[#allocation75_spill]] %s6085_s6 }
   0x8   :  { %6170 = sst [smem:[#allocation76_spill]] %s6086_s7 }
   0x9   :  { %6171 = sst [smem:[#allocation77_spill]] %s6087_s8 }
   0xa   :  { %6172 = sst [smem:[#allocation78_spill]] %s6088_s9 }
   0xb   :  { %6173 = sst [smem:[#allocation79_spill]] %s6089_s10 }
   0xc   :  { %6174 = sst [smem:[#allocation80_spill]] %s6090_s11 }
   0xd   :  { %6175 = sst [smem:[#allocation81_spill]] %s6091_s12 }
   0xe   :  { %6176 = sst [smem:[#allocation82_spill]] %s6092_s13 }
   0xf   :  { %6177 = sst [smem:[#allocation83_spill]] %s6093_s14 }
  0x10   :  { %6178 = sst [smem:[#allocation84_spill]] %s6094_s15 }
  0x11   :  { %6179 = sst [smem:[#allocation85_spill]] %s6095_s16 }
  0x12   :  { %6180 = sst [smem:[#allocation86_spill]] %s6096_s17 }
  0x13   :  { %6181 = sst [smem:[#allocation87_spill]] %s6097_s18 }
  0x14   :  { %6182 = sst [smem:[#allocation88_spill]] %s6098_s19 }
  0x15   :  { %6183 = sst [smem:[#allocation89_spill]] %s6099_s20 }
  0x16   :  { %6184 = sst [smem:[#allocation90_spill]] %s6100_s21 }
  0x17   :  { %6185 = sst [smem:[#allocation91_spill]] %s6101_s22 }
  0x18   :  { %6186 = sst [smem:[#allocation92_spill]] %s6102_s23 }
  0x19   :  { %6187 = sst [smem:[#allocation93_spill]] %s6103_s24 }
  0x1a   :  { %6188 = sst [smem:[#allocation94_spill]] %s6104_s25 }
  0x1b   :  { %30 = vsyncpa [#allocation3], 0 }
  0x1c   :  { %32 = vsyncpa [#allocation3 + $0x1], 0 }
  0x1d   :  { %33 = vsyncpa [#allocation6], 0 }
  0x1e   :  { %35 = vsyncpa [#allocation6 + $0x1], 0 }
  0x1f   :  { %36 = vsyncpa [#allocation9], 0 }
  0x20   :  { %38 = vsyncpa [#allocation9 + $0x1], 0 }
  0x21   :  { %39 = vsyncpa [#allocation12], 0 }
  0x22   :  { %40 = vsyncpa [#allocation15], 0 }
  0x23   :  { %41 = vsyncpa [#allocation18], 0 }
  0x24   :  { %42 = vsyncpa [#allocation21], 0 }
  0x25   :  { %43 = vsyncpa [#allocation24], 0 }
  0x26   :  { %44 = vsyncpa [#allocation27], 0 }
  0x27   :  { %45 = vsyncpa [#allocation30], 0 }
  0x28   :  { %46 = vsyncpa [#allocation33], 0 }
  0x29   :  { %47 = vsyncpa [#allocation36], 0 }
  0x2a   :  { %48 = vsyncpa [#allocation39], 0 }
  0x2b   :  { %49 = vsyncpa [#allocation4], 0 }
  0x2c   :  { %51 = vsyncpa [#allocation4 + $0x1], 0  ;;  %s4931_s29 = smov 0   ;;  %s4933_s2 = smov 0  }
  0x2d   :  { %s4935_s6 = smov 0   ;;  %s4937_s30 = smov 0  }
  0x2e LB: > { %6189 = sst [smem:[#allocation56_spill]] %s4733_s29  ;;  %s4755_s7 = smov [#allocation11]   ;;  %s4745_s30 = sphi %s4937_s30, %s6290_s30   ;;  %s4741_s6 = sphi %s4935_s6, %s6292_s6   ;;  %s4737_s2 = sphi %s4933_s2, %s6294_s2   ;;  %s4733_s29 = sphi %s4931_s29, %s6293_s29  }
  0x2f   : > { %6190 = sst [smem:[#allocation57_spill]] %s4741_s6  ;;  %s650_s3 = sshll.u32 %s4755_s7, 4  ;;  %s4957_s3 = int_to_ptr.vmem [resolvable:$true] %s650_s3 }
  0x30   : > { %s4952_s26 = sadd.s32 4294967295, %s4745_s30   ;;  %p3209_p0 = scmp.ge.s32.totalorder %s4745_s30, 1 }
  0x31   : > { %6191 = sst [smem:[#allocation58_spill]] %s4952_s26  ;;  %p6126_p1 = scmp.eq.s32.totalorder %s4952_s26, 0 }
  0x32   : > { %p638_p2 = scmp.lt.s32.totalorder %s4745_s30, 3  ;;  %s4756_s8 = smov [#allocation14]  }
  0x33   : > { %s674_s27 = sshll.u32 %s4756_s8, 4  ;;  %s4757_s28 = smov [#allocation17]   ;;  %s4972_s27 = int_to_ptr.vmem [resolvable:$true] %s674_s27 }
  0x34   : > { %p4959_p3 = pnand %p3209_p0, %p638_p2  ;;  %s698_s9 = sshll.u32 %s4757_s28, 4  ;;  %s4974_s9 = int_to_ptr.vmem [resolvable:$true] %s698_s9 }
  0x35   : > { %s6195_s7 = sld [smem:[#allocation74_spill]] }
  0x36   : > { %s6192_s1 = scalar_select %p4959_p3, 1, 0 }
  0x37   : > { %p3660_p5 = pneg %p4959_p3 }
  0x38   : > { %6193 = sst [smem:[#allocation59_spill]] %s6192_s1 }
  0x39   : > { %p4968_p6 = pnand %p3660_p5, %p6126_p1 }
  0x3b   : > { %s6194_s4 = scalar_select %p4968_p6, 1, 0 }
  0x3c   : > { %s3913_s25 = scalar_lea.hbm %s6195_s7, 256  ;;  %p4984_p8 = pneg %p4968_p6 }
  0x3d   : > { %p3914_p7 = scmp.ne.s32.totalorder %s6195_s7, %s3913_s25  ;;  %p3920_p11 = scmp.lt.u32.totalorder %s3913_s25, %s6195_s7 }
  0x3e   : > { %s6196_s8 = scalar_select %p4984_p8, 1, 0 }
  0x3f   : > { %p3916_p9 = pnand %p4984_p8, %p3914_p7 }
  0x41   : > { %p3917_p10 = pneg %p3916_p9 }
  0x43   : > { %p3922_p12 = pnand %p3920_p11, %p3917_p10 }
  0x45   : > { %3925 = shalt.err (!%p3922_p12)
}
  0x46   : > { %s3926_s24 = scalar_lea.vmem %s4957_s3, 256  ;;  %p3934_p5 = scmp.lt.s32.totalorder %s4957_s3, %s4957_s3 }
  0x47   : > { %p3927_p13 = scmp.ne.s32.totalorder %s4957_s3, %s3926_s24  ;;  %p3935_p4 = scmp.lt.s32.totalorder %s3926_s24, %s3926_s24 }
  0x49   : > { %p3929_p0 = pnand %p3927_p13, %p4984_p8  ;;  %p3936_p7 = por %p3935_p4, %p3934_p5 }
  0x4b   : > { %p3930_p2 = pneg %p3929_p0 }
  0x4d   : > { %p3937_p9 = pnand %p3936_p7, %p3930_p2 }
  0x4f   : > { %3940 = shalt.err (!%p3937_p9)
}
  0x50   : > { %s4758_s1 = smov 64   ;;  %s4759_s22 = smov 4  }
  0x51   : > { %3663 = dma.hbm_to_vmem [thread:$0]  (!%p4968_p6), %s6195_s7, 256, %s4957_s3, [#allocation12], %s4758_s1, %s4758_s1, %s4759_s22  }
  0x52   : > { %s6197_s20 = sld [smem:[#allocation76_spill]] }
  0x58   : > { %s3941_s24 = scalar_lea.hbm %s6197_s20, 256 }
  0x59   : > { %p3942_p4 = scmp.ne.s32.totalorder %s6197_s20, %s3941_s24  ;;  %p3948_p12 = scmp.lt.u32.totalorder %s3941_s24, %s6197_s20 }
  0x5b   : > { %p3944_p10 = pnand %p3942_p4, %p4984_p8 }
  0x5d   : > { %p3945_p11 = pneg %p3944_p10 }
  0x5f   : > { %p3950_p13 = pnand %p3948_p12, %p3945_p11 }
  0x61   : > { %3953 = shalt.err (!%p3950_p13)
}
  0x62   : > { %s3954_s3 = scalar_lea.vmem %s4972_s27, 256  ;;  %p3962_p7 = scmp.lt.s32.totalorder %s4972_s27, %s4972_s27 }
  0x63   : > { %p3955_p0 = scmp.ne.s32.totalorder %s4972_s27, %s3954_s3  ;;  %p3963_p9 = scmp.lt.s32.totalorder %s3954_s3, %s3954_s3 }
  0x65   : > { %p3957_p2 = pnand %p3955_p0, %p4984_p8  ;;  %p3964_p4 = por %p3963_p9, %p3962_p7 }
  0x67   : > { %p3958_p5 = pneg %p3957_p2 }
  0x69   : > { %p3965_p10 = pnand %p3964_p4, %p3958_p5 }
  0x6b   : > { %3968 = shalt.err (!%p3965_p10)
}
  0x6c   : > { %3669 = dma.hbm_to_vmem [thread:$0]  (!%p4968_p6), %s6197_s20, 256, %s4972_s27, [#allocation15], %s4758_s1, %s4758_s1, %s4759_s22  }
  0x6d   : > { %s6198_s25 = sld [smem:[#allocation78_spill]] }
  0x73   : > { %s3969_s5 = scalar_lea.hbm %s6198_s25, 256 }
  0x74   : > { %p3970_p11 = scmp.ne.s32.totalorder %s6198_s25, %s3969_s5  ;;  %p3976_p0 = scmp.lt.u32.totalorder %s3969_s5, %s6198_s25 }
  0x76   : > { %p3972_p12 = pnand %p3970_p11, %p4984_p8 }
  0x78   : > { %p3973_p13 = pneg %p3972_p12 }
  0x7a   : > { %p3978_p2 = pnand %p3976_p0, %p3973_p13 }
  0x7c   : > { %3981 = shalt.err (!%p3978_p2)
}
  0x7d   : > { %s3982_s27 = scalar_lea.vmem %s4974_s9, 256  ;;  %p3990_p4 = scmp.lt.s32.totalorder %s4974_s9, %s4974_s9 }
  0x7e   : > { %p3983_p5 = scmp.ne.s32.totalorder %s4974_s9, %s3982_s27  ;;  %p3991_p10 = scmp.lt.s32.totalorder %s3982_s27, %s3982_s27 }
  0x80   : > { %p3985_p7 = pnand %p3983_p5, %p4984_p8  ;;  %p3992_p11 = por %p3991_p10, %p3990_p4 }
  0x82   : > { %p3986_p9 = pneg %p3985_p7 }
  0x84   : > { %p3993_p12 = pnand %p3992_p11, %p3986_p9 }
  0x86   : > { %3996 = shalt.err (!%p3993_p12)
}
  0x87   : > { %3675 = dma.hbm_to_vmem [thread:$0]  (!%p4968_p6), %s6198_s25, 256, %s4974_s9, [#allocation18], %s4758_s1, %s4758_s1, %s4759_s22  }
  0x88   : > { %s4760_s16 = smov [#allocation20]   ;;  %s4761_s5 = smov [#allocation23]  }
  0x89   : > { %s722_s18 = sshll.u32 %s4760_s16, 4  ;;  %s746_s0 = sshll.u32 %s4761_s5, 4  ;;  %s723_s18 = int_to_ptr.vmem [resolvable:$true] %s722_s18  ;;  %s747_s0 = int_to_ptr.vmem [resolvable:$true] %s746_s0 }
  0x8a   : > { %s6199_s11 = sld [smem:[#allocation80_spill]] }
  0x90   : > { %s3997_s3 = scalar_lea.hbm %s6199_s11, 256 }
  0x91   : > { %p3998_p13 = scmp.ne.s32.totalorder %s6199_s11, %s3997_s3  ;;  %p4004_p5 = scmp.lt.u32.totalorder %s3997_s3, %s6199_s11 }
  0x93   : > { %p4000_p0 = pnand %p3998_p13, %p4984_p8 }
  0x95   : > { %p4001_p2 = pneg %p4000_p0 }
  0x97   : > { %p4006_p7 = pnand %p4004_p5, %p4001_p2 }
  0x99   : > { %4009 = shalt.err (!%p4006_p7)
}
  0x9a   : > { %s4010_s9 = scalar_lea.vmem %s723_s18, 256  ;;  %p4018_p11 = scmp.lt.s32.totalorder %s723_s18, %s723_s18 }
  0x9b   : > { %p4011_p9 = scmp.ne.s32.totalorder %s723_s18, %s4010_s9  ;;  %p4019_p12 = scmp.lt.s32.totalorder %s4010_s9, %s4010_s9 }
  0x9d   : > { %p4013_p4 = pnand %p4011_p9, %p4984_p8  ;;  %p4020_p1 = por %p4019_p12, %p4018_p11 }
  0x9f   : > { %p4014_p10 = pneg %p4013_p4 }
  0xa1   : > { %p4021_p3 = pnand %p4020_p1, %p4014_p10 }
  0xa3   : > { %4024 = shalt.err (!%p4021_p3)
}
  0xa4   : > { %3681 = dma.hbm_to_vmem [thread:$0]  (!%p4968_p6), %s6199_s11, 256, %s723_s18, [#allocation21], %s4758_s1, %s4758_s1, %s4759_s22  }
  0xa5   : > { %s6200_s13 = sld [smem:[#allocation82_spill]] }
  0xab   : > { %s4025_s5 = scalar_lea.hbm %s6200_s13, 256 }
  0xac   : > { %p4026_p1 = scmp.ne.s32.totalorder %s6200_s13, %s4025_s5  ;;  %p4032_p0 = scmp.lt.u32.totalorder %s4025_s5, %s6200_s13 }
  0xae   : > { %p4028_p3 = pnand %p4026_p1, %p4984_p8 }
  0xb0   : > { %p4029_p13 = pneg %p4028_p3 }
  0xb2   : > { %p4034_p2 = pnand %p4032_p0, %p4029_p13 }
  0xb4   : > { %4037 = shalt.err (!%p4034_p2)
}
  0xb5   : > { %s4038_s12 = scalar_lea.vmem %s747_s0, 256  ;;  %p4046_p4 = scmp.lt.s32.totalorder %s747_s0, %s747_s0 }
  0xb6   : > { %p4039_p5 = scmp.ne.s32.totalorder %s747_s0, %s4038_s12  ;;  %p4047_p10 = scmp.lt.s32.totalorder %s4038_s12, %s4038_s12 }
  0xb8   : > { %p4041_p7 = pnand %p4039_p5, %p4984_p8  ;;  %p4048_p11 = por %p4047_p10, %p4046_p4 }
  0xba   : > { %p4042_p9 = pneg %p4041_p7 }
  0xbc   : > { %p4049_p12 = pnand %p4048_p11, %p4042_p9 }
  0xbe   : > { %4052 = shalt.err (!%p4049_p12)
}
  0xbf   : > { %3687 = dma.hbm_to_vmem [thread:$0]  (!%p4968_p6), %s6200_s13, 256, %s747_s0, [#allocation24], %s4758_s1, %s4758_s1, %s4759_s22  }
  0xc0   : > { %s4762_s20 = smov [#allocation26]   ;;  %s4763_s14 = smov [#allocation29]  }
  0xc1   : > { %s770_s7 = sshll.u32 %s4762_s20, 4  ;;  %s794_s16 = sshll.u32 %s4763_s14, 4  ;;  %s771_s7 = int_to_ptr.vmem [resolvable:$true] %s770_s7  ;;  %s795_s16 = int_to_ptr.vmem [resolvable:$true] %s794_s16 }
  0xc2   : > { %s6201_s15 = sld [smem:[#allocation84_spill]] }
  0xc8   : > { %s4053_s24 = scalar_lea.hbm %s6201_s15, 256 }
  0xc9   : > { %p4054_p1 = scmp.ne.s32.totalorder %s6201_s15, %s4053_s24  ;;  %p4060_p0 = scmp.lt.u32.totalorder %s4053_s24, %s6201_s15 }
  0xcb   : > { %p4056_p3 = pnand %p4054_p1, %p4984_p8 }
  0xcd   : > { %p4057_p13 = pneg %p4056_p3 }
  0xcf   : > { %p4062_p2 = pnand %p4060_p0, %p4057_p13 }
  0xd1   : > { %4065 = shalt.err (!%p4062_p2)
}
  0xd2   : > { %s4066_s0 = scalar_lea.vmem %s771_s7, 256  ;;  %p4074_p4 = scmp.lt.s32.totalorder %s771_s7, %s771_s7 }
  0xd3   : > { %p4067_p5 = scmp.ne.s32.totalorder %s771_s7, %s4066_s0  ;;  %p4075_p10 = scmp.lt.s32.totalorder %s4066_s0, %s4066_s0 }
  0xd5   : > { %p4069_p7 = pnand %p4067_p5, %p4984_p8  ;;  %p4076_p11 = por %p4075_p10, %p4074_p4 }
  0xd7   : > { %p4070_p9 = pneg %p4069_p7 }
  0xd9   : > { %p4077_p12 = pnand %p4076_p11, %p4070_p9 }
  0xdb   : > { %4080 = shalt.err (!%p4077_p12)
}
  0xdc   : > { %3693 = dma.hbm_to_vmem [thread:$0]  (!%p4968_p6), %s6201_s15, 256, %s771_s7, [#allocation27], %s4758_s1, %s4758_s1, %s4759_s22  }
  0xdd   : > { %s6202_s17 = sld [smem:[#allocation86_spill]] }
  0xe3   : > { %s4081_s28 = scalar_lea.hbm %s6202_s17, 256 }
  0xe4   : > { %p4082_p1 = scmp.ne.s32.totalorder %s6202_s17, %s4081_s28  ;;  %p4088_p0 = scmp.lt.u32.totalorder %s4081_s28, %s6202_s17 }
  0xe6   : > { %p4084_p3 = pnand %p4082_p1, %p4984_p8 }
  0xe8   : > { %p4085_p13 = pneg %p4084_p3 }
  0xea   : > { %p4090_p2 = pnand %p4088_p0, %p4085_p13 }
  0xec   : > { %4093 = shalt.err (!%p4090_p2)
}
  0xed   : > { %s4094_s18 = scalar_lea.vmem %s795_s16, 256  ;;  %p4102_p4 = scmp.lt.s32.totalorder %s795_s16, %s795_s16 }
  0xee   : > { %p4095_p5 = scmp.ne.s32.totalorder %s795_s16, %s4094_s18  ;;  %p4103_p10 = scmp.lt.s32.totalorder %s4094_s18, %s4094_s18 }
  0xf0   : > { %p4097_p7 = pnand %p4095_p5, %p4984_p8  ;;  %p4104_p11 = por %p4103_p10, %p4102_p4 }
  0xf2   : > { %p4098_p9 = pneg %p4097_p7 }
  0xf4   : > { %p4105_p12 = pnand %p4104_p11, %p4098_p9 }
  0xf6   : > { %4108 = shalt.err (!%p4105_p12)
}
  0xf7   : > { %3699 = dma.hbm_to_vmem [thread:$0]  (!%p4968_p6), %s6202_s17, 256, %s795_s16, [#allocation30], %s4758_s1, %s4758_s1, %s4759_s22  }
  0xf8   : > { %s4764_s9 = smov [#allocation32]   ;;  %s4765_s14 = smov [#allocation35]  }
  0xf9   : > { %s818_s20 = sshll.u32 %s4764_s9, 4  ;;  %s842_s5 = sshll.u32 %s4765_s14, 4  ;;  %s819_s20 = int_to_ptr.vmem [resolvable:$true] %s818_s20  ;;  %s843_s5 = int_to_ptr.vmem [resolvable:$true] %s842_s5 }
  0xfa   : > { %s6203_s19 = sld [smem:[#allocation88_spill]] }
 0x100   : > { %s4109_s3 = scalar_lea.hbm %s6203_s19, 256 }
 0x101   : > { %p4110_p1 = scmp.ne.s32.totalorder %s6203_s19, %s4109_s3  ;;  %p4116_p0 = scmp.lt.u32.totalorder %s4109_s3, %s6203_s19 }
 0x103   : > { %p4112_p3 = pnand %p4110_p1, %p4984_p8 }
 0x105   : > { %p4113_p13 = pneg %p4112_p3 }
 0x107   : > { %p4118_p2 = pnand %p4116_p0, %p4113_p13 }
 0x109   : > { %4121 = shalt.err (!%p4118_p2)
}
 0x10a   : > { %s4122_s16 = scalar_lea.vmem %s819_s20, 256  ;;  %p4130_p4 = scmp.lt.s32.totalorder %s819_s20, %s819_s20 }
 0x10b   : > { %p4123_p5 = scmp.ne.s32.totalorder %s819_s20, %s4122_s16  ;;  %p4131_p10 = scmp.lt.s32.totalorder %s4122_s16, %s4122_s16 }
 0x10d   : > { %p4125_p7 = pnand %p4123_p5, %p4984_p8  ;;  %p4132_p11 = por %p4131_p10, %p4130_p4 }
 0x10f   : > { %p4126_p9 = pneg %p4125_p7 }
 0x111   : > { %p4133_p12 = pnand %p4132_p11, %p4126_p9 }
 0x113   : > { %4136 = shalt.err (!%p4133_p12)
}
 0x114   : > { %3705 = dma.hbm_to_vmem [thread:$0]  (!%p4968_p6), %s6203_s19, 256, %s819_s20, [#allocation33], %s4758_s1, %s4758_s1, %s4759_s22  }
 0x115   : > { %s6204_s21 = sld [smem:[#allocation90_spill]] }
 0x11b   : > { %s4137_s24 = scalar_lea.hbm %s6204_s21, 512 }
 0x11c   : > { %p4138_p1 = scmp.ne.s32.totalorder %s6204_s21, %s4137_s24  ;;  %p4144_p0 = scmp.lt.u32.totalorder %s4137_s24, %s6204_s21 }
 0x11e   : > { %p4140_p3 = pnand %p4138_p1, %p4984_p8 }
 0x120   : > { %p4141_p13 = pneg %p4140_p3 }
 0x122   : > { %p4146_p2 = pnand %p4144_p0, %p4141_p13 }
 0x124   : > { %4149 = shalt.err (!%p4146_p2)
}
 0x125   : > { %s4150_s7 = scalar_lea.vmem %s843_s5, 512  ;;  %p4158_p4 = scmp.lt.s32.totalorder %s843_s5, %s843_s5 }
 0x126   : > { %p4151_p5 = scmp.ne.s32.totalorder %s843_s5, %s4150_s7  ;;  %p4159_p10 = scmp.lt.s32.totalorder %s4150_s7, %s4150_s7 }
 0x128   : > { %p4153_p7 = pnand %p4151_p5, %p4984_p8  ;;  %p4160_p11 = por %p4159_p10, %p4158_p4 }
 0x12a   : > { %p4154_p9 = pneg %p4153_p7 }
 0x12c   : > { %p4161_p12 = pnand %p4160_p11, %p4154_p9 }
 0x12e   : > { %4164 = shalt.err (!%p4161_p12)
}
 0x12f   : > { %3711 = dma.hbm_to_vmem [thread:$0]  (!%p4968_p6), %s6204_s21, 512, %s843_s5, [#allocation36], %s4758_s1, %s4758_s1, %s4759_s22  }
 0x130   : > { %s4766_s0 = smov [#allocation38]   ;;  %s6205_s23 = sld [smem:[#allocation92_spill]] }
 0x131   : > { %s866_s9 = sshll.u32 %s4766_s0, 4  ;;  %s867_s9 = int_to_ptr.vmem [resolvable:$true] %s866_s9 }
 0x136   : > { %s4165_s24 = scalar_lea.hbm %s6205_s23, 48 }
 0x137   : > { %p4166_p1 = scmp.ne.s32.totalorder %s6205_s23, %s4165_s24  ;;  %p4172_p0 = scmp.lt.u32.totalorder %s4165_s24, %s6205_s23 }
 0x139   : > { %p4168_p3 = pnand %p4166_p1, %p4984_p8 }
 0x13b   : > { %p4169_p13 = pneg %p4168_p3 }
 0x13d   : > { %p4174_p2 = pnand %p4172_p0, %p4169_p13 }
 0x13f   : > { %4177 = shalt.err (!%p4174_p2)
}
 0x140   : > { %s4178_s1 = scalar_lea.vmem %s867_s9, 48  ;;  %s4185_s22 = scalar_lea.vmem %s867_s9, 64 }
 0x141   : > { %p4179_p5 = scmp.ne.s32.totalorder %s867_s9, %s4178_s1  ;;  %p4186_p4 = scmp.lt.s32.totalorder %s867_s9, %s867_s9 }
 0x142   : > { %p4187_p10 = scmp.lt.s32.totalorder %s4185_s22, %s4178_s1 }
 0x143   : > { %p4181_p7 = pnand %p4179_p5, %p4984_p8 }
 0x144   : > { %p4188_p11 = por %p4187_p10, %p4186_p4 }
 0x145   : > { %p4182_p9 = pneg %p4181_p7 }
 0x147   : > { %p4189_p12 = pnand %p4188_p11, %p4182_p9 }
 0x149   : > { %4192 = shalt.err (!%p4189_p12)
}
 0x14a   : > { %s6128_s5 = smov 16   ;;  %s6129_s7 = smov 1  }
 0x14b   : > { %3717 = dma.hbm_to_vmem [thread:$0]  (!%p4968_p6), %s6205_s23, 48, %s867_s9, [#allocation39], %s6128_s5, %s6128_s5, %s6129_s7  }
 0x14c   : > { %s3208_s0 = sadd.s32 4294967294, %s4745_s30   ;;  %s5209_s14 = sadd.s32 1, %s4745_s30  }
 0x14d   : > { %6206 = sst [smem:[#allocation60_spill]] %s5209_s14  ;;  %s61_s28 = ssub.s32 %s4745_s30, %s5209_s14 }
 0x14e   : > { %s64_s24 = sadd.s32 1, %s4741_s6  ;;  %p62_p1 = scmp.eq.s32.totalorder %s61_s28, 0 }
 0x14f   : > { %p71_p3 = scmp.ne.s32.totalorder %s4741_s6, %s4737_s2  ;;  %p72_p13 = scmp.eq.s32.totalorder %s4745_s30, 0 }
 0x150   : > { %p77_p0 = scmp.ne.s32.totalorder %s4737_s2, %s4733_s29  ;;  %p6208_p5 = scmp.eq.s32.totalorder %s4952_s26, 0 }
 0x151   : > { %s5220_s3 = scalar_select %p62_p1, %s4741_s6, %s64_s24  }
 0x152   : > { %p73_p2 = por %p72_p13, %p71_p3  ;;  %p5224_p7 = por %p6208_p5, %p77_p0 }
 0x153   : > { %6207 = sst [smem:[#allocation61_spill]] %s5220_s3  ;;  %p625_p9 = scmp.eq.s32.totalorder %s4952_s26, 1 }
 0x154   : > { %s6209_s27 = scalar_select %p5224_p7, 1, 0 }
 0x155   : > { %p631_p4 = scmp.eq.s32.totalorder %s3208_s0, 1  ;;  %p3761_p10 = scmp.lt.s32.totalorder %s4745_s30, 2 }
 0x156   : > { %s5231_s9 = sand.u32 1, %s4741_s6   ;;  %p5233_p11 = por %p625_p9, %p71_p3 }
 0x157   : > { %p5237_p12 = por %p631_p4, %p77_p0  ;;  %s6130_s1 = sshll.u32 %s5231_s9, 3 }
 0x158   : > { %s6210_s12 = scalar_select %p5233_p11, 1, 0 }
 0x159   : > { %s6212_s18 = scalar_select %p5237_p12, 1, 0 }
 0x15a   : > { %6211 = sst [smem:[#allocation62_spill]] %s6210_s12  ;;  %s6131_s22 = sshll.u32 %s4745_s30, 7 }
 0x15b   : > { %6213 = sst [smem:[#allocation63_spill]] %s6212_s18  ;;  %p5243_p1 = pnand %p3761_p10, %p73_p2 }
 0x15c   : > { %s6133_s16 = sand.u32 1, %s4745_s30   ;;  %s6215_s24 = sld [smem:[#allocation70_spill]] }
 0x15d   : > { %s6214_s20 = scalar_select %p5243_p1, 1, 0 }
 0x15e   : > { %s915_s7 = scalar_lea.vmem [#allocation5], %s6130_s1  ;;  %s5262_s15 = scalar_lea.sflag [#allocation6], %s6133_s16 }
 0x15f   : > { %s922_s11 = sshll.u32 %s915_s7, 4  ;;  %p5268_p13 = pneg %p5243_p1  ;;  %s5257_s11 = int_to_ptr.vmem [resolvable:$true] %s922_s11 }
 0x161   : > { %s6216_s0 = scalar_select %p5268_p13, 1, 0 }
 0x162   : > { %s5253_s5 = scalar_lea.hbm %s6215_s24, %s6131_s22  ;;  %s4198_s7 = scalar_lea.hbm %s6215_s24, 256 }
 0x163   : > { %s4193_s17 = scalar_lea.hbm %s5253_s5, 128  ;;  %p4199_p5 = scmp.lt.u32.totalorder %s5253_s5, %s6215_s24 }
 0x164   : > { %p4194_p3 = scmp.ne.s32.totalorder %s5253_s5, %s4193_s17  ;;  %p4200_p9 = scmp.lt.u32.totalorder %s4198_s7, %s4193_s17 }
 0x165   : > { %p4202_p10 = scmp.lt.u32.totalorder %s4193_s17, %s5253_s5 }
 0x166   : > { %p4196_p0 = pnand %p5268_p13, %p4194_p3  ;;  %p4201_p4 = por %p4200_p9, %p4199_p5 }
 0x168   : > { %p4197_p2 = pneg %p4196_p0  ;;  %p4203_p12 = por %p4202_p10, %p4201_p4 }
 0x16a   : > { %p4204_p11 = pnand %p4203_p12, %p4197_p2 }
 0x16c   : > { %4207 = shalt.err (!%p4204_p11)
}
 0x16d   : > { %s4208_s16 = scalar_lea.vmem %s5257_s11, 128  ;;  %s4769_s1 = smov [#allocation5]  }
 0x16e   : > { %p4209_p3 = scmp.ne.s32.totalorder %s5257_s11, %s4208_s16  ;;  %s4213_s28 = sshll.u32 %s4769_s1, 4  ;;  %s4214_s28 = int_to_ptr.vmem [resolvable:$false] %s4213_s28 }
 0x16f   : > { %s4215_s13 = scalar_lea.vmem %s4214_s28, 256  ;;  %p4216_p6 = scmp.lt.s32.totalorder %s5257_s11, %s4214_s28 }
 0x170   : > { %p4211_p0 = pnand %p4209_p3, %p5268_p13  ;;  %p4217_p8 = scmp.lt.s32.totalorder %s4215_s13, %s4208_s16 }
 0x172   : > { %p4212_p7 = pneg %p4211_p0  ;;  %p4218_p5 = por %p4217_p8, %p4216_p6 }
 0x174   : > { %p4219_p9 = pnand %p4218_p5, %p4212_p7 }
 0x176   : > { %4222 = shalt.err (!%p4219_p9)
}
 0x177   : > { %3727 = dma.hbm_to_vmem [thread:$0]  (!%p5243_p1), %s5253_s5, 128, %s5257_s11, %s5262_s15  }
 0x178   : > { %s3333_s17 = sshll.u32 %s4745_s30, 8  ;;  %s6217_s1 = sld [smem:[#allocation71_spill]] }
 0x179   : > { %s6218_s16 = sshll.u32 %s5231_s9, 4  ;;  %s6219_s24 = sld [smem:[#allocation72_spill]] }
 0x17a   : > { %s933_s13 = scalar_lea.vmem [#allocation7], %s6218_s16  ;;  %s6220_s3 = smov %s6218_s16 }
 0x17b   : > { %s940_s19 = sshll.u32 %s933_s13, 4  ;;  %s954_s11 = scalar_lea.vmem [#allocation8], %s6220_s3  ;;  %s5300_s19 = int_to_ptr.vmem [resolvable:$true] %s940_s19 }
 0x17c   : > { %s961_s5 = sshll.u32 %s954_s11, 4  ;;  %s6221_s22 = sand.u32 1, %s4745_s30   ;;  %s5309_s5 = int_to_ptr.vmem [resolvable:$true] %s961_s5 }
 0x17d   : > { %s5313_s7 = scalar_lea.sflag [#allocation9], %s6221_s22 }
 0x17e   : > { %s5296_s28 = scalar_lea.hbm %s6217_s1, %s3333_s17 }
 0x17f   : > { %s5305_s25 = scalar_lea.hbm %s6219_s24, %s3333_s17  ;;  %s4228_s17 = scalar_lea.hbm %s6219_s24, 512 }
 0x180   : > { %s4223_s16 = scalar_lea.hbm %s5305_s25, 256  ;;  %p4229_p11 = scmp.lt.u32.totalorder %s5305_s25, %s6219_s24 }
 0x181   : > { %p4224_p6 = scmp.ne.s32.totalorder %s5305_s25, %s4223_s16  ;;  %p4230_p12 = scmp.lt.u32.totalorder %s4228_s17, %s4223_s16 }
 0x182   : > { %p4232_p4 = scmp.lt.u32.totalorder %s4223_s16, %s5305_s25 }
 0x183   : > { %p4226_p8 = pnand %p4224_p6, %p5268_p13  ;;  %p4231_p2 = por %p4230_p12, %p4229_p11 }
 0x185   : > { %p4227_p7 = pneg %p4226_p8  ;;  %p4233_p10 = por %p4232_p4, %p4231_p2 }
 0x187   : > { %p4234_p3 = pnand %p4233_p10, %p4227_p7 }
 0x189   : > { %4237 = shalt.err (!%p4234_p3)
}
 0x18a   : > { %s4238_s3 = scalar_lea.vmem %s5309_s5, 256  ;;  %s4770_s11 = smov [#allocation8]  }
 0x18b   : > { %p4239_p0 = scmp.ne.s32.totalorder %s5309_s5, %s4238_s3  ;;  %s4243_s22 = sshll.u32 %s4770_s11, 4  ;;  %s4244_s22 = int_to_ptr.vmem [resolvable:$false] %s4243_s22 }
 0x18c   : > { %s4245_s6 = scalar_lea.vmem %s4244_s22, 512  ;;  %p4246_p6 = scmp.lt.s32.totalorder %s5309_s5, %s4244_s22 }
 0x18d   : > { %p4241_p5 = pnand %p4239_p0, %p5268_p13  ;;  %p4247_p8 = scmp.lt.s32.totalorder %s4245_s6, %s4238_s3 }
 0x18f   : > { %p4242_p9 = pneg %p4241_p5  ;;  %p4248_p11 = por %p4247_p8, %p4246_p6 }
 0x191   : > { %p4249_p12 = pnand %p4248_p11, %p4242_p9 }
 0x193   : > { %4252 = shalt.err (!%p4249_p12)
}
 0x194   : > { %s6155_s16 = smov 128   ;;  %s6156_s21 = smov 8  }
 0x195   : > { %3733 = dma.hbm_to_vmem [thread:$0]  (!%p5243_p1), %s5305_s25, 256, %s5309_s5, %s5313_s7, %s6155_s16, %s6155_s16, %s6156_s21  }
 0x196   : > { %s4773_s23 = smov [#allocation13]   ;;  %s4774_s13 = smov [#allocation16]  }
 0x197   : > { %s664_s17 = sshll.u32 %s4773_s23, 4  ;;  %s688_s3 = sshll.u32 %s4774_s13, 4  ;;  %s665_s17 = int_to_ptr.vmem [resolvable:$true] %s664_s17  ;;  %s689_s3 = int_to_ptr.vmem [resolvable:$true] %s688_s3 }
 0x198   : > { %s6222_s6 = sld [smem:[#allocation75_spill]]  ;;  %p6224_p2 = scmp.ne.s32.totalorder %s6196_s8, 0 }
 0x19e   : > { %s6223_s24 = smov %s6222_s6  ;;  %s4253_s14 = scalar_lea.hbm %s6222_s6, 16 }
 0x19f   : > { %p4254_p7 = scmp.ne.s32.totalorder %s6223_s24, %s4253_s14  ;;  %p4260_p3 = scmp.lt.u32.totalorder %s4253_s14, %s6223_s24 }
 0x1a1   : > { %p4256_p4 = pnand %p4254_p7, %p6224_p2 }
 0x1a3   : > { %p4257_p10 = pneg %p4256_p4 }
 0x1a5   : > { %p4262_p0 = pnand %p4260_p3, %p4257_p10 }
 0x1a7   : > { %4265 = shalt.err (!%p4262_p0)
}
 0x1a8   : > { %s4266_s25 = scalar_lea.vmem %s665_s17, 16  ;;  %s4273_s5 = scalar_lea.vmem %s665_s17, 32 }
 0x1a9   : > { %p4267_p5 = scmp.ne.s32.totalorder %s665_s17, %s4266_s25  ;;  %p4274_p8 = scmp.lt.s32.totalorder %s665_s17, %s665_s17 }
 0x1aa   : > { %p4275_p11 = scmp.lt.s32.totalorder %s4273_s5, %s4266_s25 }
 0x1ab   : > { %p4269_p9 = pnand %p4267_p5, %p6224_p2 }
 0x1ac   : > { %p4276_p12 = por %p4275_p11, %p4274_p8 }
 0x1ad   : > { %p4270_p6 = pneg %p4269_p9 }
 0x1af   : > { %p4277_p1 = pnand %p4276_p12, %p4270_p6 }
 0x1b1   : > { %4280 = shalt.err (!%p4277_p1)
}
 0x1b2   : > { %p6225_p7 = scmp.ne.s32.totalorder %s6194_s4, 0  ;;  %s6226_s12 = sld [smem:[#allocation77_spill]] }
 0x1b4   : > { %3666 = dma.hbm_to_vmem [thread:$0]  (!%p6225_p7), %s6223_s24, 16, %s665_s17, [#allocation12]  }
 0x1b8   : > { %s4281_s23 = scalar_lea.hbm %s6226_s12, 16 }
 0x1b9   : > { %p4282_p4 = scmp.ne.s32.totalorder %s6226_s12, %s4281_s23  ;;  %p4288_p1 = scmp.lt.u32.totalorder %s4281_s23, %s6226_s12 }
 0x1bb   : > { %p4284_p10 = pnand %p4282_p4, %p6224_p2 }
 0x1bd   : > { %p4285_p3 = pneg %p4284_p10 }
 0x1bf   : > { %p4290_p0 = pnand %p4288_p1, %p4285_p3 }
 0x1c1   : > { %4293 = shalt.err (!%p4290_p0)
}
 0x1c2   : > { %s4294_s25 = scalar_lea.vmem %s689_s3, 16  ;;  %s4301_s17 = scalar_lea.vmem %s689_s3, 32 }
 0x1c3   : > { %p4295_p5 = scmp.ne.s32.totalorder %s689_s3, %s4294_s25  ;;  %p4302_p8 = scmp.lt.s32.totalorder %s689_s3, %s689_s3 }
 0x1c4   : > { %p4303_p11 = scmp.lt.s32.totalorder %s4301_s17, %s4294_s25 }
 0x1c5   : > { %p4297_p9 = pnand %p4295_p5, %p6224_p2 }
 0x1c6   : > { %p4304_p12 = por %p4303_p11, %p4302_p8 }
 0x1c7   : > { %p4298_p6 = pneg %p4297_p9 }
 0x1c9   : > { %p4305_p13 = pnand %p4304_p12, %p4298_p6 }
 0x1cb   : > { %4308 = shalt.err (!%p4305_p13)
}
 0x1cc   : > { %3672 = dma.hbm_to_vmem [thread:$0]  (!%p6225_p7), %s6226_s12, 16, %s689_s3, [#allocation15]  }
 0x1cd   : > { %s4775_s18 = smov [#allocation19]   ;;  %s4776_s14 = smov [#allocation22]  }
 0x1ce   : > { %s712_s26 = sshll.u32 %s4775_s18, 4  ;;  %s736_s23 = sshll.u32 %s4776_s14, 4  ;;  %s713_s26 = int_to_ptr.vmem [resolvable:$true] %s712_s26  ;;  %s737_s23 = int_to_ptr.vmem [resolvable:$true] %s736_s23 }
 0x1cf   : > { %s6227_s10 = sld [smem:[#allocation79_spill]] }
 0x1d5   : > { %s4309_s22 = scalar_lea.hbm %s6227_s10, 16 }
 0x1d6   : > { %p4310_p13 = scmp.ne.s32.totalorder %s6227_s10, %s4309_s22  ;;  %p4316_p3 = scmp.lt.u32.totalorder %s4309_s22, %s6227_s10 }
 0x1d8   : > { %p4312_p4 = pnand %p4310_p13, %p6224_p2 }
 0x1da   : > { %p4313_p10 = pneg %p4312_p4 }
 0x1dc   : > { %p4318_p1 = pnand %p4316_p3, %p4313_p10 }
 0x1de   : > { %4321 = shalt.err (!%p4318_p1)
}
 0x1df   : > { %s4322_s3 = scalar_lea.vmem %s713_s26, 16  ;;  %s4329_s29 = scalar_lea.vmem %s713_s26, 32 }
 0x1e0   : > { %p4323_p0 = scmp.ne.s32.totalorder %s713_s26, %s4322_s3  ;;  %p4330_p6 = scmp.lt.s32.totalorder %s713_s26, %s713_s26 }
 0x1e1   : > { %p4331_p8 = scmp.lt.s32.totalorder %s4329_s29, %s4322_s3 }
 0x1e2   : > { %p4325_p5 = pnand %p4323_p0, %p6224_p2 }
 0x1e3   : > { %p4332_p11 = por %p4331_p8, %p4330_p6 }
 0x1e4   : > { %p4326_p9 = pneg %p4325_p5 }
 0x1e6   : > { %p4333_p12 = pnand %p4332_p11, %p4326_p9 }
 0x1e8   : > { %4336 = shalt.err (!%p4333_p12)
}
 0x1e9   : > { %3678 = dma.hbm_to_vmem [thread:$0]  (!%p6225_p7), %s6227_s10, 16, %s713_s26, [#allocation18]  }
 0x1ea   : > { %s6228_s22 = sld [smem:[#allocation81_spill]] }
 0x1f0   : > { %s4337_s6 = scalar_lea.hbm %s6228_s22, 16 }
 0x1f1   : > { %p4338_p13 = scmp.ne.s32.totalorder %s6228_s22, %s4337_s6  ;;  %p4344_p3 = scmp.lt.u32.totalorder %s4337_s6, %s6228_s22 }
 0x1f3   : > { %p4340_p4 = pnand %p4338_p13, %p6224_p2 }
 0x1f5   : > { %p4341_p10 = pneg %p4340_p4 }
 0x1f7   : > { %p4346_p1 = pnand %p4344_p3, %p4341_p10 }
 0x1f9   : > { %4349 = shalt.err (!%p4346_p1)
}
 0x1fa   : > { %s4350_s29 = scalar_lea.vmem %s737_s23, 16  ;;  %s4357_s26 = scalar_lea.vmem %s737_s23, 32 }
 0x1fb   : > { %p4351_p0 = scmp.ne.s32.totalorder %s737_s23, %s4350_s29  ;;  %p4358_p6 = scmp.lt.s32.totalorder %s737_s23, %s737_s23 }
 0x1fc   : > { %p4359_p8 = scmp.lt.s32.totalorder %s4357_s26, %s4350_s29 }
 0x1fd   : > { %p4353_p5 = pnand %p4351_p0, %p6224_p2 }
 0x1fe   : > { %p4360_p11 = por %p4359_p8, %p4358_p6 }
 0x1ff   : > { %p4354_p9 = pneg %p4353_p5 }
 0x201   : > { %p4361_p12 = pnand %p4360_p11, %p4354_p9 }
 0x203   : > { %4364 = shalt.err (!%p4361_p12)
}
 0x204   : > { %3684 = dma.hbm_to_vmem [thread:$0]  (!%p6225_p7), %s6228_s22, 16, %s737_s23, [#allocation21]  }
 0x205   : > { %s4777_s13 = smov [#allocation25]   ;;  %s4778_s6 = smov [#allocation28]  }
 0x206   : > { %s760_s11 = sshll.u32 %s4777_s13, 4  ;;  %s784_s25 = sshll.u32 %s4778_s6, 4  ;;  %s761_s11 = int_to_ptr.vmem [resolvable:$true] %s760_s11  ;;  %s785_s25 = int_to_ptr.vmem [resolvable:$true] %s784_s25 }
 0x207   : > { %s6229_s3 = sld [smem:[#allocation83_spill]] }
 0x20d   : > { %s4365_s16 = scalar_lea.hbm %s6229_s3, 16 }
 0x20e   : > { %p4366_p13 = scmp.ne.s32.totalorder %s6229_s3, %s4365_s16  ;;  %p4372_p3 = scmp.lt.u32.totalorder %s4365_s16, %s6229_s3 }
 0x210   : > { %p4368_p4 = pnand %p4366_p13, %p6224_p2 }
 0x212   : > { %p4369_p10 = pneg %p4368_p4 }
 0x214   : > { %p4374_p1 = pnand %p4372_p3, %p4369_p10 }
 0x216   : > { %4377 = shalt.err (!%p4374_p1)
}
 0x217   : > { %s4378_s23 = scalar_lea.vmem %s761_s11, 16  ;;  %s4385_s14 = scalar_lea.vmem %s761_s11, 32 }
 0x218   : > { %p4379_p0 = scmp.ne.s32.totalorder %s761_s11, %s4378_s23  ;;  %p4386_p6 = scmp.lt.s32.totalorder %s761_s11, %s761_s11 }
 0x219   : > { %p4387_p8 = scmp.lt.s32.totalorder %s4385_s14, %s4378_s23 }
 0x21a   : > { %p4381_p5 = pnand %p4379_p0, %p6224_p2 }
 0x21b   : > { %p4388_p11 = por %p4387_p8, %p4386_p6 }
 0x21c   : > { %p4382_p9 = pneg %p4381_p5 }
 0x21e   : > { %p4389_p12 = pnand %p4388_p11, %p4382_p9 }
 0x220   : > { %4392 = shalt.err (!%p4389_p12)
}
 0x221   : > { %3690 = dma.hbm_to_vmem [thread:$0]  (!%p6225_p7), %s6229_s3, 16, %s761_s11, [#allocation24]  }
 0x222   : > { %s6230_s17 = sld [smem:[#allocation85_spill]] }
 0x228   : > { %s4393_s5 = scalar_lea.hbm %s6230_s17, 16 }
 0x229   : > { %p4394_p13 = scmp.ne.s32.totalorder %s6230_s17, %s4393_s5  ;;  %p4400_p3 = scmp.lt.u32.totalorder %s4393_s5, %s6230_s17 }
 0x22b   : > { %p4396_p4 = pnand %p4394_p13, %p6224_p2 }
 0x22d   : > { %p4397_p10 = pneg %p4396_p4 }
 0x22f   : > { %p4402_p1 = pnand %p4400_p3, %p4397_p10 }
 0x231   : > { %4405 = shalt.err (!%p4402_p1)
}
 0x232   : > { %s4406_s14 = scalar_lea.vmem %s785_s25, 16  ;;  %s4413_s11 = scalar_lea.vmem %s785_s25, 32 }
 0x233   : > { %p4407_p0 = scmp.ne.s32.totalorder %s785_s25, %s4406_s14  ;;  %p4414_p6 = scmp.lt.s32.totalorder %s785_s25, %s785_s25 }
 0x234   : > { %p4415_p8 = scmp.lt.s32.totalorder %s4413_s11, %s4406_s14 }
 0x235   : > { %p4409_p5 = pnand %p4407_p0, %p6224_p2 }
 0x236   : > { %p4416_p11 = por %p4415_p8, %p4414_p6 }
 0x237   : > { %p4410_p9 = pneg %p4409_p5 }
 0x239   : > { %p4417_p12 = pnand %p4416_p11, %p4410_p9 }
 0x23b   : > { %4420 = shalt.err (!%p4417_p12)
}
 0x23c   : > { %3696 = dma.hbm_to_vmem [thread:$0]  (!%p6225_p7), %s6230_s17, 16, %s785_s25, [#allocation27]  }
 0x23d   : > { %s4779_s16 = smov [#allocation31]   ;;  %s4780_s5 = smov [#allocation34]  }
 0x23e   : > { %s808_s21 = sshll.u32 %s4779_s16, 4  ;;  %s832_s29 = sshll.u32 %s4780_s5, 4  ;;  %s809_s21 = int_to_ptr.vmem [resolvable:$true] %s808_s21  ;;  %s833_s29 = int_to_ptr.vmem [resolvable:$true] %s832_s29 }
 0x23f   : > { %s6231_s23 = sld [smem:[#allocation87_spill]] }
 0x245   : > { %s4421_s3 = scalar_lea.hbm %s6231_s23, 16 }
 0x246   : > { %p4422_p13 = scmp.ne.s32.totalorder %s6231_s23, %s4421_s3  ;;  %p4428_p3 = scmp.lt.u32.totalorder %s4421_s3, %s6231_s23 }
 0x248   : > { %p4424_p4 = pnand %p4422_p13, %p6224_p2 }
 0x24a   : > { %p4425_p10 = pneg %p4424_p4 }
 0x24c   : > { %p4430_p1 = pnand %p4428_p3, %p4425_p10 }
 0x24e   : > { %4433 = shalt.err (!%p4430_p1)
}
 0x24f   : > { %s4434_s25 = scalar_lea.vmem %s809_s21, 16  ;;  %s4441_s6 = scalar_lea.vmem %s809_s21, 32 }
 0x250   : > { %p4435_p0 = scmp.ne.s32.totalorder %s809_s21, %s4434_s25  ;;  %p4442_p6 = scmp.lt.s32.totalorder %s809_s21, %s809_s21 }
 0x251   : > { %p4443_p8 = scmp.lt.s32.totalorder %s4441_s6, %s4434_s25 }
 0x252   : > { %p4437_p5 = pnand %p4435_p0, %p6224_p2 }
 0x253   : > { %p4444_p11 = por %p4443_p8, %p4442_p6 }
 0x254   : > { %p4438_p9 = pneg %p4437_p5 }
 0x256   : > { %p4445_p12 = pnand %p4444_p11, %p4438_p9 }
 0x258   : > { %4448 = shalt.err (!%p4445_p12)
}
 0x259   : > { %3702 = dma.hbm_to_vmem [thread:$0]  (!%p6225_p7), %s6231_s23, 16, %s809_s21, [#allocation30]  }
 0x25a   : > { %s6232_s26 = sld [smem:[#allocation89_spill]] }
 0x260   : > { %s4449_s18 = scalar_lea.hbm %s6232_s26, 16 }
 0x261   : > { %p4450_p13 = scmp.ne.s32.totalorder %s6232_s26, %s4449_s18  ;;  %p4456_p3 = scmp.lt.u32.totalorder %s4449_s18, %s6232_s26 }
 0x263   : > { %p4452_p4 = pnand %p4450_p13, %p6224_p2 }
 0x265   : > { %p4453_p10 = pneg %p4452_p4 }
 0x267   : > { %p4458_p1 = pnand %p4456_p3, %p4453_p10 }
 0x269   : > { %4461 = shalt.err (!%p4458_p1)
}
 0x26a   : > { %s4462_s6 = scalar_lea.vmem %s833_s29, 16  ;;  %s4469_s21 = scalar_lea.vmem %s833_s29, 32 }
 0x26b   : > { %p4463_p0 = scmp.ne.s32.totalorder %s833_s29, %s4462_s6  ;;  %p4470_p6 = scmp.lt.s32.totalorder %s833_s29, %s833_s29 }
 0x26c   : > { %p4471_p8 = scmp.lt.s32.totalorder %s4469_s21, %s4462_s6 }
 0x26d   : > { %p4465_p5 = pnand %p4463_p0, %p6224_p2 }
 0x26e   : > { %p4472_p11 = por %p4471_p8, %p4470_p6 }
 0x26f   : > { %p4466_p9 = pneg %p4465_p5 }
 0x271   : > { %p4473_p12 = pnand %p4472_p11, %p4466_p9 }
 0x273   : > { %4476 = shalt.err (!%p4473_p12)
}
 0x274   : > { %3708 = dma.hbm_to_vmem [thread:$0]  (!%p6225_p7), %s6232_s26, 16, %s833_s29, [#allocation33]  }
 0x275   : > { %s4781_s10 = smov [#allocation37]   ;;  %s4782_s18 = smov [#allocation40]  }
 0x276   : > { %s856_s3 = sshll.u32 %s4781_s10, 4  ;;  %s879_s14 = sshll.u32 %s4782_s18, 4  ;;  %s857_s3 = int_to_ptr.vmem [resolvable:$true] %s856_s3  ;;  %s880_s14 = int_to_ptr.vmem [resolvable:$true] %s879_s14 }
 0x277   : > { %s6233_s25 = sld [smem:[#allocation91_spill]] }
 0x27d   : > { %s4477_s12 = scalar_lea.hbm %s6233_s25, 16 }
 0x27e   : > { %p4478_p13 = scmp.ne.s32.totalorder %s6233_s25, %s4477_s12  ;;  %p4484_p3 = scmp.lt.u32.totalorder %s4477_s12, %s6233_s25 }
 0x280   : > { %p4480_p4 = pnand %p4478_p13, %p6224_p2 }
 0x282   : > { %p4481_p10 = pneg %p4480_p4 }
 0x284   : > { %p4486_p1 = pnand %p4484_p3, %p4481_p10 }
 0x286   : > { %4489 = shalt.err (!%p4486_p1)
}
 0x287   : > { %s4490_s29 = scalar_lea.vmem %s857_s3, 16  ;;  %s4497_s5 = scalar_lea.vmem %s857_s3, 32 }
 0x288   : > { %p4491_p0 = scmp.ne.s32.totalorder %s857_s3, %s4490_s29  ;;  %p4498_p6 = scmp.lt.s32.totalorder %s857_s3, %s857_s3 }
 0x289   : > { %p4499_p8 = scmp.lt.s32.totalorder %s4497_s5, %s4490_s29 }
 0x28a   : > { %p4493_p5 = pnand %p4491_p0, %p6224_p2 }
 0x28b   : > { %p4500_p11 = por %p4499_p8, %p4498_p6 }
 0x28c   : > { %p4494_p9 = pneg %p4493_p5 }
 0x28e   : > { %p4501_p12 = pnand %p4500_p11, %p4494_p9 }
 0x290   : > { %4504 = shalt.err (!%p4501_p12)
}
 0x291   : > { %3714 = dma.hbm_to_vmem [thread:$0]  (!%p6225_p7), %s6233_s25, 16, %s857_s3, [#allocation36]  }
 0x292   : > { %s6234_s11 = sld [smem:[#allocation93_spill]] }
 0x298   : > { %s4505_s13 = scalar_lea.hbm %s6234_s11, 48 }
 0x299   : > { %p4506_p13 = scmp.ne.s32.totalorder %s6234_s11, %s4505_s13  ;;  %p4512_p3 = scmp.lt.u32.totalorder %s4505_s13, %s6234_s11 }
 0x29b   : > { %p4508_p4 = pnand %p4506_p13, %p6224_p2 }
 0x29d   : > { %p4509_p10 = pneg %p4508_p4 }
 0x29f   : > { %p4514_p1 = pnand %p4512_p3, %p4509_p10 }
 0x2a1   : > { %4517 = shalt.err (!%p4514_p1)
}
 0x2a2   : > { %s4518_s5 = scalar_lea.vmem %s880_s14, 48  ;;  %s4525_s3 = scalar_lea.vmem %s880_s14, 64 }
 0x2a3   : > { %p4519_p0 = scmp.ne.s32.totalorder %s880_s14, %s4518_s5  ;;  %p4526_p6 = scmp.lt.s32.totalorder %s880_s14, %s880_s14 }
 0x2a4   : > { %p4527_p8 = scmp.lt.s32.totalorder %s4525_s3, %s4518_s5 }
 0x2a5   : > { %p4521_p5 = pnand %p4519_p0, %p6224_p2 }
 0x2a6   : > { %p4528_p11 = por %p4527_p8, %p4526_p6 }
 0x2a7   : > { %p4522_p9 = pneg %p4521_p5 }
 0x2a9   : > { %p4529_p12 = pnand %p4528_p11, %p4522_p9 }
 0x2ab   : > { %4532 = shalt.err (!%p4529_p12)
}
 0x2ac   : > { %s6235_s10 = smov 1   ;;  %s6236_s18 = smov 16  }
 0x2ad   : > { %3720 = dma.hbm_to_vmem [thread:$0]  (!%p6225_p7), %s6234_s11, 48, %s880_s14, [#allocation39], %s6236_s18, %s6236_s18, %s6235_s10  }
 0x2ae   : > { %s6237_s8 = sshll.u32 %s4745_s30, 7  ;;  %s6238_s21 = sld [smem:[#allocation69_spill]] }
 0x2af   : > { %s6239_s29 = sshll.u32 %s5231_s9, 3  ;;  %s3241_s3 = sshll.u32 %s4745_s30, 4 }
 0x2b0   : > { %s897_s4 = scalar_lea.vmem [#allocation2], %s6239_s29  ;;  %s894_s12 = scalar_lea.sflag [#allocation3], %s5231_s9 }
 0x2b1   : > { %s904_s5 = sshll.u32 %s897_s4, 4  ;;  %p6240_p7 = scmp.ne.s32.totalorder %s6216_s0, 0  ;;  %s5532_s5 = int_to_ptr.vmem [resolvable:$true] %s904_s5 }
 0x2b4   : > { %s5528_s16 = scalar_lea.hbm %s6238_s21, %s6237_s8  ;;  %s4538_s18 = scalar_lea.hbm %s6238_s21, 256 }
 0x2b5   : > { %s4533_s17 = scalar_lea.hbm %s5528_s16, 128  ;;  %p4539_p10 = scmp.lt.u32.totalorder %s5528_s16, %s6238_s21 }
 0x2b6   : > { %p4534_p2 = scmp.ne.s32.totalorder %s5528_s16, %s4533_s17  ;;  %p4540_p3 = scmp.lt.u32.totalorder %s4538_s18, %s4533_s17 }
 0x2b7   : > { %p4542_p0 = scmp.lt.u32.totalorder %s4533_s17, %s5528_s16 }
 0x2b8   : > { %p4536_p13 = pnand %p4534_p2, %p6240_p7  ;;  %p4541_p1 = por %p4540_p3, %p4539_p10 }
 0x2ba   : > { %p4537_p4 = pneg %p4536_p13  ;;  %p4543_p5 = por %p4542_p0, %p4541_p1 }
 0x2bc   : > { %p4544_p9 = pnand %p4543_p5, %p4537_p4 }
 0x2be   : > { %4547 = shalt.err (!%p4544_p9)
}
 0x2bf   : > { %s4548_s6 = scalar_lea.vmem %s5532_s5, 128  ;;  %s4783_s29 = smov [#allocation2]  }
 0x2c0   : > { %p4549_p6 = scmp.ne.s32.totalorder %s5532_s5, %s4548_s6  ;;  %s4553_s4 = sshll.u32 %s4783_s29, 4  ;;  %s4554_s4 = int_to_ptr.vmem [resolvable:$false] %s4553_s4 }
 0x2c1   : > { %s4555_s14 = scalar_lea.vmem %s4554_s4, 256  ;;  %p4556_p12 = scmp.lt.s32.totalorder %s5532_s5, %s4554_s4 }
 0x2c2   : > { %p4551_p8 = pnand %p4549_p6, %p6240_p7  ;;  %p4557_p2 = scmp.lt.s32.totalorder %s4555_s14, %s4548_s6 }
 0x2c4   : > { %p4552_p11 = pneg %p4551_p8  ;;  %p4558_p13 = por %p4557_p2, %p4556_p12 }
 0x2c6   : > { %p4559_p10 = pnand %p4558_p13, %p4552_p11 }
 0x2c8   : > { %4562 = shalt.err (!%p4559_p10)
}
 0x2c9   : > { %p6241_p4 = scmp.ne.s32.totalorder %s6214_s20, 0  ;;  %s4563_s17 = scalar_lea.hbm %s5296_s28, 256 }
 0x2ca   : > { %p4564_p3 = scmp.ne.s32.totalorder %s5296_s28, %s4563_s17  ;;  %s4568_s8 = scalar_lea.hbm %s6217_s1, 512 }
 0x2cb   : > { %3724 = dma.hbm_to_vmem [thread:$0]  (!%p6241_p4), %s5528_s16, 128, %s5532_s5, %s894_s12  }
 0x2cc   : > { %p4566_p1 = pnand %p4564_p3, %p6240_p7  ;;  %p4569_p5 = scmp.lt.u32.totalorder %s5296_s28, %s6217_s1 }
 0x2cd   : > { %p4570_p9 = scmp.lt.u32.totalorder %s4568_s8, %s4563_s17  ;;  %p4572_p8 = scmp.lt.u32.totalorder %s4563_s17, %s5296_s28 }
 0x2ce   : > { %p4567_p0 = pneg %p4566_p1 }
 0x2cf   : > { %p4571_p6 = por %p4570_p9, %p4569_p5 }
 0x2d1   : > { %p4573_p11 = por %p4572_p8, %p4571_p6 }
 0x2d3   : > { %p4574_p12 = pnand %p4573_p11, %p4567_p0 }
 0x2d5   : > { %4577 = shalt.err (!%p4574_p12)
}
 0x2d6   : > { %s4578_s16 = scalar_lea.vmem %s5300_s19, 256  ;;  %s4784_s5 = smov [#allocation7]  }
 0x2d7   : > { %p4579_p2 = scmp.ne.s32.totalorder %s5300_s19, %s4578_s16  ;;  %s4583_s12 = sshll.u32 %s4784_s5, 4  ;;  %s4584_s12 = int_to_ptr.vmem [resolvable:$false] %s4583_s12 }
 0x2d8   : > { %s4585_s29 = scalar_lea.vmem %s4584_s12, 512  ;;  %p4586_p3 = scmp.lt.s32.totalorder %s5300_s19, %s4584_s12 }
 0x2d9   : > { %p4581_p13 = pnand %p4579_p2, %p6240_p7  ;;  %p4587_p1 = scmp.lt.s32.totalorder %s4585_s29, %s4578_s16 }
 0x2db   : > { %p4582_p10 = pneg %p4581_p13  ;;  %p4588_p5 = por %p4587_p1, %p4586_p3 }
 0x2dd   : > { %p4589_p9 = pnand %p4588_p5, %p4582_p10 }
 0x2df   : > { %4592 = shalt.err (!%p4589_p9)
}
 0x2e0   : > { %s6242_s4 = smov 8   ;;  %s6243_s14 = smov 128  }
 0x2e1   : > { %3730 = dma.hbm_to_vmem [thread:$0]  (!%p6241_p4), %s5296_s28, 256, %s5300_s19, %s5262_s15, %s6243_s14, %s6243_s14, %s6242_s4  }
 0x2e2   : > { %s6244_s18 = sld [smem:[#allocation73_spill]]  ;;  %s974_s13 = scalar_lea.vmem [#allocation10], %s5231_s9 }
 0x2e3   : > { %s981_s6 = sshll.u32 %s974_s13, 4  ;;  %s982_s6 = int_to_ptr.vmem [resolvable:$true] %s981_s6 }
 0x2e8   : > { %s5587_s8 = scalar_lea.hbm %s6244_s18, %s3241_s3  ;;  %s4598_s19 = scalar_lea.hbm %s6244_s18, 32 }
 0x2e9   : > { %s4593_s16 = scalar_lea.hbm %s5587_s8, 16  ;;  %p4599_p11 = scmp.lt.u32.totalorder %s5587_s8, %s6244_s18 }
 0x2ea   : > { %p4594_p0 = scmp.ne.s32.totalorder %s5587_s8, %s4593_s16  ;;  %p4600_p12 = scmp.lt.u32.totalorder %s4598_s19, %s4593_s16 }
 0x2eb   : > { %p4602_p13 = scmp.lt.u32.totalorder %s4593_s16, %s5587_s8 }
 0x2ec   : > { %p4596_p6 = pnand %p4594_p0, %p6240_p7  ;;  %p4601_p2 = por %p4600_p12, %p4599_p11 }
 0x2ee   : > { %p4597_p8 = pneg %p4596_p6  ;;  %p4603_p10 = por %p4602_p13, %p4601_p2 }
 0x2f0   : > { %p4604_p3 = pnand %p4603_p10, %p4597_p8 }
 0x2f2   : > { %4607 = shalt.err (!%p4604_p3)
}
 0x2f3   : > { %s4608_s9 = scalar_lea.vmem %s982_s6, 16  ;;  %s4785_s3 = smov [#allocation10]  }
 0x2f4   : > { %p4609_p1 = scmp.ne.s32.totalorder %s982_s6, %s4608_s9  ;;  %s4613_s29 = sshll.u32 %s4785_s3, 4  ;;  %s4614_s29 = int_to_ptr.vmem [resolvable:$false] %s4613_s29 }
 0x2f5   : > { %s4615_s4 = scalar_lea.vmem %s4614_s29, 32  ;;  %p4616_p0 = scmp.lt.s32.totalorder %s982_s6, %s4614_s29 }
 0x2f6   : > { %p4611_p5 = pnand %p4609_p1, %p6240_p7  ;;  %p4617_p6 = scmp.lt.s32.totalorder %s4615_s4, %s4608_s9 }
 0x2f8   : > { %p4612_p9 = pneg %p4611_p5  ;;  %p4618_p4 = por %p4617_p6, %p4616_p0 }
 0x2fa   : > { %p4619_p11 = pnand %p4618_p4, %p4612_p9 }
 0x2fc   : > { %4622 = shalt.err (!%p4619_p11)
}
 0x2fd   : > { %p6245_p12 = scmp.ne.s32.totalorder %s6214_s20, 0  ;;  %s6246_s14 = sld [smem:[#allocation59_spill]] }
 0x2ff   : > { %3736 = dma.hbm_to_vmem [thread:$0]  (!%p6245_p12), %s5587_s8, 16, %s982_s6, %s5313_s7  }
 0x303   : > { %p6247_p8 = scmp.ne.s32.totalorder %s6246_s14, 0 }
 0x305   : > { %990 = sbr.rel (%p6247_p8) target bundleno = 5058 (0x13c2), region = 120 }
 0x30c   : > { %s5611_s0 = sand.u32 1, %s4737_s2   ;;  %p6248_p7 = scmp.ne.s32.totalorder %s6209_s27, 0 }
 0x30d   : > { %s5614_s17 = sshll.u32 %s5611_s0, 3  ;;  %s993_s10 = scalar_lea.sflag [#allocation3], %s5611_s0 }
 0x30e   : > { %s996_s13 = scalar_lea.vmem [#allocation2], %s5614_s17 }
 0x30f   : > { %4676 = dma.done.wait (%p6248_p7), %s993_s10, 128  }
 0x310   : > { %4678 = vsyncadd (%p6248_p7), %s993_s10, 4294967168  ;;  %s6249_s20 = sld [smem:[#allocation58_spill]]  ;;  %s1005_s6 = scalar_lea.vmem [#allocation5], %s5614_s17 }
 0x316   : > { %s1001_s7 = sand.u32 1, %s6249_s20  }
 0x317   : > { %s1002_s8 = scalar_lea.sflag [#allocation6], %s1001_s7 }
 0x318   : > { %4680 = dma.done.wait (%p6248_p7), %s1002_s8, 384  }
 0x319   : > { %4682 = vsyncadd (%p6248_p7), %s1002_s8, 4294966912  ;;  %s3245_s16 = sshll.u32 %s5611_s0, 4  ;;  %s1020_s15 = scalar_lea.sflag [#allocation9], %s1001_s7 }
 0x31a   : > { %s5629_s5 = scalar_lea.vmem [#allocation7], %s3245_s16  ;;  %s5631_s19 = scalar_lea.vmem [#allocation8], %s3245_s16 }
 0x31b   : > { %4684 = dma.done.wait (%p6248_p7), %s1020_s15, 272  }
 0x31c   : > { %4686 = vsyncadd (%p6248_p7), %s1020_s15, 4294967024  ;;  %s1031_s28 = scalar_lea.vmem [#allocation10], %s5611_s0  ;;  %p6250_p4 = scmp.eq.s32.totalorder %s6249_s20, 0 }
 0x31e   : > { %4688 = dma.done.wait (%p6250_p4), [#allocation12], 272   ;;  %p6251_p2 = pmov %p6250_p4 }
 0x320   : > { %4690 = vsyncadd (%p6251_p2), [#allocation12], 4294967024  ;;  %p6252_p13 = pmov %p6251_p2 }
 0x321   : > { %p6253_p10 = pmov %p6251_p2 }
 0x322   : > { %4692 = dma.done.wait (%p6252_p13), [#allocation15], 272  }
 0x323   : > { %4694 = vsyncadd (%p6253_p10), [#allocation15], 4294967024  ;;  %p6254_p3 = pmov %p6251_p2 }
 0x324   : > { %p6255_p1 = pmov %p6251_p2 }
 0x325   : > { %4696 = dma.done.wait (%p6254_p3), [#allocation18], 272  }
 0x326   : > { %4698 = vsyncadd (%p6255_p1), [#allocation18], 4294967024  ;;  %p6256_p5 = pmov %p6255_p1 }
 0x327   : > { %p6257_p9 = pmov %p6255_p1 }
 0x328   : > { %4700 = dma.done.wait (%p6256_p5), [#allocation21], 272  }
 0x329   : > { %4702 = vsyncadd (%p6257_p9), [#allocation21], 4294967024  ;;  %p6258_p0 = pmov %p6255_p1 }
 0x32b   : > { %4704 = dma.done.wait (%p6258_p0), [#allocation24], 272   ;;  %p6259_p6 = pmov %p6258_p0 }
 0x32c   : > { %p6260_p11 = pmov %p6258_p0 }
 0x32d   : > { %4706 = vsyncadd (%p6259_p6), [#allocation24], 4294967024 }
 0x32e   : > { %4708 = dma.done.wait (%p6260_p11), [#allocation27], 272   ;;  %p6261_p12 = pmov %p6258_p0 }
 0x32f   : > { %p6262_p8 = pmov %p6258_p0 }
 0x330   : > { %4710 = vsyncadd (%p6261_p12), [#allocation27], 4294967024 }
 0x331   : > { %4712 = dma.done.wait (%p6262_p8), [#allocation30], 272   ;;  %p6263_p7 = pmov %p6258_p0 }
 0x332   : > { %p6264_p4 = pmov %p6258_p0 }
 0x333   : > { %4714 = vsyncadd (%p6263_p7), [#allocation30], 4294967024 }
 0x334   : > { %4716 = dma.done.wait (%p6264_p4), [#allocation33], 272   ;;  %p6265_p2 = pmov %p6258_p0 }
 0x335   : > { %p6266_p13 = pmov %p6258_p0 }
 0x336   : > { %4718 = vsyncadd (%p6265_p2), [#allocation33], 4294967024 }
 0x337   : > { %4720 = dma.done.wait (%p6266_p13), [#allocation36], 528   ;;  %p6267_p10 = pmov %p6258_p0 }
 0x338   : > { %p6268_p3 = pmov %p6258_p0 }
 0x339   : > { %4722 = vsyncadd (%p6267_p10), [#allocation36], 4294966768 }
 0x33a   : > { %4724 = dma.done.wait (%p6268_p3), [#allocation39], 96   ;;  %p6269_p1 = pmov %p6258_p0 }
 0x33b   : > { %v4786_v0 = vmov 0.0   ;;  %vm4787_vm0 = vmmov 0   ;;  %v5678_v1 = vld [vmem:[#allocation11] sm:$0xf]  ;;  %v5680_v2 = vld [vmem:[#allocation11 + $0x4] sm:$0xf] }
 0x33c   : > { %4726 = vsyncadd (%p6269_p1), [#allocation39], 4294967200  ;;  %3396 = vmatprep.subr.bf16.mxu0 %v4786_v0  ;;  %3404 = vmatprep.subr.bf16.mxu1 %v4786_v0  ;;  %6270 = vst [vmem:[#allocation64_spill] sm:$0xff] %v5678_v1  ;;  %v5682_v3 = vld [vmem:[#allocation11 + $0x8] sm:$0xf]  ;;  %v5776_v48 = vld [vmem:[%s1005_s6] sm:$0xff] }
 0x33d   : > { %3400 = vmatprep.mubr.msk.bf16.mxu0 %vm4787_vm0, %v4786_v0  ;;  %3408 = vmatprep.mubr.msk.bf16.mxu1 %vm4787_vm0, %v4786_v0  ;;  %6271 = vst [vmem:[#allocation65_spill] sm:$0xff] %v5680_v2  ;;  %6272 = vst [vmem:[#allocation66_spill] sm:$0xff] %v5682_v3  ;;  %v5684_v4 = vld [vmem:[#allocation11 + $0xc] sm:$0xf]  ;;  %v5686_v5 = vld [vmem:[#allocation13] ss:$0 sm:$0xff] }
 0x33e   : > { %v5688_v6 = vld [vmem:[#allocation14] sm:$0xf]  ;;  %v5690_v7 = vld [vmem:[#allocation14 + $0x4] sm:$0xf]  ;;  %v5692_v8 = vld [vmem:[#allocation14 + $0x8] sm:$0xf] }
 0x33f   : > { %v5694_v9 = vld [vmem:[#allocation14 + $0xc] sm:$0xf]  ;;  %v5696_v10 = vld [vmem:[#allocation16] ss:$0 sm:$0xff]  ;;  %v5698_v11 = vld [vmem:[#allocation17] sm:$0xf] }
 0x340   : > { %v5700_v12 = vld [vmem:[#allocation17 + $0x4] sm:$0xf]  ;;  %v5702_v13 = vld [vmem:[#allocation17 + $0x8] sm:$0xf]  ;;  %v5704_v14 = vld [vmem:[#allocation17 + $0xc] sm:$0xf] }
 0x341   : > { %v5706_v15 = vld [vmem:[#allocation19] ss:$0 sm:$0xff]  ;;  %v5708_v16 = vld [vmem:[#allocation20] sm:$0xf]  ;;  %v5710_v17 = vld [vmem:[#allocation20 + $0x4] sm:$0xf] }
 0x342   : > { %v5712_v18 = vld [vmem:[#allocation20 + $0x8] sm:$0xf]  ;;  %v5714_v19 = vld [vmem:[#allocation20 + $0xc] sm:$0xf]  ;;  %v5716_v20 = vld [vmem:[#allocation22] ss:$0 sm:$0xff] }
 0x343   : > { %v5718_v21 = vld [vmem:[#allocation29] sm:$0xf]  ;;  %v5720_v22 = vld [vmem:[#allocation29 + $0x4] sm:$0xf]  ;;  %v5722_v23 = vld [vmem:[#allocation29 + $0x8] sm:$0xf] }
 0x344   : > { %v5724_v24 = vld [vmem:[#allocation29 + $0xc] sm:$0xf]  ;;  %v5726_v25 = vld [vmem:[#allocation31] ss:$0 sm:$0xff]  ;;  %v5728_v26 = vld [vmem:[#allocation32] sm:$0xf] }
 0x345   : > { %v5730_v27 = vld [vmem:[#allocation32 + $0x4] sm:$0xf]  ;;  %v5732_v28 = vld [vmem:[#allocation32 + $0x8] sm:$0xf]  ;;  %v5734_v29 = vld [vmem:[#allocation32 + $0xc] sm:$0xf] }
 0x346   : > { %v5736_v30 = vld [vmem:[#allocation34] ss:$0 sm:$0xff]  ;;  %v5738_v31 = vld [vmem:[#allocation35] sm:$0xf]  ;;  %v5740_v32 = vld [vmem:[#allocation35 + $0x4] sm:$0xf] }
 0x347   : > { %v5742_v33 = vld [vmem:[#allocation35 + $0x8] sm:$0xf]  ;;  %v5744_v34 = vld [vmem:[#allocation35 + $0xc] sm:$0xf]  ;;  %v5746_v35 = vld [vmem:[#allocation35 + $0x10] sm:$0xf] }
 0x348   : > { %v5748_v36 = vld [vmem:[#allocation35 + $0x14] sm:$0xf]  ;;  %v5750_v37 = vld [vmem:[#allocation35 + $0x18] sm:$0xf]  ;;  %v5752_v38 = vld [vmem:[#allocation35 + $0x1c] sm:$0xf] }
 0x349   : > { %v5754_v39 = vld [vmem:[#allocation37] ss:$0 sm:$0xff]  ;;  %v5756_v40 = vld [vmem:[#allocation38] ss:$0 sm:$0xff]  ;;  %v5758_v41 = vld [vmem:[#allocation38 + $0x1] ss:$0 sm:$0xff] }
 0x34a   : > { %v5760_v42 = vld [vmem:[#allocation38 + $0x2] ss:$0 sm:$0xff]  ;;  %v5762_v43 = vld [vmem:[#allocation40] ss:$0 sm:$0xff]  ;;  %v5764_v44 = vld [vmem:[#allocation40 + $0x1] ss:$0 sm:$0xff] }
 0x34b   : > { %6273 = vst [vmem:[#allocation67_spill] sm:$0xff] %v5760_v42  ;;  %v5766_v45 = vld [vmem:[#allocation40 + $0x2] ss:$0 sm:$0xff]  ;;  %v5770_v46 = vld [vmem:[%s1031_s28] ss:$0 sm:$0xff]  ;;  %v3871_v49 = vld [vmem:[#allocation23] sm:$0xff]  }
 0x34c   : > { %6274 = vst [vmem:[#allocation68_spill] sm:$0xff] %v5766_v45  ;;  %v1254_v47 = vld [vmem:[%s996_s13] sm:$0xff]   ;;  %3397 = vmatpush3.bf16.msra.mxu0 %v3871_v49  ;;  %v3873_v51 = vld [vmem:[#allocation23 + $0x8] sm:$0xff]   ;;  %vm1282_vm1 = vcmask 261120   ;;  %v3268_v61 = vld [vmem:[#allocation25] ss:$0 sm:$0xff] }
 0x34d   : > { %v3872_v50 = vld [vmem:[#allocation26] sm:$0xff]   ;;  %3398 = vmatprep.subr.bf16.mxu0 %v4786_v0  ;;  %v3874_v52 = vld [vmem:[#allocation26 + $0x8] sm:$0xff]   ;;  %v3272_v63 = vld [vmem:[#allocation28] ss:$0 sm:$0xff]  ;;  %s1196_s27 = scalar_lea.vmem [#allocation41], %s5614_s17  ;;  %s5791_s12 = smov 0  }
 0x34e   : > { %3405 = vmatpush3.bf16.msra.mxu1 %v3872_v50  ;;  %v1256_v53 = vld [vmem:[%s5629_s5] sm:$0xff]  ;;  %v1257_v54 = vld [vmem:[%s5629_s5 + $0x8] sm:$0xff] }
 0x34f   : > { %3406 = vmatprep.subr.bf16.mxu1 %v4786_v0  ;;  %v1258_v55 = vld [vmem:[%s5631_s19] sm:$0xff]  ;;  %v1259_v56 = vld [vmem:[%s5631_s19 + $0x8] sm:$0xff]  ;;  %v1263_v59 = vpack.c.bf16 %v1257_v54, %v1256_v53 }
 0x350   : > { %v1260_v57 = vadd.f32 %v1258_v55, %v1256_v53  ;;  %3399 = vmatpush3.bf16.msra.mxu0 %v3873_v51  ;;  %v1261_v58 = vadd.f32 %v1259_v56, %v1257_v54 }
 0x352   : > { %3407 = vmatpush3.bf16.msra.mxu1 %v3874_v52  ;;  %v1262_v60 = vpack.c.bf16 %v1261_v58, %v1260_v57 }
 0x354   : > { %3401 = vmatmul.mubr.msk.bf16.vlgmr.msra.gmra.mrb[0].mxu0 %vm1282_vm1, %v1262_v60 }
 0x355   : > { %3409 = vmatmul.mubr.msk.bf16.vlgmr.msra.gmra.mrb[0].mxu1 %vm1282_vm1, %v1263_v59 }
 0x427   : > { %v1320_v62 = vpop.f32.mrb[0].mxu0 }
 0x428   : > { %v1383_v0 = vpop.f32.mrb[0].mxu1  ;;  %v3402_v49 = vpop.f32.mrb[1].mxu0  ;;  %v1321_v55 = vadd.f32 %v3268_v61, %v1320_v62 }
 0x429   : > { %v3410_v50 = vpop.f32.mrb[1].mxu1  ;;  %v1323_v45 = vpop.f32.mrb[2].mxu0  ;;  %v1384_v51 = vadd.f32 %v3272_v63, %v1383_v0 }
 0x42a   : > { %v1386_v42 = vpop.f32.mrb[2].mxu1  ;;  %v1324_v56 = vadd.f32 %v3268_v61, %v1323_v45  ;;  %v3403_v52 = vpop.f32.mrb[3].mxu0 }
 0x42b   : > { %v1387_v53 = vadd.f32 %v3272_v63, %v1386_v42  ;;  %v3411_v54 = vpop.f32.mrb[3].mxu1 }
 0x42c   : > { %v5784_v57 = vpack.c.bf16 %v1324_v56, %v1321_v55 }
 0x42d   : > { %v5786_v58 = vpack.c.bf16 %v1387_v53, %v1384_v51 }
 0x42e LB: >> { %v6275_v2 = vld [vmem:[#allocation65_spill] sm:$0xff]  ;;  %v6276_v1 = vld [vmem:[#allocation64_spill] sm:$0xff]  ;;  %v6161_v45 = vmov 0.0   ;;  %vm4789_vm2 = vmmov 0   ;;  %v6277_v3 = vld [vmem:[#allocation66_spill] sm:$0xff]  ;;  %v1398_v60 = vadd.f32 %v4749_v47, %v5776_v48  ;;  %v3281_v50 = vcombine.low %v5688_v6, %v5690_v7  ;;  %s4790_s9 = smov 120   ;;  %s4753_s12 = sphi %s5791_s12, %s1396_s12   ;;  %v4749_v47 = vphi %v1254_v47, %v6281_v47  }
 0x42f   : >> { %v3277_v42 = vcombine.low %v6276_v1, %v6275_v2  ;;  %3412 = vmatprep.subr.bf16.mxu1 %v6161_v45  ;;  %3416 = vmatprep.mubr.msk.bf16.mxu1 %vm4789_vm2, %v6161_v45  ;;  %v3278_v59 = vcombine.low %v6277_v3, %v5684_v4  ;;  %v3282_v56 = vcombine.low %v5692_v8, %v5694_v9  ;;  %s4791_s3 = smov 96   ;;  %s4792_s29 = smov 80   ;;  %vm1528_vm3 = vcmask 64512  }
 0x430   : >> { %3428 = vmatprep.subr.bf16.mxu0 %v6161_v45  ;;  %3430 = vmatprep.mubr.msk.bf16.mxu0 %vm4789_vm2, %v6161_v45  ;;  %v1399_v61 = vpack.c.bf16 %v1398_v60, %v1398_v60  ;;  %s4793_s4 = smov 88   ;;  %v1462_v53 = vpack.c.bf16 %v4749_v47, %v4749_v47  ;;  %s4794_s14 = smov 72   ;;  %vm1589_vm4 = vcmask 1043456   ;;  %v6278_v2 = vmov 0.0  }
 0x431   : >> { %3413 = vmatpush3.bf16.msra.mxu1 %v3277_v42  ;;  %s4795_s10 = smov 112   ;;  %s4796_s13 = smov 104   ;;  %vm1978_vm5 = vcmask 130048   ;;  %vm1980_vm6 = vcmask 195584   ;;  %vm2770_vm7 = vcmask 523264  }
 0x432   : >> { %3414 = vmatprep.subr.bf16.mxu1 %v6161_v45  ;;  %s4797_s20 = smov 8   ;;  %s4798_s7 = smov 16  }
 0x433   : >> { %s4799_s8 = smov 24   ;;  %s1396_s12 = sadd.s32 1, %s4753_s12  }
 0x434   : >> { %p1393_p5 = scmp.ge.s32.totalorder %s1396_s12, 2  }
 0x435   : >> { %3415 = vmatpush3.bf16.msra.mxu1 %v3278_v59  ;;  %s6282_s6 = sld [smem:[#allocation58_spill]] (%p1393_p5)  ;;  %s6283_s16 = sld [smem:[#allocation62_spill]] (%p1393_p5) }
 0x436   : >> { %3420 = vmatprep.subr.bf16.mxu1 %v6161_v45  ;;  %s6284_s28 = sld [smem:[#allocation94_spill]] (%p1393_p5) }
 0x438   : >> { %3417 = vmatmul.mubr.msk.bf16.vlgmr.msra.gmra.mrb[0].mxu1 %vm1282_vm1, %v1399_v61 }
 0x439   : >> { %3424 = vmatprep.mubr.msk.bf16.mxu1 %vm4789_vm2, %v6161_v45  ;;  %3421 = vmatpush3.bf16.msra.mxu1 %v3281_v50 }
 0x43a   : >> { %3422 = vmatprep.subr.bf16.mxu1 %v6161_v45 }
 0x43b   : > { %s3330_s5 = sshll.u32 (%p1393_p5), %s6282_s6, 7  ;;  %p6285_p0 = scmp.ne.s32.totalorder (%p1393_p5), %s6283_s16, 0 }
 0x43d   : >> { %3423 = vmatpush3.bf16.msra.mxu1 %v3282_v56 }
 0x43e   : >> { %3434 = vmatprep.subr.bf16.mxu1 %v6161_v45 }
 0x440   : >> { %3425 = vmatmul.mubr.msk.bf16.vlgmr.msra.gmra.mrb[4].mxu1 %vm1282_vm1, %v1462_v53 }
 0x441   : >> { %3436 = vmatprep.mubr.msk.bf16.mxu1 %vm4789_vm2, %v6161_v45 }
 0x50b   : >> { %v1455_v62 = vpop.f32.mrb[0].mxu1 }
 0x50c   : >> { %v1456_v63 = vadd.f32 %v5686_v5, %v1455_v62  ;;  %v3418_v0 = vpop.f32.mrb[1].mxu1 }
 0x50d   : >> { %v1458_v49 = vpop.f32.mrb[2].mxu1 }
 0x50e   : >> { %v1461_v55 = vpack.c.bf16 %v1456_v63, %v1456_v63  ;;  %v3419_v51 = vpop.f32.mrb[3].mxu1 }
 0x510   : >> { %1634 = vrot.lane.b32.xlu1 %v1461_v55, %s4790_s9  ;;  %1526 = vrot.lane.b32.xlu0 %v1461_v55, %s4791_s3  ;;  %s2857_s3 = sshll.u32 (%p1393_p5), %s1196_s27, 4  ;;  %s2858_s3 = int_to_ptr.vmem [resolvable:$true] %s2857_s3 }
 0x511   : > { %s4623_s12 = scalar_lea.vmem (%p1393_p5), %s2858_s3, 128 }
 0x512   : > { %p4624_p9 = scmp.ne.s32.totalorder (%p1393_p5), %s2858_s3, %s4623_s12 }
 0x514   : >> { %1747 = vrot.lane.b32.xlu1 %v1461_v55, %s4792_s29  ;;  %1636 = vrot.lane.b32.xlu0 %v1461_v55, %s4793_s4  ;;  %s2844_s29 = scalar_lea.sflag (%p1393_p5), [#allocation4], %s5611_s0  ;;  %p4625_p6 = pnand (%p1393_p5), %p4624_p9, %p6285_p0 }
 0x515   : > { %s4800_s4 = smov (%p1393_p5), [#allocation41]  }
 0x516   : > { %p4626_p11 = pneg (%p1393_p5), %p4625_p6 }
 0x518   : >> { %1857 = vrot.lane.b32.xlu1 %v1461_v55, %s4794_s14  ;;  %1745 = vrot.lane.b32.xlu0 %v1461_v55, %s4795_s10  ;;  %s4627_s14 = sshll.u32 (%p1393_p5), %s4800_s4, 4  ;;  %s4628_s14 = int_to_ptr.vmem [resolvable:$false] %s4627_s14 }
 0x519   : > { %p4630_p12 = scmp.lt.s32.totalorder (%p1393_p5), %s2858_s3, %s4628_s14 }
 0x51c   : >> { %1855 = vrot.lane.b32.xlu0 %v1461_v55, %s4796_s13 }
 0x582   : >> { %v1527_v52 = vpop.permute.xlu0 %1526  ;;  %v1635_v59 = vpop.permute.xlu1 %1634 }
 0x583   : >> { %v1533_v54 = vsel %vm1528_vm3, %v1527_v52, 0 }
 0x584   : >> { %3429 = vmatpush3.bf16.xpose.msra.mxu0 %v1533_v54 }
 0x585   : >> { %3440 = vmatprep.subr.bf16.mxu0 %v6161_v45 }
 0x586   : >> { %v1637_v42 = vpop.permute.xlu0 %1636  ;;  %v1748_v61 = vpop.permute.xlu1 %1747 }
 0x587   : >> { %v1642_v60 = vsel %vm1528_vm3, %v1637_v42, 0  ;;  %v1753_v62 = vsel %vm1528_vm3, %v1748_v61, 0 }
 0x58a   : >> { %v1858_v63 = vpop.permute.xlu1 %1857  ;;  %v1746_v0 = vpop.permute.xlu0 %1745 }
 0x58b   : >> { %3431 = vmatmul.mubr.msk.bf16.vlgmr.msra.gmra.mrb[0].mxu0 %vm1528_vm3, %v1461_v55  ;;  %v1863_v49 = vsel %vm1528_vm3, %v1858_v63, 0  ;;  %v1518_v55 = vpop.f32.mrb[4].mxu1 }
 0x58c   : >> { %3441 = vmatpush3.bf16.xpose.msra.mxu0 %v1642_v60  ;;  %3442 = vmatprep.mubr.msk.bf16.mxu0 %vm4789_vm2, %v6161_v45  ;;  %v1519_v51 = vadd.f32 %v5696_v10, %v1518_v55  ;;  %v3426_v56 = vpop.f32.mrb[5].mxu1 }
 0x58d   : >> { %3452 = vmatprep.subr.bf16.mxu0 %v6161_v45  ;;  %v1521_v53 = vpop.f32.mrb[6].mxu1 }
 0x58e   : >> { %v1856_v50 = vpop.permute.xlu0 %1855  ;;  %v3427_v52 = vpop.f32.mrb[7].mxu1  ;;  %v1524_v54 = vpack.c.bf16 %v1519_v51, %v1519_v51 }
 0x590   : >> { %v1591_v42 = vsel %vm1589_vm4, %v1524_v54, 0 }
 0x591   : >> { %3435 = vmatpush3.bf16.msra.mxu1 %v1591_v42 }
 0x592   : >> { %3446 = vmatprep.subr.bf16.mxu1 %v6161_v45 }
 0x593   : >> { %3443 = vmatmul.mubr.msk.bf16.vlgmr.msra.gmra.mrb[4].mxu0 %vm1528_vm3, %v1635_v59 }
 0x594   : >> { %3453 = vmatpush3.bf16.xpose.msra.mxu0 %v1753_v62  ;;  %3454 = vmatprep.mubr.msk.bf16.mxu0 %vm4789_vm2, %v6161_v45 }
 0x595   : >> { %3464 = vmatprep.subr.bf16.mxu0 %v6161_v45 }
 0x59b   : >> { %3455 = vmatmul.mubr.msk.bf16.vlgmr.msra.gmra.mrb[8].mxu0 %vm1528_vm3, %v1746_v0 }
 0x59c   : >> { %3465 = vmatpush3.bf16.xpose.msra.mxu0 %v1863_v49  ;;  %3466 = vmatprep.mubr.msk.bf16.mxu0 %vm4789_vm2, %v6161_v45 }
 0x59d   : >> { %3476 = vmatprep.subr.bf16.mxu0 %v6161_v45 }
 0x5a3   : >> { %3467 = vmatmul.mubr.msk.bf16.vlgmr.msra.gmra.mrb[12].mxu0 %vm1528_vm3, %v1856_v50 }
 0x5a4   : >> { %3480 = vmatprep.mubr.msk.bf16.mxu0 %vm4789_vm2, %v6161_v45 }
 0x65e   : >> { %v1569_v59 = vpop.f32.mrb[0].mxu0 }
 0x65f   : >> { %v3432_v60 = vpop.f32.mrb[1].mxu0  ;;  %v1575_v61 = vsel %vm1528_vm3, %v1569_v59, -inf }
 0x660   : >> { %1576 = vmax.xlane.f32.xlu1 %v1575_v61  ;;  %v1572_v62 = vpop.f32.mrb[2].mxu0 }
 0x661   : >> { %v3433_v63 = vpop.f32.mrb[3].mxu0 }
 0x666   : >> { %v1678_v0 = vpop.f32.mrb[4].mxu0 }
 0x667   : >> { %v3444_v49 = vpop.f32.mrb[5].mxu0  ;;  %v1684_v50 = vsel %vm1528_vm3, %v1678_v0, -inf }
 0x668   : >> { %1685 = vmax.xlane.f32.xlu0 %v1684_v50  ;;  %v1681_v55 = vpop.f32.mrb[6].mxu0 }
 0x669   : >> { %v3445_v51 = vpop.f32.mrb[7].mxu0 }
 0x66e   : >> { %v1789_v56 = vpop.f32.mrb[8].mxu0 }
 0x66f   : >> { %v3456_v53 = vpop.f32.mrb[9].mxu0  ;;  %v1795_v52 = vsel %vm1528_vm3, %v1789_v56, -inf }
 0x670   : >> { %1796 = vmax.xlane.f32.xlu0 %v1795_v52  ;;  %v1792_v42 = vpop.f32.mrb[10].mxu0 }
 0x671   : >> { %v3457_v45 = vpop.f32.mrb[11].mxu0  ;;  %1806 = vrot.lane.b32.xlu1 %v1524_v54, %s4795_s10 }
 0x676   : >> { %v1899_v60 = vpop.f32.mrb[12].mxu0 }
 0x677   : >> { %v3468_v61 = vpop.f32.mrb[13].mxu0  ;;  %v1905_v49 = vsel %vm1528_vm3, %v1899_v60, -inf }
 0x678   : >> { %v1902_v62 = vpop.f32.mrb[14].mxu0 }
 0x679   : >> { %v3469_v63 = vpop.f32.mrb[15].mxu0 }
 0x686   : >> { %1696 = vrot.lane.b32.xlu0 %v1524_v54, %s4790_s9 }
 0x695   : >> { %1906 = vmax.xlane.f32.xlu1 %v1905_v49 }
 0x6a6   : >> { %1916 = vrot.lane.b32.xlu1 %v1524_v54, %s4796_s13 }
 0x6ed   : >> { %v1577_v50 = vpop.xlane.xlu1 %1576 }
 0x6ee   : >> { %v1578_v55 = vsub.f32 %v1569_v59, %v1577_v50 }
 0x6f0   : >> { %v1579_v51 = vmul.f32 1.442695, %v1578_v55 }
 0x6f1   : >> { %v1807_v50 = vpop.permute.xlu1 %1806 }
 0x6f2   : >> { %3875 = vpow2.f32 %v1579_v51 }
 0x6f5   : >> { %v1686_v53 = vpop.xlane.xlu0 %1685 }
 0x6f6   : >> { %v1687_v52 = vsub.f32 %v1678_v0, %v1686_v53 }
 0x6f8   : >> { %v1688_v45 = vmul.f32 1.442695, %v1687_v52 }
 0x6fa   : >> { %3877 = vpow2.f32 %v1688_v45 }
 0x6fc   : >> { %v3876_v42 = vpop.eup %3875 }
 0x6fd   : >> { %v1797_v1 = vpop.xlane.xlu0 %1796  ;;  %v1585_v61 = vpack.c.bf16 %v3876_v42, %v3876_v42 }
 0x6fe   : >> { %v1798_v62 = vsub.f32 %v1789_v56, %v1797_v1  ;;  %v1812_v1 = vsel %vm1589_vm4, %v1807_v50, 0 }
 0x6ff   : >> { %3437 = vmatmul.mubr.msk.bf16.vlgmr.msra.gmra.mrb[8].mxu1 %vm1528_vm3, %v1585_v61 }
 0x700   : >> { %v1799_v63 = vmul.f32 1.442695, %v1798_v62  ;;  %3448 = vmatprep.mubr.msk.bf16.mxu1 %vm4789_vm2, %v6278_v2 }
 0x701   : >> { %v1697_v49 = vpop.permute.xlu0 %1696 }
 0x702   : >> { %3879 = vpow2.f32 %v1799_v63  ;;  %v1702_v54 = vsel %vm1589_vm4, %v1697_v49, 0 }
 0x703   : >> { %3447 = vmatpush3.bf16.msra.mxu1 %v1702_v54 }
 0x704   : >> { %v3878_v59 = vpop.eup %3877  ;;  %3458 = vmatprep.subr.bf16.mxu1 %v6278_v2 }
 0x705   : >> { %v1690_v0 = vsel %vm1528_vm3, %v3878_v59, 0.0  ;;  %v1694_v55 = vpack.c.bf16 %v3878_v59, %v3878_v59 }
 0x706   : >> { %1691 = vadd.xlane.f32.xlu0 %v1690_v0 }
 0x707   : >> { %3449 = vmatmul.mubr.msk.bf16.vlgmr.msra.gmra.mrb[12].mxu1 %vm1528_vm3, %v1694_v55 }
 0x708   : >> { %3459 = vmatpush3.bf16.msra.mxu1 %v1812_v1  ;;  %3460 = vmatprep.mubr.msk.bf16.mxu1 %vm4789_vm2, %v6278_v2 }
 0x709   : >> { %3470 = vmatprep.subr.bf16.mxu1 %v6278_v2 }
 0x70c   : >> { %v3880_v56 = vpop.eup %3879 }
 0x70d   : >> { %v1801_v51 = vsel %vm1528_vm3, %v3880_v56, 0.0  ;;  %v1805_v53 = vpack.c.bf16 %v3880_v56, %v3880_v56 }
 0x70e   : >> { %1802 = vadd.xlane.f32.xlu1 %v1801_v51 }
 0x70f   : >> { %3461 = vmatmul.mubr.msk.bf16.vlgmr.msra.gmra.mrb[16].mxu1 %vm1528_vm3, %v1805_v53  ;;  %v3293_v53 = vcombine.low %v5698_v11, %v5700_v12 }
 0x710   : >> { %3472 = vmatprep.mubr.msk.bf16.mxu1 %vm4789_vm2, %v6278_v2 }
 0x711   : >> { %3477 = vmatpush3.bf16.msra.mxu0 %v3293_v53 }
 0x712   : >> { %3478 = vmatprep.subr.bf16.mxu0 %v6278_v2 }
 0x722   : >> { %v1907_v52 = vpop.xlane.xlu1 %1906 }
 0x723   : >> { %v1908_v45 = vsub.f32 %v1899_v60, %v1907_v52  ;;  %v1581_v60 = vsel %vm1528_vm3, %v3876_v42, 0.0 }
 0x725   : >> { %v1909_v61 = vmul.f32 1.442695, %v1908_v45 }
 0x726   : >> { %v1917_v62 = vpop.permute.xlu1 %1916 }
 0x727   : >> { %3881 = vpow2.f32 %v1909_v61  ;;  %v1922_v63 = vsel %vm1589_vm4, %v1917_v62, 0 }
 0x728   : >> { %3471 = vmatpush3.bf16.msra.mxu1 %v1922_v63 }
 0x729   : >> { %3484 = vmatprep.subr.bf16.mxu1 %v6278_v2 }
 0x731   : >> { %v3882_v49 = vpop.eup %3881 }
 0x732   : >> { %v1911_v54 = vsel %vm1528_vm3, %v3882_v49, 0.0  ;;  %v1915_v59 = vpack.c.bf16 %v3882_v49, %v3882_v49 }
 0x733   : >> { %1912 = vadd.xlane.f32.xlu0 %v1911_v54 }
 0x734   : >> { %3473 = vmatmul.mubr.msk.bf16.vlgmr.msra.gmra.mrb[20].mxu1 %vm1528_vm3, %v1915_v59 }
 0x735   : >> { %3488 = vmatprep.mubr.msk.bf16.mxu1 %vm4789_vm2, %v6278_v2 }
 0x737   : >> { %1582 = vadd.xlane.f32.xlu0 %v1581_v60 }
 0x793   : >> { %v1692_v50 = vpop.xlane.xlu0 %1691 }
 0x794   : >> { %3883 = vrcp.f32 %v1692_v50 }
 0x79b   : >> { %v1803_v56 = vpop.xlane.xlu1 %1802 }
 0x79c   : >> { %3885 = vrcp.f32 %v1803_v56  ;;  %v3294_v56 = vcombine.low %v5702_v13, %v5704_v14 }
 0x79e   : >> { %v3884_v52 = vpop.eup %3883  ;;  %3479 = vmatpush3.bf16.msra.mxu0 %v3294_v56 }
 0x79f   : >> { %3492 = vmatprep.subr.bf16.mxu0 %v6278_v2 }
 0x7a6   : >> { %v3886_v49 = vpop.eup %3885 }
 0x7d2   : >> { %v1627_v0 = vpop.f32.mrb[8].mxu1 }
 0x7d3   : >> { %v3438_v55 = vpop.f32.mrb[9].mxu1 }
 0x7d4   : >> { %v1630_v1 = vpop.f32.mrb[10].mxu1 }
 0x7d5   : >> { %v3439_v51 = vpop.f32.mrb[11].mxu1  ;;  %v1913_v1 = vpop.xlane.xlu0 %1912 }
 0x7d6   : >> { %3887 = vrcp.f32 %v1913_v1 }
 0x7da   : >> { %v1738_v45 = vpop.f32.mrb[12].mxu1 }
 0x7db   : >> { %v1744_v61 = vmul.f32 %v3884_v52, %v1738_v45  ;;  %v3450_v62 = vpop.f32.mrb[13].mxu1 }
 0x7dc   : >> { %v1741_v42 = vpop.f32.mrb[14].mxu1 }
 0x7dd   : >> { %1966 = vrot.lane.b32.xlu1 %v1744_v61, %s4797_s20  ;;  %v3451_v63 = vpop.f32.mrb[15].mxu1  ;;  %v1583_v42 = vpop.xlane.xlu0 %1582 }
 0x7de   : >> { %3889 = vrcp.f32 %v1583_v42 }
 0x7e0   : >> { %v3888_v51 = vpop.eup %3887 }
 0x7e2   : >> { %v1848_v54 = vpop.f32.mrb[16].mxu1 }
 0x7e3   : >> { %v1854_v59 = vmul.f32 %v3886_v49, %v1848_v54  ;;  %v3462_v60 = vpop.f32.mrb[17].mxu1 }
 0x7e4   : >> { %v1851_v50 = vpop.f32.mrb[18].mxu1 }
 0x7e5   : >> { %1970 = vrot.lane.b32.xlu0 %v1854_v59, %s4798_s7  ;;  %v3463_v55 = vpop.f32.mrb[19].mxu1 }
 0x7e8   : >> { %v3890_v63 = vpop.eup %3889 }
 0x7e9   : >> { %v1633_v54 = vmul.f32 %v3890_v63, %v1627_v0 }
 0x807   : >> { %v1958_v53 = vpop.f32.mrb[20].mxu1 }
 0x808   : >> { %v1964_v52 = vmul.f32 %v3888_v51, %v1958_v53  ;;  %v3474_v45 = vpop.f32.mrb[21].mxu1 }
 0x809   : >> { %v1961_v61 = vpop.f32.mrb[22].mxu1 }
 0x80a   : >> { %1974 = vrot.lane.b32.xlu1 %v1964_v52, %s4799_s8  ;;  %v3475_v62 = vpop.f32.mrb[23].mxu1 }
 0x84f   : >> { %v1967_v49 = vpop.permute.xlu1 %1966 }
 0x850   : >> { %v1977_v60 = vsel %vm1528_vm3, %v1633_v54, %v1967_v49 }
 0x857   : >> { %v1971_v59 = vpop.permute.xlu0 %1970 }
 0x858   : >> { %v1979_v50 = vsel %vm1978_vm5, %v1977_v60, %v1971_v59  ;;  %v3299_v60 = vcombine.low %v5708_v16, %v5710_v17 }
 0x85a   : >> { %3485 = vmatpush3.bf16.msra.mxu1 %v3299_v60 }
 0x85b   : >> { %3486 = vmatprep.subr.bf16.mxu1 %v6278_v2 }
 0x87c   : >> { %v1975_v55 = vpop.permute.xlu1 %1974 }
 0x87d   : >> { %v1981_v1 = vsel %vm1980_vm6, %v1979_v50, %v1975_v55  ;;  %v3300_v50 = vcombine.low %v5712_v18, %v5714_v19 }
 0x87e   : >> { %v1982_v56 = vpack.c.bf16 %v1981_v1, %v1981_v1 }
 0x87f   : >> { %3487 = vmatpush3.bf16.msra.mxu1 %v3300_v50 }
 0x880   : >> { %3481 = vmatmul.mubr.msk.bf16.vlgmr.msra.gmra.mrb[16].mxu0 %vm1282_vm1, %v1982_v56  ;;  %3498 = vmatprep.subr.bf16.mxu1 %v6278_v2 }
 0x881   : >> { %3494 = vmatprep.mubr.msk.bf16.mxu0 %vm4789_vm2, %v6278_v2 }
 0x953   : >> { %v2038_v51 = vpop.f32.mrb[16].mxu0 }
 0x954   : >> { %v2039_v53 = vadd.f32 %v5706_v15, %v2038_v51  ;;  %v3482_v0 = vpop.f32.mrb[17].mxu0 }
 0x955   : >> { %v2041_v52 = vpop.f32.mrb[18].mxu0 }
 0x956   : >> { %v3483_v45 = vpop.f32.mrb[19].mxu0  ;;  %v2044_v61 = vadd.f32 %v4749_v47, %v2039_v53  ;;  %v2147_v47 = vsel %vm1528_vm3, %v5784_v57, 0 }
 0x957   : >> { %3493 = vmatpush3.bf16.xpose.msra.mxu0 %v2147_v47 }
 0x958   : >> { %v2045_v62 = vsel %vm1282_vm1, %v2044_v61, 0.0  ;;  %3504 = vmatprep.subr.bf16.mxu0 %v6278_v2 }
 0x959   : >> { %2046 = vadd.xlane.f32.xlu1 %v2045_v62 }
 0x9e6   : >> { %v2047_v42 = vpop.xlane.xlu1 %2046 }
 0x9e7   : >> { %v2049_v63 = vmul.f32 0.03125, %v2047_v42 }
 0x9e9   : >> { %v2050_v49 = vsub.f32 %v2044_v61, %v2049_v63 }
 0x9eb   : >> { %v2051_v54 = vmul.f32 %v2050_v49, %v2050_v49 }
 0x9ed   : >> { %v2052_v59 = vsel %vm1282_vm1, %v2051_v54, 0.0 }
 0x9ee   : >> { %2053 = vadd.xlane.f32.xlu0 %v2052_v59 }
 0xa04   : >> { %2248 = vrot.lane.b32.xlu0 %v5784_v57, %s4790_s9 }
 0xa7b   : >> { %v2054_v55 = vpop.xlane.xlu0 %2053 }
 0xa7c   : >> { %v2055_v1 = vmul.f32 0.03125, %v2054_v55 }
 0xa7e   : >> { %v2056_v56 = vadd.f32 1e-05, %v2055_v1 }
 0xa80   : >> { %3891 = vrsqrt.f32 %v2056_v56 }
 0xa8a   : >> { %v3892_v51 = vpop.eup %3891 }
 0xa8b   : >> { %v2058_v53 = vmul.f32 %v3892_v51, %v2050_v49  ;;  %v2249_v49 = vpop.permute.xlu0 %2248 }
 0xa8c   : >> { %v2254_v50 = vsel %vm1528_vm3, %v2249_v49, 0 }
 0xa8d   : >> { %v2065_v0 = vmul.f32 %v5756_v40, %v2058_v53 }
 0xa8f   : >> { %v5915_v52 = vadd.f32 %v5762_v43, %v2065_v0 }
 0xa91   : >> { %v2073_v45 = vadd.f32 %v5915_v52, %v5776_v48 }
 0xa93   : >> { %v2074_v61 = vpack.c.bf16 %v2073_v45, %v2073_v45 }
 0xa95   : >> { %3489 = vmatmul.mubr.msk.bf16.vlgmr.msra.gmra.mrb[24].mxu1 %vm1282_vm1, %v2074_v61 }
 0xa96   : >> { %3499 = vmatpush3.bf16.msra.mxu1 %v5786_v58  ;;  %3500 = vmatprep.mubr.msk.bf16.mxu1 %vm4789_vm2, %v6278_v2 }
 0xa97   : >> { %3510 = vmatprep.subr.bf16.mxu1 %v6278_v2 }
 0xb68   : >> { %v2130_v62 = vpop.f32.mrb[24].mxu1 }
 0xb69   : >> { %v2131_v42 = vadd.f32 %v5716_v20, %v2130_v62  ;;  %v3490_v63 = vpop.f32.mrb[25].mxu1 }
 0xb6a   : >> { %v2133_v54 = vpop.f32.mrb[26].mxu1 }
 0xb6b   : >> { %v2136_v59 = vpack.c.bf16 %v2131_v42, %v2131_v42  ;;  %v3491_v60 = vpop.f32.mrb[27].mxu1 }
 0xb6d   : >> { %2355 = vrot.lane.b32.xlu0 %v2136_v59, %s4795_s10  ;;  %2245 = vrot.lane.b32.xlu1 %v2136_v59, %s4790_s9 }
 0xb6e   : >> { %3495 = vmatmul.mubr.msk.bf16.vlgmr.msra.gmra.mrb[20].mxu0 %vm1528_vm3, %v2136_v59 }
 0xb6f   : >> { %3505 = vmatpush3.bf16.xpose.msra.mxu0 %v2254_v50  ;;  %3506 = vmatprep.mubr.msk.bf16.mxu0 %vm4789_vm2, %v6278_v2 }
 0xb70   : >> { %3516 = vmatprep.subr.bf16.mxu0 %v6278_v2 }
 0xb71   : >> { %2463 = vrot.lane.b32.xlu0 %v2136_v59, %s4796_s13  ;;  %2357 = vrot.lane.b32.xlu1 %v5784_v57, %s4795_s10 }
 0xb75   : >> { %2465 = vrot.lane.b32.xlu1 %v5784_v57, %s4796_s13 }
 0xbdf   : >> { %v2246_v47 = vpop.permute.xlu1 %2245  ;;  %v2356_v53 = vpop.permute.xlu0 %2355 }
 0xbe0   : >> { %3507 = vmatmul.mubr.msk.bf16.vlgmr.msra.gmra.mrb[24].mxu0 %vm1528_vm3, %v2246_v47 }
 0xbe1   : >> { %3518 = vmatprep.mubr.msk.bf16.mxu0 %vm4789_vm2, %v6278_v2 }
 0xbe3   : >> { %v2358_v55 = vpop.permute.xlu1 %2357  ;;  %v2464_v0 = vpop.permute.xlu0 %2463 }
 0xbe4   : >> { %v2363_v1 = vsel %vm1528_vm3, %v2358_v55, 0 }
 0xbe5   : >> { %3517 = vmatpush3.bf16.xpose.msra.mxu0 %v2363_v1 }
 0xbe6   : >> { %3528 = vmatprep.subr.bf16.mxu0 %v6278_v2 }
 0xbe7   : >> { %v2466_v56 = vpop.permute.xlu1 %2465 }
 0xbe8   : >> { %v2471_v51 = vsel %vm1528_vm3, %v2466_v56, 0 }
 0xbec   : >> { %3519 = vmatmul.mubr.msk.bf16.vlgmr.msra.gmra.mrb[28].mxu0 %vm1528_vm3, %v2356_v53 }
 0xbed   : >> { %3529 = vmatpush3.bf16.xpose.msra.mxu0 %v2471_v51  ;;  %3530 = vmatprep.mubr.msk.bf16.mxu0 %vm4789_vm2, %v6278_v2 }
 0xbee   : >> { %3540 = vmatprep.subr.bf16.mxu0 %v6278_v2 }
 0xbf4   : >> { %3531 = vmatmul.mubr.msk.bf16.vlgmr.msra.gmra.mrb[32].mxu0 %vm1528_vm3, %v2464_v0 }
 0xbf5   : >> { %3544 = vmatprep.mubr.msk.bf16.mxu0 %vm4789_vm2, %v6278_v2 }
 0xc41   : >> { %v2183_v45 = vpop.f32.mrb[20].mxu0 }
 0xc42   : >> { %v2184_v61 = vadd.f32 %v5770_v46, %v2183_v45  ;;  %v3496_v62 = vpop.f32.mrb[21].mxu0 }
 0xc43   : >> { %v2186_v42 = vpop.f32.mrb[22].mxu0 }
 0xc44   : >> { %v3497_v63 = vpop.f32.mrb[23].mxu0  ;;  %v2189_v49 = vsel %vm1978_vm5, %v2184_v61, -inf }
 0xc45   : >> { %2190 = vmax.xlane.f32.xlu1 %v2189_v49 }
 0xc56   : >> { %2416 = vrot.lane.b32.xlu1 %v5786_v58, %s4795_s10  ;;  %s4629_s10 = scalar_lea.vmem (%p1393_p5), %s4628_s14, 256 }
 0xc57   : > { %p4631_p8 = scmp.lt.s32.totalorder (%p1393_p5), %s4629_s10, %s4623_s12 }
 0xc59   : > { %p4632_p7 = por (%p1393_p5), %p4631_p8, %p4630_p12 }
 0xc5b   : > { %p4633_p4 = pnand (%p1393_p5), %p4632_p7, %p4626_p11 }
 0xcb3   : >> { %v2290_v54 = vpop.f32.mrb[24].mxu0 }
 0xcb4   : >> { %v2291_v59 = vadd.f32 %v5770_v46, %v2290_v54  ;;  %v3508_v60 = vpop.f32.mrb[25].mxu0 }
 0xcb5   : >> { %v2293_v50 = vpop.f32.mrb[26].mxu0 }
 0xcb6   : >> { %v3509_v47 = vpop.f32.mrb[27].mxu0  ;;  %v2296_v55 = vsel %vm1978_vm5, %v2291_v59, -inf }
 0xcb7   : >> { %2297 = vmax.xlane.f32.xlu0 %v2296_v55 }
 0xcbf   : >> { %v2399_v1 = vpop.f32.mrb[28].mxu0 }
 0xcc0   : >> { %v2400_v56 = vadd.f32 %v5770_v46, %v2399_v1  ;;  %v3520_v51 = vpop.f32.mrb[29].mxu0 }
 0xcc1   : >> { %v2402_v53 = vpop.f32.mrb[30].mxu0 }
 0xcc2   : >> { %v3521_v0 = vpop.f32.mrb[31].mxu0  ;;  %v2405_v45 = vsel %vm1978_vm5, %v2400_v56, -inf }
 0xcc3   : >> { %2406 = vmax.xlane.f32.xlu0 %v2405_v45 }
 0xcc7   : >> { %v2507_v62 = vpop.f32.mrb[32].mxu0 }
 0xcc8   : >> { %v2508_v42 = vadd.f32 %v5770_v46, %v2507_v62  ;;  %v3532_v63 = vpop.f32.mrb[33].mxu0 }
 0xcc9   : >> { %v2510_v49 = vpop.f32.mrb[34].mxu0 }
 0xcca   : >> { %v3533_v54 = vpop.f32.mrb[35].mxu0  ;;  %v2513_v60 = vsel %vm1978_vm5, %v2508_v42, -inf }
 0xccb   : >> { %2514 = vmax.xlane.f32.xlu1 %v2513_v60 }
 0xcd2   : >> { %v2191_v50 = vpop.xlane.xlu1 %2190 }
 0xcd3   : >> { %v2192_v47 = vsub.f32 %v2184_v61, %v2191_v50 }
 0xcd5   : >> { %v2193_v55 = vmul.f32 1.442695, %v2192_v47 }
 0xcd6   : >> { %v2417_v54 = vpop.permute.xlu1 %2416 }
 0xcd7   : >> { %3893 = vpow2.f32 %v2193_v55 }
 0xcd9   : >> { %2308 = vrot.lane.b32.xlu0 %v5786_v58, %s4790_s9  ;;  %s6039_s9 = scalar_lea.hbm (%p1393_p5), %s6284_s28, %s3330_s5 }
 0xcdc   : >> { %2524 = vrot.lane.b32.xlu1 %v5786_v58, %s4796_s13 }
 0xce1   : >> { %v3894_v1 = vpop.eup %3893 }
 0xce2   : >> { %v2199_v51 = vpack.c.bf16 %v3894_v1, %v3894_v1 }
 0xce4   : >> { %3501 = vmatmul.mubr.msk.bf16.vlgmr.msra.gmra.mrb[28].mxu1 %vm1978_vm5, %v2199_v51 }
 0xce5   : >> { %3512 = vmatprep.mubr.msk.bf16.mxu1 %vm4789_vm2, %v6278_v2 }
 0xd44   : >> { %v2298_v53 = vpop.xlane.xlu0 %2297 }
 0xd45   : >> { %v2299_v0 = vsub.f32 %v2291_v59, %v2298_v53 }
 0xd47   : >> { %v2300_v45 = vmul.f32 1.442695, %v2299_v0 }
 0xd49   : >> { %3895 = vpow2.f32 %v2300_v45 }
 0xd50   : >> { %v2407_v61 = vpop.xlane.xlu0 %2406 }
 0xd51   : >> { %v2408_v62 = vsub.f32 %v2400_v56, %v2407_v61 }
 0xd53   : >> { %v3896_v63 = vpop.eup %3895  ;;  %v2409_v49 = vmul.f32 1.442695, %v2408_v62 }
 0xd54   : >> { %v2309_v60 = vpop.permute.xlu0 %2308  ;;  %v2302_v50 = vsel %vm1978_vm5, %v3896_v63, 0.0  ;;  %v2306_v47 = vpack.c.bf16 %v3896_v63, %v3896_v63  ;;  %v2195_v63 = vsel %vm1978_vm5, %v3894_v1, 0.0 }
 0xd55   : >> { %3897 = vpow2.f32 %v2409_v49  ;;  %2303 = vadd.xlane.f32.xlu0 %v2302_v50  ;;  %3511 = vmatpush3.bf16.msra.mxu1 %v2309_v60 }
 0xd56   : >> { %3522 = vmatprep.subr.bf16.mxu1 %v6278_v2 }
 0xd58   : >> { %3513 = vmatmul.mubr.msk.bf16.vlgmr.msra.gmra.mrb[32].mxu1 %vm1978_vm5, %v2306_v47  ;;  %v2515_v55 = vpop.xlane.xlu1 %2514 }
 0xd59   : >> { %v2516_v59 = vsub.f32 %v2508_v42, %v2515_v55  ;;  %3523 = vmatpush3.bf16.msra.mxu1 %v2417_v54  ;;  %3524 = vmatprep.mubr.msk.bf16.mxu1 %vm4789_vm2, %v6278_v2 }
 0xd5a   : >> { %3534 = vmatprep.subr.bf16.mxu1 %v6278_v2 }
 0xd5b   : >> { %v2517_v56 = vmul.f32 1.442695, %v2516_v59 }
 0xd5c   : >> { %v2525_v45 = vpop.permute.xlu1 %2524 }
 0xd5d   : >> { %3899 = vpow2.f32 %v2517_v56 }
 0xd5f   : >> { %v3898_v51 = vpop.eup %3897 }
 0xd60   : >> { %v2411_v53 = vsel %vm1978_vm5, %v3898_v51, 0.0  ;;  %v2415_v0 = vpack.c.bf16 %v3898_v51, %v3898_v51  ;;  %v3312_v51 = vcombine.low %v5718_v21, %v5720_v22 }
 0xd61   : >> { %2412 = vadd.xlane.f32.xlu1 %v2411_v53 }
 0xd62   : >> { %3525 = vmatmul.mubr.msk.bf16.vlgmr.msra.gmra.mrb[36].mxu1 %vm1978_vm5, %v2415_v0  ;;  %3541 = vmatpush3.bf16.msra.mxu0 %v3312_v51 }
 0xd63   : >> { %3535 = vmatpush3.bf16.msra.mxu1 %v2525_v45  ;;  %3536 = vmatprep.mubr.msk.bf16.mxu1 %vm4789_vm2, %v6278_v2 }
 0xd64   : >> { %3548 = vmatprep.subr.bf16.mxu1 %v6278_v2  ;;  %3542 = vmatprep.subr.bf16.mxu0 %v6278_v2 }
 0xd67   : >> { %v3900_v42 = vpop.eup %3899 }
 0xd68   : >> { %v2519_v61 = vsel %vm1978_vm5, %v3900_v42, 0.0  ;;  %v2523_v62 = vpack.c.bf16 %v3900_v42, %v3900_v42 }
 0xd69   : >> { %2520 = vadd.xlane.f32.xlu0 %v2519_v61  ;;  %v3313_v61 = vcombine.low %v5722_v23, %v5724_v24 }
 0xd6a   : >> { %3537 = vmatmul.mubr.msk.bf16.vlgmr.msra.gmra.mrb[40].mxu1 %vm1978_vm5, %v2523_v62 }
 0xd6b   : >> { %3552 = vmatprep.mubr.msk.bf16.mxu1 %vm4789_vm2, %v6278_v2  ;;  %3543 = vmatpush3.bf16.msra.mxu0 %v3313_v61 }
 0xd6c   : >> { %3556 = vmatprep.subr.bf16.mxu0 %v6278_v2 }
 0xd6d   : >> { %2196 = vadd.xlane.f32.xlu0 %v2195_v63 }
 0xdb7   : >> { %v2237_v49 = vpop.f32.mrb[28].mxu1 }
 0xdb8   : >> { %v3502_v54 = vpop.f32.mrb[29].mxu1 }
 0xdb9   : >> { %v2240_v60 = vpop.f32.mrb[30].mxu1 }
 0xdba   : >> { %v3503_v50 = vpop.f32.mrb[31].mxu1 }
 0xde2   : >> { %v2304_v47 = vpop.xlane.xlu0 %2303 }
 0xde3   : >> { %3901 = vrcp.f32 %v2304_v47 }
 0xded   : >> { %v3902_v59 = vpop.eup %3901 }
 0xdee   : >> { %v2413_v55 = vpop.xlane.xlu1 %2412 }
 0xdef   : >> { %3903 = vrcp.f32 %v2413_v55 }
 0xdf6   : >> { %v2521_v42 = vpop.xlane.xlu0 %2520 }
 0xdf7   : >> { %3905 = vrcp.f32 %v2521_v42 }
 0xdf9   : >> { %v3904_v62 = vpop.eup %3903 }
 0xe01   : >> { %v3906_v55 = vpop.eup %3905 }
 0xe2b   : >> { %v2348_v56 = vpop.f32.mrb[32].mxu1 }
 0xe2c   : >> { %v2354_v53 = vmul.f32 %v3902_v59, %v2348_v56  ;;  %v3514_v0 = vpop.f32.mrb[33].mxu1 }
 0xe2d   : >> { %v2351_v45 = vpop.f32.mrb[34].mxu1 }
 0xe2e   : >> { %2572 = vrot.lane.b32.xlu1 %v2354_v53, %s4797_s20  ;;  %v3515_v1 = vpop.f32.mrb[35].mxu1  ;;  %v2197_v45 = vpop.xlane.xlu0 %2196 }
 0xe2f   : >> { %3907 = vrcp.f32 %v2197_v45 }
 0xe35   : >> { %v2456_v63 = vpop.f32.mrb[36].mxu1 }
 0xe36   : >> { %v2462_v54 = vmul.f32 %v3904_v62, %v2456_v63  ;;  %v3526_v60 = vpop.f32.mrb[37].mxu1 }
 0xe37   : >> { %v2459_v50 = vpop.f32.mrb[38].mxu1 }
 0xe38   : >> { %2576 = vrot.lane.b32.xlu0 %v2462_v54, %s4798_s7  ;;  %v3527_v47 = vpop.f32.mrb[39].mxu1 }
 0xe39   : >> { %v3908_v1 = vpop.eup %3907 }
 0xe3a   : >> { %v2243_v61 = vmul.f32 %v3908_v1, %v2237_v49 }
 0xe3d   : >> { %v2564_v59 = vpop.f32.mrb[40].mxu1 }
 0xe3e   : >> { %v2570_v56 = vmul.f32 %v3906_v55, %v2564_v59  ;;  %v3538_v51 = vpop.f32.mrb[41].mxu1 }
 0xe3f   : >> { %v2567_v53 = vpop.f32.mrb[42].mxu1 }
 0xe40   : >> { %2580 = vrot.lane.b32.xlu1 %v2570_v56, %s4799_s8  ;;  %v3539_v0 = vpop.f32.mrb[43].mxu1 }
 0xea0   : >> { %v2573_v42 = vpop.permute.xlu1 %2572 }
 0xea1   : >> { %v2583_v62 = vsel %vm1528_vm3, %v2243_v61, %v2573_v42  ;;  %v3318_v61 = vcombine.low %v5728_v26, %v5730_v27 }
 0xea3   : >> { %3549 = vmatpush3.bf16.msra.mxu1 %v3318_v61 }
 0xea4   : >> { %3550 = vmatprep.subr.bf16.mxu1 %v6278_v2 }
 0xeaa   : >> { %v2577_v3 = vpop.permute.xlu0 %2576 }
 0xeab   : >> { %v2584_v63 = vsel %vm1978_vm5, %v2583_v62, %v2577_v3  ;;  %v3319_v62 = vcombine.low %v5732_v28, %v5734_v29 }
 0xead   : >> { %3551 = vmatpush3.bf16.msra.mxu1 %v3319_v62 }
 0xeb2   : >> { %v2581_v54 = vpop.permute.xlu1 %2580 }
 0xeb3   : >> { %v2585_v60 = vsel %vm1980_vm6, %v2584_v63, %v2581_v54  ;;  %v3323_v63 = vcombine.low %v5742_v33, %v5744_v34 }
 0xeb4   : >> { %v2586_v50 = vpack.c.bf16 %v2585_v60, %v2585_v60 }
 0xeb6   : >> { %3545 = vmatmul.mubr.msk.bf16.vlgmr.msra.gmra.mrb[36].mxu0 %vm1282_vm1, %v2586_v50 }
 0xeb7   : >> { %3564 = vmatprep.mubr.msk.bf16.mxu0 %vm4789_vm2, %v6278_v2 }
 0xf89   : >> { %v2642_v47 = vpop.f32.mrb[36].mxu0 }
 0xf8a   : >> { %v2643_v55 = vadd.f32 %v5726_v25, %v2642_v47  ;;  %v3546_v59 = vpop.f32.mrb[37].mxu0 }
 0xf8b   : >> { %v2645_v56 = vpop.f32.mrb[38].mxu0 }
 0xf8c   : >> { %v3547_v49 = vpop.f32.mrb[39].mxu0  ;;  %v2648_v51 = vadd.f32 %v2643_v55, %v5915_v52  ;;  %v3322_v52 = vcombine.low %v5738_v31, %v5740_v32 }
 0xf8e   : >> { %v2649_v53 = vsel %vm1282_vm1, %v2648_v51, 0.0  ;;  %3557 = vmatpush3.bf16.msra.mxu0 %v3322_v52 }
 0xf8f   : >> { %2650 = vadd.xlane.f32.xlu1 %v2649_v53  ;;  %3558 = vmatprep.subr.bf16.mxu0 %v6278_v2  ;;  %v3325_v53 = vcombine.low %v5750_v37, %v5752_v38 }
 0xf92   : >> { %3559 = vmatpush3.bf16.msra.mxu0 %v3323_v63 }
 0xf93   : >> { %3560 = vmatprep.subr.bf16.mxu0 %v6278_v2 }
0x101c   : >> { %v2651_v3 = vpop.xlane.xlu1 %2650 }
0x101d   : >> { %v2652_v0 = vmul.f32 0.03125, %v2651_v3 }
0x101f   : >> { %v2653_v45 = vsub.f32 %v2648_v51, %v2652_v0  ;;  %v3324_v51 = vcombine.low %v5746_v35, %v5748_v36 }
0x1021   : >> { %v2654_v1 = vmul.f32 %v2653_v45, %v2653_v45  ;;  %3561 = vmatpush3.bf16.msra.mxu0 %v3324_v51 }
0x1022   : >> { %3562 = vmatprep.subr.bf16.mxu0 %v6278_v2 }
0x1023   : >> { %v2655_v42 = vsel %vm1282_vm1, %v2654_v1, 0.0 }
0x1024   : >> { %2656 = vadd.xlane.f32.xlu0 %v2655_v42 }
0x1025   : >> { %3563 = vmatpush3.bf16.msra.mxu0 %v3325_v53 }
0x10b1   : >> { %v2657_v54 = vpop.xlane.xlu0 %2656 }
0x10b2   : >> { %v2658_v60 = vmul.f32 0.03125, %v2657_v54 }
0x10b4   : >> { %v2659_v50 = vadd.f32 1e-05, %v2658_v60 }
0x10b6   : >> { %3909 = vrsqrt.f32 %v2659_v50 }
0x10c0   : >> { %v3910_v47 = vpop.eup %3909 }
0x10c1   : >> { %v2661_v55 = vmul.f32 %v3910_v47, %v2653_v45 }
0x10c3   : >> { %v2668_v59 = vmul.f32 %v5758_v41, %v2661_v55 }
0x10c5   : >> { %v2675_v56 = vadd.f32 %v5764_v44, %v2668_v59 }
0x10c7   : >> { %v2676_v49 = vpack.c.bf16 %v2675_v56, %v2675_v56 }
0x10c9   : >> { %3553 = vmatmul.mubr.msk.bf16.vlgmr.msra.gmra.mrb[44].mxu1 %vm1282_vm1, %v2676_v49 }
0x119c   : >> { %v2732_v3 = vpop.f32.mrb[44].mxu1 }
0x119d   : >> { %v2733_v0 = vadd.f32 %v5736_v30, %v2732_v3  ;;  %v3554_v45 = vpop.f32.mrb[45].mxu1 }
0x119e   : >> { %v2735_v1 = vpop.f32.mrb[46].mxu1 }
0x119f   : >> { %v2738_v42 = vmax.f32 %v2733_v0, 0.0  ;;  %v3555_v61 = vpop.f32.mrb[47].mxu1 }
0x11a0   : >> { %v6279_v61 = vld [vmem:[#allocation67_spill] sm:$0xff] }
0x11a1   : >> { %v2739_v62 = vpack.c.bf16 %v2738_v42, %v2738_v42 }
0x11a3   : >> { %3565 = vmatmul.mubr.msk.bf16.vlgmr.msra.gmra.mrb[40].mxu0 %vm2770_vm7, %v2739_v62 }
0x1276   : >> { %v2808_v52 = vpop.f32.mrb[40].mxu0 }
0x1277   : >> { %v2809_v63 = vadd.f32 %v5754_v39, %v2808_v52  ;;  %v3566_v54 = vpop.f32.mrb[41].mxu0  ;;  %v6280_v52 = vld [vmem:[#allocation68_spill] sm:$0xff] }
0x1278   : >> { %v2811_v60 = vpop.f32.mrb[42].mxu0 }
0x1279   : >> { %v3567_v2 = vpop.f32.mrb[43].mxu0  ;;  %v2814_v50 = vadd.f32 %v2809_v63, %v2675_v56 }
0x127b   : >> { %v2815_v47 = vsel %vm1282_vm1, %v2814_v50, 0.0 }
0x127c   : >> { %2816 = vadd.xlane.f32.xlu0 %v2815_v47 }
0x1309   : >> { %v2817_v55 = vpop.xlane.xlu0 %2816 }
0x130a   : >> { %v2818_v59 = vmul.f32 0.03125, %v2817_v55 }
0x130c   : >> { %v2819_v49 = vsub.f32 %v2814_v50, %v2818_v59 }
0x130e   : >> { %v2820_v51 = vmul.f32 %v2819_v49, %v2819_v49 }
0x1310   : >> { %v2821_v53 = vsel %vm1282_vm1, %v2820_v51, 0.0 }
0x1311   : >> { %2822 = vadd.xlane.f32.xlu1 %v2821_v53 }
0x139e   : >> { %v2823_v3 = vpop.xlane.xlu1 %2822 }
0x139f   : >> { %v2824_v0 = vmul.f32 0.03125, %v2823_v3 }
0x13a1   : >> { %v2825_v45 = vadd.f32 1e-05, %v2824_v0 }
0x13a3   : >> { %3911 = vrsqrt.f32 %v2825_v45 }
0x13ad   : >> { %v3912_v1 = vpop.eup %3911 }
0x13ae   : >> { %v2827_v42 = vmul.f32 %v3912_v1, %v2819_v49  ;;  %1395 = sbr.rel (!%p1393_p5) target bundleno = 1070 (0x42e), region = 300 }
0x13b0   : >> { %v2834_v62 = vmul.f32 %v6279_v61, %v2827_v42 }
0x13b2   : >> { %v2841_v56 = vadd.f32 %v6280_v52, %v2834_v62  }
0x13b4   : >> { %v6281_v47 = vmov %v2841_v56  ;;  %2842 = vst.msk [vmem:[%s1196_s27] sm:$0xff] (%p1393_p5), %vm1282_vm1, %v2841_v56 }
0x13b5   : > { %4636 = shalt.err (!%p4633_p4)
}
0x13b6   : > { %s4637_s0 = scalar_lea.hbm %s6039_s9, 128  ;;  %s4641_s13 = scalar_lea.hbm %s6284_s28, 256 }
0x13b7   : > { %p4638_p2 = scmp.ne.s32.totalorder %s6039_s9, %s4637_s0  ;;  %p4642_p3 = scmp.lt.u32.totalorder %s6039_s9, %s6284_s28 }
0x13b8   : > { %p4643_p1 = scmp.lt.u32.totalorder %s4641_s13, %s4637_s0  ;;  %p4645_p9 = scmp.lt.u32.totalorder %s4637_s0, %s6039_s9 }
0x13b9   : > { %p4639_p13 = pnand %p4638_p2, %p6285_p0 }
0x13ba   : > { %p4644_p5 = por %p4643_p1, %p4642_p3 }
0x13bb   : > { %p4640_p10 = pneg %p4639_p13 }
0x13bc   : > { %p4646_p6 = por %p4645_p9, %p4644_p5 }
0x13be   : > { %p4647_p11 = pnand %p4646_p6, %p4640_p10 }
0x13c0   : > { %4650 = shalt.err (!%p4647_p11)
}
0x13c1   : > { %3658 = dma.vmem_to_hbm [thread:$0]  (%p6285_p0), %s2858_s3, 128, %s6039_s9, %s2844_s29  }
0x13c2 PF: > { %s6286_s8 = sld [smem:[#allocation56_spill]]  ;;  %s6287_s6 = sld [smem:[#allocation63_spill]] }
0x13c3   : > { %p6289_p8 = scmp.ge.s32.totalorder %s4745_s30, 2 }
0x13c8   : > { %s2869_s5 = sand.u32 1, %s6286_s8   ;;  %p6288_p12 = scmp.ne.s32.totalorder %s6287_s6, 0 }
0x13c9   : > { %s2870_s15 = scalar_lea.sflag [#allocation4], %s2869_s5 }
0x13ca   : > { %p3738_p7 = pnand %p6289_p8, %p6288_p12 }
0x13cc   : > { %4728 = dma.done.wait (!%p3738_p7), %s2870_s15, 128  }
0x13cd   : > { %4730 = vsyncadd (!%p3738_p7), %s2870_s15, 4294967168  ;;  %s6290_s30 = sld [smem:[#allocation60_spill]]  ;;  %s6291_s19 = sld [smem:[#allocation57_spill]] }
0x13ce   : > { %s6292_s6 = sld [smem:[#allocation61_spill]]  ;;  %s6293_s29 = smov %s4737_s2 }
0x13d3   : > { %p54_p4 = scmp.ge.s32.totalorder %s6290_s30, 4   ;;  %s6294_s2 = smov %s6291_s19 }
0x13d5   :  { %56 = sbr.rel (!%p54_p4) target bundleno = 46 (0x2e), region = 311 }
0x13dc   :  { %2875 = vsyncpa [#allocation3], 1 }
0x13dd   :  { %2877 = vsyncpa [#allocation3 + $0x1], 1 }
0x13de   :  { %2878 = vsyncpa [#allocation6], 1 }
0x13df   :  { %2880 = vsyncpa [#allocation6 + $0x1], 1 }
0x13e0   :  { %2881 = vsyncpa [#allocation9], 1 }
0x13e1   :  { %2883 = vsyncpa [#allocation9 + $0x1], 1 }
0x13e2   :  { %2884 = vsyncpa [#allocation12], 1 }
0x13e3   :  { %2885 = vsyncpa [#allocation15], 1 }
0x13e4   :  { %2886 = vsyncpa [#allocation18], 1 }
0x13e5   :  { %2887 = vsyncpa [#allocation21], 1 }
0x13e6   :  { %2888 = vsyncpa [#allocation24], 1 }
0x13e7   :  { %2889 = vsyncpa [#allocation27], 1 }
0x13e8   :  { %2890 = vsyncpa [#allocation30], 1 }
0x13e9   :  { %2891 = vsyncpa [#allocation33], 1 }
0x13ea   :  { %2892 = vsyncpa [#allocation36], 1 }
0x13eb   :  { %2893 = vsyncpa [#allocation39], 1 }
0x13ec   :  { %2894 = vsyncpa [#allocation4], 1 }
0x13ed   :  { %2896 = vsyncpa [#allocation4 + $0x1], 1 }

</bundles_post_ra>
